<compile_context>
chip_gen: v7x
topology: tpu7x:2x2x1
jax: 0.10.0
libtpu: 0.0.40
codegen_flags: <defaults>
</compile_context>

<pallas_src>
import functools
import math

import jax
import jax.numpy as jnp
from jax.experimental import pallas as pl
from jax.experimental.pallas import tpu as pltpu


# Padded-input row/col offsets read by the two pre-summed taps of each output
# sub-pixel phase: even phase reads offsets (0, 1), odd phase reads (1, 2).
_PHASE_OFF = ((0, 1), (1, 2))
_N_TAPS = 16   # 4 phases x (2 row-taps x 2 col-taps) pre-summed weight blocks


def _upsample_conv_kernel(x_ref, w_ref, b_ref, o_ref, z_ref, *, wp, tm):
    """Fused nearest-2x upsample + 3x3/s1/p1 conv for one (batch, row-tile, Co-tile).

    x_ref: (1, 1, np_t, Cin)  zero-padded input rows of this tile (with halo),
                              spatially flattened, flat row stride wp.
    w_ref: (Cin, 16*Cot)      16 pre-summed per-(phase, tap) weight matrices
                              concatenated along the lane (Cout) dim.
    b_ref: (1, Cot)           bias.
    o_ref: (1, 4, tm, Cot)    4 phase planes (index 2*py + px), tm = th*wp.
    z_ref: (np_t, 16*Cot)     scratch holding the single wide matmul result.
    """
    co = o_ref.shape[3]

    # One wide MXU matmul covering all 16 taps.
    z_ref[...] = jnp.dot(x_ref[0, 0], w_ref[...],
                         preferred_element_type=jnp.float32)

    bias = b_ref[...]                                   # (1, co), broadcasts
    for py in range(2):
        for px in range(2):
            ph = 2 * py + px
            acc = None
            for i in range(2):
                for j in range(2):
                    tap = ph * 4 + 2 * i + j
                    off = _PHASE_OFF[py][i] * wp + _PHASE_OFF[px][j]
                    zt = z_ref[off:off + tm, tap * co:(tap + 1) * co]
                    acc = zt if acc is None else acc + zt
            # One fused elementwise pass per phase, bias folded in, single
            # dense (tm, co) store.
            o_ref[0, ph, :, :] = acc + bias


def _est_vmem_bytes(th, wp, cin, co_tile):
    np_t = (th + 3) * wp
    tm = th * wp
    return 4 * (2 * np_t * cin                  # x block (double-buffered)
                + 2 * cin * _N_TAPS * co_tile   # weight block (double-buffered)
                + 2 * co_tile                   # bias
                + 2 * 4 * tm * co_tile          # output block (double-buffered)
                + np_t * _N_TAPS * co_tile)     # z scratch


def _vmem_capacity_bytes():
    cap = 64 * 2 ** 20            # v7x per-core VMEM (smallest generation)
    try:
        cap = int(pltpu.get_tpu_info().vmem_capacity_bytes)
    except Exception:
        pass
    return cap


def _pick_co_tile(C, cap):
    # Only 128-multiples (lane-aligned blocks) are allowed when tiling Cout;
    # otherwise fall back to a single full-C tile.  256 only on big-VMEM chips.
    limit = 256 if cap >= 96 * 2 ** 20 else 128
    cands = [d for d in range(128, min(C, limit) + 1, 128) if C % d == 0]
    return max(cands) if cands else C


def _pick_row_tile(H, wp, cin, co_tile, cap):
    budget = min(cap // 2, 48 * 2 ** 20)        # ~32 MiB live on v7x, 48 on v5e/v6e
    th = H
    while th > 1 and _est_vmem_bytes(th, wp, cin, co_tile) > budget:
        th = (th + 1) // 2
    return th


@functools.partial(jax.jit, static_argnames=("co_tile", "row_tile"))
def upsample_forward(x, weight, bias, *, co_tile=None, row_tile=None):
    """UpSample.forward: nearest-2x upsample then 3x3 conv (NCHW in / NCHW out).

    x: (B, C, H, W); weight: (C, C, 3, 3) OIHW; bias: (C,).  Returns (B, C, 2H, 2W).
    """
    B, C, H, W = x.shape
    cap = _vmem_capacity_bytes()

    # Padded row stride: >= W+2 and a multiple of 8 (sublane-aligned row-phase
    # offsets, dense output stores).
    wp = ((W + 2 + 7) // 8) * 8

    if co_tile is None:
        co_tile = _pick_co_tile(C, cap)
    assert C % co_tile == 0 and (co_tile == C or co_tile % 128 == 0), (C, co_tile)
    n_co = C // co_tile

    if row_tile is None:
        row_tile = _pick_row_tile(H, wp, C, co_tile, cap)
    th = max(1, min(int(row_tile), H))
    n_t = -(-H // th)
    H2 = n_t * th                     # input rows incl. bottom garbage rows
    np_t = (th + 3) * wp
    tm = th * wp

    # ---- input layout (one input-sized XLA copy) ---------------------------
    # NCHW -> NHWC, zero pad (top=1, bottom=H2-H+2, left=1, right=wp-W-1), then
    # gather per-row-tile windows (th + 3 padded rows each, i.e. the halo) and
    # flatten each tile's spatial dims so the kernel sees a (spatial, Cin)
    # matmul operand.
    xt = jnp.transpose(x, (0, 2, 3, 1)).astype(jnp.float32)
    xp = jnp.pad(xt, ((0, 0), (1, H2 - H + 2), (1, wp - W - 1), (0, 0)))
    if n_t == 1:
        x_flat = xp.reshape(B, 1, np_t, C)
    else:
        row_idx = jnp.arange(n_t)[:, None] * th + jnp.arange(th + 3)[None, :]
        x_flat = jnp.take(xp, row_idx, axis=1).reshape(B, n_t, np_t, C)

    # ---- pre-summed per-phase 2x2 weights, concatenated along Cout ---------
    # Even output rows (py=0): conv taps kh=1,2 read the same input row -> sum;
    # odd rows (py=1): taps kh=0,1 sum.  Same for columns.
    A = jnp.array([[[1., 0., 0.], [0., 1., 1.]],
                   [[1., 1., 0.], [0., 0., 1.]]], dtype=jnp.float32)   # (phase, tap, k)
    wt = jnp.transpose(weight.astype(jnp.float32), (2, 3, 1, 0))       # (kh, kw, Ci, Co)
    wpt = jnp.einsum('aik,bjl,klcd->abijcd', A, A, wt)                 # (py, px, i, j, Ci, Co)
    w6 = jnp.transpose(wpt, (4, 0, 1, 2, 3, 5)).reshape(C, _N_TAPS, n_co, co_tile)
    w_wide = jnp.transpose(w6, (0, 2, 1, 3)).reshape(C, n_co * _N_TAPS * co_tile)
    b2 = bias.astype(jnp.float32).reshape(1, C)

    est = _est_vmem_bytes(th, wp, C, co_tile)
    vmem_limit = int(min(max(2 * est, 32 * 2 ** 20), (cap * 15) // 16))

    out_ph = pl.pallas_call(
        functools.partial(_upsample_conv_kernel, wp=wp, tm=tm),
        out_shape=jax.ShapeDtypeStruct((B, 4, H2 * wp, C), jnp.float32),
        grid=(B, n_t, n_co),
        in_specs=[
            pl.BlockSpec((1, 1, np_t, C), lambda b, t, j: (b, t, 0, 0)),
            pl.BlockSpec((C, _N_TAPS * co_tile), lambda b, t, j: (0, j)),
            pl.BlockSpec((1, co_tile), lambda b, t, j: (0, j)),
        ],
        out_specs=pl.BlockSpec((1, 4, tm, co_tile), lambda b, t, j: (b, 0, t, j)),
        scratch_shapes=[pltpu.VMEM((np_t, _N_TAPS * co_tile), jnp.float32)],
        compiler_params=pltpu.CompilerParams(
            dimension_semantics=("parallel", "parallel", "parallel"),
            vmem_limit_bytes=vmem_limit),
    )(x_flat, w_wide, b2)

    # ---- phase interleave + NHWC->NCHW: one fused output-sized copy --------
    o = out_ph.reshape(B, 2, 2, H2, wp, C)[:, :, :, :H, :W, :]   # (B, py, px, H, W, C)
    o = jnp.transpose(o, (0, 5, 3, 1, 4, 2))                      # (B, C, H, py, W, px)
    return o.reshape(B, C, 2 * H, 2 * W).astype(x.dtype)


def _reference(x, weight, bias):
    """Pure-JAX reference matching the PyTorch module exactly."""
    up = jnp.repeat(jnp.repeat(x, 2, axis=2), 2, axis=3)
    out = jax.lax.conv_general_dilated(
        up, weight, window_strides=(1, 1), padding=((1, 1), (1, 1)),
        dimension_numbers=("NCHW", "OIHW", "NCHW"),
        precision=jax.lax.Precision.HIGHEST)
    return out + bias[None, :, None, None]


if __name__ == "__main__":
    key = jax.random.PRNGKey(0)
    kx, kw, kb, kx2, kw2, kb2 = jax.random.split(key, 6)

    # UpSample(in_ch=4) on a (2, 4, 16, 16) input; xavier_uniform_ conv weight
    # (fan_in = fan_out = C*3*3) and a small nonzero bias to exercise the
    # folded-bias path (the module init uses zeros, which is a sub-case).
    B, C, H, W = 2, 4, 16, 16
    x = jax.random.normal(kx, (B, C, H, W), dtype=jnp.float32)
    bound = math.sqrt(6.0 / (2 * C * 9))
    weight = jax.random.uniform(kw, (C, C, 3, 3), jnp.float32, -bound, bound)
    bias = 0.1 * jax.random.normal(kb, (C,), dtype=jnp.float32)

    out = jax.block_until_ready(upsample_forward(x, weight, bias))
    ref = _reference(x, weight, bias)
    assert out.shape == (B, C, 2 * H, 2 * W)
    err = float(jnp.max(jnp.abs(out - ref)))
    assert err < 1e-4, err

    # Second (still small) config that exercises the tiled paths:
    # Cout tiling (co_tile=128, n_co=2) and row tiling with H % row_tile != 0.
    B2, C2, Hb, Wb = 1, 256, 8, 8
    x2 = jax.random.normal(kx2, (B2, C2, Hb, Wb), dtype=jnp.float32)
    bound2 = math.sqrt(6.0 / (2 * C2 * 9))
    weight2 = jax.random.uniform(kw2, (C2, C2, 3, 3), jnp.float32, -bound2, bound2)
    bias2 = 0.1 * jax.random.normal(kb2, (C2,), dtype=jnp.float32)

    out2 = jax.block_until_ready(
        upsample_forward(x2, weight2, bias2, co_tile=128, row_tile=3))
    ref2 = _reference(x2, weight2, bias2)
    assert out2.shape == (B2, C2, 2 * Hb, 2 * Wb)
    err2 = float(jnp.max(jnp.abs(out2 - ref2)))
    assert err2 < 1e-3, err2

    print("KERNEL_OK")
</pallas_src>

<mosaic_0001>
module attributes {stable_mosaic.version = 11 : i64} {
  func.func @_upsample_conv_kernel(%arg0: i32, %arg1: i32, %arg2: i32, %arg3: memref<1x1x456x4xf32, #tpu.memory_space<vmem>>, %arg4: memref<4x64xf32, #tpu.memory_space<vmem>>, %arg5: memref<1x4xf32, #tpu.memory_space<vmem>>, %arg6: memref<1x4x384x4xf32, #tpu.memory_space<vmem>>, %arg7: memref<456x64xf32, #tpu.memory_space<vmem>>) attributes {dimension_semantics = [#tpu.dimension_semantics<parallel>, #tpu.dimension_semantics<parallel>, #tpu.dimension_semantics<parallel>], iteration_bounds = array<i64: 2, 1, 1>, scalar_prefetch = 0 : i64, scratch_operands = 1 : i64, tpu.core_type = #tpu.core_type<tc>, window_params = [{transform_indices = @transform_0, window_bounds = array<i64: 1, 1, 456, 4>}, {transform_indices = @transform_1, window_bounds = array<i64: 4, 64>}, {transform_indices = @transform_2, window_bounds = array<i64: 1, 4>}, {transform_indices = @transform_3, window_bounds = array<i64: 1, 4, 384, 4>}]} {
    %c0 = arith.constant 0 : index
    %c0_0 = arith.constant 0 : index
    %c0_1 = arith.constant 0 : index
    %c0_2 = arith.constant 0 : index
    %0 = vector.load %arg3[%c0, %c0_0, %c0_1, %c0_2] : memref<1x1x456x4xf32, #tpu.memory_space<vmem>>, vector<1x1x456x4xf32>
    %1 = vector.shape_cast %0 : vector<1x1x456x4xf32> to vector<456x4xf32>
    %c0_3 = arith.constant 0 : index
    %c0_4 = arith.constant 0 : index
    %2 = vector.load %arg4[%c0_3, %c0_4] : memref<4x64xf32, #tpu.memory_space<vmem>>, vector<4x64xf32>
    %cst = arith.constant dense<0.000000e+00> : vector<456x64xf32>
    %3 = tpu.matmul %1, %2, %cst {dimension_numbers = #tpu.dot_dimension_numbers<[1], [0], [0], [1], [0, 0, 1, 1], [], []>} : vector<456x4xf32>, vector<4x64xf32>, vector<456x64xf32> -> vector<456x64xf32>
    %c0_5 = arith.constant 0 : index
    %c0_6 = arith.constant 0 : index
    %4 = vector.load %arg7[%c0_5, %c0_6] : memref<456x64xf32, #tpu.memory_space<vmem>>, vector<456x64xf32>
    tpu.vector_store %arg7[%c0_5, %c0_6], %3 {strides = array<i32>} : memref<456x64xf32, #tpu.memory_space<vmem>>, vector<456x64xf32>,
    %c0_7 = arith.constant 0 : index
    %c0_8 = arith.constant 0 : index
    %5 = vector.load %arg5[%c0_7, %c0_8] : memref<1x4xf32, #tpu.memory_space<vmem>>, vector<1x4xf32>
    %c0_9 = arith.constant 0 : index
    %c0_10 = arith.constant 0 : index
    %6 = vector.load %arg7[%c0_9, %c0_10] : memref<456x64xf32, #tpu.memory_space<vmem>>, vector<384x4xf32>
    %c1 = arith.constant 1 : index
    %c4 = arith.constant 4 : index
    %7 = vector.load %arg7[%c1, %c4] : memref<456x64xf32, #tpu.memory_space<vmem>>, vector<384x4xf32>
    %8 = arith.addf %6, %7 : vector<384x4xf32>
    %c24 = arith.constant 24 : index
    %c8 = arith.constant 8 : index
    %9 = vector.load %arg7[%c24, %c8] : memref<456x64xf32, #tpu.memory_space<vmem>>, vector<384x4xf32>
    %10 = arith.addf %8, %9 : vector<384x4xf32>
    %c25 = arith.constant 25 : index
    %c12 = arith.constant 12 : index
    %11 = vector.load %arg7[%c25, %c12] : memref<456x64xf32, #tpu.memory_space<vmem>>, vector<384x4xf32>
    %12 = arith.addf %10, %11 : vector<384x4xf32>
    %13 = vector.broadcast %5 : vector<1x4xf32> to vector<384x4xf32>
    %14 = arith.addf %12, %13 : vector<384x4xf32>
    %c0_11 = arith.constant 0 : index
    %c0_12 = arith.constant 0 : index
    %c0_13 = arith.constant 0 : index
    %c0_14 = arith.constant 0 : index
    %15 = vector.load %arg6[%c0_11, %c0_12, %c0_13, %c0_14] : memref<1x4x384x4xf32, #tpu.memory_space<vmem>>, vector<1x1x384x4xf32>
    %16 = vector.shape_cast %15 : vector<1x1x384x4xf32> to vector<384x4xf32>
    %17 = vector.shape_cast %14 : vector<384x4xf32> to vector<1x1x384x4xf32>
    tpu.vector_store %arg6[%c0_11, %c0_12, %c0_13, %c0_14], %17 {strides = array<i32>} : memref<1x4x384x4xf32, #tpu.memory_space<vmem>>, vector<1x1x384x4xf32>,
    %c1_15 = arith.constant 1 : index
    %c16 = arith.constant 16 : index
    %18 = vector.load %arg7[%c1_15, %c16] : memref<456x64xf32, #tpu.memory_space<vmem>>, vector<384x4xf32>
    %c2 = arith.constant 2 : index
    %c20 = arith.constant 20 : index
    %19 = vector.load %arg7[%c2, %c20] : memref<456x64xf32, #tpu.memory_space<vmem>>, vector<384x4xf32>
    %20 = arith.addf %18, %19 : vector<384x4xf32>
    %c25_16 = arith.constant 25 : index
    %c24_17 = arith.constant 24 : index
    %21 = vector.load %arg7[%c25_16, %c24_17] : memref<456x64xf32, #tpu.memory_space<vmem>>, vector<384x4xf32>
    %22 = arith.addf %20, %21 : vector<384x4xf32>
    %c26 = arith.constant 26 : index
    %c28 = arith.constant 28 : index
    %23 = vector.load %arg7[%c26, %c28] : memref<456x64xf32, #tpu.memory_space<vmem>>, vector<384x4xf32>
    %24 = arith.addf %22, %23 : vector<384x4xf32>
    %25 = vector.broadcast %5 : vector<1x4xf32> to vector<384x4xf32>
    %26 = arith.addf %24, %25 : vector<384x4xf32>
    %c0_18 = arith.constant 0 : index
    %c1_19 = arith.constant 1 : index
    %c0_20 = arith.constant 0 : index
    %c0_21 = arith.constant 0 : index
    %27 = vector.load %arg6[%c0_18, %c1_19, %c0_20, %c0_21] : memref<1x4x384x4xf32, #tpu.memory_space<vmem>>, vector<1x1x384x4xf32>
    %28 = vector.shape_cast %27 : vector<1x1x384x4xf32> to vector<384x4xf32>
    %29 = vector.shape_cast %26 : vector<384x4xf32> to vector<1x1x384x4xf32>
    tpu.vector_store %arg6[%c0_18, %c1_19, %c0_20, %c0_21], %29 {strides = array<i32>} : memref<1x4x384x4xf32, #tpu.memory_space<vmem>>, vector<1x1x384x4xf32>,
    %c24_22 = arith.constant 24 : index
    %c32 = arith.constant 32 : index
    %30 = vector.load %arg7[%c24_22, %c32] : memref<456x64xf32, #tpu.memory_space<vmem>>, vector<384x4xf32>
    %c25_23 = arith.constant 25 : index
    %c36 = arith.constant 36 : index
    %31 = vector.load %arg7[%c25_23, %c36] : memref<456x64xf32, #tpu.memory_space<vmem>>, vector<384x4xf32>
    %32 = arith.addf %30, %31 : vector<384x4xf32>
    %c48 = arith.constant 48 : index
    %c40 = arith.constant 40 : index
    %33 = vector.load %arg7[%c48, %c40] : memref<456x64xf32, #tpu.memory_space<vmem>>, vector<384x4xf32>
    %34 = arith.addf %32, %33 : vector<384x4xf32>
    %c49 = arith.constant 49 : index
    %c44 = arith.constant 44 : index
    %35 = vector.load %arg7[%c49, %c44] : memref<456x64xf32, #tpu.memory_space<vmem>>, vector<384x4xf32>
    %36 = arith.addf %34, %35 : vector<384x4xf32>
    %37 = vector.broadcast %5 : vector<1x4xf32> to vector<384x4xf32>
    %38 = arith.addf %36, %37 : vector<384x4xf32>
    %c0_24 = arith.constant 0 : index
    %c2_25 = arith.constant 2 : index
    %c0_26 = arith.constant 0 : index
    %c0_27 = arith.constant 0 : index
    %39 = vector.load %arg6[%c0_24, %c2_25, %c0_26, %c0_27] : memref<1x4x384x4xf32, #tpu.memory_space<vmem>>, vector<1x1x384x4xf32>
    %40 = vector.shape_cast %39 : vector<1x1x384x4xf32> to vector<384x4xf32>
    %41 = vector.shape_cast %38 : vector<384x4xf32> to vector<1x1x384x4xf32>
    tpu.vector_store %arg6[%c0_24, %c2_25, %c0_26, %c0_27], %41 {strides = array<i32>} : memref<1x4x384x4xf32, #tpu.memory_space<vmem>>, vector<1x1x384x4xf32>,
    %c25_28 = arith.constant 25 : index
    %c48_29 = arith.constant 48 : index
    %42 = vector.load %arg7[%c25_28, %c48_29] : memref<456x64xf32, #tpu.memory_space<vmem>>, vector<384x4xf32>
    %c26_30 = arith.constant 26 : index
    %c52 = arith.constant 52 : index
    %43 = vector.load %arg7[%c26_30, %c52] : memref<456x64xf32, #tpu.memory_space<vmem>>, vector<384x4xf32>
    %44 = arith.addf %42, %43 : vector<384x4xf32>
    %c49_31 = arith.constant 49 : index
    %c56 = arith.constant 56 : index
    %45 = vector.load %arg7[%c49_31, %c56] : memref<456x64xf32, #tpu.memory_space<vmem>>, vector<384x4xf32>
    %46 = arith.addf %44, %45 : vector<384x4xf32>
    %c50 = arith.constant 50 : index
    %c60 = arith.constant 60 : index
    %47 = vector.load %arg7[%c50, %c60] : memref<456x64xf32, #tpu.memory_space<vmem>>, vector<384x4xf32>
    %48 = arith.addf %46, %47 : vector<384x4xf32>
    %49 = vector.broadcast %5 : vector<1x4xf32> to vector<384x4xf32>
    %50 = arith.addf %48, %49 : vector<384x4xf32>
    %c0_32 = arith.constant 0 : index
    %c3 = arith.constant 3 : index
    %c0_33 = arith.constant 0 : index
    %c0_34 = arith.constant 0 : index
    %51 = vector.load %arg6[%c0_32, %c3, %c0_33, %c0_34] : memref<1x4x384x4xf32, #tpu.memory_space<vmem>>, vector<1x1x384x4xf32>
    %52 = vector.shape_cast %51 : vector<1x1x384x4xf32> to vector<384x4xf32>
    %53 = vector.shape_cast %50 : vector<384x4xf32> to vector<1x1x384x4xf32>
    tpu.vector_store %arg6[%c0_32, %c3, %c0_33, %c0_34], %53 {strides = array<i32>} : memref<1x4x384x4xf32, #tpu.memory_space<vmem>>, vector<1x1x384x4xf32>,
    return
  }
  func.func @transform_0(%arg0: i32, %arg1: i32, %arg2: i32) -> (i32, i32, i32, i32) {
    %c0_i32 = arith.constant 0 : i32
    %c0_i32_0 = arith.constant 0 : i32
    %c0_i32_1 = arith.constant 0 : i32
    return %arg0, %arg1, %c0_i32, %c0_i32_0 : i32, i32, i32, i32
  }
  func.func @transform_1(%arg0: i32, %arg1: i32, %arg2: i32) -> (i32, i32) {
    %c0_i32 = arith.constant 0 : i32
    %c0_i32_0 = arith.constant 0 : i32
    return %c0_i32, %arg2 : i32, i32
  }
  func.func @transform_2(%arg0: i32, %arg1: i32, %arg2: i32) -> (i32, i32) {
    %c0_i32 = arith.constant 0 : i32
    %c0_i32_0 = arith.constant 0 : i32
    return %c0_i32, %arg2 : i32, i32
  }
  func.func @transform_3(%arg0: i32, %arg1: i32, %arg2: i32) -> (i32, i32, i32, i32) {
    %c0_i32 = arith.constant 0 : i32
    %c0_i32_0 = arith.constant 0 : i32
    return %arg0, %c0_i32, %arg1, %arg2 : i32, i32, i32, i32
  }
}

</mosaic_0001>

<bundles_post_ra>
// kernel: upsample_forward.1
= control target key start
LH: loop header
LB: loop body
LE: loop exit
PB: predicated region body
PF: predicated region fallthrough
CT: control target
= control target key end

     0   :  { %8 = vsyncpa [#allocation4], 0  ;;  %s5752_s12 = smov 0   ;;  %s5754_s13 = smov 0   ;;  %s9947_s0 = inlined_call_operand.vmem [shape: f32[2,1,456,4], index: 0, kind: input, shape index: {}]   ;;  %s9948_s1 = inlined_call_operand.vmem [shape: f32[4,64], index: 1, kind: input, shape index: {}]   ;;  %s9949_s2 = inlined_call_operand.hbm [shape: f32[1,4], index: 2, kind: input, shape index: {}]   ;;  %s9950_s3 = inlined_call_operand.vmem [shape: f32[2,4,384,4], index: 3, kind: output, shape index: {}]  }
   0x1   :  { %s5756_s14 = smov 0  }
   0x2 LB: > { %s5121_s15 = sadd.s32 4294967295, %s5718_s14   ;;  %s33_s16 = sadd.s32 1, %s5714_s13  ;;  %s5718_s14 = sphi %s5756_s14, %s14_s14   ;;  %s5714_s13 = sphi %s5754_s13, %s10783_s13   ;;  %s5710_s12 = sphi %s5752_s12, %s10782_s12  }
   0x3   : > { %p35_p0 = scmp.ge.s32.totalorder %s33_s16, 2  ;;  %p5123_p1 = scmp.ge.s32.totalorder %s5718_s14, 1 }
   0x4   : > { %p148_p2 = scmp.lt.s32.totalorder %s5718_s14, 3  ;;  %p5777_p4 = scmp.eq.s32.totalorder %s5121_s15, 0 }
   0x5   : > { %s10785_s16 = smov (%p35_p0, %s33_s16), 0  ;;  %s5720_s19 = smov [#allocation3]  }
   0x6   : > { %p5773_p3 = pnand %p5123_p1, %p148_p2  ;;  %s170_s20 = sshll.u32 %s5720_s19, 4  ;;  %s171_s20 = int_to_ptr.vmem [resolvable:$true] %s170_s20 }
   0x7   : > { %s10086_s18 = scalar_select %p5777_p4, 1, 0 }
   0x8   : > { %s10085_s17 = scalar_select %p5773_p3, 1, 0 }
   0x9   : > { %p5575_p5 = pneg %p5773_p3  ;;  %s5664_s24 = scalar_lea.hbm %s9949_s2, 16 }
   0xa   : > { %p5665_p7 = scmp.ne.s32.totalorder %s9949_s2, %s5664_s24  ;;  %p5671_p11 = scmp.lt.u32.totalorder %s5664_s24, %s9949_s2 }
   0xb   : > { %p5785_p6 = pnand %p5777_p4, %p5575_p5 }
   0xd   : > { %p5666_p8 = pneg %p5785_p6 }
   0xf   : > { %p5667_p9 = pnand %p5666_p8, %p5665_p7 }
  0x11   : > { %p5668_p10 = pneg %p5667_p9 }
  0x13   : > { %p5673_p12 = pnand %p5671_p11, %p5668_p10 }
  0x15   : > { %5676 = shalt.err (!%p5673_p12)
}
  0x16   : > { %s5677_s29 = scalar_lea.vmem %s171_s20, 16  ;;  %s5684_s30 = scalar_lea.vmem %s171_s20, 32 }
  0x17   : > { %p5678_p13 = scmp.ne.s32.totalorder %s171_s20, %s5677_s29  ;;  %p5685_p2 = scmp.lt.s32.totalorder %s171_s20, %s171_s20 }
  0x18   : > { %p5686_p5 = scmp.lt.s32.totalorder %s5684_s30, %s5677_s29 }
  0x19   : > { %p5680_p0 = pnand %p5678_p13, %p5666_p8 }
  0x1a   : > { %p5687_p4 = por %p5686_p5, %p5685_p2 }
  0x1b   : > { %p5681_p1 = pneg %p5680_p0 }
  0x1d   : > { %p5688_p3 = pnand %p5687_p4, %p5681_p1 }
  0x1f   : > { %5691 = shalt.err (!%p5688_p3)
}
  0x20   : > { %5578 = dma.hbm_to_vmem [thread:$0]  (!%p5785_p6), %s9949_s2, 16, %s171_s20, [#allocation4]  }
  0x21   : > { %p10088_p7 = scmp.ne.s32.totalorder %s10085_s17, 0 }
  0x23   : > { %195 = sbr.rel (%p10088_p7) target bundleno = 2175 (0x87f), region = 32 }
  0x2a   : > { %p10089_p9 = scmp.ne.s32.totalorder %s10086_s18, 0 }
  0x2c   : > { %5705 = dma.done.wait (%p10089_p9), [#allocation4], 16  }
  0x2d   : > { %5707 = vsyncadd (%p10089_p9), [#allocation4], 4294967280  ;;  %p234_p8 = scmp.lt.s32.totalorder %s5710_s12, 1  ;;  %v9954_v0 = vmov 0.0   ;;  %vm5722_vm0 = vmmov 0   ;;  %vm490_vm1 = vcmask 1043456  }
  0x2e   : > { %5394 = vmatprep.subr.mxu0 %v9954_v0  ;;  %5567 = vmatprep.subr.mxu1 %v9954_v0  ;;  %vm318_vm2 = vcmask 31744   ;;  %v317_v1 = vld [vmem:[%s9948_s1] sm:$0xf]  ;;  %vm844_vm3 = vcmask 523264   ;;  %s5723_s15 = smov 120   ;;  %s5724_s17 = smov 124  }
  0x2f   : > { %5396 = vmatprep.mubr.msk.f32.mxu0 %vm5722_vm0, %v9954_v0  ;;  %5483 = vmatprep.mubr.msk.f32.mxu1 %vm5722_vm0, %v9954_v0  ;;  %s10787_s12 = smov (!%p234_p8, %s5710_s12), 1  ;;  %s5725_s18 = smov 116  }
  0x30   : > { %s5569_s6 = smul.u32 456, %s10787_s12  ;;  %5395 = vmatpush3.msk.msra.mxu0 %vm490_vm1, %v317_v1  ;;  %5568 = vmatpush3.msk.msra.mxu1 %vm490_vm1, %v317_v1  ;;  %s5727_s23 = smov 112  }
  0x31   : > { %s5570_s19 = smul.u32 1536, %s10787_s12  ;;  %s5726_s12 = smov 16  }
  0x32   : > { %s5825_s9 = scalar_lea.vmem %s9947_s0, %s5569_s6  ;;  %s5728_s24 = smov 32  }
  0x33   : > { %v260_v2 = vld [vmem:[%s5825_s9] sm:$0xff]  ;;  %v289_v3 = vld [vmem:[%s5825_s9 + $0xe8] sm:$0xff]  ;;  %v290_v5 = vld [vmem:[%s5825_s9 + $0xf0] sm:$0xff]  ;;  %s6276_s22 = scalar_lea.vmem %s9950_s3, %s5570_s19  ;;  %s5729_s25 = smov 96  }
  0x34   : > { %5397 = vmatmul.mubr.msk.f32.vlgmr.msra.gmra.mrb[0].mxu0 %vm318_vm2, %v260_v2  ;;  %5484 = vmatmul.mubr.msk.f32.vlgmr.msra.gmra.mrb[0].mxu1 %vm318_vm2, %v289_v3  ;;  %v261_v4 = vld [vmem:[%s5825_s9 + $0x8] sm:$0xff]  ;;  %v262_v6 = vld [vmem:[%s5825_s9 + $0x10] sm:$0xff]  ;;  %v291_v7 = vld [vmem:[%s5825_s9 + $0xf8] sm:$0xff]  ;;  %s5730_s26 = smov 48   ;;  %s5731_s27 = smov 80  }
  0x35   : > { %5399 = vmatprep.mubr.msk.f32.mxu0 %vm5722_vm0, %v9954_v0  ;;  %5486 = vmatprep.mubr.msk.f32.mxu1 %vm5722_vm0, %v9954_v0  ;;  %v263_v8 = vld [vmem:[%s5825_s9 + $0x18] sm:$0xff]  ;;  %v292_v9 = vld [vmem:[%s5825_s9 + $0x100] sm:$0xff]  ;;  %v293_v11 = vld [vmem:[%s5825_s9 + $0x108] sm:$0xff] }
  0x36   : > { %v264_v10 = vld [vmem:[%s5825_s9 + $0x20] sm:$0xff]  ;;  %v265_v12 = vld [vmem:[%s5825_s9 + $0x28] sm:$0xff]  ;;  %v294_v13 = vld [vmem:[%s5825_s9 + $0x110] sm:$0xff] }
  0x37   : > { %v266_v14 = vld [vmem:[%s5825_s9 + $0x30] sm:$0xff]  ;;  %v295_v15 = vld [vmem:[%s5825_s9 + $0x118] sm:$0xff]  ;;  %v296_v17 = vld [vmem:[%s5825_s9 + $0x120] sm:$0xff] }
  0x38   : > { %5400 = vmatmul.mubr.msk.f32.gmra.mrb[2].mxu0 %vm318_vm2, %v261_v4  ;;  %5487 = vmatmul.mubr.msk.f32.gmra.mrb[2].mxu1 %vm318_vm2, %v290_v5  ;;  %v267_v16 = vld [vmem:[%s5825_s9 + $0x38] sm:$0xff]  ;;  %v268_v18 = vld [vmem:[%s5825_s9 + $0x40] sm:$0xff]  ;;  %v297_v19 = vld [vmem:[%s5825_s9 + $0x128] sm:$0xff] }
  0x39   : > { %5402 = vmatprep.mubr.msk.f32.mxu0 %vm5722_vm0, %v9954_v0  ;;  %5489 = vmatprep.mubr.msk.f32.mxu1 %vm5722_vm0, %v9954_v0  ;;  %v269_v20 = vld [vmem:[%s5825_s9 + $0x48] sm:$0xff]  ;;  %v298_v21 = vld [vmem:[%s5825_s9 + $0x130] sm:$0xff]  ;;  %v299_v23 = vld [vmem:[%s5825_s9 + $0x138] sm:$0xff] }
  0x3a   : > { %v270_v22 = vld [vmem:[%s5825_s9 + $0x50] sm:$0xff]  ;;  %v271_v24 = vld [vmem:[%s5825_s9 + $0x58] sm:$0xff]  ;;  %v300_v25 = vld [vmem:[%s5825_s9 + $0x140] sm:$0xff] }
  0x3b   : > { %v272_v26 = vld [vmem:[%s5825_s9 + $0x60] sm:$0xff]  ;;  %v301_v27 = vld [vmem:[%s5825_s9 + $0x148] sm:$0xff]  ;;  %v302_v29 = vld [vmem:[%s5825_s9 + $0x150] sm:$0xff] }
  0x3c   : > { %5403 = vmatmul.mubr.msk.f32.gmra.mrb[4].mxu0 %vm318_vm2, %v262_v6  ;;  %5490 = vmatmul.mubr.msk.f32.gmra.mrb[4].mxu1 %vm318_vm2, %v291_v7  ;;  %v273_v28 = vld [vmem:[%s5825_s9 + $0x68] sm:$0xff]  ;;  %v274_v30 = vld [vmem:[%s5825_s9 + $0x70] sm:$0xff]  ;;  %v303_v31 = vld [vmem:[%s5825_s9 + $0x158] sm:$0xff] }
  0x3d   : > { %5405 = vmatprep.mubr.msk.f32.mxu0 %vm5722_vm0, %v9954_v0  ;;  %5492 = vmatprep.mubr.msk.f32.mxu1 %vm5722_vm0, %v9954_v0  ;;  %v275_v32 = vld [vmem:[%s5825_s9 + $0x78] sm:$0xff]  ;;  %v304_v33 = vld [vmem:[%s5825_s9 + $0x160] sm:$0xff]  ;;  %v305_v35 = vld [vmem:[%s5825_s9 + $0x168] sm:$0xff] }
  0x3e   : > { %v276_v34 = vld [vmem:[%s5825_s9 + $0x80] sm:$0xff]  ;;  %v277_v36 = vld [vmem:[%s5825_s9 + $0x88] sm:$0xff]  ;;  %v306_v37 = vld [vmem:[%s5825_s9 + $0x170] sm:$0xff] }
  0x3f   : > { %v278_v38 = vld [vmem:[%s5825_s9 + $0x90] sm:$0xff]  ;;  %v279_v39 = vld [vmem:[%s5825_s9 + $0x98] sm:$0xff]  ;;  %v280_v40 = vld [vmem:[%s5825_s9 + $0xa0] sm:$0xff] }
  0x40   : > { %5406 = vmatmul.mubr.msk.f32.gmra.mrb[6].mxu0 %vm318_vm2, %v263_v8  ;;  %5493 = vmatmul.mubr.msk.f32.gmra.mrb[6].mxu1 %vm318_vm2, %v292_v9  ;;  %v281_v41 = vld [vmem:[%s5825_s9 + $0xa8] sm:$0xff]  ;;  %v282_v42 = vld [vmem:[%s5825_s9 + $0xb0] sm:$0xff]  ;;  %v283_v43 = vld [vmem:[%s5825_s9 + $0xb8] sm:$0xff] }
  0x41   : > { %5408 = vmatprep.mubr.msk.f32.mxu0 %vm5722_vm0, %v9954_v0  ;;  %5495 = vmatprep.mubr.msk.f32.mxu1 %vm5722_vm0, %v9954_v0  ;;  %v284_v44 = vld [vmem:[%s5825_s9 + $0xc0] sm:$0xff]  ;;  %v307_v45 = vld [vmem:[%s5825_s9 + $0x178] sm:$0xff]  ;;  %v285_v46 = vld [vmem:[%s5825_s9 + $0xc8] sm:$0xff] }
  0x42   : > { %v286_v47 = vld [vmem:[%s5825_s9 + $0xd0] sm:$0xff]  ;;  %v308_v48 = vld [vmem:[%s5825_s9 + $0x180] sm:$0xff]  ;;  %v287_v49 = vld [vmem:[%s5825_s9 + $0xd8] sm:$0xff] }
  0x43   : > { %v288_v50 = vld [vmem:[%s5825_s9 + $0xe0] sm:$0xff]  ;;  %v309_v51 = vld [vmem:[%s5825_s9 + $0x188] sm:$0xff]  ;;  %v310_v52 = vld [vmem:[%s5825_s9 + $0x190] sm:$0xff] }
  0x44   : > { %5409 = vmatmul.mubr.msk.f32.gmra.mrb[8].mxu0 %vm318_vm2, %v264_v10  ;;  %5496 = vmatmul.mubr.msk.f32.gmra.mrb[8].mxu1 %vm318_vm2, %v293_v11  ;;  %v311_v53 = vld [vmem:[%s5825_s9 + $0x198] sm:$0xff] }
  0x45   : > { %5411 = vmatprep.mubr.msk.f32.mxu0 %vm5722_vm0, %v9954_v0  ;;  %5498 = vmatprep.mubr.msk.f32.mxu1 %vm5722_vm0, %v9954_v0 }
  0x48   : > { %5412 = vmatmul.mubr.msk.f32.gmra.mrb[10].mxu0 %vm318_vm2, %v265_v12  ;;  %5499 = vmatmul.mubr.msk.f32.gmra.mrb[10].mxu1 %vm318_vm2, %v294_v13 }
  0x49   : > { %5414 = vmatprep.mubr.msk.f32.mxu0 %vm5722_vm0, %v9954_v0  ;;  %5501 = vmatprep.mubr.msk.f32.mxu1 %vm5722_vm0, %v9954_v0 }
  0x4c   : > { %5415 = vmatmul.mubr.msk.f32.gmra.mrb[12].mxu0 %vm318_vm2, %v266_v14  ;;  %5502 = vmatmul.mubr.msk.f32.gmra.mrb[12].mxu1 %vm318_vm2, %v295_v15 }
  0x4d   : > { %5417 = vmatprep.mubr.msk.f32.mxu0 %vm5722_vm0, %v9954_v0  ;;  %5504 = vmatprep.mubr.msk.f32.mxu1 %vm5722_vm0, %v9954_v0 }
  0x50   : > { %5418 = vmatmul.mubr.msk.f32.gmra.mrb[14].mxu0 %vm318_vm2, %v267_v16  ;;  %5505 = vmatmul.mubr.msk.f32.gmra.mrb[14].mxu1 %vm318_vm2, %v296_v17 }
  0x51   : > { %5420 = vmatprep.mubr.msk.f32.mxu0 %vm5722_vm0, %v9954_v0  ;;  %5507 = vmatprep.mubr.msk.f32.mxu1 %vm5722_vm0, %v9954_v0 }
  0x54   : > { %5421 = vmatmul.mubr.msk.f32.gmra.mrb[16].mxu0 %vm318_vm2, %v268_v18  ;;  %5508 = vmatmul.mubr.msk.f32.gmra.mrb[16].mxu1 %vm318_vm2, %v297_v19 }
  0x55   : > { %5423 = vmatprep.mubr.msk.f32.mxu0 %vm5722_vm0, %v9954_v0  ;;  %5510 = vmatprep.mubr.msk.f32.mxu1 %vm5722_vm0, %v9954_v0 }
  0x58   : > { %5424 = vmatmul.mubr.msk.f32.gmra.mrb[18].mxu0 %vm318_vm2, %v269_v20  ;;  %5511 = vmatmul.mubr.msk.f32.gmra.mrb[18].mxu1 %vm318_vm2, %v298_v21 }
  0x59   : > { %5426 = vmatprep.mubr.msk.f32.mxu0 %vm5722_vm0, %v9954_v0  ;;  %5513 = vmatprep.mubr.msk.f32.mxu1 %vm5722_vm0, %v9954_v0 }
  0x5c   : > { %5427 = vmatmul.mubr.msk.f32.gmra.mrb[20].mxu0 %vm318_vm2, %v270_v22  ;;  %5514 = vmatmul.mubr.msk.f32.gmra.mrb[20].mxu1 %vm318_vm2, %v299_v23 }
  0x5d   : > { %5429 = vmatprep.mubr.msk.f32.mxu0 %vm5722_vm0, %v9954_v0  ;;  %5516 = vmatprep.mubr.msk.f32.mxu1 %vm5722_vm0, %v9954_v0 }
  0x60   : > { %5430 = vmatmul.mubr.msk.f32.gmra.mrb[22].mxu0 %vm318_vm2, %v271_v24  ;;  %5517 = vmatmul.mubr.msk.f32.gmra.mrb[22].mxu1 %vm318_vm2, %v300_v25 }
  0x61   : > { %5432 = vmatprep.mubr.msk.f32.mxu0 %vm5722_vm0, %v9954_v0  ;;  %5519 = vmatprep.mubr.msk.f32.mxu1 %vm5722_vm0, %v9954_v0 }
  0x64   : > { %5433 = vmatmul.mubr.msk.f32.gmra.mrb[24].mxu0 %vm318_vm2, %v272_v26  ;;  %5520 = vmatmul.mubr.msk.f32.gmra.mrb[24].mxu1 %vm318_vm2, %v301_v27 }
  0x65   : > { %5435 = vmatprep.mubr.msk.f32.mxu0 %vm5722_vm0, %v9954_v0  ;;  %5522 = vmatprep.mubr.msk.f32.mxu1 %vm5722_vm0, %v9954_v0 }
  0x68   : > { %5436 = vmatmul.mubr.msk.f32.gmra.mrb[26].mxu0 %vm318_vm2, %v273_v28  ;;  %5523 = vmatmul.mubr.msk.f32.gmra.mrb[26].mxu1 %vm318_vm2, %v302_v29 }
  0x69   : > { %5438 = vmatprep.mubr.msk.f32.mxu0 %vm5722_vm0, %v9954_v0  ;;  %5525 = vmatprep.mubr.msk.f32.mxu1 %vm5722_vm0, %v9954_v0 }
  0x6c   : > { %5439 = vmatmul.mubr.msk.f32.gmra.mrb[28].mxu0 %vm318_vm2, %v274_v30  ;;  %5526 = vmatmul.mubr.msk.f32.gmra.mrb[28].mxu1 %vm318_vm2, %v303_v31 }
  0x6d   : > { %5441 = vmatprep.mubr.msk.f32.mxu0 %vm5722_vm0, %v9954_v0  ;;  %5528 = vmatprep.mubr.msk.f32.mxu1 %vm5722_vm0, %v9954_v0 }
  0x70   : > { %5442 = vmatmul.mubr.msk.f32.gmra.mrb[30].mxu0 %vm318_vm2, %v275_v32  ;;  %5529 = vmatmul.mubr.msk.f32.gmra.mrb[30].mxu1 %vm318_vm2, %v304_v33 }
  0x71   : > { %5444 = vmatprep.mubr.msk.f32.mxu0 %vm5722_vm0, %v9954_v0  ;;  %5531 = vmatprep.mubr.msk.f32.mxu1 %vm5722_vm0, %v9954_v0 }
  0x74   : > { %5445 = vmatmul.mubr.msk.f32.gmra.mrb[32].mxu0 %vm318_vm2, %v276_v34  ;;  %5532 = vmatmul.mubr.msk.f32.gmra.mrb[32].mxu1 %vm318_vm2, %v305_v35 }
  0x75   : > { %5447 = vmatprep.mubr.msk.f32.mxu0 %vm5722_vm0, %v9954_v0  ;;  %5534 = vmatprep.mubr.msk.f32.mxu1 %vm5722_vm0, %v9954_v0 }
  0x78   : > { %5448 = vmatmul.mubr.msk.f32.gmra.mrb[34].mxu0 %vm318_vm2, %v277_v36  ;;  %5535 = vmatmul.mubr.msk.f32.gmra.mrb[34].mxu1 %vm318_vm2, %v306_v37 }
  0x79   : > { %5450 = vmatprep.mubr.msk.f32.mxu0 %vm5722_vm0, %v9954_v0  ;;  %5537 = vmatprep.mubr.msk.f32.mxu1 %vm5722_vm0, %v9954_v0 }
  0x7c   : > { %5451 = vmatmul.mubr.msk.f32.gmra.mrb[36].mxu0 %vm318_vm2, %v278_v38  ;;  %5538 = vmatmul.mubr.msk.f32.gmra.mrb[36].mxu1 %vm318_vm2, %v307_v45 }
  0x7d   : > { %5453 = vmatprep.mubr.msk.f32.mxu0 %vm5722_vm0, %v9954_v0  ;;  %5540 = vmatprep.mubr.msk.f32.mxu1 %vm5722_vm0, %v9954_v0 }
  0x80   : > { %5454 = vmatmul.mubr.msk.f32.gmra.mrb[38].mxu0 %vm318_vm2, %v279_v39  ;;  %5541 = vmatmul.mubr.msk.f32.gmra.mrb[38].mxu1 %vm318_vm2, %v308_v48 }
  0x81   : > { %5456 = vmatprep.mubr.msk.f32.mxu0 %vm5722_vm0, %v9954_v0  ;;  %5543 = vmatprep.mubr.msk.f32.mxu1 %vm5722_vm0, %v9954_v0 }
  0x84   : > { %5457 = vmatmul.mubr.msk.f32.gmra.mrb[40].mxu0 %vm318_vm2, %v280_v40  ;;  %5544 = vmatmul.mubr.msk.f32.gmra.mrb[40].mxu1 %vm318_vm2, %v309_v51 }
  0x85   : > { %5459 = vmatprep.mubr.msk.f32.mxu0 %vm5722_vm0, %v9954_v0  ;;  %5546 = vmatprep.mubr.msk.f32.mxu1 %vm5722_vm0, %v9954_v0 }
  0x88   : > { %5460 = vmatmul.mubr.msk.f32.gmra.mrb[42].mxu0 %vm318_vm2, %v281_v41  ;;  %5547 = vmatmul.mubr.msk.f32.gmra.mrb[42].mxu1 %vm318_vm2, %v310_v52 }
  0x89   : > { %5462 = vmatprep.mubr.msk.f32.mxu0 %vm5722_vm0, %v9954_v0  ;;  %5549 = vmatprep.mubr.msk.f32.mxu1 %vm5722_vm0, %v9954_v0 }
  0x8c   : > { %5463 = vmatmul.mubr.msk.f32.gmra.mrb[44].mxu0 %vm318_vm2, %v282_v42  ;;  %5550 = vmatmul.mubr.msk.f32.gmra.mrb[44].mxu1 %vm318_vm2, %v311_v53 }
  0x8d   : > { %5465 = vmatprep.mubr.msk.f32.mxu0 %vm5722_vm0, %v9954_v0  ;;  %5552 = vmatprep.mubr.msk.f32.mxu1 %vm5722_vm0, %v9954_v0 }
  0x90   : > { %5466 = vmatmul.mubr.msk.f32.gmra.mrb[46].mxu0 %vm318_vm2, %v283_v43 }
  0x91   : > { %5468 = vmatprep.mubr.msk.f32.mxu0 %vm5722_vm0, %v9954_v0 }
  0x94   : > { %5469 = vmatmul.mubr.msk.f32.gmra.mrb[48].mxu0 %vm318_vm2, %v284_v44 }
  0x95   : > { %5471 = vmatprep.mubr.msk.f32.mxu0 %vm5722_vm0, %v9954_v0 }
  0x98   : > { %5472 = vmatmul.mubr.msk.f32.gmra.mrb[50].mxu0 %vm318_vm2, %v285_v46 }
  0x99   : > { %5474 = vmatprep.mubr.msk.f32.mxu0 %vm5722_vm0, %v9954_v0 }
  0x9c   : > { %5475 = vmatmul.mubr.msk.f32.gmra.mrb[52].mxu0 %vm318_vm2, %v286_v47 }
  0x9d   : > { %5477 = vmatprep.mubr.msk.f32.mxu0 %vm5722_vm0, %v9954_v0 }
  0xa0   : > { %5478 = vmatmul.mubr.msk.f32.gmra.mrb[54].mxu0 %vm318_vm2, %v287_v49 }
  0xa1   : > { %5480 = vmatprep.mubr.msk.f32.mxu0 %vm5722_vm0, %v9954_v0 }
  0xa4   : > { %5481 = vmatmul.mubr.msk.f32.gmra.mrb[56].mxu0 %vm318_vm2, %v288_v50 }
 0x107   : > { %v560_v54 = vpop.f32.mrb[0].mxu0  ;;  %v705_v55 = vpop.f32.mrb[0].mxu1 }
 0x108   : > { %845 = vst.msk [vmem:[#allocation2] sm:$0xff] %vm844_vm3, %v560_v54  ;;  %874 = vst.msk [vmem:[#allocation2 + $0xe8] sm:$0xff] %vm844_vm3, %v705_v55  ;;  %v5398_v56 = vpop.f32.mrb[1].mxu0  ;;  %v5485_v57 = vpop.f32.mrb[1].mxu1 }
 0x10b   : > { %v565_v58 = vpop.f32.mrb[2].mxu0  ;;  %v710_v59 = vpop.f32.mrb[2].mxu1 }
 0x10c   : > { %846 = vst.msk [vmem:[#allocation2 + $0x8] sm:$0xff] %vm844_vm3, %v565_v58  ;;  %875 = vst.msk [vmem:[#allocation2 + $0xf0] sm:$0xff] %vm844_vm3, %v710_v59  ;;  %v5401_v60 = vpop.f32.mrb[3].mxu0  ;;  %v5488_v61 = vpop.f32.mrb[3].mxu1 }
 0x10f   : > { %v570_v62 = vpop.f32.mrb[4].mxu0  ;;  %v715_v63 = vpop.f32.mrb[4].mxu1  ;;  %v6040_v1 = vld [vmem:[#allocation2 + $0xe8] sm:$0xff] }
 0x110   : > { %847 = vst.msk [vmem:[#allocation2 + $0x10] sm:$0xff] %vm844_vm3, %v570_v62  ;;  %876 = vst.msk [vmem:[#allocation2 + $0xf8] sm:$0xff] %vm844_vm3, %v715_v63  ;;  %1342 = vrot.lane.b32.xlu0 %v6040_v1, %s5723_s15  ;;  %v5404_v2 = vpop.f32.mrb[5].mxu0  ;;  %v5491_v3 = vpop.f32.mrb[5].mxu1 }
 0x113   : > { %v980_v4 = vld [vmem:[#allocation2 + $0xe9] sm:$0xff]  ;;  %v951_v5 = vld [vmem:[#allocation2 + $0x1] sm:$0xff]  ;;  %v575_v6 = vpop.f32.mrb[6].mxu0  ;;  %v720_v7 = vpop.f32.mrb[6].mxu1 }
 0x114   : > { %1105 = vrot.lane.b32.xlu1 %v980_v4, %s5724_s17  ;;  %1047 = vrot.lane.b32.xlu0 %v951_v5, %s5724_s17  ;;  %848 = vst.msk [vmem:[#allocation2 + $0x18] sm:$0xff] %vm844_vm3, %v575_v6  ;;  %877 = vst.msk [vmem:[#allocation2 + $0x100] sm:$0xff] %vm844_vm3, %v720_v7  ;;  %v5407_v8 = vpop.f32.mrb[7].mxu0  ;;  %v5494_v9 = vpop.f32.mrb[7].mxu1  ;;  %v6050_v10 = vld [vmem:[#allocation2 + $0xf0] sm:$0xff]  ;;  %v1830_v16 = vld [vmem:[#allocation2 + $0x2] sm:$0xff] }
 0x117   : > { %v580_v11 = vpop.f32.mrb[8].mxu0  ;;  %v725_v12 = vpop.f32.mrb[8].mxu1  ;;  %v981_v15 = vld [vmem:[#allocation2 + $0xf1] sm:$0xff]  ;;  %v952_v22 = vld [vmem:[#allocation2 + $0x9] sm:$0xff] }
 0x118   : > { %1344 = vrot.lane.b32.xlu1 %v6050_v10, %s5723_s15  ;;  %1540 = vrot.lane.b32.xlu0 %v980_v4, %s5725_s18  ;;  %849 = vst.msk [vmem:[#allocation2 + $0x20] sm:$0xff] %vm844_vm3, %v580_v11  ;;  %878 = vst.msk [vmem:[#allocation2 + $0x108] sm:$0xff] %vm844_vm3, %v725_v12  ;;  %v5497_v13 = vpop.f32.mrb[9].mxu1  ;;  %v5410_v14 = vpop.f32.mrb[9].mxu0  ;;  %v1831_v21 = vld [vmem:[#allocation2 + $0xa] sm:$0xff]  ;;  %v6069_v32 = vld [vmem:[#allocation2 + $0xf8] sm:$0xff] }
 0x11b   : > { %v730_v17 = vpop.f32.mrb[10].mxu1  ;;  %v585_v18 = vpop.f32.mrb[10].mxu0  ;;  %v953_v27 = vld [vmem:[#allocation2 + $0x11] sm:$0xff]  ;;  %v982_v33 = vld [vmem:[#allocation2 + $0xf9] sm:$0xff] }
 0x11c   : > { %1542 = vrot.lane.b32.xlu1 %v981_v15, %s5725_s18  ;;  %1926 = vrot.lane.b32.xlu0 %v1830_v16, %s5724_s17  ;;  %879 = vst.msk [vmem:[#allocation2 + $0x110] sm:$0xff] %vm844_vm3, %v730_v17  ;;  %850 = vst.msk [vmem:[#allocation2 + $0x28] sm:$0xff] %vm844_vm3, %v585_v18  ;;  %v5413_v19 = vpop.f32.mrb[11].mxu0  ;;  %v5500_v20 = vpop.f32.mrb[11].mxu1  ;;  %v6076_v38 = vld [vmem:[#allocation2 + $0x100] sm:$0xff]  ;;  %v6078_v39 = vld [vmem:[#allocation2 + $0x18] sm:$0xff] }
 0x11d   : > { %v1832_v50 = vld [vmem:[#allocation2 + $0x12] sm:$0xff] }
 0x11f   : > { %v590_v23 = vpop.f32.mrb[12].mxu0  ;;  %v735_v24 = vpop.f32.mrb[12].mxu1  ;;  %v954_v44 = vld [vmem:[#allocation2 + $0x19] sm:$0xff]  ;;  %v983_v55 = vld [vmem:[#allocation2 + $0x101] sm:$0xff] }
 0x120   : > { %1928 = vrot.lane.b32.xlu1 %v1831_v21, %s5724_s17  ;;  %1049 = vrot.lane.b32.xlu0 %v952_v22, %s5724_s17  ;;  %851 = vst.msk [vmem:[#allocation2 + $0x30] sm:$0xff] %vm844_vm3, %v590_v23  ;;  %880 = vst.msk [vmem:[#allocation2 + $0x118] sm:$0xff] %vm844_vm3, %v735_v24  ;;  %v5503_v25 = vpop.f32.mrb[13].mxu1  ;;  %v5416_v26 = vpop.f32.mrb[13].mxu0  ;;  %v6090_v49 = vld [vmem:[#allocation2 + $0x20] sm:$0xff]  ;;  %v6101_v60 = vld [vmem:[#allocation2 + $0x108] sm:$0xff] }
 0x121   : > { %v1833_v61 = vld [vmem:[#allocation2 + $0x1a] sm:$0xff] }
 0x123   : > { %v740_v28 = vpop.f32.mrb[14].mxu1  ;;  %v595_v29 = vpop.f32.mrb[14].mxu0  ;;  %v984_v4 = vld [vmem:[#allocation2 + $0x109] sm:$0xff]  ;;  %v955_v11 = vld [vmem:[#allocation2 + $0x21] sm:$0xff] }
 0x124   : > { %1107 = vrot.lane.b32.xlu0 %v981_v15, %s5724_s17  ;;  %1051 = vrot.lane.b32.xlu1 %v953_v27, %s5724_s17  ;;  %881 = vst.msk [vmem:[#allocation2 + $0x120] sm:$0xff] %vm844_vm3, %v740_v28  ;;  %852 = vst.msk [vmem:[#allocation2 + $0x38] sm:$0xff] %vm844_vm3, %v595_v29  ;;  %v5419_v30 = vpop.f32.mrb[15].mxu0  ;;  %v5506_v31 = vpop.f32.mrb[15].mxu1  ;;  %v6112_v9 = vld [vmem:[#allocation2 + $0x110] sm:$0xff]  ;;  %v312_v15 = vld [vmem:[%s5825_s9 + $0x1a0] sm:$0xff] }
 0x125   : > { %5553 = vmatmul.mubr.msk.f32.gmra.mrb[46].mxu1 %vm318_vm2, %v312_v15  ;;  %v6123_v17 = vld [vmem:[#allocation2 + $0x28] sm:$0xff] }
 0x126   : > { %5555 = vmatprep.mubr.msk.f32.mxu1 %vm5722_vm0, %v9954_v0  ;;  %v1834_v24 = vld [vmem:[#allocation2 + $0x22] sm:$0xff] }
 0x127   : > { %v600_v34 = vpop.f32.mrb[16].mxu0  ;;  %v745_v35 = vpop.f32.mrb[16].mxu1  ;;  %v956_v20 = vld [vmem:[#allocation2 + $0x29] sm:$0xff]  ;;  %v985_v29 = vld [vmem:[#allocation2 + $0x111] sm:$0xff] }
 0x128   : > { %1346 = vrot.lane.b32.xlu0 %v6069_v32, %s5723_s15  ;;  %1109 = vrot.lane.b32.xlu1 %v982_v33, %s5724_s17  ;;  %853 = vst.msk [vmem:[#allocation2 + $0x40] sm:$0xff] %vm844_vm3, %v600_v34  ;;  %v5422_v36 = vpop.f32.mrb[17].mxu0  ;;  %882 = vst.msk [vmem:[#allocation2 + $0x128] sm:$0xff] %vm844_vm3, %v745_v35  ;;  %v5509_v37 = vpop.f32.mrb[17].mxu1  ;;  %v6132_v23 = vld [vmem:[#allocation2 + $0x30] sm:$0xff] }
 0x129   : > { %v1835_v34 = vld [vmem:[#allocation2 + $0x2a] sm:$0xff] }
 0x12b   : > { %v605_v40 = vpop.f32.mrb[18].mxu0  ;;  %v750_v41 = vpop.f32.mrb[18].mxu1 }
 0x12c   : > { %1348 = vrot.lane.b32.xlu1 %v6076_v38, %s5723_s15  ;;  %1290 = vrot.lane.b32.xlu0 %v6078_v39, %s5723_s15  ;;  %854 = vst.msk [vmem:[#allocation2 + $0x48] sm:$0xff] %vm844_vm3, %v605_v40  ;;  %v5425_v42 = vpop.f32.mrb[19].mxu0  ;;  %883 = vst.msk [vmem:[#allocation2 + $0x130] sm:$0xff] %vm844_vm3, %v750_v41  ;;  %v5512_v43 = vpop.f32.mrb[19].mxu1  ;;  %v986_v41 = vld [vmem:[#allocation2 + $0x119] sm:$0xff] }
 0x12f   : > { %v610_v45 = vpop.f32.mrb[20].mxu0  ;;  %v755_v46 = vpop.f32.mrb[20].mxu1 }
 0x130   : > { %1544 = vrot.lane.b32.xlu0 %v982_v33, %s5725_s18  ;;  %1053 = vrot.lane.b32.xlu1 %v954_v44, %s5724_s17  ;;  %855 = vst.msk [vmem:[#allocation2 + $0x50] sm:$0xff] %vm844_vm3, %v610_v45  ;;  %v5428_v47 = vpop.f32.mrb[21].mxu0  ;;  %884 = vst.msk [vmem:[#allocation2 + $0x138] sm:$0xff] %vm844_vm3, %v755_v46  ;;  %v5515_v48 = vpop.f32.mrb[21].mxu1  ;;  %v6142_v33 = vld [vmem:[#allocation2 + $0x118] sm:$0xff] }
 0x131   : > { %v957_v45 = vld [vmem:[#allocation2 + $0x31] sm:$0xff] }
 0x132   : > { %v6158_v48 = vld [vmem:[#allocation2 + $0x38] sm:$0xff] }
 0x133   : > { %v615_v51 = vpop.f32.mrb[22].mxu0  ;;  %v760_v52 = vpop.f32.mrb[22].mxu1  ;;  %v959_v15 = vld [vmem:[#allocation2 + $0x41] sm:$0xff] }
 0x134   : > { %1930 = vrot.lane.b32.xlu0 %v1832_v50, %s5724_s17  ;;  %1292 = vrot.lane.b32.xlu1 %v6090_v49, %s5723_s15  ;;  %856 = vst.msk [vmem:[#allocation2 + $0x58] sm:$0xff] %vm844_vm3, %v615_v51  ;;  %v5431_v53 = vpop.f32.mrb[23].mxu0  ;;  %885 = vst.msk [vmem:[#allocation2 + $0x140] sm:$0xff] %vm844_vm3, %v760_v52  ;;  %v5518_v54 = vpop.f32.mrb[23].mxu1  ;;  %v958_v52 = vld [vmem:[#allocation2 + $0x39] sm:$0xff] }
 0x137   : > { %v620_v56 = vpop.f32.mrb[24].mxu0  ;;  %v765_v57 = vpop.f32.mrb[24].mxu1 }
 0x138   : > { %1111 = vrot.lane.b32.xlu0 %v983_v55, %s5724_s17  ;;  %1546 = vrot.lane.b32.xlu1 %v983_v55, %s5725_s18  ;;  %857 = vst.msk [vmem:[#allocation2 + $0x60] sm:$0xff] %vm844_vm3, %v620_v56  ;;  %v5434_v58 = vpop.f32.mrb[25].mxu0  ;;  %886 = vst.msk [vmem:[#allocation2 + $0x148] sm:$0xff] %vm844_vm3, %v765_v57  ;;  %v5521_v59 = vpop.f32.mrb[25].mxu1  ;;  %v6167_v55 = vld [vmem:[#allocation2 + $0x40] sm:$0xff]  ;;  %v1836_v56 = vld [vmem:[#allocation2 + $0x32] sm:$0xff] }
 0x13b   : > { %v625_v62 = vpop.f32.mrb[26].mxu0  ;;  %v770_v63 = vpop.f32.mrb[26].mxu1 }
 0x13c   : > { %1350 = vrot.lane.b32.xlu0 %v6101_v60, %s5723_s15  ;;  %1932 = vrot.lane.b32.xlu1 %v1833_v61, %s5724_s17  ;;  %858 = vst.msk [vmem:[#allocation2 + $0x68] sm:$0xff] %vm844_vm3, %v625_v62  ;;  %v5437_v2 = vpop.f32.mrb[27].mxu0  ;;  %887 = vst.msk [vmem:[#allocation2 + $0x150] sm:$0xff] %vm844_vm3, %v770_v63  ;;  %v5524_v3 = vpop.f32.mrb[27].mxu1  ;;  %v987_v62 = vld [vmem:[#allocation2 + $0x121] sm:$0xff] }
 0x13d   : > { %v6177_v3 = vld [vmem:[#allocation2 + $0x128] sm:$0xff] }
 0x13f   : > { %v630_v5 = vpop.f32.mrb[28].mxu0  ;;  %v775_v6 = vpop.f32.mrb[28].mxu1 }
 0x140   : > { %1488 = vrot.lane.b32.xlu0 %v954_v44, %s5725_s18  ;;  %1113 = vrot.lane.b32.xlu1 %v984_v4, %s5724_s17  ;;  %859 = vst.msk [vmem:[#allocation2 + $0x70] sm:$0xff] %vm844_vm3, %v630_v5  ;;  %v5440_v7 = vpop.f32.mrb[29].mxu0  ;;  %888 = vst.msk [vmem:[#allocation2 + $0x158] sm:$0xff] %vm844_vm3, %v775_v6  ;;  %v5527_v8 = vpop.f32.mrb[29].mxu1  ;;  %v6152_v44 = vld [vmem:[#allocation2 + $0x120] sm:$0xff] }
 0x143   : > { %v635_v12 = vpop.f32.mrb[30].mxu0  ;;  %v780_v13 = vpop.f32.mrb[30].mxu1 }
 0x144   : > { %1352 = vrot.lane.b32.xlu1 %v6112_v9, %s5723_s15  ;;  %1055 = vrot.lane.b32.xlu0 %v955_v11, %s5724_s17  ;;  %860 = vst.msk [vmem:[#allocation2 + $0x78] sm:$0xff] %vm844_vm3, %v635_v12  ;;  %v5443_v14 = vpop.f32.mrb[31].mxu0  ;;  %889 = vst.msk [vmem:[#allocation2 + $0x160] sm:$0xff] %vm844_vm3, %v780_v13  ;;  %v5530_v16 = vpop.f32.mrb[31].mxu1  ;;  %v988_v12 = vld [vmem:[#allocation2 + $0x129] sm:$0xff] }
 0x145   : > { %v6187_v14 = vld [vmem:[#allocation2 + $0x130] sm:$0xff]  ;;  %v6192_v16 = vld [vmem:[#allocation2 + $0x48] sm:$0xff] }
 0x147   : > { %v640_v18 = vpop.f32.mrb[32].mxu0  ;;  %v785_v27 = vpop.f32.mrb[32].mxu1 }
 0x148   : > { %1490 = vrot.lane.b32.xlu1 %v955_v11, %s5725_s18  ;;  %1294 = vrot.lane.b32.xlu0 %v6123_v17, %s5723_s15  ;;  %861 = vst.msk [vmem:[#allocation2 + $0x80] sm:$0xff] %vm844_vm3, %v640_v18  ;;  %v5446_v19 = vpop.f32.mrb[33].mxu0  ;;  %890 = vst.msk [vmem:[#allocation2 + $0x168] sm:$0xff] %vm844_vm3, %v785_v27  ;;  %v5533_v28 = vpop.f32.mrb[33].mxu1 }
 0x149   : > { %v960_v19 = vld [vmem:[#allocation2 + $0x49] sm:$0xff] }
 0x14b   : > { %v645_v21 = vpop.f32.mrb[34].mxu0  ;;  %v790_v37 = vpop.f32.mrb[34].mxu1 }
 0x14c   : > { %1548 = vrot.lane.b32.xlu0 %v984_v4, %s5725_s18  ;;  %1057 = vrot.lane.b32.xlu1 %v956_v20, %s5724_s17  ;;  %862 = vst.msk [vmem:[#allocation2 + $0x88] sm:$0xff] %vm844_vm3, %v645_v21  ;;  %v5449_v22 = vpop.f32.mrb[35].mxu0  ;;  %891 = vst.msk [vmem:[#allocation2 + $0x170] sm:$0xff] %vm844_vm3, %v790_v37  ;;  %v5536_v40 = vpop.f32.mrb[35].mxu1  ;;  %v1837_v4 = vld [vmem:[#allocation2 + $0x3a] sm:$0xff] }
 0x14f   : > { %v650_v25 = vpop.f32.mrb[36].mxu0  ;;  %v795_v59 = vpop.f32.mrb[36].mxu1 }
 0x150   : > { %1934 = vrot.lane.b32.xlu0 %v1834_v24, %s5724_s17  ;;  %1296 = vrot.lane.b32.xlu1 %v6132_v23, %s5723_s15  ;;  %863 = vst.msk [vmem:[#allocation2 + $0x90] sm:$0xff] %vm844_vm3, %v650_v25  ;;  %v5452_v26 = vpop.f32.mrb[37].mxu0  ;;  %892 = vst.msk [vmem:[#allocation2 + $0x178] sm:$0xff] %vm844_vm3, %v795_v59  ;;  %v5539_v61 = vpop.f32.mrb[37].mxu1  ;;  %v1838_v24 = vld [vmem:[#allocation2 + $0x42] sm:$0xff] }
 0x151   : > { %v6252_v59 = vld [vmem:[#allocation2 + $0x60] sm:$0xff] }
 0x153   : > { %v655_v30 = vpop.f32.mrb[38].mxu0  ;;  %v800_v7 = vpop.f32.mrb[38].mxu1 }
 0x154   : > { %1115 = vrot.lane.b32.xlu0 %v985_v29, %s5724_s17  ;;  %1550 = vrot.lane.b32.xlu1 %v985_v29, %s5725_s18  ;;  %864 = vst.msk [vmem:[#allocation2 + $0x98] sm:$0xff] %vm844_vm3, %v655_v30  ;;  %v5455_v31 = vpop.f32.mrb[39].mxu0  ;;  %893 = vst.msk [vmem:[#allocation2 + $0x180] sm:$0xff] %vm844_vm3, %v800_v7  ;;  %v5542_v8 = vpop.f32.mrb[39].mxu1  ;;  %v989_v29 = vld [vmem:[#allocation2 + $0x131] sm:$0xff] }
 0x157   : > { %v660_v35 = vpop.f32.mrb[40].mxu0  ;;  %v805_v25 = vpop.f32.mrb[40].mxu1 }
 0x158   : > { %1354 = vrot.lane.b32.xlu0 %v6142_v33, %s5723_s15  ;;  %1936 = vrot.lane.b32.xlu1 %v1835_v34, %s5724_s17  ;;  %865 = vst.msk [vmem:[#allocation2 + $0xa0] sm:$0xff] %vm844_vm3, %v660_v35  ;;  %v5458_v36 = vpop.f32.mrb[41].mxu0  ;;  %894 = vst.msk [vmem:[#allocation2 + $0x188] sm:$0xff] %vm844_vm3, %v805_v25  ;;  %v5545_v26 = vpop.f32.mrb[41].mxu1  ;;  %v6219_v34 = vld [vmem:[#allocation2 + $0x138] sm:$0xff]  ;;  %v1839_v35 = vld [vmem:[#allocation2 + $0x4a] sm:$0xff] }
 0x15b   : > { %v665_v42 = vpop.f32.mrb[42].mxu0  ;;  %v810_v36 = vpop.f32.mrb[42].mxu1 }
 0x15c   : > { %1492 = vrot.lane.b32.xlu0 %v956_v20, %s5725_s18  ;;  %1117 = vrot.lane.b32.xlu1 %v986_v41, %s5724_s17  ;;  %866 = vst.msk [vmem:[#allocation2 + $0xa8] sm:$0xff] %vm844_vm3, %v665_v42  ;;  %v5461_v43 = vpop.f32.mrb[43].mxu0  ;;  %v6201_v20 = vld [vmem:[#allocation2 + $0x50] sm:$0xff]  ;;  %895 = vst.msk [vmem:[#allocation2 + $0x190] sm:$0xff] %vm844_vm3, %v810_v36  ;;  %v5548_v37 = vpop.f32.mrb[43].mxu1  ;;  %v990_v42 = vld [vmem:[#allocation2 + $0x139] sm:$0xff] }
 0x15d   : > { %v6231_v43 = vld [vmem:[#allocation2 + $0x140] sm:$0xff]  ;;  %v6289_v36 = vld [vmem:[#allocation2 + $0x150] sm:$0xff] }
 0x15f   : > { %v670_v46 = vpop.f32.mrb[44].mxu0 }
 0x160   : > { %1356 = vrot.lane.b32.xlu1 %v6152_v44, %s5723_s15  ;;  %1059 = vrot.lane.b32.xlu0 %v957_v45, %s5724_s17  ;;  %867 = vst.msk [vmem:[#allocation2 + $0xb0] sm:$0xff] %vm844_vm3, %v670_v46  ;;  %v5464_v47 = vpop.f32.mrb[45].mxu0 }
 0x161   : > { %v961_v47 = vld [vmem:[#allocation2 + $0x51] sm:$0xff] }
 0x163   : > { %v675_v50 = vpop.f32.mrb[46].mxu0 }
 0x164   : > { %1494 = vrot.lane.b32.xlu1 %v957_v45, %s5725_s18  ;;  %1298 = vrot.lane.b32.xlu0 %v6158_v48, %s5723_s15  ;;  %868 = vst.msk [vmem:[#allocation2 + $0xb8] sm:$0xff] %vm844_vm3, %v675_v50  ;;  %v5467_v51 = vpop.f32.mrb[47].mxu0 }
 0x167   : > { %v680_v53 = vpop.f32.mrb[48].mxu0 }
 0x168   : > { %1552 = vrot.lane.b32.xlu0 %v986_v41, %s5725_s18  ;;  %1061 = vrot.lane.b32.xlu1 %v958_v52, %s5724_s17  ;;  %869 = vst.msk [vmem:[#allocation2 + $0xc0] sm:$0xff] %vm844_vm3, %v680_v53  ;;  %v5470_v54 = vpop.f32.mrb[49].mxu0 }
 0x16b   : > { %v685_v57 = vpop.f32.mrb[50].mxu0 }
 0x16c   : > { %1938 = vrot.lane.b32.xlu0 %v1836_v56, %s5724_s17  ;;  %1300 = vrot.lane.b32.xlu1 %v6167_v55, %s5723_s15  ;;  %870 = vst.msk [vmem:[#allocation2 + $0xc8] sm:$0xff] %vm844_vm3, %v685_v57  ;;  %v5473_v58 = vpop.f32.mrb[51].mxu0  ;;  %v962_v56 = vld [vmem:[#allocation2 + $0x59] sm:$0xff]  ;;  %v815_v57 = vpop.f32.mrb[44].mxu1 }
 0x16d   : > { %896 = vst.msk [vmem:[#allocation2 + $0x198] sm:$0xff] %vm844_vm3, %v815_v57  ;;  %v5551_v58 = vpop.f32.mrb[45].mxu1 }
 0x16f   : > { %v690_v63 = vpop.f32.mrb[52].mxu0 }
 0x170   : > { %1119 = vrot.lane.b32.xlu0 %v987_v62, %s5724_s17  ;;  %1554 = vrot.lane.b32.xlu1 %v987_v62, %s5725_s18  ;;  %871 = vst.msk [vmem:[#allocation2 + $0xd0] sm:$0xff] %vm844_vm3, %v690_v63  ;;  %v5476_v2 = vpop.f32.mrb[53].mxu0  ;;  %v1840_v63 = vld [vmem:[#allocation2 + $0x52] sm:$0xff] }
 0x173   : > { %v695_v5 = vpop.f32.mrb[54].mxu0 }
 0x174   : > { %1358 = vrot.lane.b32.xlu0 %v6177_v3, %s5723_s15  ;;  %1940 = vrot.lane.b32.xlu1 %v1837_v4, %s5724_s17  ;;  %872 = vst.msk [vmem:[#allocation2 + $0xd8] sm:$0xff] %vm844_vm3, %v695_v5  ;;  %v5479_v6 = vpop.f32.mrb[55].mxu0 }
 0x175   : > { %v991_v6 = vld [vmem:[#allocation2 + $0x141] sm:$0xff] }
 0x177   : > { %v700_v11 = vpop.f32.mrb[56].mxu0 }
 0x178   : > { %873 = vst.msk [vmem:[#allocation2 + $0xe0] sm:$0xff] %vm844_vm3, %v700_v11  ;;  %1496 = vrot.lane.b32.xlu0 %v958_v52, %s5725_s18  ;;  %1121 = vrot.lane.b32.xlu1 %v988_v12, %s5724_s17  ;;  %v5482_v13 = vpop.f32.mrb[57].mxu0  ;;  %v6244_v52 = vld [vmem:[#allocation2 + $0x58] sm:$0xff]  ;;  %v6269_v11 = vld [vmem:[#allocation3] ss:$0 sm:$0xff] }
 0x17c   : > { %1360 = vrot.lane.b32.xlu1 %v6187_v14, %s5723_s15  ;;  %1063 = vrot.lane.b32.xlu0 %v959_v15, %s5724_s17 }
 0x180   : > { %1498 = vrot.lane.b32.xlu1 %v959_v15, %s5725_s18  ;;  %1302 = vrot.lane.b32.xlu0 %v6192_v16, %s5723_s15  ;;  %v6271_v15 = vld [vmem:[#allocation2 + $0x148] sm:$0xff] }
 0x182   : > { %v6197_v18 = vpop.permute.xlu0 %1342 }
 0x184   : > { %1556 = vrot.lane.b32.xlu0 %v988_v12, %s5725_s18  ;;  %1065 = vrot.lane.b32.xlu1 %v960_v19, %s5724_s17 }
 0x186   : > { %v1106_v21 = vpop.permute.xlu1 %1105  ;;  %v6203_v22 = vpop.permute.xlu0 %1047 }
 0x187   : > { %v1220_v5 = vadd.f32 %v1106_v21, %v6040_v1  ;;  %v903_v21 = vld [vmem:[#allocation2] sm:$0xff] }
 0x188   : > { %1942 = vrot.lane.b32.xlu0 %v1838_v24, %s5724_s17  ;;  %1304 = vrot.lane.b32.xlu1 %v6201_v20, %s5723_s15  ;;  %v1191_v26 = vadd.f32 %v6203_v22, %v903_v21  ;;  %v6319_v21 = vld [vmem:[#allocation2 + $0x70] sm:$0xff] }
 0x18a   : > { %v6209_v27 = vpop.permute.xlu1 %1344  ;;  %v6211_v28 = vpop.permute.xlu0 %1540 }
 0x18c   : > { %1123 = vrot.lane.b32.xlu0 %v989_v29, %s5724_s17  ;;  %1558 = vrot.lane.b32.xlu1 %v989_v29, %s5725_s18  ;;  %v992_v29 = vld [vmem:[#allocation2 + $0x149] sm:$0xff] }
 0x18e   : > { %v6215_v30 = vpop.permute.xlu1 %1542  ;;  %v6217_v31 = vpop.permute.xlu0 %1926 }
 0x18f   : > { %10090 = vst [vmem:[#allocation6_spill] sm:$0xff] %v6217_v31 }
 0x190   : > { %1362 = vrot.lane.b32.xlu0 %v6219_v34, %s5723_s15  ;;  %1944 = vrot.lane.b32.xlu1 %v1839_v35, %s5724_s17 }
 0x192   : > { %v6225_v40 = vpop.permute.xlu1 %1928  ;;  %v6227_v41 = vpop.permute.xlu0 %1049 }
 0x193   : > { %10091 = vst [vmem:[#allocation7_spill] sm:$0xff] %v6225_v40 }
 0x194   : > { %1500 = vrot.lane.b32.xlu0 %v960_v19, %s5725_s18  ;;  %1125 = vrot.lane.b32.xlu1 %v990_v42, %s5724_s17  ;;  %v1841_v19 = vld [vmem:[#allocation2 + $0x5a] sm:$0xff] }
 0x196   : > { %v6233_v45 = vpop.permute.xlu0 %1107  ;;  %v6235_v46 = vpop.permute.xlu1 %1051 }
 0x198   : > { %1364 = vrot.lane.b32.xlu1 %v6231_v43, %s5723_s15  ;;  %1067 = vrot.lane.b32.xlu0 %v961_v47, %s5724_s17 }
 0x19a   : > { %v6240_v50 = vpop.permute.xlu0 %1346  ;;  %v6242_v51 = vpop.permute.xlu1 %1109 }
 0x19c   : > { %1502 = vrot.lane.b32.xlu1 %v961_v47, %s5725_s18  ;;  %1306 = vrot.lane.b32.xlu0 %v6244_v52, %s5723_s15 }
 0x19e   : > { %v1349_v53 = vpop.permute.xlu1 %1348  ;;  %v1291_v54 = vpop.permute.xlu0 %1290 }
 0x19f   : > { %v1463_v7 = vadd.f32 %v1349_v53, %v1220_v5  ;;  %v1434_v35 = vadd.f32 %v1291_v54, %v1191_v26  ;;  %v6293_v53 = vld [vmem:[#allocation2 + $0x61] sm:$0xff] }
 0x1a0   : > { %1560 = vrot.lane.b32.xlu0 %v990_v42, %s5725_s18  ;;  %1069 = vrot.lane.b32.xlu1 %v962_v56, %s5724_s17 }
 0x1a2   : > { %v6254_v61 = vpop.permute.xlu0 %1544  ;;  %v6256_v62 = vpop.permute.xlu1 %1053 }
 0x1a3   : > { %10092 = vst [vmem:[#allocation8_spill] sm:$0xff] %v6254_v61 }
 0x1a4   : > { %1946 = vrot.lane.b32.xlu0 %v1840_v63, %s5724_s17  ;;  %1308 = vrot.lane.b32.xlu1 %v6252_v59, %s5723_s15  ;;  %v6305_v63 = vld [vmem:[#allocation2 + $0x68] sm:$0xff] }
 0x1a6   : > { %v6261_v2 = vpop.permute.xlu0 %1930  ;;  %v1293_v4 = vpop.permute.xlu1 %1292 }
 0x1a7   : > { %10093 = vst [vmem:[#allocation9_spill] sm:$0xff] %v6261_v2 }
 0x1a8   : > { %1127 = vrot.lane.b32.xlu0 %v991_v6, %s5724_s17  ;;  %1562 = vrot.lane.b32.xlu1 %v991_v6, %s5725_s18 }
 0x1aa   : > { %v6267_v8 = vpop.permute.xlu0 %1111  ;;  %v1547_v12 = vpop.permute.xlu1 %1546 }
 0x1ab   : > { %v1661_v13 = vadd.f32 %v1547_v12, %v1463_v7  ;;  %v1221_v12 = vadd.f32 %v6233_v45, %v6050_v10  ;;  %v1842_v45 = vld [vmem:[#allocation2 + $0x62] sm:$0xff] }
 0x1ac   : > { %1366 = vrot.lane.b32.xlu0 %v6271_v15, %s5723_s15  ;;  %1948 = vrot.lane.b32.xlu1 %v1841_v19, %s5724_s17  ;;  %v6313_v19 = vld [vmem:[#allocation2 + $0x69] sm:$0xff] }
 0x1ad   : > { %v1715_v1 = vadd.f32 %v6269_v11, %v1661_v13 }
 0x1ae   : > { %v1351_v24 = vpop.permute.xlu0 %1350  ;;  %v6282_v25 = vpop.permute.xlu1 %1932 }
 0x1af   : > { %10094 = vst [vmem:[#allocation10_spill] sm:$0xff] %v6282_v25  ;;  %1763 = vst.msk [vmem:[%s6276_s22 + $0xe8] sm:$0xff] %vm318_vm2, %v1715_v1  ;;  %v6560_v25 = vld [vmem:[#allocation2 + $0xa8] sm:$0xff] }
 0x1b0   : > { %1504 = vrot.lane.b32.xlu0 %v962_v56, %s5725_s18  ;;  %1129 = vrot.lane.b32.xlu1 %v992_v29, %s5724_s17  ;;  %v904_v56 = vld [vmem:[#allocation2 + $0x8] sm:$0xff] }
 0x1b1   : > { %v1192_v54 = vadd.f32 %v6227_v41, %v904_v56  ;;  %v1464_v41 = vadd.f32 %v1351_v24, %v1221_v12  ;;  %v1843_v12 = vld [vmem:[#allocation2 + $0x6a] sm:$0xff] }
 0x1b2   : > { %v1489_v37 = vpop.permute.xlu0 %1488  ;;  %v6291_v42 = vpop.permute.xlu1 %1113 }
 0x1b3   : > { %v1632_v47 = vadd.f32 %v1489_v37, %v1434_v35  ;;  %v1435_v5 = vadd.f32 %v1293_v4, %v1192_v54  ;;  %v1222_v37 = vadd.f32 %v6242_v51, %v6069_v32  ;;  %v905_v51 = vld [vmem:[#allocation2 + $0x10] sm:$0xff] }
 0x1b4   : > { %1368 = vrot.lane.b32.xlu1 %v6289_v36, %s5723_s15  ;;  %1071 = vrot.lane.b32.xlu0 %v6293_v53, %s5724_s17 }
 0x1b5   : > { %v1686_v22 = vadd.f32 %v6269_v11, %v1632_v47  ;;  %v993_v47 = vld [vmem:[#allocation2 + $0x151] sm:$0xff] }
 0x1b6   : > { %v1353_v57 = vpop.permute.xlu1 %1352  ;;  %v6300_v58 = vpop.permute.xlu0 %1055 }
 0x1b7   : > { %1734 = vst.msk [vmem:[%s6276_s22] sm:$0xff] %vm318_vm2, %v1686_v22  ;;  %v1465_v22 = vadd.f32 %v1353_v57, %v1222_v37  ;;  %v1193_v57 = vadd.f32 %v6235_v46, %v905_v51 }
 0x1b8   : > { %1506 = vrot.lane.b32.xlu1 %v6293_v53, %s5725_s18  ;;  %1310 = vrot.lane.b32.xlu0 %v6305_v63, %s5723_s15 }
 0x1ba   : > { %v1491_v6 = vpop.permute.xlu1 %1490  ;;  %v1295_v7 = vpop.permute.xlu0 %1294 }
 0x1bb   : > { %v1633_v13 = vadd.f32 %v1491_v6, %v1435_v5  ;;  %v6339_v6 = vld [vmem:[#allocation2 + $0x158] sm:$0xff] }
 0x1bc   : > { %1564 = vrot.lane.b32.xlu0 %v992_v29, %s5725_s18  ;;  %1073 = vrot.lane.b32.xlu1 %v6313_v19, %s5724_s17 }
 0x1bd   : > { %v1687_v1 = vadd.f32 %v6269_v11, %v1633_v13 }
 0x1be   : > { %v1549_v4 = vpop.permute.xlu0 %1548  ;;  %v6321_v26 = vpop.permute.xlu1 %1057 }
 0x1bf   : > { %1735 = vst.msk [vmem:[%s6276_s22 + $0x8] sm:$0xff] %vm318_vm2, %v1687_v1  ;;  %v1662_v10 = vadd.f32 %v1549_v4, %v1464_v41  ;;  %v994_v1 = vld [vmem:[#allocation2 + $0x159] sm:$0xff]  ;;  %v1436_v4 = vadd.f32 %v1295_v7, %v1193_v57  ;;  %v1194_v7 = vadd.f32 %v6256_v62, %v6078_v39  ;;  %v1223_v57 = vadd.f32 %v6267_v8, %v6076_v38 }
 0x1c0   : > { %1950 = vrot.lane.b32.xlu0 %v1842_v45, %s5724_s17  ;;  %1312 = vrot.lane.b32.xlu1 %v6319_v21, %s5723_s15  ;;  %v1844_v8 = vld [vmem:[#allocation2 + $0x72] sm:$0xff] }
 0x1c1   : > { %v1716_v29 = vadd.f32 %v6269_v11, %v1662_v10  ;;  %v6353_v10 = vld [vmem:[#allocation2 + $0x160] sm:$0xff] }
 0x1c2   : > { %v6329_v35 = vpop.permute.xlu0 %1934  ;;  %v1297_v24 = vpop.permute.xlu1 %1296 }
 0x1c3   : > { %10095 = vst [vmem:[#allocation11_spill] sm:$0xff] %v6329_v35  ;;  %1764 = vst.msk [vmem:[%s6276_s22 + $0xf0] sm:$0xff] %vm318_vm2, %v1716_v29  ;;  %v6540_v35 = vld [vmem:[#allocation2 + $0x9a] sm:$0xff] }
 0x1c4   : > { %1131 = vrot.lane.b32.xlu0 %v993_v47, %s5724_s17  ;;  %1566 = vrot.lane.b32.xlu1 %v993_v47, %s5725_s18  ;;  %v6357_v47 = vld [vmem:[#allocation2 + $0x71] sm:$0xff]  ;;  %10104 = vst [vmem:[#allocation20_spill] sm:$0xff] %v6540_v35 }
 0x1c6   : > { %v6337_v56 = vpop.permute.xlu0 %1115  ;;  %v1551_v54 = vpop.permute.xlu1 %1550 }
 0x1c7   : > { %v1663_v5 = vadd.f32 %v1551_v54, %v1465_v22  ;;  %v1225_v0 = vadd.f32 %v6337_v56, %v6112_v9  ;;  %v1846_v56 = vld [vmem:[#allocation2 + $0x82] sm:$0xff] }
 0x1c8   : > { %1370 = vrot.lane.b32.xlu0 %v6339_v6, %s5723_s15  ;;  %1952 = vrot.lane.b32.xlu1 %v1843_v12, %s5724_s17  ;;  %v1437_v12 = vadd.f32 %v1297_v24, %v1194_v7 }
 0x1c9   : > { %v1717_v32 = vadd.f32 %v6269_v11, %v1663_v5  ;;  %v6370_v5 = vld [vmem:[#allocation2 + $0x78] sm:$0xff] }
 0x1ca   : > { %v1355_v13 = vpop.permute.xlu0 %1354  ;;  %v6345_v41 = vpop.permute.xlu1 %1936 }
 0x1cb   : > { %10096 = vst [vmem:[#allocation12_spill] sm:$0xff] %v6345_v41  ;;  %1765 = vst.msk [vmem:[%s6276_s22 + $0xf8] sm:$0xff] %vm318_vm2, %v1717_v32  ;;  %v1466_v39 = vadd.f32 %v1355_v13, %v1223_v57  ;;  %v6507_v41 = vld [vmem:[#allocation2 + $0x99] sm:$0xff] }
 0x1cc   : > { %1508 = vrot.lane.b32.xlu0 %v6313_v19, %s5725_s18  ;;  %1133 = vrot.lane.b32.xlu1 %v994_v1, %s5724_s17 }
 0x1ce   : > { %v1493_v45 = vpop.permute.xlu0 %1492  ;;  %v6355_v29 = vpop.permute.xlu1 %1117 }
 0x1cf   : > { %v1634_v37 = vadd.f32 %v1493_v45, %v1436_v4  ;;  %v6378_v45 = vld [vmem:[#allocation2 + $0x79] sm:$0xff] }
 0x1d0   : > { %1372 = vrot.lane.b32.xlu1 %v6353_v10, %s5723_s15  ;;  %1075 = vrot.lane.b32.xlu0 %v6357_v47, %s5724_s17 }
 0x1d1   : > { %v1688_v46 = vadd.f32 %v6269_v11, %v1634_v37  ;;  %v6384_v37 = vld [vmem:[#allocation2 + $0x80] sm:$0xff] }
 0x1d2   : > { %v1357_v22 = vpop.permute.xlu1 %1356  ;;  %v6364_v54 = vpop.permute.xlu0 %1059 }
 0x1d3   : > { %1736 = vst.msk [vmem:[%s6276_s22 + $0x10] sm:$0xff] %vm318_vm2, %v1688_v46 }
 0x1d4   : > { %1510 = vrot.lane.b32.xlu1 %v6357_v47, %s5725_s18  ;;  %1314 = vrot.lane.b32.xlu0 %v6370_v5, %s5723_s15 }
 0x1d6   : > { %v1495_v32 = vpop.permute.xlu1 %1494  ;;  %v1299_v51 = vpop.permute.xlu0 %1298 }
 0x1d7   : > { %v1635_v4 = vadd.f32 %v1495_v32, %v1437_v12  ;;  %v1224_v12 = vadd.f32 %v6291_v42, %v6101_v60  ;;  %v995_v32 = vld [vmem:[#allocation2 + $0x161] sm:$0xff] }
 0x1d8   : > { %1568 = vrot.lane.b32.xlu0 %v994_v1, %s5725_s18  ;;  %1077 = vrot.lane.b32.xlu1 %v6378_v45, %s5724_s17 }
 0x1d9   : > { %v1689_v62 = vadd.f32 %v6269_v11, %v1635_v4  ;;  %v1467_v57 = vadd.f32 %v1357_v22, %v1224_v12  ;;  %v1195_v22 = vadd.f32 %v6300_v58, %v6090_v49 }
 0x1da   : > { %v1553_v24 = vpop.permute.xlu0 %1552  ;;  %v6386_v46 = vpop.permute.xlu1 %1061 }
 0x1db   : > { %1737 = vst.msk [vmem:[%s6276_s22 + $0x18] sm:$0xff] %vm318_vm2, %v1689_v62  ;;  %v1664_v38 = vadd.f32 %v1553_v24, %v1466_v39  ;;  %v6404_v24 = vld [vmem:[#allocation2 + $0x168] sm:$0xff]  ;;  %v1438_v12 = vadd.f32 %v1299_v51, %v1195_v22  ;;  %v1196_v51 = vadd.f32 %v6321_v26, %v6123_v17 }
 0x1dc   : > { %1954 = vrot.lane.b32.xlu0 %v1844_v8, %s5724_s17  ;;  %1316 = vrot.lane.b32.xlu1 %v6384_v37, %s5723_s15  ;;  %v6436_v22 = vld [vmem:[#allocation2 + $0x88] sm:$0xff] }
 0x1dd   : > { %v1718_v1 = vadd.f32 %v6269_v11, %v1664_v38  ;;  %v1845_v38 = vld [vmem:[#allocation2 + $0x7a] sm:$0xff] }
 0x1de   : > { %v6394_v7 = vpop.permute.xlu0 %1938  ;;  %v1301_v13 = vpop.permute.xlu1 %1300 }
 0x1df   : > { %10097 = vst [vmem:[#allocation13_spill] sm:$0xff] %v6394_v7  ;;  %1766 = vst.msk [vmem:[%s6276_s22 + $0x100] sm:$0xff] %vm318_vm2, %v1718_v1  ;;  %v996_v1 = vld [vmem:[#allocation2 + $0x169] sm:$0xff] }
 0x1e0   : > { %1135 = vrot.lane.b32.xlu0 %v995_v32, %s5724_s17  ;;  %1570 = vrot.lane.b32.xlu1 %v995_v32, %s5725_s18  ;;  %v6419_v32 = vld [vmem:[#allocation2 + $0x170] sm:$0xff] }
 0x1e1   : > { %v6444_v7 = vld [vmem:[#allocation2 + $0x89] sm:$0xff] }
 0x1e2   : > { %v6402_v4 = vpop.permute.xlu0 %1119  ;;  %v1555_v39 = vpop.permute.xlu1 %1554 }
 0x1e3   : > { %v1665_v62 = vadd.f32 %v1555_v39, %v1467_v57 }
 0x1e4   : > { %1374 = vrot.lane.b32.xlu0 %v6404_v24, %s5723_s15  ;;  %1956 = vrot.lane.b32.xlu1 %v1845_v38, %s5724_s17  ;;  %v6423_v38 = vld [vmem:[#allocation2 + $0x81] sm:$0xff] }
 0x1e5   : > { %v1719_v60 = vadd.f32 %v6269_v11, %v1665_v62 }
 0x1e6   : > { %v1359_v42 = vpop.permute.xlu0 %1358  ;;  %v6410_v8 = vpop.permute.xlu1 %1940 }
 0x1e7   : > { %10098 = vst [vmem:[#allocation14_spill] sm:$0xff] %v6410_v8  ;;  %1767 = vst.msk [vmem:[%s6276_s22 + $0x108] sm:$0xff] %vm318_vm2, %v1719_v60  ;;  %v1468_v17 = vadd.f32 %v1359_v42, %v1225_v0  ;;  %v1226_v42 = vadd.f32 %v6355_v29, %v6142_v33 }
 0x1e8   : > { %1512 = vrot.lane.b32.xlu0 %v6378_v45, %s5725_s18  ;;  %1137 = vrot.lane.b32.xlu1 %v996_v1, %s5724_s17 }
 0x1ea   : > { %v1497_v57 = vpop.permute.xlu0 %1496  ;;  %v6421_v39 = vpop.permute.xlu1 %1121 }
 0x1eb   : > { %v1636_v62 = vadd.f32 %v1497_v57, %v1438_v12  ;;  %v1439_v12 = vadd.f32 %v1301_v13, %v1196_v51 }
 0x1ec   : > { %1376 = vrot.lane.b32.xlu1 %v6419_v32, %s5723_s15  ;;  %1079 = vrot.lane.b32.xlu0 %v6423_v38, %s5724_s17 }
 0x1ed   : > { %v1690_v49 = vadd.f32 %v6269_v11, %v1636_v62 }
 0x1ee   : > { %v1361_v58 = vpop.permute.xlu1 %1360  ;;  %v6430_v60 = vpop.permute.xlu0 %1063 }
 0x1ef   : > { %1738 = vst.msk [vmem:[%s6276_s22 + $0x20] sm:$0xff] %vm318_vm2, %v1690_v49  ;;  %v6450_v49 = vld [vmem:[#allocation2 + $0x90] sm:$0xff] }
 0x1f0   : > { %1514 = vrot.lane.b32.xlu1 %v6423_v38, %s5725_s18  ;;  %1318 = vrot.lane.b32.xlu0 %v6436_v22, %s5723_s15 }
 0x1f2   : > { %v1499_v57 = vpop.permute.xlu1 %1498  ;;  %v1303_v62 = vpop.permute.xlu0 %1302 }
 0x1f3   : > { %v1637_v8 = vadd.f32 %v1499_v57, %v1439_v12  ;;  %v1469_v57 = vadd.f32 %v1361_v58, %v1226_v42  ;;  %v1197_v58 = vadd.f32 %v6364_v54, %v6132_v23  ;;  %v998_v42 = vld [vmem:[#allocation2 + $0x179] sm:$0xff] }
 0x1f4   : > { %1572 = vrot.lane.b32.xlu0 %v996_v1, %s5725_s18  ;;  %1081 = vrot.lane.b32.xlu1 %v6444_v7, %s5724_s17 }
 0x1f5   : > { %v1691_v26 = vadd.f32 %v6269_v11, %v1637_v8  ;;  %v997_v8 = vld [vmem:[#allocation2 + $0x171] sm:$0xff] }
 0x1f6   : > { %v1557_v13 = vpop.permute.xlu0 %1556  ;;  %v6452_v51 = vpop.permute.xlu1 %1065 }
 0x1f7   : > { %1739 = vst.msk [vmem:[%s6276_s22 + $0x28] sm:$0xff] %vm318_vm2, %v1691_v26  ;;  %v1666_v9 = vadd.f32 %v1557_v13, %v1468_v17 }
 0x1f8   : > { %1958 = vrot.lane.b32.xlu0 %v1846_v56, %s5724_s17  ;;  %1320 = vrot.lane.b32.xlu1 %v6450_v49, %s5723_s15  ;;  %v1847_v56 = vld [vmem:[#allocation2 + $0x8a] sm:$0xff] }
 0x1f9   : > { %v1720_v1 = vadd.f32 %v6269_v11, %v1666_v9  ;;  %v6470_v9 = vld [vmem:[#allocation2 + $0x178] sm:$0xff] }
 0x1fa   : > { %v6460_v12 = vpop.permute.xlu0 %1942  ;;  %v1305_v0 = vpop.permute.xlu1 %1304 }
 0x1fb   : > { %10099 = vst [vmem:[#allocation15_spill] sm:$0xff] %v6460_v12  ;;  %1768 = vst.msk [vmem:[%s6276_s22 + $0x110] sm:$0xff] %vm318_vm2, %v1720_v1  ;;  %v6487_v12 = vld [vmem:[#allocation2 + $0x91] sm:$0xff] }
 0x1fc   : > { %1139 = vrot.lane.b32.xlu0 %v997_v8, %s5724_s17  ;;  %1574 = vrot.lane.b32.xlu1 %v997_v8, %s5725_s18  ;;  %v1440_v8 = vadd.f32 %v1303_v62, %v1197_v58  ;;  %v1198_v62 = vadd.f32 %v6386_v46, %v6158_v48  ;;  %v6499_v58 = vld [vmem:[#allocation2 + $0x98] sm:$0xff] }
 0x1fe   : > { %v6468_v17 = vpop.permute.xlu0 %1123  ;;  %v1559_v26 = vpop.permute.xlu1 %1558 }
 0x1ff   : > { %v1667_v13 = vadd.f32 %v1559_v26, %v1469_v57  ;;  %v1239_v57 = vld [vmem:[#allocation2 + $0x180] sm:$0xff] }
 0x200   : > { %1378 = vrot.lane.b32.xlu0 %v6470_v9, %s5723_s15  ;;  %1960 = vrot.lane.b32.xlu1 %v1847_v56, %s5724_s17 }
 0x201   : > { %v1721_v33 = vadd.f32 %v6269_v11, %v1667_v13 }
 0x202   : > { %v1363_v29 = vpop.permute.xlu0 %1362  ;;  %v6476_v1 = vpop.permute.xlu1 %1944 }
 0x203   : > { %10100 = vst [vmem:[#allocation16_spill] sm:$0xff] %v6476_v1  ;;  %1769 = vst.msk [vmem:[%s6276_s22 + $0x118] sm:$0xff] %vm318_vm2, %v1721_v33 }
 0x204   : > { %1516 = vrot.lane.b32.xlu0 %v6444_v7, %s5725_s18  ;;  %1141 = vrot.lane.b32.xlu1 %v998_v42, %s5724_s17 }
 0x206   : > { %v1501_v26 = vpop.permute.xlu0 %1500  ;;  %v6485_v56 = vpop.permute.xlu1 %1125 }
 0x207   : > { %v1638_v13 = vadd.f32 %v1501_v26, %v1440_v8  ;;  %v1441_v8 = vadd.f32 %v1305_v0, %v1198_v62 }
 0x208   : > { %1380 = vrot.lane.b32.xlu1 %v1239_v57, %s5723_s15  ;;  %1083 = vrot.lane.b32.xlu0 %v6487_v12, %s5724_s17 }
 0x209   : > { %v1692_v23 = vadd.f32 %v6269_v11, %v1638_v13  ;;  %v1227_v13 = vadd.f32 %v6402_v4, %v6152_v44  ;;  %v6519_v4 = vld [vmem:[#allocation2 + $0x92] sm:$0xff] }
 0x20a   : > { %v1365_v54 = vpop.permute.xlu1 %1364  ;;  %v6493_v33 = vpop.permute.xlu0 %1067  ;;  %10101 = vst [vmem:[#allocation17_spill] sm:$0xff] %v6519_v4 }
 0x20b   : > { %1740 = vst.msk [vmem:[%s6276_s22 + $0x30] sm:$0xff] %vm318_vm2, %v1692_v23  ;;  %v1470_v48 = vadd.f32 %v1363_v29, %v1227_v13  ;;  %v6513_v23 = vld [vmem:[#allocation2 + $0xa0] sm:$0xff] }
 0x20c   : > { %1518 = vrot.lane.b32.xlu1 %v6487_v12, %s5725_s18  ;;  %1322 = vrot.lane.b32.xlu0 %v6499_v58, %s5723_s15  ;;  %v6532_v13 = vld [vmem:[#allocation2 + $0x181] sm:$0xff] }
 0x20d   : > { %10103 = vst [vmem:[#allocation19_spill] sm:$0xff] %v6532_v13 }
 0x20e   : > { %v1503_v57 = vpop.permute.xlu1 %1502  ;;  %v1307_v26 = vpop.permute.xlu0 %1306 }
 0x20f   : > { %v1639_v1 = vadd.f32 %v1503_v57, %v1441_v8  ;;  %v1228_v57 = vadd.f32 %v6421_v39, %v6177_v3 }
 0x210   : > { %1576 = vrot.lane.b32.xlu0 %v998_v42, %s5725_s18  ;;  %1085 = vrot.lane.b32.xlu1 %v6507_v41, %s5724_s17  ;;  %v1240_v42 = vld [vmem:[#allocation2 + $0x188] sm:$0xff] }
 0x211   : > { %v1693_v46 = vadd.f32 %v6269_v11, %v1639_v1 }
 0x212   : > { %v1561_v0 = vpop.permute.xlu0 %1560  ;;  %v6515_v62 = vpop.permute.xlu1 %1069 }
 0x213   : > { %1741 = vst.msk [vmem:[%s6276_s22 + $0x38] sm:$0xff] %vm318_vm2, %v1693_v46  ;;  %v1668_v44 = vadd.f32 %v1561_v0, %v1470_v48  ;;  %v1471_v48 = vadd.f32 %v1365_v54, %v1228_v57  ;;  %v820_v46 = vpop.f32.mrb[46].mxu1  ;;  %v1199_v57 = vadd.f32 %v6430_v60, %v6167_v55 }
 0x214   : > { %1962 = vrot.lane.b32.xlu0 %v6519_v4, %s5724_s17  ;;  %1324 = vrot.lane.b32.xlu1 %v6513_v23, %s5723_s15  ;;  %897 = vst.msk [vmem:[#allocation2 + $0x1a0] sm:$0xff] %vm844_vm3, %v820_v46  ;;  %v5554_v3 = vpop.f32.mrb[47].mxu1 }
 0x215   : > { %v1722_v29 = vadd.f32 %v6269_v11, %v1668_v44  ;;  %v1442_v46 = vadd.f32 %v1307_v26, %v1199_v57  ;;  %v1200_v26 = vadd.f32 %v6452_v51, %v6192_v16  ;;  %v6575_v57 = vld [vmem:[#allocation2 + $0xa9] sm:$0xff]  ;;  %v1229_v16 = vadd.f32 %v6468_v17, %v6187_v14  ;;  %v6596_v14 = vld [vmem:[#allocation2 + $0x191] sm:$0xff] }
 0x216   : > { %v6526_v1 = vpop.permute.xlu0 %1946  ;;  %v1309_v8 = vpop.permute.xlu1 %1308  ;;  %10108 = vst [vmem:[#allocation24_spill] sm:$0xff] %v6596_v14 }
 0x217   : > { %10102 = vst [vmem:[#allocation18_spill] sm:$0xff] %v6526_v1  ;;  %1770 = vst.msk [vmem:[%s6276_s22 + $0x120] sm:$0xff] %vm318_vm2, %v1722_v29  ;;  %v1241_v29 = vld [vmem:[#allocation2 + $0x190] sm:$0xff] }
 0x218   : > { %1382 = vrot.lane.b32.xlu0 %v1240_v42, %s5723_s15  ;;  %1578 = vrot.lane.b32.xlu1 %v6532_v13, %s5725_s18 }
 0x21a   : > { %v6537_v0 = vpop.permute.xlu0 %1127  ;;  %v1563_v44 = vpop.permute.xlu1 %1562 }
 0x21b   : > { %v1669_v1 = vadd.f32 %v1563_v44, %v1471_v48  ;;  %v6553_v48 = vld [vmem:[#allocation2 + $0xa1] sm:$0xff]  ;;  %v1231_v4 = vadd.f32 %v6537_v0, %v6231_v43  ;;  %v6678_v0 = vld [vmem:[#allocation2 + $0xc9] sm:$0xff] }
 0x21c   : > { %1520 = vrot.lane.b32.xlu0 %v6507_v41, %s5725_s18  ;;  %1964 = vrot.lane.b32.xlu1 %v6540_v35, %s5724_s17  ;;  %v6676_v43 = vld [vmem:[#allocation2 + $0xc2] sm:$0xff] }
 0x21d   : > { %v1723_v39 = vadd.f32 %v6269_v11, %v1669_v1  ;;  %10114 = vst [vmem:[#allocation30_spill] sm:$0xff] %v6676_v43 }
 0x21e   : > { %v1367_v54 = vpop.permute.xlu0 %1366  ;;  %v6547_v42 = vpop.permute.xlu1 %1948 }
 0x21f   : > { %10105 = vst [vmem:[#allocation21_spill] sm:$0xff] %v6547_v42  ;;  %1771 = vst.msk [vmem:[%s6276_s22 + $0x128] sm:$0xff] %vm318_vm2, %v1723_v39  ;;  %v1472_v2 = vadd.f32 %v1367_v54, %v1229_v16  ;;  %v6611_v16 = vld [vmem:[#allocation2 + $0xb1] sm:$0xff] }
 0x220   : > { %1384 = vrot.lane.b32.xlu1 %v1241_v29, %s5723_s15  ;;  %1087 = vrot.lane.b32.xlu0 %v6553_v48, %s5724_s17  ;;  %v6573_v29 = vld [vmem:[#allocation2 + $0x189] sm:$0xff] }
 0x221   : > { %10106 = vst [vmem:[#allocation22_spill] sm:$0xff] %v6573_v29 }
 0x222   : > { %v1505_v44 = vpop.permute.xlu0 %1504  ;;  %v6558_v1 = vpop.permute.xlu1 %1129 }
 0x223   : > { %v1640_v3 = vadd.f32 %v1505_v44, %v1442_v46  ;;  %v1443_v46 = vadd.f32 %v1309_v8, %v1200_v26  ;;  %v6581_v44 = vld [vmem:[#allocation2 + $0xb0] sm:$0xff] }
 0x224   : > { %1522 = vrot.lane.b32.xlu1 %v6553_v48, %s5725_s18  ;;  %1326 = vrot.lane.b32.xlu0 %v6560_v25, %s5723_s15 }
 0x225   : > { %v1694_v55 = vadd.f32 %v6269_v11, %v1640_v3 }
 0x226   : > { %v1369_v60 = vpop.permute.xlu1 %1368  ;;  %v6567_v39 = vpop.permute.xlu0 %1071 }
 0x227   : > { %1742 = vst.msk [vmem:[%s6276_s22 + $0x40] sm:$0xff] %vm318_vm2, %v1694_v55  ;;  %v6585_v55 = vld [vmem:[#allocation2 + $0xa2] sm:$0xff] }
 0x228   : > { %1580 = vrot.lane.b32.xlu0 %v6573_v29, %s5725_s18  ;;  %1089 = vrot.lane.b32.xlu1 %v6575_v57, %s5724_s17  ;;  %10107 = vst [vmem:[#allocation23_spill] sm:$0xff] %v6585_v55 }
 0x22a   : > { %v1507_v3 = vpop.permute.xlu1 %1506  ;;  %v1311_v42 = vpop.permute.xlu0 %1310 }
 0x22b   : > { %v1641_v51 = vadd.f32 %v1507_v3, %v1443_v46  ;;  %v1230_v3 = vadd.f32 %v6485_v56, %v6219_v34 }
 0x22c   : > { %1966 = vrot.lane.b32.xlu0 %v6585_v55, %s5724_s17  ;;  %1328 = vrot.lane.b32.xlu1 %v6581_v44, %s5723_s15 }
 0x22d   : > { %v1695_v8 = vadd.f32 %v6269_v11, %v1641_v51 }
 0x22e   : > { %v1565_v26 = vpop.permute.xlu0 %1564  ;;  %v6592_v40 = vpop.permute.xlu1 %1073 }
 0x22f   : > { %1743 = vst.msk [vmem:[%s6276_s22 + $0x48] sm:$0xff] %vm318_vm2, %v1695_v8  ;;  %v1670_v31 = vadd.f32 %v1565_v26, %v1472_v2  ;;  %v6609_v2 = vld [vmem:[#allocation2 + $0xaa] sm:$0xff] }
 0x230   : > { %1524 = vrot.lane.b32.xlu0 %v6575_v57, %s5725_s18  ;;  %1582 = vrot.lane.b32.xlu1 %v6596_v14, %s5725_s18  ;;  %10110 = vst [vmem:[#allocation26_spill] sm:$0xff] %v6609_v2  ;;  %v6724_v14 = vld [vmem:[#allocation2 + $0xd9] sm:$0xff] }
 0x231   : > { %v1724_v17 = vadd.f32 %v6269_v11, %v1670_v31  ;;  %v1473_v31 = vadd.f32 %v1369_v60, %v1230_v3  ;;  %v1201_v60 = vadd.f32 %v6493_v33, %v6201_v20  ;;  %v6632_v3 = vld [vmem:[#allocation2 + $0xb2] sm:$0xff] }
 0x232   : > { %v6603_v46 = vpop.permute.xlu0 %1950  ;;  %v1313_v54 = vpop.permute.xlu1 %1312  ;;  %10112 = vst [vmem:[#allocation28_spill] sm:$0xff] %v6632_v3 }
 0x233   : > { %10109 = vst [vmem:[#allocation25_spill] sm:$0xff] %v6603_v46  ;;  %1772 = vst.msk [vmem:[%s6276_s22 + $0x130] sm:$0xff] %vm318_vm2, %v1724_v17  ;;  %v6619_v46 = vld [vmem:[#allocation2 + $0xb8] sm:$0xff] }
 0x234   : > { %1968 = vrot.lane.b32.xlu1 %v6609_v2, %s5724_s17  ;;  %1091 = vrot.lane.b32.xlu0 %v6611_v16, %s5724_s17 }
 0x236   : > { %v6617_v51 = vpop.permute.xlu0 %1131  ;;  %v1567_v8 = vpop.permute.xlu1 %1566 }
 0x237   : > { %v1671_v26 = vadd.f32 %v1567_v8, %v1473_v31  ;;  %v6634_v31 = vld [vmem:[#allocation2 + $0xb9] sm:$0xff]  ;;  %v1444_v8 = vadd.f32 %v1311_v42, %v1201_v60  ;;  %v1202_v42 = vadd.f32 %v6515_v62, %v6244_v52  ;;  %v6665_v62 = vld [vmem:[#allocation2 + $0xc8] sm:$0xff]  ;;  %v1233_v13 = vadd.f32 %v6617_v51, %v6289_v36 }
 0x238   : > { %1526 = vrot.lane.b32.xlu1 %v6611_v16, %s5725_s18  ;;  %1330 = vrot.lane.b32.xlu0 %v6619_v46, %s5723_s15  ;;  %v6655_v60 = vld [vmem:[#allocation2 + $0xba] sm:$0xff] }
 0x239   : > { %v1725_v34 = vadd.f32 %v6269_v11, %v1671_v26  ;;  %v6640_v26 = vld [vmem:[#allocation2 + $0xc0] sm:$0xff]  ;;  %10113 = vst [vmem:[#allocation29_spill] sm:$0xff] %v6655_v60 }
 0x23a   : > { %v1371_v56 = vpop.permute.xlu0 %1370  ;;  %v6626_v17 = vpop.permute.xlu1 %1952  ;;  %v6758_v36 = vld [vmem:[#allocation2 + $0xda] sm:$0xff] }
 0x23b   : > { %10111 = vst [vmem:[#allocation27_spill] sm:$0xff] %v6626_v17  ;;  %1773 = vst.msk [vmem:[%s6276_s22 + $0x138] sm:$0xff] %vm318_vm2, %v1725_v34 }
 0x23c   : > { %1970 = vrot.lane.b32.xlu0 %v6632_v3, %s5724_s17  ;;  %1093 = vrot.lane.b32.xlu1 %v6634_v31, %s5724_s17 }
 0x23e   : > { %v1509_v17 = vpop.permute.xlu0 %1508  ;;  %v6642_v55 = vpop.permute.xlu1 %1133 }
 0x23f   : > { %v1642_v20 = vadd.f32 %v1509_v17, %v1444_v8  ;;  %v6657_v17 = vld [vmem:[#allocation2 + $0xc1] sm:$0xff]  ;;  %v1445_v8 = vadd.f32 %v1313_v54, %v1202_v42 }
 0x240   : > { %1528 = vrot.lane.b32.xlu0 %v6634_v31, %s5725_s18  ;;  %1332 = vrot.lane.b32.xlu1 %v6640_v26, %s5723_s15 }
 0x241   : > { %v1696_v33 = vadd.f32 %v6269_v11, %v1642_v20 }
 0x242   : > { %v1373_v34 = vpop.permute.xlu1 %1372  ;;  %v6649_v3 = vpop.permute.xlu0 %1075 }
 0x243   : > { %1744 = vst.msk [vmem:[%s6276_s22 + $0x50] sm:$0xff] %vm318_vm2, %v1696_v33  ;;  %v1474_v33 = vadd.f32 %v1371_v56, %v1231_v4  ;;  %v6685_v56 = vld [vmem:[#allocation2 + $0xd0] sm:$0xff] }
 0x244   : > { %1972 = vrot.lane.b32.xlu1 %v6655_v60, %s5724_s17  ;;  %1095 = vrot.lane.b32.xlu0 %v6657_v17, %s5724_s17 }
 0x246   : > { %v1511_v20 = vpop.permute.xlu1 %1510  ;;  %v1315_v2 = vpop.permute.xlu0 %1314 }
 0x247   : > { %v1643_v52 = vadd.f32 %v1511_v20, %v1445_v8 }
 0x248   : > { %1530 = vrot.lane.b32.xlu1 %v6657_v17, %s5725_s18  ;;  %1334 = vrot.lane.b32.xlu0 %v6665_v62, %s5723_s15 }
 0x249   : > { %v1697_v60 = vadd.f32 %v6269_v11, %v1643_v52 }
 0x24a   : > { %v1569_v35 = vpop.permute.xlu0 %1568  ;;  %v6672_v54 = vpop.permute.xlu1 %1077 }
 0x24b   : > { %1745 = vst.msk [vmem:[%s6276_s22 + $0x58] sm:$0xff] %vm318_vm2, %v1697_v60  ;;  %v1672_v42 = vadd.f32 %v1569_v35, %v1474_v33  ;;  %v1232_v35 = vadd.f32 %v6558_v1, %v6271_v15 }
 0x24c   : > { %1974 = vrot.lane.b32.xlu0 %v6676_v43, %s5724_s17  ;;  %1097 = vrot.lane.b32.xlu1 %v6678_v0, %s5724_s17  ;;  %v6699_v43 = vld [vmem:[#allocation2 + $0xca] sm:$0xff] }
 0x24d   : > { %v1726_v4 = vadd.f32 %v6269_v11, %v1672_v42  ;;  %v1475_v60 = vadd.f32 %v1373_v34, %v1232_v35  ;;  %10116 = vst [vmem:[#allocation32_spill] sm:$0xff] %v6699_v43  ;;  %v1203_v34 = vadd.f32 %v6567_v39, %v6252_v59  ;;  %v6714_v35 = vld [vmem:[#allocation2 + $0xd8] sm:$0xff]  ;;  %v6731_v39 = vld [vmem:[#allocation2 + $0xe0] sm:$0xff] }
 0x24e   : > { %v6687_v8 = vpop.permute.xlu0 %1954  ;;  %v1317_v20 = vpop.permute.xlu1 %1316 }
 0x24f   : > { %10115 = vst [vmem:[#allocation31_spill] sm:$0xff] %v6687_v8  ;;  %1774 = vst.msk [vmem:[%s6276_s22 + $0x140] sm:$0xff] %vm318_vm2, %v1726_v4  ;;  %v6701_v8 = vld [vmem:[#allocation2 + $0xd1] sm:$0xff] }
 0x250   : > { %1532 = vrot.lane.b32.xlu0 %v6678_v0, %s5725_s18  ;;  %1336 = vrot.lane.b32.xlu1 %v6685_v56, %s5723_s15 }
 0x252   : > { %v6697_v52 = vpop.permute.xlu0 %1135  ;;  %v1571_v33 = vpop.permute.xlu1 %1570 }
 0x253   : > { %v1673_v42 = vadd.f32 %v1571_v33, %v1475_v60  ;;  %v1446_v60 = vadd.f32 %v1315_v2, %v1203_v34  ;;  %v1204_v34 = vadd.f32 %v6592_v40, %v6305_v63 }
 0x254   : > { %1976 = vrot.lane.b32.xlu1 %v6699_v43, %s5724_s17  ;;  %1099 = vrot.lane.b32.xlu0 %v6701_v8, %s5724_s17 }
 0x255   : > { %v1727_v15 = vadd.f32 %v6269_v11, %v1673_v42 }
 0x256   : > { %v1375_v1 = vpop.permute.xlu0 %1374  ;;  %v6708_v4 = vpop.permute.xlu1 %1956 }
 0x257   : > { %10117 = vst [vmem:[#allocation33_spill] sm:$0xff] %v6708_v4  ;;  %1775 = vst.msk [vmem:[%s6276_s22 + $0x148] sm:$0xff] %vm318_vm2, %v1727_v15  ;;  %v6722_v4 = vld [vmem:[#allocation2 + $0xd2] sm:$0xff]  ;;  %v1476_v40 = vadd.f32 %v1375_v1, %v1233_v13  ;;  %v1234_v1 = vadd.f32 %v6642_v55, %v6339_v6  ;;  %v6783_v6 = vld [vmem:[#allocation2 + $0xfa] sm:$0xff] }
 0x258   : > { %1534 = vrot.lane.b32.xlu1 %v6701_v8, %s5725_s18  ;;  %1338 = vrot.lane.b32.xlu0 %v6714_v35, %s5723_s15  ;;  %10118 = vst [vmem:[#allocation34_spill] sm:$0xff] %v6722_v4  ;;  %10122 = vst [vmem:[#allocation38_spill] sm:$0xff] %v6783_v6 }
 0x25a   : > { %v1513_v33 = vpop.permute.xlu0 %1512  ;;  %v6720_v42 = vpop.permute.xlu1 %1137 }
 0x25b   : > { %v1644_v43 = vadd.f32 %v1513_v33, %v1446_v60  ;;  %v6739_v60 = vld [vmem:[#allocation2 + $0xe1] sm:$0xff] }
 0x25c   : > { %1978 = vrot.lane.b32.xlu0 %v6722_v4, %s5724_s17  ;;  %1101 = vrot.lane.b32.xlu1 %v6724_v14, %s5724_s17 }
 0x25d   : > { %v1698_v59 = vadd.f32 %v6269_v11, %v1644_v43  ;;  %v1447_v43 = vadd.f32 %v1317_v20, %v1204_v34  ;;  %v6756_v34 = vld [vmem:[#allocation2 + $0xe2] sm:$0xff] }
 0x25e   : > { %v1377_v15 = vpop.permute.xlu1 %1376  ;;  %v6733_v2 = vpop.permute.xlu0 %1079 }
 0x25f   : > { %1746 = vst.msk [vmem:[%s6276_s22 + $0x60] sm:$0xff] %vm318_vm2, %v1698_v59 }
 0x260   : > { %1103 = vrot.lane.b32.xlu0 %v6739_v60, %s5724_s17  ;;  %1340 = vrot.lane.b32.xlu1 %v6731_v39, %s5723_s15 }
 0x262   : > { %v1515_v33 = vpop.permute.xlu1 %1514  ;;  %v1319_v4 = vpop.permute.xlu0 %1318 }
 0x263   : > { %v1645_v29 = vadd.f32 %v1515_v33, %v1447_v43  ;;  %v6771_v43 = vld [vmem:[#allocation2 + $0xf2] sm:$0xff]  ;;  %v6773_v33 = vld [vmem:[#allocation2 + $0xea] sm:$0xff] }
 0x264   : > { %1536 = vrot.lane.b32.xlu0 %v6724_v14, %s5725_s18  ;;  %1538 = vrot.lane.b32.xlu1 %v6739_v60, %s5725_s18  ;;  %10120 = vst [vmem:[#allocation36_spill] sm:$0xff] %v6771_v43 }
 0x265   : > { %v1699_v63 = vadd.f32 %v6269_v11, %v1645_v29 }
 0x266   : > { %v1573_v59 = vpop.permute.xlu0 %1572  ;;  %v6752_v61 = vpop.permute.xlu1 %1081 }
 0x267   : > { %1747 = vst.msk [vmem:[%s6276_s22 + $0x68] sm:$0xff] %vm318_vm2, %v1699_v63  ;;  %v1674_v20 = vadd.f32 %v1573_v59, %v1476_v40  ;;  %v1477_v40 = vadd.f32 %v1377_v15, %v1234_v1  ;;  %v1205_v15 = vadd.f32 %v6649_v3, %v6319_v21  ;;  %v6796_v1 = vld [vmem:[#allocation2 + $0x112] sm:$0xff]  ;;  %v6808_v21 = vld [vmem:[#allocation2 + $0x11a] sm:$0xff] }
 0x268   : > { %1982 = vrot.lane.b32.xlu0 %v6756_v34, %s5724_s17  ;;  %1980 = vrot.lane.b32.xlu1 %v6758_v36, %s5724_s17  ;;  %10124 = vst [vmem:[#allocation40_spill] sm:$0xff] %v6796_v1  ;;  %10126 = vst [vmem:[#allocation42_spill] sm:$0xff] %v6808_v21 }
 0x269   : > { %v1728_v13 = vadd.f32 %v6269_v11, %v1674_v20 }
 0x26a   : > { %v6765_v51 = vpop.permute.xlu0 %1958  ;;  %v1321_v29 = vpop.permute.xlu1 %1320 }
 0x26b   : > { %10119 = vst [vmem:[#allocation35_spill] sm:$0xff] %v6765_v51  ;;  %1776 = vst.msk [vmem:[%s6276_s22 + $0x150] sm:$0xff] %vm318_vm2, %v1728_v13  ;;  %v6781_v51 = vld [vmem:[#allocation2 + $0x102] sm:$0xff] }
 0x26c   : > { %1986 = vrot.lane.b32.xlu0 %v6771_v43, %s5724_s17  ;;  %1984 = vrot.lane.b32.xlu1 %v6773_v33, %s5724_s17  ;;  %10121 = vst [vmem:[#allocation37_spill] sm:$0xff] %v6781_v51 }
 0x26e   : > { %v6779_v63 = vpop.permute.xlu0 %1139  ;;  %v1575_v59 = vpop.permute.xlu1 %1574 }
 0x26f   : > { %v1675_v20 = vadd.f32 %v1575_v59, %v1477_v40  ;;  %v6798_v40 = vld [vmem:[#allocation2 + $0x10a] sm:$0xff]  ;;  %v1448_v59 = vadd.f32 %v1319_v4, %v1205_v15  ;;  %v1206_v4 = vadd.f32 %v6672_v54, %v6370_v5  ;;  %v6821_v15 = vld [vmem:[#allocation2 + $0x132] sm:$0xff]  ;;  %v6831_v54 = vld [vmem:[#allocation2 + $0x142] sm:$0xff] }
 0x270   : > { %1990 = vrot.lane.b32.xlu0 %v6781_v51, %s5724_s17  ;;  %1988 = vrot.lane.b32.xlu1 %v6783_v6, %s5724_s17  ;;  %v6806_v6 = vld [vmem:[#allocation2 + $0x122] sm:$0xff]  ;;  %10127 = vst [vmem:[#allocation43_spill] sm:$0xff] %v6821_v15 }
 0x271   : > { %v1729_v55 = vadd.f32 %v6269_v11, %v1675_v20  ;;  %10125 = vst [vmem:[#allocation41_spill] sm:$0xff] %v6806_v6 }
 0x272   : > { %v1379_v13 = vpop.permute.xlu0 %1378  ;;  %v6790_v43 = vpop.permute.xlu1 %1960 }
 0x273   : > { %10123 = vst [vmem:[#allocation39_spill] sm:$0xff] %v6790_v43  ;;  %1777 = vst.msk [vmem:[%s6276_s22 + $0x158] sm:$0xff] %vm318_vm2, %v1729_v55 }
 0x274   : > { %1994 = vrot.lane.b32.xlu0 %v6796_v1, %s5724_s17  ;;  %1992 = vrot.lane.b32.xlu1 %v6798_v40, %s5724_s17 }
 0x276   : > { %v1517_v20 = vpop.permute.xlu0 %1516  ;;  %v6804_v51 = vpop.permute.xlu1 %1141 }
 0x277   : > { %v1646_v43 = vadd.f32 %v1517_v20, %v1448_v59  ;;  %v6823_v59 = vld [vmem:[#allocation2 + $0x12a] sm:$0xff] }
 0x278   : > { %1998 = vrot.lane.b32.xlu0 %v6806_v6, %s5724_s17  ;;  %1996 = vrot.lane.b32.xlu1 %v6808_v21, %s5724_s17  ;;  %10128 = vst [vmem:[#allocation44_spill] sm:$0xff] %v6823_v59  ;;  %v1235_v21 = vadd.f32 %v6697_v52, %v6353_v10  ;;  %v6844_v52 = vld [vmem:[#allocation2 + $0x152] sm:$0xff] }
 0x279   : > { %v1700_v3 = vadd.f32 %v6269_v11, %v1646_v43  ;;  %v1449_v43 = vadd.f32 %v1321_v29, %v1206_v4  ;;  %10129 = vst [vmem:[#allocation45_spill] sm:$0xff] %v6844_v52 }
 0x27a   : > { %v1381_v55 = vpop.permute.xlu1 %1380  ;;  %v6815_v1 = vpop.permute.xlu0 %1083 }
 0x27b   : > { %1748 = vst.msk [vmem:[%s6276_s22 + $0x70] sm:$0xff] %vm318_vm2, %v1700_v3  ;;  %v6833_v3 = vld [vmem:[#allocation2 + $0x13a] sm:$0xff] }
 0x27c   : > { %2002 = vrot.lane.b32.xlu0 %v6821_v15, %s5724_s17  ;;  %2000 = vrot.lane.b32.xlu1 %v6823_v59, %s5724_s17  ;;  %v1478_v15 = vadd.f32 %v1379_v13, %v1235_v21 }
 0x27e   : > { %v1519_v20 = vpop.permute.xlu1 %1518  ;;  %v1323_v6 = vpop.permute.xlu0 %1322 }
 0x27f   : > { %v1647_v5 = vadd.f32 %v1519_v20, %v1449_v43  ;;  %v6846_v43 = vld [vmem:[#allocation2 + $0x14a] sm:$0xff] }
 0x280   : > { %2006 = vrot.lane.b32.xlu0 %v6831_v54, %s5724_s17  ;;  %2004 = vrot.lane.b32.xlu1 %v6833_v3, %s5724_s17 }
 0x281   : > { %v1701_v29 = vadd.f32 %v6269_v11, %v1647_v5  ;;  %v1236_v5 = vadd.f32 %v6720_v42, %v6404_v24  ;;  %v6869_v42 = vld [vmem:[#allocation2 + $0x172] sm:$0xff] }
 0x282   : > { %v1577_v4 = vpop.permute.xlu0 %1576  ;;  %v6840_v59 = vpop.permute.xlu1 %1085 }
 0x283   : > { %1749 = vst.msk [vmem:[%s6276_s22 + $0x78] sm:$0xff] %vm318_vm2, %v1701_v29  ;;  %v1676_v10 = vadd.f32 %v1577_v4, %v1478_v15  ;;  %v6859_v15 = vld [vmem:[#allocation2 + $0x162] sm:$0xff]  ;;  %v6861_v29 = vld [vmem:[#allocation2 + $0x15a] sm:$0xff]  ;;  %v1479_v4 = vadd.f32 %v1381_v55, %v1236_v5 }
 0x284   : > { %2010 = vrot.lane.b32.xlu0 %v6844_v52, %s5724_s17  ;;  %2008 = vrot.lane.b32.xlu1 %v6846_v43, %s5724_s17  ;;  %10131 = vst [vmem:[#allocation47_spill] sm:$0xff] %v6859_v15  ;;  %10132 = vst [vmem:[#allocation48_spill] sm:$0xff] %v6861_v29  ;;  %v1207_v52 = vadd.f32 %v6733_v2, %v6384_v37  ;;  %v6882_v2 = vld [vmem:[#allocation2 + $0x17a] sm:$0xff] }
 0x285   : > { %v1730_v13 = vadd.f32 %v6269_v11, %v1676_v10 }
 0x286   : > { %v6853_v21 = vpop.permute.xlu0 %1962  ;;  %v1325_v20 = vpop.permute.xlu1 %1324 }
 0x287   : > { %10130 = vst [vmem:[#allocation46_spill] sm:$0xff] %v6853_v21  ;;  %1778 = vst.msk [vmem:[%s6276_s22 + $0x160] sm:$0xff] %vm318_vm2, %v1730_v13  ;;  %v6871_v13 = vld [vmem:[#allocation2 + $0x16a] sm:$0xff] }
 0x288   : > { %2014 = vrot.lane.b32.xlu0 %v6859_v15, %s5724_s17  ;;  %2012 = vrot.lane.b32.xlu1 %v6861_v29, %s5724_s17  ;;  %v1450_v15 = vadd.f32 %v1323_v6, %v1207_v52 }
 0x28a   : > { %v1383_v10 = vpop.permute.xlu0 %1382  ;;  %v1579_v21 = vpop.permute.xlu1 %1578 }
 0x28b   : > { %v1677_v24 = vadd.f32 %v1579_v21, %v1479_v4  ;;  %v6884_v21 = vld [vmem:[#allocation2 + $0x19] sm:$0xff] }
 0x28c   : > { %2018 = vrot.lane.b32.xlu0 %v6869_v42, %s5724_s17  ;;  %2016 = vrot.lane.b32.xlu1 %v6871_v13, %s5724_s17  ;;  %10134 = vst [vmem:[#allocation50_spill] sm:$0xff] %v6884_v21 }
 0x28d   : > { %v1731_v55 = vadd.f32 %v6269_v11, %v1677_v24  ;;  %v1208_v24 = vadd.f32 %v6752_v61, %v6436_v22  ;;  %v6907_v22 = vld [vmem:[#allocation2 + $0x39] sm:$0xff] }
 0x28e   : > { %v1521_v5 = vpop.permute.xlu0 %1520  ;;  %v6878_v29 = vpop.permute.xlu1 %1964 }
 0x28f   : > { %10133 = vst [vmem:[#allocation49_spill] sm:$0xff] %v6878_v29  ;;  %1779 = vst.msk [vmem:[%s6276_s22 + $0x168] sm:$0xff] %vm318_vm2, %v1731_v55  ;;  %v1648_v37 = vadd.f32 %v1521_v5, %v1450_v15  ;;  %v6897_v15 = vld [vmem:[#allocation2 + $0x29] sm:$0xff]  ;;  %v6901_v55 = vld [vmem:[#allocation2 + $0x21] sm:$0xff]  ;;  %v1451_v5 = vadd.f32 %v1325_v20, %v1208_v24 }
 0x290   : > { %2169 = vrot.lane.b32.xlu0 %v6884_v21, %s5723_s15  ;;  %2020 = vrot.lane.b32.xlu1 %v6882_v2, %s5724_s17  ;;  %10135 = vst [vmem:[#allocation51_spill] sm:$0xff] %v6897_v15  ;;  %10136 = vst [vmem:[#allocation52_spill] sm:$0xff] %v6901_v55  ;;  %v1237_v21 = vadd.f32 %v6779_v63, %v6419_v32  ;;  %v6918_v63 = vld [vmem:[#allocation2 + $0x49] sm:$0xff] }
 0x291   : > { %v1702_v6 = vadd.f32 %v6269_v11, %v1648_v37  ;;  %10137 = vst [vmem:[#allocation53_spill] sm:$0xff] %v6918_v63 }
 0x292   : > { %v1385_v52 = vpop.permute.xlu1 %1384  ;;  %v6891_v4 = vpop.permute.xlu0 %1087 }
 0x293   : > { %1750 = vst.msk [vmem:[%s6276_s22 + $0x80] sm:$0xff] %vm318_vm2, %v1702_v6  ;;  %v6911_v6 = vld [vmem:[#allocation2 + $0x31] sm:$0xff] }
 0x294   : > { %2173 = vrot.lane.b32.xlu0 %v6897_v15, %s5723_s15  ;;  %2171 = vrot.lane.b32.xlu1 %v6901_v55, %s5723_s15  ;;  %v1480_v15 = vadd.f32 %v1383_v10, %v1237_v21 }
 0x296   : > { %v1523_v37 = vpop.permute.xlu1 %1522  ;;  %v1327_v29 = vpop.permute.xlu0 %1326 }
 0x297   : > { %v1649_v61 = vadd.f32 %v1523_v37, %v1451_v5  ;;  %v6922_v5 = vld [vmem:[#allocation2 + $0x41] sm:$0xff] }
 0x298   : > { %2177 = vrot.lane.b32.xlu0 %v6907_v22, %s5723_s15  ;;  %2175 = vrot.lane.b32.xlu1 %v6911_v6, %s5723_s15  ;;  %10138 = vst [vmem:[#allocation54_spill] sm:$0xff] %v6922_v5  ;;  %v6926_v37 = vld [vmem:[#allocation3] ss:$0 sm:$0xff] }
 0x299   : > { %v1703_v20 = vadd.f32 %v6269_v11, %v1649_v61  ;;  %v1209_v61 = vadd.f32 %v6815_v1, %v6450_v49 }
 0x29a   : > { %v1581_v24 = vpop.permute.xlu0 %1580  ;;  %v1090_v55 = vpop.permute.xlu1 %1089 }
 0x29b   : > { %1751 = vst.msk [vmem:[%s6276_s22 + $0x88] sm:$0xff] %vm318_vm2, %v1703_v20  ;;  %v1678_v32 = vadd.f32 %v1581_v24, %v1480_v15  ;;  %v1238_v15 = vadd.f32 %v6804_v51, %v6470_v9  ;;  %v6937_v20 = vld [vmem:[#allocation2 + $0x59] sm:$0xff]  ;;  %v6941_v24 = vld [vmem:[#allocation2 + $0x51] sm:$0xff] }
 0x29c   : > { %2181 = vrot.lane.b32.xlu0 %v6918_v63, %s5723_s15  ;;  %2179 = vrot.lane.b32.xlu1 %v6922_v5, %s5723_s15  ;;  %10140 = vst [vmem:[#allocation56_spill] sm:$0xff] %v6937_v20 }
 0x29d   : > { %v1732_v10 = vadd.f32 %v6926_v37, %v1678_v32  ;;  %v1481_v32 = vadd.f32 %v1385_v52, %v1238_v15 }
 0x29e   : > { %v6929_v11 = vpop.permute.xlu0 %1966  ;;  %v1329_v21 = vpop.permute.xlu1 %1328 }
 0x29f   : > { %10139 = vst [vmem:[#allocation55_spill] sm:$0xff] %v6929_v11  ;;  %1780 = vst.msk [vmem:[%s6276_s22 + $0x170] sm:$0xff] %vm318_vm2, %v1732_v10  ;;  %v1452_v11 = vadd.f32 %v1327_v29, %v1209_v61  ;;  %v1210_v29 = vadd.f32 %v6840_v59, %v6499_v58 }
 0x2a0   : > { %2185 = vrot.lane.b32.xlu0 %v6937_v20, %s5723_s15  ;;  %2183 = vrot.lane.b32.xlu1 %v6941_v24, %s5723_s15 }
 0x2a2   : > { %v1525_v9 = vpop.permute.xlu0 %1524  ;;  %v1583_v51 = vpop.permute.xlu1 %1582 }
 0x2a3   : > { %v1650_v63 = vadd.f32 %v1525_v9, %v1452_v11  ;;  %v1679_v49 = vadd.f32 %v1583_v51, %v1481_v32  ;;  %v7006_v51 = vld [vmem:[#allocation2 + $0xe9] sm:$0xff] }
 0x2a4   : > { %2189 = vrot.lane.b32.xlu0 %v6313_v19, %s5723_s15  ;;  %2187 = vrot.lane.b32.xlu1 %v6293_v53, %s5723_s15  ;;  %v1453_v53 = vadd.f32 %v1329_v21, %v1210_v29  ;;  %10143 = vst [vmem:[#allocation59_spill] sm:$0xff] %v7006_v51 }
 0x2a5   : > { %v1704_v1 = vadd.f32 %v6926_v37, %v1650_v63  ;;  %v1733_v10 = vadd.f32 %v6926_v37, %v1679_v49 }
 0x2a6   : > { %v6951_v20 = vpop.permute.xlu1 %1968  ;;  %v1092_v5 = vpop.permute.xlu0 %1091 }
 0x2a7   : > { %1752 = vst.msk [vmem:[%s6276_s22 + $0x90] sm:$0xff] %vm318_vm2, %v1704_v1  ;;  %1781 = vst.msk [vmem:[%s6276_s22 + $0x178] sm:$0xff] %vm318_vm2, %v1733_v10  ;;  %v7019_v1 = vld [vmem:[#allocation2 + $0xf9] sm:$0xff]  ;;  %v7021_v10 = vld [vmem:[#allocation2 + $0xf1] sm:$0xff] }
 0x2a8   : > { %2193 = vrot.lane.b32.xlu0 %v6378_v45, %s5723_s15  ;;  %2191 = vrot.lane.b32.xlu1 %v6357_v47, %s5723_s15  ;;  %v1211_v45 = vadd.f32 %v6891_v4, %v6513_v23  ;;  %10145 = vst [vmem:[#allocation61_spill] sm:$0xff] %v7019_v1  ;;  %10146 = vst [vmem:[#allocation62_spill] sm:$0xff] %v7021_v10 }
 0x2aa   : > { %v1527_v19 = vpop.permute.xlu1 %1526  ;;  %v1331_v52 = vpop.permute.xlu0 %1330 }
 0x2ab   : > { %v1651_v63 = vadd.f32 %v1527_v19, %v1453_v53  ;;  %v1454_v47 = vadd.f32 %v1331_v52, %v1211_v45  ;;  %v7029_v52 = vld [vmem:[#allocation2 + $0x109] sm:$0xff] }
 0x2ac   : > { %2197 = vrot.lane.b32.xlu0 %v6444_v7, %s5723_s15  ;;  %2195 = vrot.lane.b32.xlu1 %v6423_v38, %s5723_s15  ;;  %10147 = vst [vmem:[#allocation63_spill] sm:$0xff] %v7029_v52 }
 0x2ad   : > { %v1705_v58 = vadd.f32 %v6926_v37, %v1651_v63  ;;  %v7031_v63 = vld [vmem:[#allocation2 + $0x101] sm:$0xff] }
 0x2ae   : > { %v6968_v59 = vpop.permute.xlu0 %1970  ;;  %v1094_v11 = vpop.permute.xlu1 %1093  ;;  %10148 = vst [vmem:[#allocation64_spill] sm:$0xff] %v7031_v63 }
 0x2af   : > { %1753 = vst.msk [vmem:[%s6276_s22 + $0x98] sm:$0xff] %vm318_vm2, %v1705_v58  ;;  %v1214_v49 = vadd.f32 %v1094_v11, %v6619_v46 }
 0x2b0   : > { %2201 = vrot.lane.b32.xlu0 %v6507_v41, %s5723_s15  ;;  %2199 = vrot.lane.b32.xlu1 %v6487_v12, %s5723_s15  ;;  %v1212_v41 = vadd.f32 %v1090_v55, %v6560_v25 }
 0x2b2   : > { %v1529_v7 = vpop.permute.xlu0 %1528  ;;  %v1333_v38 = vpop.permute.xlu1 %1332 }
 0x2b3   : > { %v1652_v21 = vadd.f32 %v1529_v7, %v1454_v47  ;;  %v1455_v12 = vadd.f32 %v1333_v38, %v1212_v41  ;;  %v7046_v47 = vld [vmem:[#allocation2 + $0x119] sm:$0xff]  ;;  %v7048_v7 = vld [vmem:[#allocation2 + $0x111] sm:$0xff] }
 0x2b4   : > { %2205 = vrot.lane.b32.xlu0 %v6575_v57, %s5723_s15  ;;  %2203 = vrot.lane.b32.xlu1 %v6553_v48, %s5723_s15  ;;  %10150 = vst [vmem:[#allocation66_spill] sm:$0xff] %v7046_v47  ;;  %10151 = vst [vmem:[#allocation67_spill] sm:$0xff] %v7048_v7 }
 0x2b5   : > { %v1706_v23 = vadd.f32 %v6926_v37, %v1652_v21 }
 0x2b6   : > { %v6983_v4 = vpop.permute.xlu1 %1972  ;;  %v1096_v15 = vpop.permute.xlu0 %1095 }
 0x2b7   : > { %10141 = vst [vmem:[#allocation57_spill] sm:$0xff] %v6983_v4  ;;  %1754 = vst.msk [vmem:[%s6276_s22 + $0xa0] sm:$0xff] %vm318_vm2, %v1706_v23  ;;  %v1215_v41 = vadd.f32 %v1096_v15, %v6640_v26  ;;  %v10154_v15 = vld [vmem:[#allocation8_spill] sm:$0xff] }
 0x2b8   : > { %2209 = vrot.lane.b32.xlu0 %v6634_v31, %s5723_s15  ;;  %2207 = vrot.lane.b32.xlu1 %v6611_v16, %s5723_s15  ;;  %v1213_v31 = vadd.f32 %v1092_v5, %v6581_v44 }
 0x2ba   : > { %v1531_v57 = vpop.permute.xlu1 %1530  ;;  %v1335_v61 = vpop.permute.xlu0 %1334 }
 0x2bb   : > { %v1653_v48 = vadd.f32 %v1531_v57, %v1455_v12  ;;  %v1456_v16 = vadd.f32 %v1335_v61, %v1213_v31  ;;  %v7059_v61 = vld [vmem:[#allocation2 + $0x129] sm:$0xff] }
 0x2bc   : > { %2213 = vrot.lane.b32.xlu0 %v6678_v0, %s5723_s15  ;;  %2211 = vrot.lane.b32.xlu1 %v6657_v17, %s5723_s15  ;;  %10152 = vst [vmem:[#allocation68_spill] sm:$0xff] %v7059_v61 }
 0x2bd   : > { %v1707_v25 = vadd.f32 %v6926_v37, %v1653_v48  ;;  %v7061_v48 = vld [vmem:[#allocation2 + $0x121] sm:$0xff] }
 0x2be   : > { %v6997_v55 = vpop.permute.xlu0 %1974  ;;  %v1098_v32 = vpop.permute.xlu1 %1097  ;;  %10153 = vst [vmem:[#allocation69_spill] sm:$0xff] %v7061_v48 }
 0x2bf   : > { %10142 = vst [vmem:[#allocation58_spill] sm:$0xff] %v6997_v55  ;;  %1755 = vst.msk [vmem:[%s6276_s22 + $0xa8] sm:$0xff] %vm318_vm2, %v1707_v25  ;;  %v1216_v12 = vadd.f32 %v1098_v32, %v6665_v62 }
 0x2c0   : > { %2217 = vrot.lane.b32.xlu0 %v6724_v14, %s5723_s15  ;;  %2215 = vrot.lane.b32.xlu1 %v6701_v8, %s5723_s15 }
 0x2c2   : > { %v1533_v0 = vpop.permute.xlu0 %1532  ;;  %v1337_v9 = vpop.permute.xlu1 %1336 }
 0x2c3   : > { %v1654_v17 = vadd.f32 %v1533_v0, %v1456_v16  ;;  %v7072_v0 = vld [vmem:[#allocation2 + $0x139] sm:$0xff] }
 0x2c4   : > { %2221 = vrot.lane.b32.xlu0 %v7006_v51, %s5723_s15  ;;  %2219 = vrot.lane.b32.xlu1 %v6739_v60, %s5723_s15  ;;  %v1457_v60 = vadd.f32 %v1337_v9, %v1214_v49  ;;  %10155 = vst [vmem:[#allocation8_spill] sm:$0xff] %v7072_v0  ;;  %v7074_v9 = vld [vmem:[#allocation2 + $0x131] sm:$0xff] }
 0x2c5   : > { %v1708_v44 = vadd.f32 %v6926_v37, %v1654_v17  ;;  %10156 = vst [vmem:[#allocation70_spill] sm:$0xff] %v7074_v9 }
 0x2c6   : > { %v7013_v5 = vpop.permute.xlu1 %1976  ;;  %v1100_v14 = vpop.permute.xlu0 %1099 }
 0x2c7   : > { %10144 = vst [vmem:[#allocation60_spill] sm:$0xff] %v7013_v5  ;;  %1756 = vst.msk [vmem:[%s6276_s22 + $0xb0] sm:$0xff] %vm318_vm2, %v1708_v44  ;;  %v1217_v8 = vadd.f32 %v1100_v14, %v6685_v56  ;;  %v5644_v5 = vld [vmem:[#allocation2 + $0x11] sm:$0xff] }
 0x2c8   : > { %2225 = vrot.lane.b32.xlu0 %v7019_v1, %s5723_s15  ;;  %2223 = vrot.lane.b32.xlu1 %v7021_v10, %s5723_s15 }
 0x2c9   : > { %v1460_v29 = vadd.f32 %v6197_v18, %v1217_v8  ;;  %v7093_v8 = vld [vmem:[#allocation2 + $0x149] sm:$0xff] }
 0x2ca   : > { %v1535_v46 = vpop.permute.xlu1 %1534  ;;  %v1339_v53 = vpop.permute.xlu0 %1338  ;;  %10159 = vst [vmem:[#allocation73_spill] sm:$0xff] %v7093_v8 }
 0x2cb   : > { %v1658_v19 = vadd.f32 %v6211_v28, %v1460_v29  ;;  %v1655_v56 = vadd.f32 %v1535_v46, %v1457_v60  ;;  %v7095_v60 = vld [vmem:[#allocation2 + $0x141] sm:$0xff] }
 0x2cc   : > { %2229 = vrot.lane.b32.xlu0 %v7029_v52, %s5723_s15  ;;  %2227 = vrot.lane.b32.xlu1 %v7031_v63, %s5723_s15  ;;  %10160 = vst [vmem:[#allocation74_spill] sm:$0xff] %v7095_v60  ;;  %v313_v52 = vld [vmem:[%s5825_s9 + $0x1a8] sm:$0xff] }
 0x2cd   : > { %v1712_v58 = vadd.f32 %v6926_v37, %v1658_v19  ;;  %v1709_v11 = vadd.f32 %v6926_v37, %v1655_v56  ;;  %v7107_v19 = vld [vmem:[#allocation2 + $0x151] sm:$0xff]  ;;  %5556 = vmatmul.mubr.msk.f32.gmra.mrb[48].mxu1 %vm318_vm2, %v313_v52 }
 0x2ce   : > { %v7039_v18 = vpop.permute.xlu0 %1978  ;;  %v1102_v45 = vpop.permute.xlu1 %1101  ;;  %10164 = vst [vmem:[#allocation78_spill] sm:$0xff] %v7107_v19 }
 0x2cf   : > { %10149 = vst [vmem:[#allocation65_spill] sm:$0xff] %v7039_v18  ;;  %1760 = vst.msk [vmem:[%s6276_s22 + $0xd0] sm:$0xff] %vm318_vm2, %v1712_v58  ;;  %v1218_v28 = vadd.f32 %v1102_v45, %v6714_v35  ;;  %v7119_v45 = vld [vmem:[#allocation2 + $0x161] sm:$0xff] }
 0x2d0   : > { %1757 = vst.msk [vmem:[%s6276_s22 + $0xb8] sm:$0xff] %vm318_vm2, %v1709_v11  ;;  %2233 = vrot.lane.b32.xlu0 %v7046_v47, %s5723_s15  ;;  %2231 = vrot.lane.b32.xlu1 %v7048_v7, %s5723_s15  ;;  %v7117_v11 = vld [vmem:[#allocation2 + $0x169] sm:$0xff]  ;;  %10168 = vst [vmem:[#allocation82_spill] sm:$0xff] %v7119_v45 }
 0x2d1   : > { %v1461_v38 = vadd.f32 %v6209_v27, %v1218_v28  ;;  %v1458_v27 = vadd.f32 %v1339_v53, %v1215_v41  ;;  %v7105_v53 = vld [vmem:[#allocation2 + $0x159] sm:$0xff]  ;;  %10167 = vst [vmem:[#allocation81_spill] sm:$0xff] %v7117_v11 }
 0x2d2   : > { %v1104_v21 = vpop.permute.xlu0 %1103  ;;  %v1341_v23 = vpop.permute.xlu1 %1340  ;;  %10163 = vst [vmem:[#allocation77_spill] sm:$0xff] %v7105_v53 }
 0x2d3   : > { %v1659_v35 = vadd.f32 %v6215_v30, %v1461_v38  ;;  %v1219_v57 = vadd.f32 %v1104_v21, %v6731_v39  ;;  %v1459_v62 = vadd.f32 %v1341_v23, %v1216_v12  ;;  %v7129_v21 = vld [vmem:[#allocation2 + $0x179] sm:$0xff]  ;;  %v7131_v23 = vld [vmem:[#allocation2 + $0x171] sm:$0xff] }
 0x2d4   : > { %2237 = vrot.lane.b32.xlu0 %v7059_v61, %s5723_s15  ;;  %2235 = vrot.lane.b32.xlu1 %v7061_v48, %s5723_s15  ;;  %10171 = vst [vmem:[#allocation85_spill] sm:$0xff] %v7129_v21  ;;  %10172 = vst [vmem:[#allocation86_spill] sm:$0xff] %v7131_v23  ;;  %v10212_v61 = vld [vmem:[#allocation48_spill] sm:$0xff]  ;;  %v2361_v48 = vld [vmem:[#allocation2 + $0x182] sm:$0xff] }
 0x2d5   : > { %v1713_v25 = vadd.f32 %v6926_v37, %v1659_v35  ;;  %v1462_v26 = vadd.f32 %v6240_v50, %v1219_v57  ;;  %v10175_v35 = vld [vmem:[#allocation22_spill] sm:$0xff]  ;;  %v10176_v57 = vld [vmem:[#allocation19_spill] sm:$0xff] }
 0x2d6   : > { %v1537_v30 = vpop.permute.xlu0 %1536  ;;  %v1539_v39 = vpop.permute.xlu1 %1538 }
 0x2d7   : > { %1761 = vst.msk [vmem:[%s6276_s22 + $0xd8] sm:$0xff] %vm318_vm2, %v1713_v25  ;;  %v1660_v32 = vadd.f32 %v10154_v15, %v1462_v26  ;;  %v1656_v31 = vadd.f32 %v1537_v30, %v1458_v27  ;;  %v1657_v16 = vadd.f32 %v1539_v39, %v1459_v62  ;;  %v5627_v26 = vld [vmem:[#allocation2 + $0x1a] sm:$0xff]  ;;  %v5628_v15 = vld [vmem:[#allocation2 + $0x2a] sm:$0xff] }
 0x2d8   : > { %2241 = vrot.lane.b32.xlu0 %v7072_v0, %s5723_s15  ;;  %2239 = vrot.lane.b32.xlu1 %v7074_v9, %s5723_s15  ;;  %v10179_v62 = vld [vmem:[#allocation24_spill] sm:$0xff]  ;;  %v10202_v0 = vld [vmem:[#allocation42_spill] sm:$0xff] }
 0x2d9   : > { %v1714_v50 = vadd.f32 %v6926_v37, %v1660_v32  ;;  %v1710_v17 = vadd.f32 %v6926_v37, %v1656_v31  ;;  %v1711_v44 = vadd.f32 %v6926_v37, %v1657_v16  ;;  %v5629_v32 = vld [vmem:[#allocation2 + $0x22] sm:$0xff]  ;;  %v10205_v9 = vld [vmem:[#allocation44_spill] sm:$0xff] }
 0x2da   : > { %v7083_v14 = vpop.permute.xlu0 %1982  ;;  %v7085_v49 = vpop.permute.xlu1 %1980 }
 0x2db   : > { %10157 = vst [vmem:[#allocation71_spill] sm:$0xff] %v7083_v14  ;;  %10158 = vst [vmem:[#allocation72_spill] sm:$0xff] %v7085_v49  ;;  %v10249_v49 = vld [vmem:[#allocation6_spill] sm:$0xff] }
 0x2dc   : > { %1762 = vst.msk [vmem:[%s6276_s22 + $0xe0] sm:$0xff] %vm318_vm2, %v1714_v50  ;;  %1758 = vst.msk [vmem:[%s6276_s22 + $0xc0] sm:$0xff] %vm318_vm2, %v1710_v17  ;;  %2245 = vrot.lane.b32.xlu0 %v7093_v8, %s5723_s15  ;;  %2243 = vrot.lane.b32.xlu1 %v7095_v60, %s5723_s15  ;;  %v5630_v50 = vld [vmem:[#allocation2 + $0x3a] sm:$0xff]  ;;  %v5631_v17 = vld [vmem:[#allocation2 + $0x32] sm:$0xff] }
 0x2dd   : > { %1759 = vst.msk [vmem:[%s6276_s22 + $0xc8] sm:$0xff] %vm318_vm2, %v1711_v44  ;;  %v10195_v8 = vld [vmem:[#allocation32_spill] sm:$0xff]  ;;  %v10198_v60 = vld [vmem:[#allocation38_spill] sm:$0xff] }
 0x2de   : > { %v7101_v29 = vpop.permute.xlu0 %1986  ;;  %v7103_v46 = vpop.permute.xlu1 %1984 }
 0x2df   : > { %10161 = vst [vmem:[#allocation75_spill] sm:$0xff] %v7101_v29  ;;  %10162 = vst [vmem:[#allocation76_spill] sm:$0xff] %v7103_v46 }
 0x2e0   : > { %2249 = vrot.lane.b32.xlu0 %v7105_v53, %s5723_s15  ;;  %2247 = vrot.lane.b32.xlu1 %v7107_v19, %s5723_s15  ;;  %v10191_v53 = vld [vmem:[#allocation26_spill] sm:$0xff]  ;;  %v10193_v19 = vld [vmem:[#allocation29_spill] sm:$0xff] }
 0x2e2   : > { %v7113_v56 = vpop.permute.xlu0 %1990  ;;  %v7115_v58 = vpop.permute.xlu1 %1988 }
 0x2e3   : > { %10165 = vst [vmem:[#allocation79_spill] sm:$0xff] %v7113_v56  ;;  %10166 = vst [vmem:[#allocation80_spill] sm:$0xff] %v7115_v58 }
 0x2e4   : > { %2253 = vrot.lane.b32.xlu0 %v7117_v11, %s5723_s15  ;;  %2251 = vrot.lane.b32.xlu1 %v7119_v45, %s5723_s15  ;;  %v10189_v45 = vld [vmem:[#allocation20_spill] sm:$0xff] }
 0x2e6   : > { %v7125_v28 = vpop.permute.xlu0 %1994  ;;  %v7127_v38 = vpop.permute.xlu1 %1992 }
 0x2e7   : > { %10169 = vst [vmem:[#allocation83_spill] sm:$0xff] %v7125_v28  ;;  %10170 = vst [vmem:[#allocation84_spill] sm:$0xff] %v7127_v38 }
 0x2e8   : > { %2257 = vrot.lane.b32.xlu0 %v7129_v21, %s5723_s15  ;;  %2255 = vrot.lane.b32.xlu1 %v7131_v23, %s5723_s15  ;;  %v5636_v21 = vld [vmem:[#allocation2 + $0x6a] sm:$0xff] }
 0x2ea   : > { %v7137_v41 = vpop.permute.xlu0 %1998  ;;  %v7139_v12 = vpop.permute.xlu1 %1996 }
 0x2eb   : > { %10173 = vst [vmem:[#allocation87_spill] sm:$0xff] %v7137_v41  ;;  %10174 = vst [vmem:[#allocation88_spill] sm:$0xff] %v7139_v12 }
 0x2ec   : > { %2261 = vrot.lane.b32.xlu0 %v10175_v35, %s5723_s15  ;;  %2259 = vrot.lane.b32.xlu1 %v10176_v57, %s5723_s15  ;;  %v5632_v57 = vld [vmem:[#allocation2 + $0x4a] sm:$0xff] }
 0x2ee   : > { %v7145_v27 = vpop.permute.xlu0 %2002  ;;  %v7147_v25 = vpop.permute.xlu1 %2000 }
 0x2ef   : > { %10177 = vst [vmem:[#allocation22_spill] sm:$0xff] %v7145_v27  ;;  %10178 = vst [vmem:[#allocation19_spill] sm:$0xff] %v7147_v25 }
 0x2f0   : > { %2367 = vrot.lane.b32.xlu0 %v5627_v26, %s5725_s18  ;;  %2263 = vrot.lane.b32.xlu1 %v10179_v62, %s5723_s15  ;;  %v5633_v26 = vld [vmem:[#allocation2 + $0x42] sm:$0xff] }
 0x2f2   : > { %v7152_v30 = vpop.permute.xlu0 %2006  ;;  %v7154_v39 = vpop.permute.xlu1 %2004 }
 0x2f3   : > { %10180 = vst [vmem:[#allocation24_spill] sm:$0xff] %v7152_v30  ;;  %10181 = vst [vmem:[#allocation89_spill] sm:$0xff] %v7154_v39 }
 0x2f4   : > { %2371 = vrot.lane.b32.xlu0 %v5628_v15, %s5725_s18  ;;  %2369 = vrot.lane.b32.xlu1 %v5629_v32, %s5725_s18  ;;  %v5634_v32 = vld [vmem:[#allocation2 + $0x5a] sm:$0xff] }
 0x2f6   : > { %v7158_v31 = vpop.permute.xlu0 %2010  ;;  %v7160_v16 = vpop.permute.xlu1 %2008 }
 0x2f7   : > { %10182 = vst [vmem:[#allocation90_spill] sm:$0xff] %v7158_v31  ;;  %10183 = vst [vmem:[#allocation91_spill] sm:$0xff] %v7160_v16 }
 0x2f8   : > { %2375 = vrot.lane.b32.xlu0 %v5630_v50, %s5725_s18  ;;  %2373 = vrot.lane.b32.xlu1 %v5631_v17, %s5725_s18  ;;  %v5635_v50 = vld [vmem:[#allocation2 + $0x52] sm:$0xff] }
 0x2fa   : > { %v7164_v44 = vpop.permute.xlu0 %2014  ;;  %v7166_v35 = vpop.permute.xlu1 %2012 }
 0x2fb   : > { %10184 = vst [vmem:[#allocation92_spill] sm:$0xff] %v7164_v44  ;;  %10185 = vst [vmem:[#allocation93_spill] sm:$0xff] %v7166_v35 }
 0x2fc   : > { %2379 = vrot.lane.b32.xlu0 %v5632_v57, %s5725_s18  ;;  %2377 = vrot.lane.b32.xlu1 %v5633_v26, %s5725_s18  ;;  %v5637_v57 = vld [vmem:[#allocation2 + $0x62] sm:$0xff] }
 0x2fe   : > { %v7170_v62 = vpop.permute.xlu0 %2018  ;;  %v7172_v15 = vpop.permute.xlu1 %2016 }
 0x2ff   : > { %10186 = vst [vmem:[#allocation94_spill] sm:$0xff] %v7170_v62  ;;  %10187 = vst [vmem:[#allocation95_spill] sm:$0xff] %v7172_v15  ;;  %v5638_v15 = vld [vmem:[#allocation2 + $0x7a] sm:$0xff] }
 0x300   : > { %2383 = vrot.lane.b32.xlu0 %v5634_v32, %s5725_s18  ;;  %2381 = vrot.lane.b32.xlu1 %v5635_v50, %s5725_s18  ;;  %v5639_v32 = vld [vmem:[#allocation2 + $0x72] sm:$0xff] }
 0x302   : > { %v7176_v17 = vpop.permute.xlu0 %2169  ;;  %v7178_v23 = vpop.permute.xlu1 %2020 }
 0x303   : > { %10188 = vst [vmem:[#allocation96_spill] sm:$0xff] %v7178_v23  ;;  %v5640_v23 = vld [vmem:[#allocation2 + $0x8a] sm:$0xff] }
 0x304   : > { %2387 = vrot.lane.b32.xlu0 %v5636_v21, %s5725_s18  ;;  %2385 = vrot.lane.b32.xlu1 %v5637_v57, %s5725_s18  ;;  %v5641_v21 = vld [vmem:[#allocation2 + $0x82] sm:$0xff] }
 0x306   : > { %v7182_v26 = vpop.permute.xlu0 %2173  ;;  %v7184_v62 = vpop.permute.xlu1 %2171 }
 0x308   : > { %2391 = vrot.lane.b32.xlu0 %v5638_v15, %s5725_s18  ;;  %2389 = vrot.lane.b32.xlu1 %v5639_v32, %s5725_s18  ;;  %v10190_v15 = vld [vmem:[#allocation17_spill] sm:$0xff] }
 0x30a   : > { %v7188_v50 = vpop.permute.xlu0 %2177  ;;  %v7190_v11 = vpop.permute.xlu1 %2175 }
 0x30c   : > { %2395 = vrot.lane.b32.xlu0 %v5640_v23, %s5725_s18  ;;  %2393 = vrot.lane.b32.xlu1 %v5641_v21, %s5725_s18  ;;  %v10192_v23 = vld [vmem:[#allocation23_spill] sm:$0xff] }
 0x30e   : > { %v7194_v57 = vpop.permute.xlu0 %2181  ;;  %v7196_v44 = vpop.permute.xlu1 %2179 }
 0x310   : > { %2399 = vrot.lane.b32.xlu0 %v10189_v45, %s5725_s18  ;;  %2397 = vrot.lane.b32.xlu1 %v10190_v15, %s5725_s18  ;;  %v10194_v45 = vld [vmem:[#allocation28_spill] sm:$0xff] }
 0x312   : > { %v7202_v32 = vpop.permute.xlu0 %2185  ;;  %v7204_v35 = vpop.permute.xlu1 %2183 }
 0x314   : > { %2403 = vrot.lane.b32.xlu0 %v10191_v53, %s5725_s18  ;;  %2401 = vrot.lane.b32.xlu1 %v10192_v23, %s5725_s18  ;;  %v10196_v53 = vld [vmem:[#allocation30_spill] sm:$0xff] }
 0x316   : > { %v7210_v21 = vpop.permute.xlu0 %2189  ;;  %v7212_v31 = vpop.permute.xlu1 %2187 }
 0x318   : > { %2407 = vrot.lane.b32.xlu0 %v10193_v19, %s5725_s18  ;;  %2405 = vrot.lane.b32.xlu1 %v10194_v45, %s5725_s18  ;;  %v10197_v19 = vld [vmem:[#allocation34_spill] sm:$0xff] }
 0x31a   : > { %v7218_v15 = vpop.permute.xlu0 %2193  ;;  %v7220_v16 = vpop.permute.xlu1 %2191 }
 0x31c   : > { %2411 = vrot.lane.b32.xlu0 %v10195_v8, %s5725_s18  ;;  %2409 = vrot.lane.b32.xlu1 %v10196_v53, %s5725_s18 }
 0x31e   : > { %v7226_v23 = vpop.permute.xlu0 %2197  ;;  %v7232_v30 = vpop.permute.xlu1 %2195 }
 0x320   : > { %2415 = vrot.lane.b32.xlu0 %v6758_v36, %s5725_s18  ;;  %2413 = vrot.lane.b32.xlu1 %v10197_v19, %s5725_s18  ;;  %v10199_v36 = vld [vmem:[#allocation36_spill] sm:$0xff] }
 0x322   : > { %v7234_v45 = vpop.permute.xlu0 %2201  ;;  %v7242_v53 = vpop.permute.xlu1 %2199 }
 0x324   : > { %2419 = vrot.lane.b32.xlu0 %v6773_v33, %s5725_s18  ;;  %2417 = vrot.lane.b32.xlu1 %v6756_v34, %s5725_s18  ;;  %v10200_v33 = vld [vmem:[#allocation37_spill] sm:$0xff] }
 0x326   : > { %v7240_v8 = vpop.permute.xlu0 %2205  ;;  %v7254_v39 = vpop.permute.xlu1 %2203 }
 0x328   : > { %2423 = vrot.lane.b32.xlu0 %v10198_v60, %s5725_s18  ;;  %2421 = vrot.lane.b32.xlu1 %v10199_v36, %s5725_s18  ;;  %v10203_v60 = vld [vmem:[#allocation40_spill] sm:$0xff] }
 0x32a   : > { %v7248_v19 = vpop.permute.xlu0 %2209  ;;  %v7264_v36 = vpop.permute.xlu1 %2207 }
 0x32c   : > { %2427 = vrot.lane.b32.xlu0 %v6798_v40, %s5725_s18  ;;  %2425 = vrot.lane.b32.xlu1 %v10200_v33, %s5725_s18  ;;  %v10206_v40 = vld [vmem:[#allocation41_spill] sm:$0xff] }
 0x32e   : > { %v7256_v34 = vpop.permute.xlu0 %2213  ;;  %v7276_v25 = vpop.permute.xlu1 %2211 }
 0x32f   : > { %10201 = vst [vmem:[#allocation20_spill] sm:$0xff] %v7256_v34  ;;  %v10254_v34 = vld [vmem:[#allocation50_spill] sm:$0xff] }
 0x330   : > { %2431 = vrot.lane.b32.xlu0 %v10202_v0, %s5725_s18  ;;  %2429 = vrot.lane.b32.xlu1 %v10203_v60, %s5725_s18  ;;  %v10208_v0 = vld [vmem:[#allocation43_spill] sm:$0xff] }
 0x332   : > { %v7262_v27 = vpop.permute.xlu0 %2217 }
 0x333   : > { %10204 = vst [vmem:[#allocation17_spill] sm:$0xff] %v7262_v27 }
 0x334   : > { %2435 = vrot.lane.b32.xlu0 %v10205_v9, %s5725_s18  ;;  %2433 = vrot.lane.b32.xlu1 %v10206_v40, %s5725_s18  ;;  %v7286_v40 = vpop.permute.xlu1 %2215 }
 0x335   : > { %10211 = vst [vmem:[#allocation28_spill] sm:$0xff] %v7286_v40  ;;  %v10253_v40 = vld [vmem:[#allocation10_spill] sm:$0xff] }
 0x336   : > { %v7270_v33 = vpop.permute.xlu0 %2221 }
 0x337   : > { %10207 = vst [vmem:[#allocation26_spill] sm:$0xff] %v7270_v33 }
 0x338   : > { %2439 = vrot.lane.b32.xlu0 %v6833_v3, %s5725_s18  ;;  %2437 = vrot.lane.b32.xlu1 %v10208_v0, %s5725_s18  ;;  %v10213_v3 = vld [vmem:[#allocation45_spill] sm:$0xff]  ;;  %v7298_v41 = vpop.permute.xlu1 %2219 }
 0x339   : > { %10216 = vst [vmem:[#allocation30_spill] sm:$0xff] %v7298_v41  ;;  %v10250_v41 = vld [vmem:[#allocation7_spill] sm:$0xff] }
 0x33a   : > { %v7278_v60 = vpop.permute.xlu0 %2225 }
 0x33b   : > { %10209 = vst [vmem:[#allocation23_spill] sm:$0xff] %v7278_v60 }
 0x33c   : > { %2443 = vrot.lane.b32.xlu0 %v6846_v43, %s5725_s18  ;;  %2441 = vrot.lane.b32.xlu1 %v6831_v54, %s5725_s18  ;;  %v10215_v43 = vld [vmem:[#allocation47_spill] sm:$0xff]  ;;  %v7308_v12 = vpop.permute.xlu1 %2223 }
 0x33d   : > { %10219 = vst [vmem:[#allocation36_spill] sm:$0xff] %v7308_v12 }
 0x33e   : > { %v7284_v9 = vpop.permute.xlu0 %2229 }
 0x33f   : > { %10210 = vst [vmem:[#allocation29_spill] sm:$0xff] %v7284_v9 }
 0x340   : > { %2447 = vrot.lane.b32.xlu0 %v10212_v61, %s5725_s18  ;;  %2445 = vrot.lane.b32.xlu1 %v10213_v3, %s5725_s18  ;;  %v2362_v3 = vld [vmem:[#allocation2 + $0x18a] sm:$0xff] }
 0x342   : > { %v7292_v0 = vpop.permute.xlu0 %2233 }
 0x343   : > { %10214 = vst [vmem:[#allocation32_spill] sm:$0xff] %v7292_v0 }
 0x344   : > { %2451 = vrot.lane.b32.xlu0 %v6871_v13, %s5725_s18  ;;  %2449 = vrot.lane.b32.xlu1 %v10215_v43, %s5725_s18  ;;  %v2363_v43 = vld [vmem:[#allocation2 + $0x192] sm:$0xff] }
 0x346   : > { %v7300_v54 = vpop.permute.xlu0 %2237 }
 0x347   : > { %10217 = vst [vmem:[#allocation34_spill] sm:$0xff] %v7300_v54 }
 0x348   : > { %2455 = vrot.lane.b32.xlu0 %v6882_v2, %s5725_s18  ;;  %2453 = vrot.lane.b32.xlu1 %v6869_v42, %s5725_s18  ;;  %v7316_v2 = vpop.permute.xlu1 %2227 }
 0x349   : > { %10221 = vst [vmem:[#allocation42_spill] sm:$0xff] %v7316_v2 }
 0x34a   : > { %v7306_v61 = vpop.permute.xlu0 %2241 }
 0x34b   : > { %10218 = vst [vmem:[#allocation38_spill] sm:$0xff] %v7306_v61 }
 0x34c   : > { %2459 = vrot.lane.b32.xlu0 %v2362_v3, %s5725_s18  ;;  %2457 = vrot.lane.b32.xlu1 %v2361_v48, %s5725_s18  ;;  %v7322_v54 = vpop.permute.xlu1 %2231 }
 0x34d   : > { %10224 = vst [vmem:[#allocation41_spill] sm:$0xff] %v7322_v54 }
 0x34e   : > { %v7312_v13 = vpop.permute.xlu0 %2245 }
 0x34f   : > { %10220 = vst [vmem:[#allocation37_spill] sm:$0xff] %v7312_v13 }
 0x350   : > { %2559 = vrot.lane.b32.xlu0 %v6926_v37, %s5726_s12  ;;  %2461 = vrot.lane.b32.xlu1 %v2363_v43, %s5725_s18  ;;  %v7326_v48 = vpop.permute.xlu1 %2235 }
 0x351   : > { %10226 = vst [vmem:[#allocation48_spill] sm:$0xff] %v7326_v48 }
 0x352   : > { %v7318_v42 = vpop.permute.xlu0 %2249 }
 0x353   : > { %10222 = vst [vmem:[#allocation40_spill] sm:$0xff] %v7318_v42 }
 0x354   : > { %v7330_v28 = vpop.permute.xlu1 %2239 }
 0x355   : > { %10228 = vst [vmem:[#allocation47_spill] sm:$0xff] %v7330_v28 }
 0x356   : > { %v7320_v61 = vpop.permute.xlu0 %2253 }
 0x357   : > { %10223 = vst [vmem:[#allocation44_spill] sm:$0xff] %v7320_v61 }
 0x358   : > { %v7332_v43 = vpop.permute.xlu1 %2243 }
 0x359   : > { %10229 = vst [vmem:[#allocation97_spill] sm:$0xff] %v7332_v43 }
 0x35a   : > { %v7324_v47 = vpop.permute.xlu0 %2257 }
 0x35b   : > { %10225 = vst [vmem:[#allocation43_spill] sm:$0xff] %v7324_v47 }
 0x35c   : > { %v7338_v61 = vpop.permute.xlu1 %2247 }
 0x35d   : > { %10230 = vst [vmem:[#allocation98_spill] sm:$0xff] %v7338_v61  ;;  %v10234_v61 = vmov 0.0  }
 0x35e   : > { %v7328_v3 = vpop.permute.xlu0 %2261  ;;  %5558 = vmatprep.mubr.msk.f32.mxu1 %vm5722_vm0, %v10234_v61 }
 0x35f   : > { %10227 = vst [vmem:[#allocation45_spill] sm:$0xff] %v7328_v3 }
 0x360   : > { %v7342_v47 = vpop.permute.xlu1 %2251 }
 0x361   : > { %10231 = vst [vmem:[#allocation99_spill] sm:$0xff] %v7342_v47 }
 0x362   : > { %v2368_v13 = vpop.permute.xlu0 %2367 }
 0x364   : > { %v7348_v3 = vpop.permute.xlu1 %2255 }
 0x365   : > { %10232 = vst [vmem:[#allocation100_spill] sm:$0xff] %v7348_v3 }
 0x366   : > { %v2372_v37 = vpop.permute.xlu0 %2371 }
 0x368   : > { %v7353_v43 = vpop.permute.xlu1 %2259 }
 0x369   : > { %10233 = vst [vmem:[#allocation101_spill] sm:$0xff] %v7353_v43 }
 0x36a   : > { %v7334_v7 = vpop.permute.xlu0 %2375 }
 0x36c   : > { %v7362_v47 = vpop.permute.xlu1 %2263 }
 0x36d   : > { %10235 = vst [vmem:[#allocation102_spill] sm:$0xff] %v7362_v47 }
 0x36e   : > { %v7336_v42 = vpop.permute.xlu0 %2379 }
 0x370   : > { %v2370_v9 = vpop.permute.xlu1 %2369 }
 0x372   : > { %v7340_v0 = vpop.permute.xlu0 %2383 }
 0x374   : > { %v2374_v1 = vpop.permute.xlu1 %2373 }
 0x376   : > { %v7344_v38 = vpop.permute.xlu0 %2387 }
 0x378   : > { %v2378_v29 = vpop.permute.xlu1 %2377 }
 0x37a   : > { %v7346_v48 = vpop.permute.xlu0 %2391 }
 0x37c   : > { %v2382_v2 = vpop.permute.xlu1 %2381 }
 0x37e   : > { %v7350_v28 = vpop.permute.xlu0 %2395 }
 0x380   : > { %v7378_v46 = vpop.permute.xlu1 %2385 }
 0x382   : > { %v7355_v56 = vpop.permute.xlu0 %2399 }
 0x384   : > { %v7384_v14 = vpop.permute.xlu1 %2389 }
 0x386   : > { %v7360_v63 = vpop.permute.xlu0 %2403 }
 0x388   : > { %v7388_v33 = vpop.permute.xlu1 %2393 }
 0x38a   : > { %v7364_v54 = vpop.permute.xlu0 %2407 }
 0x38b   : > { %10236 = vst [vmem:[#allocation103_spill] sm:$0xff] %v7364_v54 }
 0x38e   : > { %v7366_v3 = vpop.permute.xlu0 %2411 }
 0x38f   : > { %10237 = vst [vmem:[#allocation104_spill] sm:$0xff] %v7366_v3 }
 0x392   : > { %v7368_v58 = vpop.permute.xlu0 %2415 }
 0x393   : > { %10238 = vst [vmem:[#allocation105_spill] sm:$0xff] %v7368_v58 }
 0x396   : > { %v7370_v43 = vpop.permute.xlu0 %2419 }
 0x397   : > { %10239 = vst [vmem:[#allocation106_spill] sm:$0xff] %v7370_v43 }
 0x39a   : > { %v7372_v10 = vpop.permute.xlu0 %2423 }
 0x39b   : > { %10240 = vst [vmem:[#allocation107_spill] sm:$0xff] %v7372_v10 }
 0x39e   : > { %v7374_v52 = vpop.permute.xlu0 %2427 }
 0x39f   : > { %10241 = vst [vmem:[#allocation108_spill] sm:$0xff] %v7374_v52  ;;  %v7394_v52 = vpop.permute.xlu1 %2397 }
 0x3a2   : > { %v7376_v60 = vpop.permute.xlu0 %2431 }
 0x3a3   : > { %10242 = vst [vmem:[#allocation109_spill] sm:$0xff] %v7376_v60  ;;  %v5642_v60 = vld [vmem:[#allocation2 + $0x1] sm:$0xff]  ;;  %v7400_v27 = vpop.permute.xlu1 %2401 }
 0x3a4   : > { %v2070_v18 = vadd.f32 %v5642_v60, %v10249_v49 }
 0x3a6   : > { %v7380_v47 = vpop.permute.xlu0 %2435 }
 0x3a7   : > { %10243 = vst [vmem:[#allocation110_spill] sm:$0xff] %v7380_v47  ;;  %v5643_v47 = vld [vmem:[#allocation2 + $0x9] sm:$0xff] }
 0x3aa   : > { %v7382_v51 = vpop.permute.xlu0 %2439 }
 0x3ab   : > { %10244 = vst [vmem:[#allocation111_spill] sm:$0xff] %v7382_v51  ;;  %v2071_v51 = vadd.f32 %v5643_v47, %v10250_v41 }
 0x3ae   : > { %v7386_v12 = vpop.permute.xlu0 %2443 }
 0x3af   : > { %10245 = vst [vmem:[#allocation112_spill] sm:$0xff] %v7386_v12  ;;  %v2313_v12 = vadd.f32 %v7176_v17, %v2070_v18  ;;  %v10255_v17 = vld [vmem:[#allocation11_spill] sm:$0xff] }
 0x3b1   : > { %v2511_v54 = vadd.f32 %v2368_v13, %v2313_v12 }
 0x3b2   : > { %v7390_v43 = vpop.permute.xlu0 %2447 }
 0x3b3   : > { %10246 = vst [vmem:[#allocation113_spill] sm:$0xff] %v7390_v43  ;;  %v2314_v43 = vadd.f32 %v7184_v62, %v2071_v51  ;;  %v10256_v51 = vld [vmem:[#allocation52_spill] sm:$0xff] }
 0x3b4   : > { %v2074_v62 = vadd.f32 %v10256_v51, %v10255_v17 }
 0x3b5   : > { %v2512_v4 = vadd.f32 %v2370_v9, %v2314_v43 }
 0x3b6   : > { %v7392_v10 = vpop.permute.xlu0 %2451 }
 0x3b7   : > { %10247 = vst [vmem:[#allocation114_spill] sm:$0xff] %v7392_v10  ;;  %v10252_v10 = vld [vmem:[#allocation9_spill] sm:$0xff] }
 0x3b8   : > { %v2072_v55 = vadd.f32 %v5644_v5, %v10252_v10  ;;  %v10257_v5 = vld [vmem:[#allocation12_spill] sm:$0xff]  ;;  %v10258_v10 = vld [vmem:[#allocation51_spill] sm:$0xff] }
 0x3ba   : > { %v7396_v58 = vpop.permute.xlu0 %2455  ;;  %v2315_v47 = vadd.f32 %v7182_v26, %v2072_v55  ;;  %v2317_v55 = vadd.f32 %v7188_v50, %v2074_v62  ;;  %v10259_v26 = vld [vmem:[#allocation13_spill] sm:$0xff] }
 0x3bb   : > { %10248 = vst [vmem:[#allocation115_spill] sm:$0xff] %v7396_v58  ;;  %v2073_v58 = vadd.f32 %v10254_v34, %v10253_v40  ;;  %v2075_v34 = vadd.f32 %v10258_v10, %v10257_v5  ;;  %v2076_v40 = vadd.f32 %v6911_v6, %v10259_v26  ;;  %v10265_v10 = vld [vmem:[#allocation18_spill] sm:$0xff]  ;;  %v10268_v26 = vld [vmem:[#allocation25_spill] sm:$0xff] }
 0x3bc   : > { %v2513_v12 = vadd.f32 %v2372_v37, %v2315_v47 }
 0x3bd   : > { %v2316_v41 = vadd.f32 %v7190_v11, %v2073_v58  ;;  %v2318_v58 = vadd.f32 %v7196_v44, %v2075_v34  ;;  %v2319_v44 = vadd.f32 %v7194_v57, %v2076_v40  ;;  %v2080_v34 = vadd.f32 %v6941_v24, %v10265_v10 }
 0x3be   : > { %v7402_v3 = vpop.permute.xlu0 %2459 }
 0x3bf   : > { %10251 = vst [vmem:[#allocation6_spill] sm:$0xff] %v7402_v3  ;;  %v7417_v3 = vpop.permute.xlu1 %2405  ;;  %v2514_v9 = vadd.f32 %v2374_v1, %v2316_v41  ;;  %v2515_v1 = vadd.f32 %v7334_v7, %v2317_v55  ;;  %v2516_v37 = vadd.f32 %v2378_v29, %v2318_v58  ;;  %v10261_v41 = vld [vmem:[#allocation15_spill] sm:$0xff]  ;;  %v10264_v7 = vld [vmem:[#allocation53_spill] sm:$0xff]  ;;  %v2517_v17 = vadd.f32 %v7336_v42, %v2319_v44  ;;  %v10267_v42 = vld [vmem:[#allocation56_spill] sm:$0xff] }
 0x3c2   : > { %v7409_v49 = vpop.permute.xlu0 %2559 }
 0x3c3   : > { %v2562_v60 = vadd.f32 %v7409_v49, %v2511_v54  ;;  %v2563_v18 = vadd.f32 %v7409_v49, %v2512_v4  ;;  %v2564_v4 = vadd.f32 %v7409_v49, %v2513_v12  ;;  %v2565_v11 = vadd.f32 %v7409_v49, %v2514_v9  ;;  %v10260_v54 = vld [vmem:[#allocation14_spill] sm:$0xff]  ;;  %v7434_v50 = vpop.permute.xlu1 %2409  ;;  %v10266_v9 = vld [vmem:[#allocation21_spill] sm:$0xff] }
 0x3c4   : > { %v2077_v13 = vadd.f32 %v6907_v22, %v10260_v54  ;;  %v2566_v47 = vadd.f32 %v7409_v49, %v2515_v1  ;;  %v2567_v6 = vadd.f32 %v7409_v49, %v2516_v37  ;;  %v2568_v62 = vadd.f32 %v7409_v49, %v2517_v17  ;;  %v5646_v54 = vld [vmem:[#allocation2 + $0x69] sm:$0xff]  ;;  %v5649_v17 = vld [vmem:[#allocation2 + $0x81] sm:$0xff] }
 0x3c5   : > { %2658 = vrot.lane.b32.xlu1 %v2562_v60, %s5727_s23  ;;  %2660 = vrot.lane.b32.xlu0 %v2563_v18, %s5727_s23  ;;  %v10262_v60 = vld [vmem:[#allocation54_spill] sm:$0xff]  ;;  %v10263_v18 = vld [vmem:[#allocation16_spill] sm:$0xff] }
 0x3c6   : > { %v2320_v43 = vadd.f32 %v7204_v35, %v2077_v13  ;;  %v2078_v22 = vadd.f32 %v10262_v60, %v10261_v41  ;;  %v2079_v29 = vadd.f32 %v10264_v7, %v10263_v18  ;;  %v10269_v13 = vld [vmem:[#allocation27_spill] sm:$0xff]  ;;  %v10271_v60 = vld [vmem:[#allocation33_spill] sm:$0xff] }
 0x3c7   : > { %v7453_v12 = vpop.permute.xlu1 %2413 }
 0x3c8   : > { %v2518_v51 = vadd.f32 %v2382_v2, %v2320_v43  ;;  %v2321_v57 = vadd.f32 %v7202_v32, %v2078_v22  ;;  %v2322_v35 = vadd.f32 %v7212_v31, %v2079_v29  ;;  %v2081_v2 = vadd.f32 %v10267_v42, %v10266_v9  ;;  %v5651_v42 = vld [vmem:[#allocation2 + $0x91] sm:$0xff] }
 0x3c9   : > { %2662 = vrot.lane.b32.xlu1 %v2564_v4, %s5727_s23  ;;  %2664 = vrot.lane.b32.xlu0 %v2565_v11, %s5727_s23  ;;  %v2323_v31 = vadd.f32 %v7210_v21, %v2080_v34  ;;  %v5645_v11 = vld [vmem:[#allocation2 + $0x61] sm:$0xff] }
 0x3ca   : > { %v2569_v5 = vadd.f32 %v7409_v49, %v2518_v51  ;;  %v2519_v55 = vadd.f32 %v7340_v0, %v2321_v57  ;;  %v2520_v58 = vadd.f32 %v7378_v46, %v2322_v35  ;;  %v2324_v32 = vadd.f32 %v7220_v16, %v2081_v2  ;;  %v10272_v51 = vld [vmem:[#allocation35_spill] sm:$0xff]  ;;  %v10274_v2 = vld [vmem:[#allocation46_spill] sm:$0xff] }
 0x3cb   : > { %v2082_v40 = vadd.f32 %v5645_v11, %v10268_v26  ;;  %v2083_v0 = vadd.f32 %v5646_v54, %v10269_v13  ;;  %v2521_v46 = vadd.f32 %v7344_v38, %v2323_v31  ;;  %v7471_v21 = vpop.permute.xlu1 %2417  ;;  %v5648_v38 = vld [vmem:[#allocation2 + $0x79] sm:$0xff]  ;;  %v2086_v57 = vadd.f32 %v5649_v17, %v10272_v51  ;;  %v5653_v26 = vld [vmem:[#allocation2 + $0xa1] sm:$0xff]  ;;  %v5654_v13 = vld [vmem:[#allocation2 + $0xa9] sm:$0xff] }
 0x3cc   : > { %v2570_v4 = vadd.f32 %v7409_v49, %v2519_v55  ;;  %v2571_v24 = vadd.f32 %v7409_v49, %v2520_v58  ;;  %v2522_v1 = vadd.f32 %v7384_v14, %v2324_v32  ;;  %v2085_v14 = vadd.f32 %v5648_v38, %v10271_v60  ;;  %v5652_v58 = vld [vmem:[#allocation2 + $0x99] sm:$0xff] }
 0x3cd   : > { %2666 = vrot.lane.b32.xlu1 %v2566_v47, %s5727_s23  ;;  %2668 = vrot.lane.b32.xlu0 %v2567_v6, %s5727_s23  ;;  %v2325_v16 = vadd.f32 %v7218_v15, %v2082_v40  ;;  %v2326_v37 = vadd.f32 %v7232_v30, %v2083_v0  ;;  %v2572_v44 = vadd.f32 %v7409_v49, %v2521_v46  ;;  %v5647_v47 = vld [vmem:[#allocation2 + $0x71] sm:$0xff]  ;;  %v10280_v38 = vld [vmem:[#allocation28_spill] sm:$0xff] }
 0x3ce   : > { %v2573_v43 = vadd.f32 %v7409_v49, %v2522_v1  ;;  %v10270_v6 = vld [vmem:[#allocation31_spill] sm:$0xff]  ;;  %v2328_v15 = vadd.f32 %v7242_v53, %v2085_v14  ;;  %v2088_v55 = vadd.f32 %v5651_v42, %v10274_v2  ;;  %v10283_v17 = vld [vmem:[#allocation104_spill] sm:$0xff] }
 0x3cf   : > { %v2084_v41 = vadd.f32 %v5647_v47, %v10270_v6  ;;  %v2523_v22 = vadd.f32 %v7346_v48, %v2325_v16  ;;  %v2524_v18 = vadd.f32 %v7388_v33, %v2326_v37  ;;  %v7488_v35 = vpop.permute.xlu1 %2421  ;;  %v5650_v48 = vld [vmem:[#allocation2 + $0x89] sm:$0xff]  ;;  %v10276_v40 = vld [vmem:[#allocation55_spill] sm:$0xff]  ;;  %v10287_v2 = vld [vmem:[#allocation72_spill] sm:$0xff] }
 0x3d0   : > { %v2526_v10 = vadd.f32 %v7394_v52, %v2328_v15  ;;  %v2090_v54 = vadd.f32 %v5653_v26, %v10276_v40  ;;  %v5656_v37 = vld [vmem:[#allocation2 + $0xb9] sm:$0xff]  ;;  %v5658_v15 = vld [vmem:[#allocation2 + $0xc9] sm:$0xff] }
 0x3d1   : > { %2670 = vrot.lane.b32.xlu1 %v2568_v62, %s5727_s23  ;;  %2672 = vrot.lane.b32.xlu0 %v2569_v5, %s5727_s23  ;;  %v2327_v30 = vadd.f32 %v7226_v23, %v2084_v41  ;;  %v2574_v7 = vadd.f32 %v7409_v49, %v2523_v22  ;;  %v2575_v29 = vadd.f32 %v7409_v49, %v2524_v18  ;;  %v10273_v62 = vld [vmem:[#allocation39_spill] sm:$0xff]  ;;  %v5657_v22 = vld [vmem:[#allocation2 + $0xc1] sm:$0xff]  ;;  %v10281_v18 = vld [vmem:[#allocation58_spill] sm:$0xff] }
 0x3d2   : > { %v2087_v33 = vadd.f32 %v5650_v48, %v10273_v62  ;;  %v2329_v23 = vadd.f32 %v7234_v45, %v2086_v57  ;;  %v2577_v9 = vadd.f32 %v7409_v49, %v2526_v10  ;;  %v2331_v45 = vadd.f32 %v7240_v8, %v2088_v55  ;;  %v10278_v47 = vld [vmem:[#allocation103_spill] sm:$0xff]  ;;  %v10284_v48 = vld [vmem:[#allocation17_spill] sm:$0xff] }
 0x3d3   : > { %v2525_v5 = vadd.f32 %v7350_v28, %v2327_v30  ;;  %v10275_v28 = vld [vmem:[#allocation49_spill] sm:$0xff]  ;;  %v2333_v8 = vadd.f32 %v7248_v19, %v2090_v54  ;;  %v2094_v30 = vadd.f32 %v5657_v22, %v10281_v18  ;;  %v5660_v42 = vld [vmem:[#allocation2 + $0xd9] sm:$0xff] }
 0x3d4   : > { %v2330_v53 = vadd.f32 %v7254_v39, %v2087_v33  ;;  %v2089_v31 = vadd.f32 %v5652_v58, %v10275_v28  ;;  %v2527_v52 = vadd.f32 %v7355_v56, %v2329_v23  ;;  %v7505_v39 = vpop.permute.xlu1 %2425  ;;  %v314_v56 = vld [vmem:[%s5825_s9 + $0x1b0] sm:$0xff]  ;;  %v2529_v0 = vadd.f32 %v7360_v63, %v2331_v45 }
 0x3d5   : > { %2674 = vrot.lane.b32.xlu1 %v2570_v4, %s5727_s23  ;;  %2676 = vrot.lane.b32.xlu0 %v2571_v24, %s5727_s23  ;;  %v2576_v34 = vadd.f32 %v7409_v49, %v2525_v5  ;;  %v2531_v6 = vadd.f32 %v10278_v47, %v2333_v8  ;;  %v2337_v62 = vadd.f32 %v10284_v48, %v2094_v30  ;;  %v10285_v33 = vld [vmem:[#allocation30_spill] sm:$0xff]  ;;  %v10291_v26 = vld [vmem:[#allocation71_spill] sm:$0xff]  ;;  %v10299_v47 = vld [vmem:[#allocation61_spill] sm:$0xff] }
 0x3d6   : > { %v2528_v32 = vadd.f32 %v7400_v27, %v2330_v53  ;;  %v2332_v4 = vadd.f32 %v7264_v36, %v2089_v31  ;;  %v2578_v24 = vadd.f32 %v7409_v49, %v2527_v52  ;;  %v2091_v27 = vadd.f32 %v5654_v13, %v6951_v20  ;;  %5559 = vmatmul.mubr.msk.f32.gmra.mrb[50].mxu1 %vm318_vm2, %v314_v56  ;;  %v5655_v20 = vld [vmem:[#allocation2 + $0xb1] sm:$0xff]  ;;  %v10293_v13 = vld [vmem:[#allocation76_spill] sm:$0xff] }
 0x3d7   : > { %v2580_v1 = vadd.f32 %v7409_v49, %v2529_v0  ;;  %5561 = vmatprep.mubr.msk.f32.mxu1 %vm5722_vm0, %v10234_v61  ;;  %v2092_v63 = vadd.f32 %v5655_v20, %v6968_v59  ;;  %v2582_v14 = vadd.f32 %v7409_v49, %v2531_v6  ;;  %v5659_v53 = vld [vmem:[#allocation2 + $0xd1] sm:$0xff]  ;;  %v2097_v55 = vadd.f32 %v5660_v42, %v10287_v2  ;;  %v10300_v6 = vld [vmem:[#allocation80_spill] sm:$0xff] }
 0x3d8   : > { %v2579_v11 = vadd.f32 %v7409_v49, %v2528_v32  ;;  %v2530_v46 = vadd.f32 %v7417_v3, %v2332_v4  ;;  %v2334_v36 = vadd.f32 %v7276_v25, %v2091_v27  ;;  %v2430_v3 = vpop.permute.xlu1 %2429  ;;  %v10279_v25 = vld [vmem:[#allocation20_spill] sm:$0xff]  ;;  %v10289_v31 = vld [vmem:[#allocation26_spill] sm:$0xff]  ;;  %v10292_v56 = vld [vmem:[#allocation59_spill] sm:$0xff] }
 0x3d9   : > { %2678 = vrot.lane.b32.xlu1 %v2572_v44, %s5727_s23  ;;  %2680 = vrot.lane.b32.xlu0 %v2573_v43, %s5727_s23  ;;  %v10277_v44 = vld [vmem:[#allocation57_spill] sm:$0xff]  ;;  %v2335_v41 = vadd.f32 %v10279_v25, %v2092_v63  ;;  %v10290_v32 = vld [vmem:[#allocation36_spill] sm:$0xff]  ;;  %v2099_v27 = vadd.f32 %v10293_v13, %v10292_v56  ;;  %v10295_v8 = vld [vmem:[#allocation23_spill] sm:$0xff] }
 0x3da   : > { %v2581_v16 = vadd.f32 %v7409_v49, %v2530_v46  ;;  %v2093_v43 = vadd.f32 %v5656_v37, %v10277_v44  ;;  %v2532_v19 = vadd.f32 %v7434_v50, %v2334_v36  ;;  %v2340_v45 = vadd.f32 %v10290_v32, %v2097_v55  ;;  %v10297_v37 = vld [vmem:[#allocation62_spill] sm:$0xff]  ;;  %v10298_v44 = vld [vmem:[#allocation75_spill] sm:$0xff] }
 0x3db   : > { %v2533_v50 = vadd.f32 %v10283_v17, %v2335_v41  ;;  %v10301_v25 = vld [vmem:[#allocation107_spill] sm:$0xff]  ;;  %v10316_v32 = vld [vmem:[#allocation34_spill] sm:$0xff] }
 0x3dc   : > { %v2336_v60 = vadd.f32 %v10280_v38, %v2093_v43  ;;  %v2583_v59 = vadd.f32 %v7409_v49, %v2532_v19  ;;  %v2434_v57 = vpop.permute.xlu1 %2433  ;;  %v2538_v46 = vadd.f32 %v7488_v35, %v2340_v45  ;;  %v2100_v43 = vadd.f32 %v10298_v44, %v10297_v37  ;;  %v10306_v17 = vld [vmem:[#allocation63_spill] sm:$0xff] }
 0x3dd   : > { %2682 = vrot.lane.b32.xlu1 %v2574_v7, %s5727_s23  ;;  %2684 = vrot.lane.b32.xlu0 %v2575_v29, %s5727_s23  ;;  %v10282_v7 = vld [vmem:[#allocation60_spill] sm:$0xff]  ;;  %v2584_v10 = vadd.f32 %v7409_v49, %v2533_v50  ;;  %v2101_v19 = vadd.f32 %v10300_v6, %v10299_v47  ;;  %v10312_v42 = vld [vmem:[#allocation83_spill] sm:$0xff]  ;;  %v10326_v47 = vld [vmem:[#allocation22_spill] sm:$0xff] }
 0x3de   : > { %v2095_v29 = vadd.f32 %v5658_v15, %v10282_v7  ;;  %v2534_v51 = vadd.f32 %v7453_v12, %v2336_v60  ;;  %v10288_v12 = vld [vmem:[#allocation105_spill] sm:$0xff]  ;;  %v2589_v63 = vadd.f32 %v7409_v49, %v2538_v46  ;;  %v10304_v15 = vld [vmem:[#allocation64_spill] sm:$0xff]  ;;  %v10305_v7 = vld [vmem:[#allocation79_spill] sm:$0xff] }
 0x3df   : > { %v2535_v58 = vadd.f32 %v10288_v12, %v2337_v62  ;;  %v10302_v60 = vld [vmem:[#allocation29_spill] sm:$0xff]  ;;  %v10307_v50 = vld [vmem:[#allocation84_spill] sm:$0xff]  ;;  %v10313_v12 = vld [vmem:[#allocation66_spill] sm:$0xff] }
 0x3e0   : > { %v2338_v5 = vadd.f32 %v10285_v33, %v2095_v29  ;;  %v2585_v23 = vadd.f32 %v7409_v49, %v2534_v51  ;;  %v2438_v54 = vpop.permute.xlu1 %2437  ;;  %v2102_v29 = vadd.f32 %v10305_v7, %v10304_v15  ;;  %v2103_v51 = vadd.f32 %v10307_v50, %v10306_v17  ;;  %v10309_v33 = vld [vmem:[#allocation32_spill] sm:$0xff]  ;;  %v10319_v56 = vld [vmem:[#allocation87_spill] sm:$0xff]  ;;  %v10322_v46 = vld [vmem:[#allocation110_spill] sm:$0xff] }
 0x3e1   : > { %2686 = vrot.lane.b32.xlu1 %v2576_v34, %s5727_s23  ;;  %2688 = vrot.lane.b32.xlu0 %v2577_v9, %s5727_s23  ;;  %v10286_v34 = vld [vmem:[#allocation65_spill] sm:$0xff]  ;;  %v2586_v4 = vadd.f32 %v7409_v49, %v2535_v58  ;;  %v10314_v58 = vld [vmem:[#allocation88_spill] sm:$0xff]  ;;  %v10332_v7 = vld [vmem:[#allocation74_spill] sm:$0xff] }
 0x3e2   : > { %v2096_v9 = vadd.f32 %v5659_v53, %v10286_v34  ;;  %v2536_v28 = vadd.f32 %v7471_v21, %v2338_v5  ;;  %v10294_v21 = vld [vmem:[#allocation106_spill] sm:$0xff]  ;;  %v2345_v5 = vadd.f32 %v10309_v33, %v2102_v29  ;;  %v10333_v29 = vld [vmem:[#allocation24_spill] sm:$0xff] }
 0x3e3   : > { %v2110_v17 = vadd.f32 %v10333_v29, %v10332_v7 }
 0x3e4   : > { %v2339_v52 = vadd.f32 %v10289_v31, %v2096_v9  ;;  %v2442_v38 = vpop.permute.xlu1 %2441  ;;  %v10311_v9 = vld [vmem:[#allocation67_spill] sm:$0xff] }
 0x3e5   : > { %2690 = vrot.lane.b32.xlu1 %v2578_v24, %s5727_s23  ;;  %2692 = vrot.lane.b32.xlu0 %v2579_v11, %s5727_s23  ;;  %v2587_v24 = vadd.f32 %v7409_v49, %v2536_v28  ;;  %v5661_v11 = vld [vmem:[#allocation2 + $0xe1] sm:$0xff]  ;;  %v2104_v2 = vadd.f32 %v10312_v42, %v10311_v9  ;;  %v2105_v28 = vadd.f32 %v10314_v58, %v10313_v12  ;;  %v10339_v42 = vld [vmem:[#allocation78_spill] sm:$0xff] }
 0x3e6   : > { %v2098_v40 = vadd.f32 %v5661_v11, %v10291_v26  ;;  %v2537_v0 = vadd.f32 %v10294_v21, %v2339_v52  ;;  %v10321_v21 = vld [vmem:[#allocation19_spill] sm:$0xff]  ;;  %v10341_v58 = vld [vmem:[#allocation77_spill] sm:$0xff] }
 0x3e7   : > { %v2347_v45 = vadd.f32 %v10316_v32, %v2104_v2  ;;  %v10340_v2 = vld [vmem:[#allocation90_spill] sm:$0xff] }
 0x3e8   : > { %v2341_v36 = vadd.f32 %v10295_v8, %v2098_v40  ;;  %v2588_v20 = vadd.f32 %v7409_v49, %v2537_v0  ;;  %v2446_v55 = vpop.permute.xlu1 %2445  ;;  %v10318_v40 = vld [vmem:[#allocation69_spill] sm:$0xff]  ;;  %v2112_v12 = vadd.f32 %v10340_v2, %v10339_v42 }
 0x3e9   : > { %2694 = vrot.lane.b32.xlu1 %v2580_v1, %s5727_s23  ;;  %2696 = vrot.lane.b32.xlu0 %v2581_v16, %s5727_s23  ;;  %v10296_v1 = vld [vmem:[#allocation42_spill] sm:$0xff]  ;;  %v2106_v13 = vadd.f32 %v10319_v56, %v10318_v40 }
 0x3ea   : > { %v2342_v16 = vadd.f32 %v10296_v1, %v2099_v27  ;;  %v2539_v35 = vadd.f32 %v10301_v25, %v2341_v36  ;;  %v10320_v27 = vld [vmem:[#allocation68_spill] sm:$0xff]  ;;  %v10323_v1 = vld [vmem:[#allocation38_spill] sm:$0xff]  ;;  %v10328_v25 = vld [vmem:[#allocation89_spill] sm:$0xff] }
 0x3eb   : > { %v2107_v0 = vadd.f32 %v10321_v21, %v10320_v27  ;;  %v10346_v56 = vld [vmem:[#allocation82_spill] sm:$0xff]  ;;  %v10348_v21 = vld [vmem:[#allocation81_spill] sm:$0xff] }
 0x3ec   : > { %v2540_v41 = vadd.f32 %v7505_v39, %v2342_v16  ;;  %v2590_v18 = vadd.f32 %v7409_v49, %v2539_v35  ;;  %v10308_v39 = vld [vmem:[#allocation108_spill] sm:$0xff]  ;;  %v2450_v36 = vpop.permute.xlu1 %2449  ;;  %v2349_v16 = vadd.f32 %v10323_v1, %v2106_v13  ;;  %v10351_v1 = vld [vmem:[#allocation85_spill] sm:$0xff] }
 0x3ed   : > { %2698 = vrot.lane.b32.xlu1 %v2582_v14, %s5727_s23  ;;  %2700 = vrot.lane.b32.xlu0 %v2583_v59, %s5727_s23  ;;  %v2343_v14 = vadd.f32 %v10302_v60, %v2100_v43  ;;  %v10303_v59 = vld [vmem:[#allocation41_spill] sm:$0xff]  ;;  %v10325_v43 = vld [vmem:[#allocation70_spill] sm:$0xff]  ;;  %v10347_v13 = vld [vmem:[#allocation92_spill] sm:$0xff] }
 0x3ee   : > { %v2344_v22 = vadd.f32 %v10303_v59, %v2101_v19  ;;  %v2591_v30 = vadd.f32 %v7409_v49, %v2540_v41  ;;  %v2108_v6 = vadd.f32 %v10326_v47, %v10325_v43  ;;  %v10327_v19 = vld [vmem:[#allocation8_spill] sm:$0xff]  ;;  %v2114_v27 = vadd.f32 %v10347_v13, %v10346_v56  ;;  %v7708_v2 = vld [vmem:[#allocation2 + $0x69] sm:$0xff] }
 0x3ef   : > { %v2541_v48 = vadd.f32 %v10308_v39, %v2343_v14  ;;  %v2109_v35 = vadd.f32 %v10328_v25, %v10327_v19  ;;  %v10330_v14 = vld [vmem:[#allocation37_spill] sm:$0xff]  ;;  %v10335_v39 = vld [vmem:[#allocation91_spill] sm:$0xff]  ;;  %v10355_v19 = vld [vmem:[#allocation86_spill] sm:$0xff] }
 0x3f0   : > { %v2542_v62 = vadd.f32 %v2430_v3, %v2344_v22  ;;  %v10315_v3 = vld [vmem:[#allocation109_spill] sm:$0xff]  ;;  %v2351_v59 = vadd.f32 %v10330_v14, %v2108_v6  ;;  %v10331_v22 = vld [vmem:[#allocation98_spill] sm:$0xff]  ;;  %v2454_v50 = vpop.permute.xlu1 %2453  ;;  %v10358_v14 = vld [vmem:[#allocation115_spill] sm:$0xff] }
 0x3f1   : > { %2702 = vrot.lane.b32.xlu1 %v2584_v10, %s5727_s23  ;;  %2704 = vrot.lane.b32.xlu0 %v2585_v23, %s5727_s23  ;;  %v10310_v10 = vld [vmem:[#allocation48_spill] sm:$0xff]  ;;  %v2592_v53 = vadd.f32 %v7409_v49, %v2541_v48  ;;  %v2543_v31 = vadd.f32 %v10315_v3, %v2345_v5  ;;  %v10356_v25 = vld [vmem:[#allocation94_spill] sm:$0xff] }
 0x3f2   : > { %v2346_v23 = vadd.f32 %v10310_v10, %v2103_v51  ;;  %v2593_v34 = vadd.f32 %v7409_v49, %v2542_v62  ;;  %v10334_v51 = vld [vmem:[#allocation73_spill] sm:$0xff]  ;;  %v10337_v5 = vld [vmem:[#allocation40_spill] sm:$0xff] }
 0x3f3   : > { %v2594_v11 = vadd.f32 %v7409_v49, %v2543_v31  ;;  %v2111_v48 = vadd.f32 %v10335_v39, %v10334_v51  ;;  %v2353_v10 = vadd.f32 %v10337_v5, %v2110_v17  ;;  %v10343_v31 = vld [vmem:[#allocation113_spill] sm:$0xff]  ;;  %v10360_v17 = vld [vmem:[#allocation6_spill] sm:$0xff] }
 0x3f4   : > { %v2544_v52 = vadd.f32 %v2434_v57, %v2346_v23  ;;  %v2545_v57 = vadd.f32 %v10322_v46, %v2347_v45  ;;  %v10338_v23 = vld [vmem:[#allocation99_spill] sm:$0xff]  ;;  %v2458_v32 = vpop.permute.xlu1 %2457  ;;  %v10344_v45 = vld [vmem:[#allocation44_spill] sm:$0xff]  ;;  %v7756_v13 = vld [vmem:[#allocation2 + $0xa9] sm:$0xff] }
 0x3f5   : > { %2706 = vrot.lane.b32.xlu1 %v2586_v4, %s5727_s23  ;;  %2708 = vrot.lane.b32.xlu0 %v2587_v24, %s5727_s23  ;;  %v10317_v4 = vld [vmem:[#allocation47_spill] sm:$0xff]  ;;  %v7682_v5 = vld [vmem:[#allocation2 + $0x41] sm:$0xff] }
 0x3f6   : > { %v2348_v24 = vadd.f32 %v10317_v4, %v2105_v28  ;;  %v2595_v26 = vadd.f32 %v7409_v49, %v2544_v52  ;;  %v2596_v37 = vadd.f32 %v7409_v49, %v2545_v57  ;;  %v10342_v28 = vld [vmem:[#allocation93_spill] sm:$0xff]  ;;  %v2355_v4 = vadd.f32 %v10344_v45, %v2112_v12  ;;  %v10350_v57 = vld [vmem:[#allocation114_spill] sm:$0xff] }
 0x3f7   : > { %v2113_v3 = vadd.f32 %v10342_v28, %v10341_v58  ;;  %v7710_v12 = vld [vmem:[#allocation2 + $0x71] sm:$0xff] }
 0x3f8   : > { %v2546_v8 = vadd.f32 %v2438_v54, %v2348_v24  ;;  %v10329_v54 = vld [vmem:[#allocation111_spill] sm:$0xff]  ;;  %v10345_v24 = vld [vmem:[#allocation100_spill] sm:$0xff] }
 0x3f9   : > { %2710 = vrot.lane.b32.xlu1 %v2588_v20, %s5727_s23  ;;  %2712 = vrot.lane.b32.xlu0 %v2589_v63, %s5727_s23  ;;  %v10324_v20 = vld [vmem:[#allocation97_spill] sm:$0xff]  ;;  %v2547_v41 = vadd.f32 %v10329_v54, %v2349_v16  ;;  %v10352_v16 = vld [vmem:[#allocation96_spill] sm:$0xff]  ;;  %v2462_v54 = vpop.permute.xlu1 %2461  ;;  %v7734_v45 = vld [vmem:[#allocation2 + $0x91] sm:$0xff] }
 0x3fa   : > { %v2350_v63 = vadd.f32 %v10324_v20, %v2107_v0  ;;  %v2597_v44 = vadd.f32 %v7409_v49, %v2546_v8  ;;  %v10349_v0 = vld [vmem:[#allocation95_spill] sm:$0xff]  ;;  %v2553_v8 = vadd.f32 %v10350_v57, %v2355_v4  ;;  %v2117_v20 = vadd.f32 %v10352_v16, %v10351_v1  ;;  %v7770_v57 = vld [vmem:[#allocation2 + $0xc1] sm:$0xff]  ;;  %v7780_v1 = vld [vmem:[#allocation2 + $0xc9] sm:$0xff] }
 0x3fb   : > { %v2115_v46 = vadd.f32 %v10349_v0, %v10348_v21  ;;  %v7782_v16 = vld [vmem:[#allocation2 + $0xd1] sm:$0xff] }
 0x3fc   : > { %v2548_v60 = vadd.f32 %v2442_v38, %v2350_v63  ;;  %v10336_v38 = vld [vmem:[#allocation112_spill] sm:$0xff]  ;;  %v10353_v63 = vld [vmem:[#allocation43_spill] sm:$0xff]  ;;  %v2604_v47 = vadd.f32 %v7409_v49, %v2553_v8 }
 0x3fd   : > { %2714 = vrot.lane.b32.xlu1 %v2590_v18, %s5727_s23  ;;  %2716 = vrot.lane.b32.xlu0 %v2591_v30, %s5727_s23  ;;  %v2352_v18 = vadd.f32 %v10331_v22, %v2109_v35  ;;  %v2598_v30 = vadd.f32 %v7409_v49, %v2547_v41  ;;  %v2549_v62 = vadd.f32 %v10336_v38, %v2351_v59  ;;  %v10357_v41 = vld [vmem:[#allocation102_spill] sm:$0xff]  ;;  %v2900_v38 = vld [vmem:[#allocation2 + $0x21] sm:$0xff] }
 0x3fe   : > { %v2599_v15 = vadd.f32 %v7409_v49, %v2548_v60  ;;  %v2116_v35 = vadd.f32 %v10356_v25, %v10355_v19  ;;  %v2360_v60 = vadd.f32 %v10357_v41, %v2117_v20  ;;  %v7806_v19 = vld [vmem:[#allocation2 + $0xf1] sm:$0xff]  ;;  %v825_v25 = vpop.f32.mrb[48].mxu1 }
 0x3ff   : > { %v2550_v33 = vadd.f32 %v2446_v55, %v2352_v18  ;;  %v2551_v55 = vadd.f32 %v10343_v31, %v2353_v10  ;;  %v10359_v18 = vld [vmem:[#allocation45_spill] sm:$0xff]  ;;  %898 = vst.msk [vmem:[#allocation2 + $0x1a8] sm:$0xff] %vm844_vm3, %v825_v25 }
 0x400   : > { %v7688_v10 = vld [vmem:[#allocation2 + $0x49] sm:$0xff]  ;;  %v7722_v31 = vld [vmem:[#allocation2 + $0x81] sm:$0xff] }
 0x401   : > { %2718 = vrot.lane.b32.xlu1 %v2592_v53, %s5727_s23  ;;  %2720 = vrot.lane.b32.xlu0 %v2593_v34, %s5727_s23  ;;  %v2354_v53 = vadd.f32 %v10338_v23, %v2111_v48  ;;  %v2600_v34 = vadd.f32 %v7409_v49, %v2549_v62  ;;  %v2601_v9 = vadd.f32 %v7409_v49, %v2550_v33  ;;  %v2899_v48 = vld [vmem:[#allocation2 + $0x19] sm:$0xff]  ;;  %v2901_v62 = vld [vmem:[#allocation2 + $0x29] sm:$0xff]  ;;  %v7675_v33 = vld [vmem:[#allocation2 + $0x31] sm:$0xff] }
 0x402   : > { %v7690_v23 = vld [vmem:[#allocation2 + $0x51] sm:$0xff] }
 0x403   : > { %v2552_v52 = vadd.f32 %v2450_v36, %v2354_v53  ;;  %v7696_v53 = vld [vmem:[#allocation2 + $0x59] sm:$0xff] }
 0x405   : > { %2722 = vrot.lane.b32.xlu1 %v2594_v11, %s5727_s23  ;;  %2724 = vrot.lane.b32.xlu0 %v2595_v26, %s5727_s23  ;;  %v2356_v11 = vadd.f32 %v10345_v24, %v2113_v3  ;;  %v2602_v26 = vadd.f32 %v7409_v49, %v2551_v55  ;;  %v2603_v40 = vadd.f32 %v7409_v49, %v2552_v52  ;;  %v7720_v3 = vld [vmem:[#allocation2 + $0x79] sm:$0xff] }
 0x407   : > { %v2554_v36 = vadd.f32 %v2454_v50, %v2356_v11  ;;  %v7744_v11 = vld [vmem:[#allocation2 + $0x99] sm:$0xff] }
 0x409   : > { %2726 = vrot.lane.b32.xlu1 %v2596_v37, %s5727_s23  ;;  %2728 = vrot.lane.b32.xlu0 %v2597_v44, %s5727_s23  ;;  %v2357_v37 = vadd.f32 %v10353_v63, %v2114_v27  ;;  %v10354_v44 = vld [vmem:[#allocation101_spill] sm:$0xff]  ;;  %v2605_v6 = vadd.f32 %v7409_v49, %v2554_v36  ;;  %v7758_v27 = vld [vmem:[#allocation2 + $0xb1] sm:$0xff] }
 0x40a   : > { %v2358_v43 = vadd.f32 %v10354_v44, %v2115_v46  ;;  %v7768_v46 = vld [vmem:[#allocation2 + $0xb9] sm:$0xff]  ;;  %v7794_v44 = vld [vmem:[#allocation2 + $0xe1] sm:$0xff] }
 0x40b   : > { %v2555_v59 = vadd.f32 %v10358_v14, %v2357_v37  ;;  %v7792_v37 = vld [vmem:[#allocation2 + $0xd9] sm:$0xff]  ;;  %v7819_v14 = vld [vmem:[#allocation2 + $0x101] sm:$0xff] }
 0x40c   : > { %v2556_v22 = vadd.f32 %v2458_v32, %v2358_v43  ;;  %v7732_v32 = vld [vmem:[#allocation2 + $0x89] sm:$0xff] }
 0x40d   : > { %2730 = vrot.lane.b32.xlu1 %v2598_v30, %s5727_s23  ;;  %2732 = vrot.lane.b32.xlu0 %v2599_v15, %s5727_s23  ;;  %v2359_v30 = vadd.f32 %v10359_v18, %v2116_v35  ;;  %v2558_v15 = vadd.f32 %v2462_v54, %v2360_v60  ;;  %v2606_v7 = vadd.f32 %v7409_v49, %v2555_v59  ;;  %v5557_v35 = vpop.f32.mrb[49].mxu1  ;;  %v7817_v60 = vld [vmem:[#allocation2 + $0xf9] sm:$0xff]  ;;  %v7829_v18 = vld [vmem:[#allocation2 + $0x109] sm:$0xff] }
 0x40e   : > { %v2607_v29 = vadd.f32 %v7409_v49, %v2556_v22 }
 0x40f   : > { %v2557_v50 = vadd.f32 %v10360_v17, %v2359_v30  ;;  %v2609_v51 = vadd.f32 %v7409_v49, %v2558_v15  ;;  %v7831_v30 = vld [vmem:[#allocation2 + $0x111] sm:$0xff]  ;;  %v7843_v17 = vld [vmem:[#allocation2 + $0x121] sm:$0xff] }
 0x411   : > { %2734 = vrot.lane.b32.xlu1 %v2600_v34, %s5727_s23  ;;  %2736 = vrot.lane.b32.xlu0 %v2601_v9, %s5727_s23  ;;  %v2608_v39 = vadd.f32 %v7409_v49, %v2557_v50  ;;  %v7680_v49 = vld [vmem:[#allocation2 + $0x39] sm:$0xff]  ;;  %v7698_v34 = vld [vmem:[#allocation2 + $0x61] sm:$0xff] }
 0x415   : > { %2738 = vrot.lane.b32.xlu1 %v2602_v26, %s5727_s23  ;;  %2740 = vrot.lane.b32.xlu0 %v2603_v40, %s5727_s23  ;;  %v7746_v26 = vld [vmem:[#allocation2 + $0xa1] sm:$0xff] }
 0x419   : > { %2742 = vrot.lane.b32.xlu1 %v2604_v47, %s5727_s23  ;;  %2744 = vrot.lane.b32.xlu0 %v2605_v6, %s5727_s23  ;;  %v7804_v6 = vld [vmem:[#allocation2 + $0xe9] sm:$0xff] }
 0x41d   : > { %2746 = vrot.lane.b32.xlu1 %v2606_v7, %s5727_s23  ;;  %2748 = vrot.lane.b32.xlu0 %v2607_v29, %s5727_s23  ;;  %v7841_v29 = vld [vmem:[#allocation2 + $0x119] sm:$0xff] }
 0x421   : > { %2750 = vrot.lane.b32.xlu1 %v2608_v39, %s5727_s23  ;;  %2752 = vrot.lane.b32.xlu0 %v2609_v51, %s5727_s23  ;;  %v7853_v39 = vld [vmem:[#allocation2 + $0x129] sm:$0xff] }
 0x425   : > { %2995 = vrot.lane.b32.xlu1 %v2899_v48, %s5724_s17  ;;  %2997 = vrot.lane.b32.xlu0 %v2900_v38, %s5724_s17  ;;  %v7855_v48 = vld [vmem:[#allocation2 + $0x131] sm:$0xff] }
 0x429   : > { %2999 = vrot.lane.b32.xlu1 %v2901_v62, %s5724_s17  ;;  %3001 = vrot.lane.b32.xlu0 %v7675_v33, %s5724_s17 }
 0x42d   : > { %3003 = vrot.lane.b32.xlu1 %v7680_v49, %s5724_s17  ;;  %3005 = vrot.lane.b32.xlu0 %v7682_v5, %s5724_s17 }
 0x431   : > { %3007 = vrot.lane.b32.xlu1 %v7688_v10, %s5724_s17  ;;  %3009 = vrot.lane.b32.xlu0 %v7690_v23, %s5724_s17 }
 0x435   : > { %3011 = vrot.lane.b32.xlu1 %v7696_v53, %s5724_s17  ;;  %3013 = vrot.lane.b32.xlu0 %v7698_v34, %s5724_s17 }
 0x437   : > { %v2661_v9 = vpop.permute.xlu0 %2660  ;;  %v2659_v42 = vpop.permute.xlu1 %2658 }
 0x438   : > { %5191 = vst.msk [vmem:[%s6276_s22 + $0x188] sm:$0xff] %vm318_vm2, %v2661_v9  ;;  %5190 = vst.msk [vmem:[%s6276_s22 + $0x180] sm:$0xff] %vm318_vm2, %v2659_v42  ;;  %v7865_v9 = vld [vmem:[#allocation2 + $0x139] sm:$0xff]  ;;  %v7867_v42 = vld [vmem:[#allocation2 + $0x141] sm:$0xff] }
 0x439   : > { %3015 = vrot.lane.b32.xlu1 %v7708_v2, %s5724_s17  ;;  %3017 = vrot.lane.b32.xlu0 %v7710_v12, %s5724_s17 }
 0x43b   : > { %v2665_v58 = vpop.permute.xlu0 %2664  ;;  %v2663_v28 = vpop.permute.xlu1 %2662 }
 0x43c   : > { %5193 = vst.msk [vmem:[%s6276_s22 + $0x198] sm:$0xff] %vm318_vm2, %v2665_v58  ;;  %5192 = vst.msk [vmem:[%s6276_s22 + $0x190] sm:$0xff] %vm318_vm2, %v2663_v28 }
 0x43d   : > { %3019 = vrot.lane.b32.xlu1 %v7720_v3, %s5724_s17  ;;  %3021 = vrot.lane.b32.xlu0 %v7722_v31, %s5724_s17 }
 0x43f   : > { %v2669_v55 = vpop.permute.xlu0 %2668  ;;  %v2667_v52 = vpop.permute.xlu1 %2666 }
 0x440   : > { %5195 = vst.msk [vmem:[%s6276_s22 + $0x1a8] sm:$0xff] %vm318_vm2, %v2669_v55  ;;  %5194 = vst.msk [vmem:[%s6276_s22 + $0x1a0] sm:$0xff] %vm318_vm2, %v2667_v52  ;;  %v7877_v55 = vld [vmem:[#allocation2 + $0x149] sm:$0xff]  ;;  %v7879_v52 = vld [vmem:[#allocation2 + $0x151] sm:$0xff] }
 0x441   : > { %3023 = vrot.lane.b32.xlu1 %v7732_v32, %s5724_s17  ;;  %3025 = vrot.lane.b32.xlu0 %v7734_v45, %s5724_s17 }
 0x443   : > { %v2673_v4 = vpop.permute.xlu0 %2672  ;;  %v2671_v24 = vpop.permute.xlu1 %2670 }
 0x444   : > { %5197 = vst.msk [vmem:[%s6276_s22 + $0x1b8] sm:$0xff] %vm318_vm2, %v2673_v4  ;;  %5196 = vst.msk [vmem:[%s6276_s22 + $0x1b0] sm:$0xff] %vm318_vm2, %v2671_v24 }
 0x445   : > { %3027 = vrot.lane.b32.xlu1 %v7744_v11, %s5724_s17  ;;  %3029 = vrot.lane.b32.xlu0 %v7746_v26, %s5724_s17 }
 0x447   : > { %v2677_v40 = vpop.permute.xlu0 %2676  ;;  %v2675_v56 = vpop.permute.xlu1 %2674 }
 0x448   : > { %5199 = vst.msk [vmem:[%s6276_s22 + $0x1c8] sm:$0xff] %vm318_vm2, %v2677_v40  ;;  %5198 = vst.msk [vmem:[%s6276_s22 + $0x1c0] sm:$0xff] %vm318_vm2, %v2675_v56  ;;  %v7889_v40 = vld [vmem:[#allocation2 + $0x159] sm:$0xff]  ;;  %v7891_v56 = vld [vmem:[#allocation2 + $0x161] sm:$0xff] }
 0x449   : > { %3031 = vrot.lane.b32.xlu1 %v7756_v13, %s5724_s17  ;;  %3033 = vrot.lane.b32.xlu0 %v7758_v27, %s5724_s17 }
 0x44b   : > { %v2681_v21 = vpop.permute.xlu0 %2680  ;;  %v2679_v0 = vpop.permute.xlu1 %2678 }
 0x44c   : > { %5201 = vst.msk [vmem:[%s6276_s22 + $0x1d8] sm:$0xff] %vm318_vm2, %v2681_v21  ;;  %5200 = vst.msk [vmem:[%s6276_s22 + $0x1d0] sm:$0xff] %vm318_vm2, %v2679_v0 }
 0x44d   : > { %3035 = vrot.lane.b32.xlu1 %v7768_v46, %s5724_s17  ;;  %3037 = vrot.lane.b32.xlu0 %v7770_v57, %s5724_s17 }
 0x44f   : > { %v2685_v8 = vpop.permute.xlu0 %2684  ;;  %v2683_v36 = vpop.permute.xlu1 %2682 }
 0x450   : > { %5203 = vst.msk [vmem:[%s6276_s22 + $0x1e8] sm:$0xff] %vm318_vm2, %v2685_v8  ;;  %5202 = vst.msk [vmem:[%s6276_s22 + $0x1e0] sm:$0xff] %vm318_vm2, %v2683_v36  ;;  %v7901_v8 = vld [vmem:[#allocation2 + $0x169] sm:$0xff]  ;;  %v7903_v36 = vld [vmem:[#allocation2 + $0x171] sm:$0xff] }
 0x451   : > { %3039 = vrot.lane.b32.xlu1 %v7780_v1, %s5724_s17  ;;  %3041 = vrot.lane.b32.xlu0 %v7782_v16, %s5724_s17 }
 0x453   : > { %v2689_v20 = vpop.permute.xlu0 %2688  ;;  %v2687_v63 = vpop.permute.xlu1 %2686 }
 0x454   : > { %5205 = vst.msk [vmem:[%s6276_s22 + $0x1f8] sm:$0xff] %vm318_vm2, %v2689_v20  ;;  %5204 = vst.msk [vmem:[%s6276_s22 + $0x1f0] sm:$0xff] %vm318_vm2, %v2687_v63 }
 0x455   : > { %3043 = vrot.lane.b32.xlu1 %v7792_v37, %s5724_s17  ;;  %3045 = vrot.lane.b32.xlu0 %v7794_v44, %s5724_s17 }
 0x457   : > { %v2693_v43 = vpop.permute.xlu0 %2692  ;;  %v2691_v47 = vpop.permute.xlu1 %2690 }
 0x458   : > { %5207 = vst.msk [vmem:[%s6276_s22 + $0x208] sm:$0xff] %vm318_vm2, %v2693_v43  ;;  %5206 = vst.msk [vmem:[%s6276_s22 + $0x200] sm:$0xff] %vm318_vm2, %v2691_v47  ;;  %v7913_v43 = vld [vmem:[#allocation2 + $0x179] sm:$0xff]  ;;  %v7915_v47 = vld [vmem:[#allocation2 + $0x181] sm:$0xff] }
 0x459   : > { %3047 = vrot.lane.b32.xlu1 %v7804_v6, %s5724_s17  ;;  %3049 = vrot.lane.b32.xlu0 %v7806_v19, %s5724_s17 }
 0x45b   : > { %v2697_v54 = vpop.permute.xlu0 %2696  ;;  %v2695_v41 = vpop.permute.xlu1 %2694 }
 0x45c   : > { %5209 = vst.msk [vmem:[%s6276_s22 + $0x218] sm:$0xff] %vm318_vm2, %v2697_v54  ;;  %5208 = vst.msk [vmem:[%s6276_s22 + $0x210] sm:$0xff] %vm318_vm2, %v2695_v41  ;;  %v7925_v54 = vld [vmem:[#allocation2 + $0x189] sm:$0xff]  ;;  %v7927_v41 = vld [vmem:[#allocation2 + $0x191] sm:$0xff] }
 0x45d   : > { %3051 = vrot.lane.b32.xlu1 %v7817_v60, %s5724_s17  ;;  %3053 = vrot.lane.b32.xlu0 %v7819_v14, %s5724_s17 }
 0x45f   : > { %v2701_v59 = vpop.permute.xlu0 %2700  ;;  %v2699_v22 = vpop.permute.xlu1 %2698 }
 0x460   : > { %5211 = vst.msk [vmem:[%s6276_s22 + $0x228] sm:$0xff] %vm318_vm2, %v2701_v59  ;;  %5210 = vst.msk [vmem:[%s6276_s22 + $0x220] sm:$0xff] %vm318_vm2, %v2699_v22 }
 0x461   : > { %3055 = vrot.lane.b32.xlu1 %v7829_v18, %s5724_s17  ;;  %3057 = vrot.lane.b32.xlu0 %v7831_v30, %s5724_s17 }
 0x463   : > { %v2705_v15 = vpop.permute.xlu0 %2704  ;;  %v2703_v7 = vpop.permute.xlu1 %2702 }
 0x464   : > { %5213 = vst.msk [vmem:[%s6276_s22 + $0x238] sm:$0xff] %vm318_vm2, %v2705_v15  ;;  %5212 = vst.msk [vmem:[%s6276_s22 + $0x230] sm:$0xff] %vm318_vm2, %v2703_v7  ;;  %v7937_v15 = vld [vmem:[#allocation2 + $0x38] sm:$0xff]  ;;  %v7939_v7 = vld [vmem:[#allocation2 + $0x30] sm:$0xff] }
 0x465   : > { %3059 = vrot.lane.b32.xlu1 %v7841_v29, %s5724_s17  ;;  %3061 = vrot.lane.b32.xlu0 %v7843_v17, %s5724_s17 }
 0x467   : > { %v2709_v50 = vpop.permute.xlu0 %2708  ;;  %v2707_v51 = vpop.permute.xlu1 %2706 }
 0x468   : > { %5215 = vst.msk [vmem:[%s6276_s22 + $0x248] sm:$0xff] %vm318_vm2, %v2709_v50  ;;  %5214 = vst.msk [vmem:[%s6276_s22 + $0x240] sm:$0xff] %vm318_vm2, %v2707_v51 }
 0x469   : > { %3063 = vrot.lane.b32.xlu1 %v7853_v39, %s5724_s17  ;;  %3065 = vrot.lane.b32.xlu0 %v7855_v48, %s5724_s17 }
 0x46b   : > { %v2713_v38 = vpop.permute.xlu0 %2712  ;;  %v2711_v62 = vpop.permute.xlu1 %2710 }
 0x46c   : > { %5217 = vst.msk [vmem:[%s6276_s22 + $0x258] sm:$0xff] %vm318_vm2, %v2713_v38  ;;  %5216 = vst.msk [vmem:[%s6276_s22 + $0x250] sm:$0xff] %vm318_vm2, %v2711_v62  ;;  %v7949_v38 = vld [vmem:[#allocation2 + $0x48] sm:$0xff]  ;;  %v7951_v62 = vld [vmem:[#allocation2 + $0x40] sm:$0xff] }
 0x46d   : > { %3067 = vrot.lane.b32.xlu1 %v7865_v9, %s5724_s17  ;;  %3069 = vrot.lane.b32.xlu0 %v7867_v42, %s5724_s17  ;;  %10361 = vst [vmem:[#allocation7_spill] sm:$0xff] %v7949_v38 }
 0x46f   : > { %v2717_v58 = vpop.permute.xlu0 %2716  ;;  %v2715_v28 = vpop.permute.xlu1 %2714 }
 0x470   : > { %5219 = vst.msk [vmem:[%s6276_s22 + $0x268] sm:$0xff] %vm318_vm2, %v2717_v58  ;;  %5218 = vst.msk [vmem:[%s6276_s22 + $0x260] sm:$0xff] %vm318_vm2, %v2715_v28 }
 0x471   : > { %3071 = vrot.lane.b32.xlu1 %v7877_v55, %s5724_s17  ;;  %3073 = vrot.lane.b32.xlu0 %v7879_v52, %s5724_s17 }
 0x473   : > { %v2721_v4 = vpop.permute.xlu0 %2720  ;;  %v2719_v24 = vpop.permute.xlu1 %2718 }
 0x474   : > { %5221 = vst.msk [vmem:[%s6276_s22 + $0x278] sm:$0xff] %vm318_vm2, %v2721_v4  ;;  %5220 = vst.msk [vmem:[%s6276_s22 + $0x270] sm:$0xff] %vm318_vm2, %v2719_v24  ;;  %v7961_v4 = vld [vmem:[#allocation2 + $0x58] sm:$0xff]  ;;  %v7963_v24 = vld [vmem:[#allocation2 + $0x50] sm:$0xff] }
 0x475   : > { %3075 = vrot.lane.b32.xlu1 %v7889_v40, %s5724_s17  ;;  %3077 = vrot.lane.b32.xlu0 %v7891_v56, %s5724_s17  ;;  %10362 = vst [vmem:[#allocation9_spill] sm:$0xff] %v7961_v4 }
 0x477   : > { %v2725_v21 = vpop.permute.xlu0 %2724  ;;  %v2723_v0 = vpop.permute.xlu1 %2722 }
 0x478   : > { %5223 = vst.msk [vmem:[%s6276_s22 + $0x288] sm:$0xff] %vm318_vm2, %v2725_v21  ;;  %5222 = vst.msk [vmem:[%s6276_s22 + $0x280] sm:$0xff] %vm318_vm2, %v2723_v0 }
 0x479   : > { %3079 = vrot.lane.b32.xlu1 %v7901_v8, %s5724_s17  ;;  %3081 = vrot.lane.b32.xlu0 %v7903_v36, %s5724_s17 }
 0x47b   : > { %v2729_v20 = vpop.permute.xlu0 %2728  ;;  %v2727_v63 = vpop.permute.xlu1 %2726 }
 0x47c   : > { %5225 = vst.msk [vmem:[%s6276_s22 + $0x298] sm:$0xff] %vm318_vm2, %v2729_v20  ;;  %5224 = vst.msk [vmem:[%s6276_s22 + $0x290] sm:$0xff] %vm318_vm2, %v2727_v63  ;;  %v7973_v20 = vld [vmem:[#allocation2 + $0x68] sm:$0xff]  ;;  %v7975_v63 = vld [vmem:[#allocation2 + $0x60] sm:$0xff] }
 0x47d   : > { %3083 = vrot.lane.b32.xlu1 %v7913_v43, %s5724_s17  ;;  %3085 = vrot.lane.b32.xlu0 %v7915_v47, %s5724_s17  ;;  %10363 = vst [vmem:[#allocation10_spill] sm:$0xff] %v7973_v20  ;;  %10364 = vst [vmem:[#allocation50_spill] sm:$0xff] %v7975_v63 }
 0x47f   : > { %v2733_v25 = vpop.permute.xlu0 %2732  ;;  %v2731_v35 = vpop.permute.xlu1 %2730 }
 0x480   : > { %5227 = vst.msk [vmem:[%s6276_s22 + $0x2a8] sm:$0xff] %vm318_vm2, %v2733_v25  ;;  %5226 = vst.msk [vmem:[%s6276_s22 + $0x2a0] sm:$0xff] %vm318_vm2, %v2731_v35 }
 0x481   : > { %3087 = vrot.lane.b32.xlu1 %v7925_v54, %s5724_s17  ;;  %3089 = vrot.lane.b32.xlu0 %v7927_v41, %s5724_s17 }
 0x483   : > { %v2737_v59 = vpop.permute.xlu0 %2736  ;;  %v2735_v22 = vpop.permute.xlu1 %2734 }
 0x484   : > { %5229 = vst.msk [vmem:[%s6276_s22 + $0x2b8] sm:$0xff] %vm318_vm2, %v2737_v59  ;;  %5228 = vst.msk [vmem:[%s6276_s22 + $0x2b0] sm:$0xff] %vm318_vm2, %v2735_v22  ;;  %v7985_v59 = vld [vmem:[#allocation2 + $0x78] sm:$0xff]  ;;  %v7987_v22 = vld [vmem:[#allocation2 + $0x70] sm:$0xff] }
 0x485   : > { %3240 = vrot.lane.b32.xlu0 %v7937_v15, %s5723_s15  ;;  %3238 = vrot.lane.b32.xlu1 %v7939_v7, %s5723_s15  ;;  %10365 = vst [vmem:[#allocation11_spill] sm:$0xff] %v7985_v59  ;;  %10366 = vst [vmem:[#allocation52_spill] sm:$0xff] %v7987_v22 }
 0x487   : > { %v2741_v50 = vpop.permute.xlu0 %2740  ;;  %v2739_v51 = vpop.permute.xlu1 %2738 }
 0x488   : > { %5231 = vst.msk [vmem:[%s6276_s22 + $0x2c8] sm:$0xff] %vm318_vm2, %v2741_v50  ;;  %5230 = vst.msk [vmem:[%s6276_s22 + $0x2c0] sm:$0xff] %vm318_vm2, %v2739_v51 }
 0x489   : > { %3244 = vrot.lane.b32.xlu0 %v7949_v38, %s5723_s15  ;;  %3242 = vrot.lane.b32.xlu1 %v7951_v62, %s5723_s15  ;;  %v8057_v38 = vld [vmem:[#allocation2 + $0xd8] sm:$0xff] }
 0x48a   : > { %10383 = vst [vmem:[#allocation39_spill] sm:$0xff] %v8057_v38 }
 0x48b   : > { %v2745_v58 = vpop.permute.xlu0 %2744  ;;  %v2743_v28 = vpop.permute.xlu1 %2742 }
 0x48c   : > { %5233 = vst.msk [vmem:[%s6276_s22 + $0x2d8] sm:$0xff] %vm318_vm2, %v2745_v58  ;;  %5232 = vst.msk [vmem:[%s6276_s22 + $0x2d0] sm:$0xff] %vm318_vm2, %v2743_v28  ;;  %v7997_v58 = vld [vmem:[#allocation2 + $0x88] sm:$0xff]  ;;  %v7999_v28 = vld [vmem:[#allocation2 + $0x80] sm:$0xff] }
 0x48d   : > { %3248 = vrot.lane.b32.xlu0 %v7961_v4, %s5723_s15  ;;  %3246 = vrot.lane.b32.xlu1 %v7963_v24, %s5723_s15  ;;  %10367 = vst [vmem:[#allocation12_spill] sm:$0xff] %v7997_v58  ;;  %10368 = vst [vmem:[#allocation51_spill] sm:$0xff] %v7999_v28 }
 0x48f   : > { %v2749_v21 = vpop.permute.xlu0 %2748  ;;  %v2747_v0 = vpop.permute.xlu1 %2746 }
 0x490   : > { %5235 = vst.msk [vmem:[%s6276_s22 + $0x2e8] sm:$0xff] %vm318_vm2, %v2749_v21  ;;  %5234 = vst.msk [vmem:[%s6276_s22 + $0x2e0] sm:$0xff] %vm318_vm2, %v2747_v0 }
 0x491   : > { %3252 = vrot.lane.b32.xlu0 %v7973_v20, %s5723_s15  ;;  %3250 = vrot.lane.b32.xlu1 %v7975_v63, %s5723_s15  ;;  %v8045_v63 = vld [vmem:[#allocation2 + $0xc8] sm:$0xff] }
 0x492   : > { %10379 = vst [vmem:[#allocation27_spill] sm:$0xff] %v8045_v63 }
 0x493   : > { %v2753_v25 = vpop.permute.xlu0 %2752  ;;  %v2751_v35 = vpop.permute.xlu1 %2750 }
 0x494   : > { %5237 = vst.msk [vmem:[%s6276_s22 + $0x2f8] sm:$0xff] %vm318_vm2, %v2753_v25  ;;  %5236 = vst.msk [vmem:[%s6276_s22 + $0x2f0] sm:$0xff] %vm318_vm2, %v2751_v35  ;;  %v8009_v25 = vld [vmem:[#allocation2 + $0x98] sm:$0xff]  ;;  %v8011_v35 = vld [vmem:[#allocation2 + $0x90] sm:$0xff] }
 0x495   : > { %3256 = vrot.lane.b32.xlu0 %v7985_v59, %s5723_s15  ;;  %3254 = vrot.lane.b32.xlu1 %v7987_v22, %s5723_s15  ;;  %10369 = vst [vmem:[#allocation13_spill] sm:$0xff] %v8009_v25  ;;  %10370 = vst [vmem:[#allocation14_spill] sm:$0xff] %v8011_v35  ;;  %v8021_v59 = vld [vmem:[#allocation2 + $0xa8] sm:$0xff]  ;;  %v8033_v22 = vld [vmem:[#allocation2 + $0xb8] sm:$0xff] }
 0x496   : > { %10371 = vst [vmem:[#allocation15_spill] sm:$0xff] %v8021_v59  ;;  %10375 = vst [vmem:[#allocation18_spill] sm:$0xff] %v8033_v22 }
 0x497   : > { %v7993_v50 = vpop.permute.xlu0 %2997  ;;  %v7995_v51 = vpop.permute.xlu1 %2995 }
 0x499   : > { %3260 = vrot.lane.b32.xlu0 %v7997_v58, %s5723_s15  ;;  %3258 = vrot.lane.b32.xlu1 %v7999_v28, %s5723_s15  ;;  %v8023_v28 = vld [vmem:[#allocation2 + $0xa0] sm:$0xff] }
 0x49a   : > { %10372 = vst [vmem:[#allocation54_spill] sm:$0xff] %v8023_v28 }
 0x49b   : > { %v8005_v21 = vpop.permute.xlu0 %3001  ;;  %v8007_v0 = vpop.permute.xlu1 %2999 }
 0x49d   : > { %3264 = vrot.lane.b32.xlu0 %v8009_v25, %s5723_s15  ;;  %3262 = vrot.lane.b32.xlu1 %v8011_v35, %s5723_s15  ;;  %v8035_v35 = vld [vmem:[#allocation2 + $0xb0] sm:$0xff] }
 0x49e   : > { %10376 = vst [vmem:[#allocation21_spill] sm:$0xff] %v8035_v35 }
 0x49f   : > { %v8017_v61 = vpop.permute.xlu0 %3005  ;;  %v8019_v58 = vpop.permute.xlu1 %3003 }
 0x4a1   : > { %3268 = vrot.lane.b32.xlu0 %v8021_v59, %s5723_s15  ;;  %3266 = vrot.lane.b32.xlu1 %v8023_v28, %s5723_s15  ;;  %v8047_v28 = vld [vmem:[#allocation2 + $0xc0] sm:$0xff] }
 0x4a2   : > { %10380 = vst [vmem:[#allocation31_spill] sm:$0xff] %v8047_v28 }
 0x4a3   : > { %v8029_v20 = vpop.permute.xlu0 %3009  ;;  %v8031_v25 = vpop.permute.xlu1 %3007 }
 0x4a4   : > { %10373 = vst [vmem:[#allocation16_spill] sm:$0xff] %v8029_v20  ;;  %10374 = vst [vmem:[#allocation53_spill] sm:$0xff] %v8031_v25 }
 0x4a5   : > { %3272 = vrot.lane.b32.xlu0 %v8033_v22, %s5723_s15  ;;  %3270 = vrot.lane.b32.xlu1 %v8035_v35, %s5723_s15  ;;  %v8059_v35 = vld [vmem:[#allocation2 + $0xd0] sm:$0xff] }
 0x4a6   : > { %10384 = vst [vmem:[#allocation46_spill] sm:$0xff] %v8059_v35 }
 0x4a7   : > { %v8041_v4 = vpop.permute.xlu0 %3013  ;;  %v8043_v59 = vpop.permute.xlu1 %3011 }
 0x4a8   : > { %10377 = vst [vmem:[#allocation56_spill] sm:$0xff] %v8041_v4  ;;  %10378 = vst [vmem:[#allocation25_spill] sm:$0xff] %v8043_v59  ;;  %v8069_v4 = vld [vmem:[#allocation2 + $0xe8] sm:$0xff] }
 0x4a9   : > { %3276 = vrot.lane.b32.xlu0 %v8045_v63, %s5723_s15  ;;  %3274 = vrot.lane.b32.xlu1 %v8047_v28, %s5723_s15  ;;  %10387 = vst [vmem:[#allocation57_spill] sm:$0xff] %v8069_v4  ;;  %v8071_v28 = vld [vmem:[#allocation2 + $0xe0] sm:$0xff] }
 0x4aa   : > { %10388 = vst [vmem:[#allocation103_spill] sm:$0xff] %v8071_v28 }
 0x4ab   : > { %v8053_v25 = vpop.permute.xlu0 %3017  ;;  %v8055_v22 = vpop.permute.xlu1 %3015 }
 0x4ac   : > { %10381 = vst [vmem:[#allocation33_spill] sm:$0xff] %v8053_v25  ;;  %10382 = vst [vmem:[#allocation35_spill] sm:$0xff] %v8055_v22  ;;  %v8081_v25 = vld [vmem:[#allocation2 + $0xf8] sm:$0xff] }
 0x4ad   : > { %3280 = vrot.lane.b32.xlu0 %v8057_v38, %s5723_s15  ;;  %3278 = vrot.lane.b32.xlu1 %v8059_v35, %s5723_s15  ;;  %10391 = vst [vmem:[#allocation58_spill] sm:$0xff] %v8081_v25  ;;  %v8083_v35 = vld [vmem:[#allocation2 + $0xf0] sm:$0xff] }
 0x4ae   : > { %10392 = vst [vmem:[#allocation60_spill] sm:$0xff] %v8083_v35 }
 0x4af   : > { %v8065_v59 = vpop.permute.xlu0 %3021  ;;  %v8067_v63 = vpop.permute.xlu1 %3019 }
 0x4b0   : > { %10385 = vst [vmem:[#allocation49_spill] sm:$0xff] %v8065_v59  ;;  %10386 = vst [vmem:[#allocation55_spill] sm:$0xff] %v8067_v63  ;;  %v8093_v59 = vld [vmem:[#allocation2 + $0x108] sm:$0xff] }
 0x4b1   : > { %3284 = vrot.lane.b32.xlu0 %v8069_v4, %s5723_s15  ;;  %3282 = vrot.lane.b32.xlu1 %v8071_v28, %s5723_s15  ;;  %10395 = vst [vmem:[#allocation30_spill] sm:$0xff] %v8093_v59  ;;  %v8095_v28 = vld [vmem:[#allocation2 + $0x100] sm:$0xff] }
 0x4b2   : > { %10396 = vst [vmem:[#allocation65_spill] sm:$0xff] %v8095_v28 }
 0x4b3   : > { %v8077_v22 = vpop.permute.xlu0 %3025  ;;  %v8079_v38 = vpop.permute.xlu1 %3023 }
 0x4b4   : > { %10389 = vst [vmem:[#allocation20_spill] sm:$0xff] %v8077_v22  ;;  %10390 = vst [vmem:[#allocation28_spill] sm:$0xff] %v8079_v38  ;;  %v830_v38 = vpop.f32.mrb[50].mxu1 }
 0x4b5   : > { %3288 = vrot.lane.b32.xlu0 %v8081_v25, %s5723_s15  ;;  %3286 = vrot.lane.b32.xlu1 %v8083_v35, %s5723_s15  ;;  %899 = vst.msk [vmem:[#allocation2 + $0x1b0] sm:$0xff] %vm844_vm3, %v830_v38  ;;  %v5560_v25 = vpop.f32.mrb[51].mxu1  ;;  %v8118_v38 = vld [vmem:[#allocation2 + $0x128] sm:$0xff] }
 0x4b6   : > { %10403 = vst [vmem:[#allocation76_spill] sm:$0xff] %v8118_v38  ;;  %v8120_v25 = vld [vmem:[#allocation2 + $0x120] sm:$0xff] }
 0x4b7   : > { %v8089_v63 = vpop.permute.xlu0 %3029  ;;  %v8091_v4 = vpop.permute.xlu1 %3027  ;;  %10404 = vst [vmem:[#allocation106_spill] sm:$0xff] %v8120_v25 }
 0x4b8   : > { %10393 = vst [vmem:[#allocation104_spill] sm:$0xff] %v8089_v63  ;;  %10394 = vst [vmem:[#allocation17_spill] sm:$0xff] %v8091_v4  ;;  %v8106_v63 = vld [vmem:[#allocation2 + $0x118] sm:$0xff]  ;;  %v8108_v4 = vld [vmem:[#allocation2 + $0x110] sm:$0xff] }
 0x4b9   : > { %3292 = vrot.lane.b32.xlu0 %v8093_v59, %s5723_s15  ;;  %3290 = vrot.lane.b32.xlu1 %v8095_v28, %s5723_s15  ;;  %10399 = vst [vmem:[#allocation26_spill] sm:$0xff] %v8106_v63  ;;  %10400 = vst [vmem:[#allocation36_spill] sm:$0xff] %v8108_v4 }
 0x4bb   : > { %v8102_v22 = vpop.permute.xlu0 %3033  ;;  %v8104_v35 = vpop.permute.xlu1 %3031 }
 0x4bc   : > { %10397 = vst [vmem:[#allocation72_spill] sm:$0xff] %v8102_v22  ;;  %10398 = vst [vmem:[#allocation105_spill] sm:$0xff] %v8104_v35  ;;  %v8130_v22 = vld [vmem:[#allocation2 + $0x138] sm:$0xff] }
 0x4bd   : > { %3296 = vrot.lane.b32.xlu0 %v8106_v63, %s5723_s15  ;;  %3294 = vrot.lane.b32.xlu1 %v8108_v4, %s5723_s15  ;;  %10407 = vst [vmem:[#allocation62_spill] sm:$0xff] %v8130_v22  ;;  %v8132_v4 = vld [vmem:[#allocation2 + $0x130] sm:$0xff] }
 0x4be   : > { %10408 = vst [vmem:[#allocation75_spill] sm:$0xff] %v8132_v4 }
 0x4bf   : > { %v8114_v59 = vpop.permute.xlu0 %3037  ;;  %v8116_v28 = vpop.permute.xlu1 %3035 }
 0x4c0   : > { %10401 = vst [vmem:[#allocation71_spill] sm:$0xff] %v8114_v59  ;;  %10402 = vst [vmem:[#allocation59_spill] sm:$0xff] %v8116_v28  ;;  %v8142_v59 = vld [vmem:[#allocation2 + $0x148] sm:$0xff] }
 0x4c1   : > { %3300 = vrot.lane.b32.xlu0 %v8118_v38, %s5723_s15  ;;  %3298 = vrot.lane.b32.xlu1 %v8120_v25, %s5723_s15  ;;  %10411 = vst [vmem:[#allocation107_spill] sm:$0xff] %v8142_v59  ;;  %v8144_v25 = vld [vmem:[#allocation2 + $0x140] sm:$0xff] }
 0x4c2   : > { %10412 = vst [vmem:[#allocation29_spill] sm:$0xff] %v8144_v25 }
 0x4c3   : > { %v8126_v35 = vpop.permute.xlu0 %3041  ;;  %v8128_v63 = vpop.permute.xlu1 %3039 }
 0x4c4   : > { %10405 = vst [vmem:[#allocation23_spill] sm:$0xff] %v8126_v35  ;;  %10406 = vst [vmem:[#allocation42_spill] sm:$0xff] %v8128_v63  ;;  %v8154_v35 = vld [vmem:[#allocation2 + $0x158] sm:$0xff] }
 0x4c5   : > { %3304 = vrot.lane.b32.xlu0 %v8130_v22, %s5723_s15  ;;  %3302 = vrot.lane.b32.xlu1 %v8132_v4, %s5723_s15  ;;  %10415 = vst [vmem:[#allocation79_spill] sm:$0xff] %v8154_v35  ;;  %v8156_v4 = vld [vmem:[#allocation2 + $0x150] sm:$0xff] }
 0x4c6   : > { %10416 = vst [vmem:[#allocation63_spill] sm:$0xff] %v8156_v4 }
 0x4c7   : > { %v8138_v28 = vpop.permute.xlu0 %3045  ;;  %v8140_v38 = vpop.permute.xlu1 %3043 }
 0x4c8   : > { %10409 = vst [vmem:[#allocation61_spill] sm:$0xff] %v8138_v28  ;;  %10410 = vst [vmem:[#allocation80_spill] sm:$0xff] %v8140_v38  ;;  %v8166_v28 = vld [vmem:[#allocation2 + $0x168] sm:$0xff] }
 0x4c9   : > { %3308 = vrot.lane.b32.xlu0 %v8142_v59, %s5723_s15  ;;  %3306 = vrot.lane.b32.xlu1 %v8144_v25, %s5723_s15  ;;  %10419 = vst [vmem:[#allocation32_spill] sm:$0xff] %v8166_v28  ;;  %v8168_v25 = vld [vmem:[#allocation2 + $0x160] sm:$0xff] }
 0x4ca   : > { %10420 = vst [vmem:[#allocation48_spill] sm:$0xff] %v8168_v25 }
 0x4cb   : > { %v8150_v63 = vpop.permute.xlu0 %3049  ;;  %v8152_v22 = vpop.permute.xlu1 %3047 }
 0x4cc   : > { %10413 = vst [vmem:[#allocation41_spill] sm:$0xff] %v8150_v63  ;;  %10414 = vst [vmem:[#allocation64_spill] sm:$0xff] %v8152_v22  ;;  %v8178_v63 = vld [vmem:[#allocation2 + $0x178] sm:$0xff] }
 0x4cd   : > { %3312 = vrot.lane.b32.xlu0 %v8154_v35, %s5723_s15  ;;  %3310 = vrot.lane.b32.xlu1 %v8156_v4, %s5723_s15  ;;  %10423 = vst [vmem:[#allocation66_spill] sm:$0xff] %v8178_v63  ;;  %v8180_v4 = vld [vmem:[#allocation2 + $0x170] sm:$0xff] }
 0x4ce   : > { %10424 = vst [vmem:[#allocation88_spill] sm:$0xff] %v8180_v4 }
 0x4cf   : > { %v8162_v38 = vpop.permute.xlu0 %3053  ;;  %v8164_v59 = vpop.permute.xlu1 %3051 }
 0x4d0   : > { %10417 = vst [vmem:[#allocation84_spill] sm:$0xff] %v8162_v38  ;;  %10418 = vst [vmem:[#allocation108_spill] sm:$0xff] %v8164_v59  ;;  %v8190_v38 = vld [vmem:[#allocation2 + $0x188] sm:$0xff] }
 0x4d1   : > { %3316 = vrot.lane.b32.xlu0 %v8166_v28, %s5723_s15  ;;  %3314 = vrot.lane.b32.xlu1 %v8168_v25, %s5723_s15  ;;  %10427 = vst [vmem:[#allocation47_spill] sm:$0xff] %v8190_v38  ;;  %v8192_v25 = vld [vmem:[#allocation2 + $0x180] sm:$0xff] }
 0x4d2   : > { %10428 = vst [vmem:[#allocation69_spill] sm:$0xff] %v8192_v25 }
 0x4d3   : > { %v8174_v22 = vpop.permute.xlu0 %3057  ;;  %v8176_v35 = vpop.permute.xlu1 %3055 }
 0x4d4   : > { %10421 = vst [vmem:[#allocation67_spill] sm:$0xff] %v8174_v22  ;;  %10422 = vst [vmem:[#allocation83_spill] sm:$0xff] %v8176_v35  ;;  %v3187_v22 = vld [vmem:[#allocation2 + $0x198] sm:$0xff] }
 0x4d5   : > { %3320 = vrot.lane.b32.xlu0 %v8178_v63, %s5723_s15  ;;  %3318 = vrot.lane.b32.xlu1 %v8180_v4, %s5723_s15  ;;  %v8202_v4 = vld [vmem:[#allocation2 + $0x190] sm:$0xff] }
 0x4d6   : > { %10431 = vst [vmem:[#allocation19_spill] sm:$0xff] %v8202_v4 }
 0x4d7   : > { %v8186_v59 = vpop.permute.xlu0 %3061  ;;  %v8188_v28 = vpop.permute.xlu1 %3059 }
 0x4d8   : > { %10425 = vst [vmem:[#allocation109_spill] sm:$0xff] %v8186_v59  ;;  %10426 = vst [vmem:[#allocation34_spill] sm:$0xff] %v8188_v28  ;;  %v3189_v28 = vld [vmem:[#allocation2 + $0x1a8] sm:$0xff]  ;;  %v3188_v59 = vld [vmem:[#allocation2 + $0x1a0] sm:$0xff] }
 0x4d9   : > { %3324 = vrot.lane.b32.xlu0 %v8190_v38, %s5723_s15  ;;  %3322 = vrot.lane.b32.xlu1 %v8192_v25, %s5723_s15 }
 0x4db   : > { %v8198_v35 = vpop.permute.xlu0 %3065  ;;  %v8200_v63 = vpop.permute.xlu1 %3063 }
 0x4dc   : > { %10429 = vst [vmem:[#allocation87_spill] sm:$0xff] %v8198_v35  ;;  %10430 = vst [vmem:[#allocation68_spill] sm:$0xff] %v8200_v63 }
 0x4dd   : > { %3328 = vrot.lane.b32.xlu0 %v3187_v22, %s5723_s15  ;;  %3326 = vrot.lane.b32.xlu1 %v8202_v4, %s5723_s15 }
 0x4df   : > { %v8207_v20 = vpop.permute.xlu0 %3069  ;;  %v8209_v38 = vpop.permute.xlu1 %3067 }
 0x4e0   : > { %10432 = vst [vmem:[#allocation110_spill] sm:$0xff] %v8207_v20  ;;  %10433 = vst [vmem:[#allocation38_spill] sm:$0xff] %v8209_v38 }
 0x4e1   : > { %3332 = vrot.lane.b32.xlu0 %v3189_v28, %s5723_s15  ;;  %3330 = vrot.lane.b32.xlu1 %v3188_v59, %s5723_s15 }
 0x4e3   : > { %v8213_v25 = vpop.permute.xlu0 %3073  ;;  %v8215_v63 = vpop.permute.xlu1 %3071 }
 0x4e4   : > { %10434 = vst [vmem:[#allocation97_spill] sm:$0xff] %v8213_v25  ;;  %10435 = vst [vmem:[#allocation70_spill] sm:$0xff] %v8215_v63 }
 0x4e5   : > { %3438 = vrot.lane.b32.xlu0 %v7680_v49, %s5725_s18  ;;  %3436 = vrot.lane.b32.xlu1 %v7675_v33, %s5725_s18 }
 0x4e7   : > { %v8221_v22 = vpop.permute.xlu0 %3077  ;;  %v8223_v4 = vpop.permute.xlu1 %3075 }
 0x4e8   : > { %10436 = vst [vmem:[#allocation22_spill] sm:$0xff] %v8221_v22  ;;  %10437 = vst [vmem:[#allocation8_spill] sm:$0xff] %v8223_v4 }
 0x4e9   : > { %3442 = vrot.lane.b32.xlu0 %v7688_v10, %s5725_s18  ;;  %3440 = vrot.lane.b32.xlu1 %v7682_v5, %s5725_s18 }
 0x4eb   : > { %v8229_v59 = vpop.permute.xlu0 %3081  ;;  %v8231_v28 = vpop.permute.xlu1 %3079 }
 0x4ec   : > { %10438 = vst [vmem:[#allocation89_spill] sm:$0xff] %v8229_v59  ;;  %10439 = vst [vmem:[#allocation111_spill] sm:$0xff] %v8231_v28 }
 0x4ed   : > { %3446 = vrot.lane.b32.xlu0 %v7696_v53, %s5725_s18  ;;  %3444 = vrot.lane.b32.xlu1 %v7690_v23, %s5725_s18 }
 0x4ef   : > { %v8237_v33 = vpop.permute.xlu0 %3085  ;;  %v8239_v49 = vpop.permute.xlu1 %3083 }
 0x4f0   : > { %10440 = vst [vmem:[#allocation37_spill] sm:$0xff] %v8237_v33  ;;  %10441 = vst [vmem:[#allocation98_spill] sm:$0xff] %v8239_v49 }
 0x4f1   : > { %3450 = vrot.lane.b32.xlu0 %v7708_v2, %s5725_s18  ;;  %3448 = vrot.lane.b32.xlu1 %v7698_v34, %s5725_s18 }
 0x4f3   : > { %v8245_v5 = vpop.permute.xlu0 %3089  ;;  %v8247_v10 = vpop.permute.xlu1 %3087 }
 0x4f4   : > { %10442 = vst [vmem:[#allocation74_spill] sm:$0xff] %v8245_v5  ;;  %10443 = vst [vmem:[#allocation24_spill] sm:$0xff] %v8247_v10 }
 0x4f5   : > { %3454 = vrot.lane.b32.xlu0 %v7720_v3, %s5725_s18  ;;  %3452 = vrot.lane.b32.xlu1 %v7710_v12, %s5725_s18 }
 0x4f7   : > { %v8253_v23 = vpop.permute.xlu0 %3240  ;;  %v8255_v53 = vpop.permute.xlu1 %3238 }
 0x4f9   : > { %3458 = vrot.lane.b32.xlu0 %v7732_v32, %s5725_s18  ;;  %3456 = vrot.lane.b32.xlu1 %v7722_v31, %s5725_s18 }
 0x4fb   : > { %v8261_v34 = vpop.permute.xlu0 %3244  ;;  %v8263_v2 = vpop.permute.xlu1 %3242 }
 0x4fd   : > { %3462 = vrot.lane.b32.xlu0 %v7744_v11, %s5725_s18  ;;  %3460 = vrot.lane.b32.xlu1 %v7734_v45, %s5725_s18 }
 0x4ff   : > { %v8269_v12 = vpop.permute.xlu1 %3246  ;;  %v8271_v3 = vpop.permute.xlu0 %3248 }
 0x501   : > { %3466 = vrot.lane.b32.xlu0 %v7756_v13, %s5725_s18  ;;  %3464 = vrot.lane.b32.xlu1 %v7746_v26, %s5725_s18 }
 0x503   : > { %v8277_v31 = vpop.permute.xlu1 %3250  ;;  %v8283_v32 = vpop.permute.xlu0 %3252 }
 0x505   : > { %3470 = vrot.lane.b32.xlu0 %v7768_v46, %s5725_s18  ;;  %3468 = vrot.lane.b32.xlu1 %v7758_v27, %s5725_s18 }
 0x507   : > { %v8285_v45 = vpop.permute.xlu1 %3254  ;;  %v8293_v26 = vpop.permute.xlu0 %3256 }
 0x509   : > { %3474 = vrot.lane.b32.xlu0 %v7780_v1, %s5725_s18  ;;  %3472 = vrot.lane.b32.xlu1 %v7770_v57, %s5725_s18 }
 0x50b   : > { %v8291_v11 = vpop.permute.xlu1 %3258  ;;  %v8305_v27 = vpop.permute.xlu0 %3260 }
 0x50d   : > { %3478 = vrot.lane.b32.xlu0 %v7792_v37, %s5725_s18  ;;  %3476 = vrot.lane.b32.xlu1 %v7782_v16, %s5725_s18 }
 0x50f   : > { %v8299_v13 = vpop.permute.xlu1 %3262  ;;  %v8315_v1 = vpop.permute.xlu0 %3264 }
 0x511   : > { %3482 = vrot.lane.b32.xlu0 %v7804_v6, %s5725_s18  ;;  %3480 = vrot.lane.b32.xlu1 %v7794_v44, %s5725_s18 }
 0x513   : > { %v8307_v46 = vpop.permute.xlu1 %3266  ;;  %v8327_v37 = vpop.permute.xlu0 %3268 }
 0x515   : > { %3486 = vrot.lane.b32.xlu0 %v7817_v60, %s5725_s18  ;;  %3484 = vrot.lane.b32.xlu1 %v7806_v19, %s5725_s18 }
 0x517   : > { %v8313_v57 = vpop.permute.xlu1 %3270  ;;  %v8337_v19 = vpop.permute.xlu0 %3272 }
 0x519   : > { %3490 = vrot.lane.b32.xlu0 %v7829_v18, %s5725_s18  ;;  %3488 = vrot.lane.b32.xlu1 %v7819_v14, %s5725_s18 }
 0x51b   : > { %v8321_v16 = vpop.permute.xlu1 %3274  ;;  %v8349_v14 = vpop.permute.xlu0 %3276 }
 0x51d   : > { %3494 = vrot.lane.b32.xlu0 %v7841_v29, %s5725_s18  ;;  %3492 = vrot.lane.b32.xlu1 %v7831_v30, %s5725_s18 }
 0x51f   : > { %v8329_v44 = vpop.permute.xlu1 %3278  ;;  %v8359_v29 = vpop.permute.xlu0 %3280 }
 0x521   : > { %3498 = vrot.lane.b32.xlu0 %v7853_v39, %s5725_s18  ;;  %3496 = vrot.lane.b32.xlu1 %v7843_v17, %s5725_s18 }
 0x523   : > { %v8335_v6 = vpop.permute.xlu1 %3282  ;;  %v8371_v39 = vpop.permute.xlu0 %3284 }
 0x524   : > { %10444 = vst [vmem:[#allocation73_spill] sm:$0xff] %v8335_v6  ;;  %10449 = vst [vmem:[#allocation78_spill] sm:$0xff] %v8371_v39 }
 0x525   : > { %3502 = vrot.lane.b32.xlu0 %v7865_v9, %s5725_s18  ;;  %3500 = vrot.lane.b32.xlu1 %v7855_v48, %s5725_s18 }
 0x527   : > { %v8343_v60 = vpop.permute.xlu1 %3286 }
 0x528   : > { %10445 = vst [vmem:[#allocation91_spill] sm:$0xff] %v8343_v60 }
 0x529   : > { %3506 = vrot.lane.b32.xlu0 %v7877_v55, %s5725_s18  ;;  %3504 = vrot.lane.b32.xlu1 %v7867_v42, %s5725_s18  ;;  %v3430_v42 = vld [vmem:[#allocation2 + $0x199] sm:$0xff]  ;;  %v8381_v55 = vpop.permute.xlu0 %3288 }
 0x52a   : > { %10452 = vst [vmem:[#allocation93_spill] sm:$0xff] %v8381_v55  ;;  %v2853_v55 = vld [vmem:[#allocation2 + $0x28] sm:$0xff] }
 0x52b   : > { %v8351_v18 = vpop.permute.xlu1 %3290 }
 0x52c   : > { %10446 = vst [vmem:[#allocation112_spill] sm:$0xff] %v8351_v18 }
 0x52d   : > { %3510 = vrot.lane.b32.xlu0 %v7889_v40, %s5725_s18  ;;  %3508 = vrot.lane.b32.xlu1 %v7879_v52, %s5725_s18  ;;  %v3432_v52 = vld [vmem:[#allocation2 + $0x1a9] sm:$0xff] }
 0x52f   : > { %v8357_v30 = vpop.permute.xlu1 %3294 }
 0x530   : > { %10447 = vst [vmem:[#allocation40_spill] sm:$0xff] %v8357_v30 }
 0x531   : > { %3514 = vrot.lane.b32.xlu0 %v7901_v8, %s5725_s18  ;;  %3512 = vrot.lane.b32.xlu1 %v7891_v56, %s5725_s18  ;;  %v3431_v56 = vld [vmem:[#allocation2 + $0x1a1] sm:$0xff]  ;;  %v8390_v8 = vpop.permute.xlu0 %3292 }
 0x532   : > { %10454 = vst [vmem:[#allocation44_spill] sm:$0xff] %v8390_v8 }
 0x533   : > { %v8365_v17 = vpop.permute.xlu1 %3298 }
 0x534   : > { %10448 = vst [vmem:[#allocation99_spill] sm:$0xff] %v8365_v17 }
 0x535   : > { %3518 = vrot.lane.b32.xlu0 %v7913_v43, %s5725_s18  ;;  %3516 = vrot.lane.b32.xlu1 %v7903_v36, %s5725_s18  ;;  %v5662_v43 = vld [vmem:[#allocation3] ss:$0 sm:$0xff] }
 0x537   : > { %v8373_v48 = vpop.permute.xlu1 %3302 }
 0x538   : > { %10450 = vst [vmem:[#allocation90_spill] sm:$0xff] %v8373_v48 }
 0x539   : > { %3522 = vrot.lane.b32.xlu0 %v7925_v54, %s5725_s18  ;;  %3520 = vrot.lane.b32.xlu1 %v7915_v47, %s5725_s18  ;;  %v8396_v54 = vpop.permute.xlu0 %3296 }
 0x53a   : > { %10457 = vst [vmem:[#allocation92_spill] sm:$0xff] %v8396_v54 }
 0x53b   : > { %v8379_v9 = vpop.permute.xlu1 %3306 }
 0x53c   : > { %10451 = vst [vmem:[#allocation77_spill] sm:$0xff] %v8379_v9 }
 0x53d   : > { %3526 = vrot.lane.b32.xlu0 %v3430_v42, %s5725_s18  ;;  %3524 = vrot.lane.b32.xlu1 %v7927_v41, %s5725_s18  ;;  %v8400_v42 = vpop.permute.xlu0 %3300 }
 0x53e   : > { %10459 = vst [vmem:[#allocation95_spill] sm:$0xff] %v8400_v42 }
 0x53f   : > { %v8386_v40 = vpop.permute.xlu1 %3310 }
 0x540   : > { %10453 = vst [vmem:[#allocation113_spill] sm:$0xff] %v8386_v40 }
 0x541   : > { %3530 = vrot.lane.b32.xlu0 %v3432_v52, %s5725_s18  ;;  %3528 = vrot.lane.b32.xlu1 %v3431_v56, %s5725_s18  ;;  %v8406_v56 = vpop.permute.xlu0 %3304 }
 0x542   : > { %10462 = vst [vmem:[#allocation96_spill] sm:$0xff] %v8406_v56 }
 0x543   : > { %v8392_v36 = vpop.permute.xlu1 %3314 }
 0x544   : > { %10455 = vst [vmem:[#allocation100_spill] sm:$0xff] %v8392_v36 }
 0x545   : > { %3628 = vrot.lane.b32.xlu1 %v5662_v43, %s5728_s24  ;;  %v8408_v49 = vpop.permute.xlu0 %3308 }
 0x546   : > { %10463 = vst [vmem:[#allocation43_spill] sm:$0xff] %v8408_v49 }
 0x547   : > { %v8394_v47 = vpop.permute.xlu1 %3318 }
 0x548   : > { %10456 = vst [vmem:[#allocation82_spill] sm:$0xff] %v8394_v47 }
 0x549   : > { %v8412_v43 = vpop.permute.xlu0 %3312 }
 0x54a   : > { %10464 = vst [vmem:[#allocation101_spill] sm:$0xff] %v8412_v43 }
 0x54b   : > { %v8398_v41 = vpop.permute.xlu1 %3322 }
 0x54c   : > { %10458 = vst [vmem:[#allocation81_spill] sm:$0xff] %v8398_v41 }
 0x54d   : > { %v8416_v47 = vpop.permute.xlu0 %3316 }
 0x54e   : > { %10465 = vst [vmem:[#allocation86_spill] sm:$0xff] %v8416_v47 }
 0x54f   : > { %v8402_v10 = vpop.permute.xlu1 %3326 }
 0x550   : > { %10460 = vst [vmem:[#allocation114_spill] sm:$0xff] %v8402_v10 }
 0x551   : > { %v8422_v10 = vpop.permute.xlu0 %3320 }
 0x552   : > { %10466 = vst [vmem:[#allocation94_spill] sm:$0xff] %v8422_v10 }
 0x553   : > { %v8404_v52 = vpop.permute.xlu1 %3330 }
 0x554   : > { %10461 = vst [vmem:[#allocation85_spill] sm:$0xff] %v8404_v52 }
 0x555   : > { %v8426_v22 = vpop.permute.xlu0 %3324 }
 0x556   : > { %10467 = vst [vmem:[#allocation102_spill] sm:$0xff] %v8426_v22 }
 0x557   : > { %v3437_v5 = vpop.permute.xlu1 %3436 }
 0x559   : > { %v8432_v25 = vpop.permute.xlu0 %3328 }
 0x55a   : > { %10468 = vst [vmem:[#allocation115_spill] sm:$0xff] %v8432_v25 }
 0x55b   : > { %v3441_v33 = vpop.permute.xlu1 %3440 }
 0x55d   : > { %v8436_v43 = vpop.permute.xlu0 %3332 }
 0x55e   : > { %10469 = vst [vmem:[#allocation45_spill] sm:$0xff] %v8436_v43 }
 0x55f   : > { %v8410_v28 = vpop.permute.xlu1 %3444 }
 0x561   : > { %v3439_v20 = vpop.permute.xlu0 %3438 }
 0x563   : > { %v8414_v59 = vpop.permute.xlu1 %3448 }
 0x565   : > { %v3443_v9 = vpop.permute.xlu0 %3442 }
 0x567   : > { %v8418_v41 = vpop.permute.xlu1 %3452 }
 0x569   : > { %v3447_v35 = vpop.permute.xlu0 %3446 }
 0x56b   : > { %v8420_v4 = vpop.permute.xlu1 %3456 }
 0x56d   : > { %v3451_v25 = vpop.permute.xlu0 %3450 }
 0x56f   : > { %v8424_v52 = vpop.permute.xlu1 %3460 }
 0x571   : > { %v3455_v43 = vpop.permute.xlu0 %3454 }
 0x573   : > { %v8428_v36 = vpop.permute.xlu1 %3464 }
 0x575   : > { %v8456_v30 = vpop.permute.xlu0 %3458 }
 0x577   : > { %v8430_v63 = vpop.permute.xlu1 %3468 }
 0x57b   : > { %v8434_v40 = vpop.permute.xlu1 %3472 }
 0x57f   : > { %v8438_v47 = vpop.permute.xlu1 %3476 }
 0x580   : > { %10470 = vst [vmem:[#allocation6_spill] sm:$0xff] %v8438_v47 }
 0x583   : > { %v8440_v38 = vpop.permute.xlu1 %3480 }
 0x584   : > { %10471 = vst [vmem:[#allocation116_spill] sm:$0xff] %v8440_v38 }
 0x587   : > { %v8442_v10 = vpop.permute.xlu1 %3484 }
 0x588   : > { %10472 = vst [vmem:[#allocation117_spill] sm:$0xff] %v8442_v10  ;;  %v2851_v10 = vld [vmem:[#allocation2 + $0x18] sm:$0xff] }
 0x58b   : > { %v8444_v49 = vpop.permute.xlu1 %3488 }
 0x58c   : > { %10473 = vst [vmem:[#allocation118_spill] sm:$0xff] %v8444_v49  ;;  %v8462_v49 = vpop.permute.xlu0 %3462 }
 0x58f   : > { %v8446_v22 = vpop.permute.xlu1 %3492 }
 0x590   : > { %10474 = vst [vmem:[#allocation119_spill] sm:$0xff] %v8446_v22  ;;  %v8466_v8 = vpop.permute.xlu0 %3466 }
 0x593   : > { %v8448_v48 = vpop.permute.xlu1 %3496 }
 0x594   : > { %10475 = vst [vmem:[#allocation120_spill] sm:$0xff] %v8448_v48  ;;  %v8476_v38 = vpop.permute.xlu0 %3470 }
 0x597   : > { %v8450_v56 = vpop.permute.xlu1 %3500 }
 0x598   : > { %10476 = vst [vmem:[#allocation121_spill] sm:$0xff] %v8450_v56  ;;  %v2852_v56 = vld [vmem:[#allocation2 + $0x20] sm:$0xff] }
 0x59b   : > { %v8452_v17 = vpop.permute.xlu1 %3504 }
 0x59c   : > { %10477 = vst [vmem:[#allocation122_spill] sm:$0xff] %v8452_v17  ;;  %v3140_v17 = vadd.f32 %v7993_v50, %v2852_v56 }
 0x59f   : > { %v8454_v42 = vpop.permute.xlu1 %3508 }
 0x5a0   : > { %10478 = vst [vmem:[#allocation123_spill] sm:$0xff] %v8454_v42  ;;  %v3139_v42 = vadd.f32 %v7995_v51, %v2851_v10 }
 0x5a3   : > { %v8458_v54 = vpop.permute.xlu1 %3512 }
 0x5a4   : > { %10479 = vst [vmem:[#allocation124_spill] sm:$0xff] %v8458_v54  ;;  %v3383_v54 = vadd.f32 %v8253_v23, %v3140_v17 }
 0x5a6   : > { %v3581_v6 = vadd.f32 %v3439_v20, %v3383_v54  ;;  %v8493_v20 = vpop.permute.xlu0 %3474  ;;  %v10489_v54 = vld [vmem:[#allocation25_spill] sm:$0xff] }
 0x5a7   : > { %v8460_v18 = vpop.permute.xlu1 %3516 }
 0x5a8   : > { %10480 = vst [vmem:[#allocation125_spill] sm:$0xff] %v8460_v18  ;;  %v3382_v18 = vadd.f32 %v8255_v53, %v3139_v42  ;;  %v3144_v53 = vadd.f32 %v8017_v61, %v7951_v62  ;;  %v10483_v62 = vld [vmem:[#allocation16_spill] sm:$0xff] }
 0x5aa   : > { %v3580_v39 = vadd.f32 %v3437_v5, %v3382_v18 }
 0x5ab   : > { %v8464_v22 = vpop.permute.xlu1 %3520 }
 0x5ac   : > { %10481 = vst [vmem:[#allocation126_spill] sm:$0xff] %v8464_v22  ;;  %v3142_v22 = vadd.f32 %v8005_v21, %v7939_v7  ;;  %v3143_v7 = vadd.f32 %v8019_v58, %v7937_v15  ;;  %v3146_v15 = vadd.f32 %v10483_v62, %v7963_v24  ;;  %v10484_v58 = vld [vmem:[#allocation7_spill] sm:$0xff]  ;;  %v10487_v24 = vld [vmem:[#allocation56_spill] sm:$0xff]  ;;  %v10495_v62 = vld [vmem:[#allocation49_spill] sm:$0xff] }
 0x5ae   : > { %v3385_v50 = vadd.f32 %v8261_v34, %v3142_v22  ;;  %v3387_v22 = vadd.f32 %v8271_v3, %v3144_v53  ;;  %v3386_v5 = vadd.f32 %v8269_v12, %v3143_v7  ;;  %v3389_v3 = vadd.f32 %v8283_v32, %v3146_v15  ;;  %v10492_v7 = vld [vmem:[#allocation10_spill] sm:$0xff] }
 0x5af   : > { %v8468_v48 = vpop.permute.xlu1 %3524 }
 0x5b0   : > { %10482 = vst [vmem:[#allocation127_spill] sm:$0xff] %v8468_v48  ;;  %v3141_v48 = vadd.f32 %v8007_v0, %v2853_v55  ;;  %v3583_v21 = vadd.f32 %v3443_v9, %v3385_v50  ;;  %v3584_v18 = vadd.f32 %v8410_v28, %v3386_v5  ;;  %v8512_v55 = vpop.permute.xlu0 %3478  ;;  %v3587_v42 = vadd.f32 %v3451_v25, %v3389_v3  ;;  %v10498_v3 = vld [vmem:[#allocation14_spill] sm:$0xff] }
 0x5b2   : > { %v3384_v51 = vadd.f32 %v8263_v2, %v3141_v48  ;;  %v10486_v48 = vld [vmem:[#allocation50_spill] sm:$0xff] }
 0x5b3   : > { %v8472_v60 = vpop.permute.xlu1 %3528  ;;  %v3148_v9 = vadd.f32 %v10487_v24, %v10486_v48  ;;  %v10501_v48 = vld [vmem:[#allocation28_spill] sm:$0xff] }
 0x5b4   : > { %v3582_v0 = vadd.f32 %v3441_v33, %v3384_v51  ;;  %v10485_v33 = vld [vmem:[#allocation53_spill] sm:$0xff] }
 0x5b5   : > { %v3145_v2 = vadd.f32 %v10485_v33, %v10484_v58  ;;  %v10497_v58 = vld [vmem:[#allocation55_spill] sm:$0xff] }
 0x5b7   : > { %v8481_v47 = vpop.permute.xlu1 %3628  ;;  %v3388_v12 = vadd.f32 %v8277_v31, %v3145_v2  ;;  %v3391_v31 = vadd.f32 %v8293_v26, %v3148_v9  ;;  %v8530_v26 = vpop.permute.xlu0 %3482 }
 0x5b8   : > { %v3632_v10 = vadd.f32 %v8481_v47, %v3581_v6  ;;  %v3631_v23 = vadd.f32 %v8481_v47, %v3580_v39  ;;  %v3634_v34 = vadd.f32 %v8481_v47, %v3583_v21  ;;  %v3633_v61 = vadd.f32 %v8481_v47, %v3582_v0  ;;  %v10493_v21 = vld [vmem:[#allocation35_spill] sm:$0xff] }
 0x5b9   : > { %v3585_v6 = vadd.f32 %v3447_v35, %v3387_v22  ;;  %v3635_v39 = vadd.f32 %v8481_v47, %v3584_v18  ;;  %v10488_v35 = vld [vmem:[#allocation9_spill] sm:$0xff]  ;;  %v3586_v56 = vadd.f32 %v8414_v59, %v3388_v12  ;;  %v3638_v50 = vadd.f32 %v8481_v47, %v3587_v42  ;;  %v10499_v12 = vld [vmem:[#allocation20_spill] sm:$0xff] }
 0x5ba   : > { %3729 = vrot.lane.b32.xlu1 %v3632_v10, %s5729_s25  ;;  %3727 = vrot.lane.b32.xlu0 %v3631_v23, %s5729_s25  ;;  %v3147_v28 = vadd.f32 %v10489_v54, %v10488_v35  ;;  %v10490_v10 = vld [vmem:[#allocation52_spill] sm:$0xff]  ;;  %v10491_v23 = vld [vmem:[#allocation33_spill] sm:$0xff]  ;;  %v3149_v25 = vadd.f32 %v10493_v21, %v10492_v7  ;;  %v3589_v0 = vadd.f32 %v3455_v43, %v3391_v31  ;;  %v10496_v43 = vld [vmem:[#allocation11_spill] sm:$0xff] }
 0x5bb   : > { %v3636_v17 = vadd.f32 %v8481_v47, %v3585_v6  ;;  %v3637_v51 = vadd.f32 %v8481_v47, %v3586_v56  ;;  %v3150_v53 = vadd.f32 %v10491_v23, %v10490_v10  ;;  %v10503_v42 = vld [vmem:[#allocation104_spill] sm:$0xff]  ;;  %v10504_v31 = vld [vmem:[#allocation13_spill] sm:$0xff] }
 0x5bc   : > { %v3390_v32 = vadd.f32 %v8285_v45, %v3147_v28  ;;  %v3392_v22 = vadd.f32 %v8291_v11, %v3149_v25  ;;  %v3640_v5 = vadd.f32 %v8481_v47, %v3589_v0  ;;  %v10502_v28 = vld [vmem:[#allocation54_spill] sm:$0xff]  ;;  %v10507_v7 = vld [vmem:[#allocation72_spill] sm:$0xff]  ;;  %v10508_v25 = vld [vmem:[#allocation15_spill] sm:$0xff] }
 0x5bd   : > { %v3393_v45 = vadd.f32 %v8305_v27, %v3150_v53  ;;  %v3156_v56 = vadd.f32 %v10503_v42, %v10502_v28  ;;  %v10506_v53 = vld [vmem:[#allocation21_spill] sm:$0xff]  ;;  %v10525_v42 = vld [vmem:[#allocation116_spill] sm:$0xff] }
 0x5be   : > { %3733 = vrot.lane.b32.xlu1 %v3634_v34, %s5729_s25  ;;  %3731 = vrot.lane.b32.xlu0 %v3633_v61, %s5729_s25  ;;  %v3588_v59 = vadd.f32 %v8418_v41, %v3390_v32  ;;  %v10494_v61 = vld [vmem:[#allocation51_spill] sm:$0xff]  ;;  %v3151_v41 = vadd.f32 %v10497_v58, %v10496_v43  ;;  %v3590_v2 = vadd.f32 %v8420_v4, %v3392_v22  ;;  %v10505_v32 = vld [vmem:[#allocation17_spill] sm:$0xff] }
 0x5bf   : > { %v3152_v15 = vadd.f32 %v10495_v62, %v10494_v61  ;;  %v3591_v33 = vadd.f32 %v8456_v30, %v3393_v45  ;;  %v10500_v30 = vld [vmem:[#allocation12_spill] sm:$0xff]  ;;  %v3158_v21 = vadd.f32 %v10507_v7, %v10506_v53  ;;  %v10530_v7 = vld [vmem:[#allocation57_spill] sm:$0xff] }
 0x5c0   : > { %v3639_v34 = vadd.f32 %v8481_v47, %v3588_v59  ;;  %v3394_v27 = vadd.f32 %v8299_v13, %v3151_v41  ;;  %v3641_v18 = vadd.f32 %v8481_v47, %v3590_v2  ;;  %v3153_v4 = vadd.f32 %v10501_v48, %v10500_v30  ;;  %v10514_v2 = vld [vmem:[#allocation46_spill] sm:$0xff]  ;;  %v10520_v30 = vld [vmem:[#allocation73_spill] sm:$0xff] }
 0x5c1   : > { %v3395_v11 = vadd.f32 %v8315_v1, %v3152_v15  ;;  %v3642_v6 = vadd.f32 %v8481_v47, %v3591_v33  ;;  %v10512_v15 = vld [vmem:[#allocation18_spill] sm:$0xff] }
 0x5c2   : > { %3737 = vrot.lane.b32.xlu1 %v3636_v17, %s5729_s25  ;;  %3735 = vrot.lane.b32.xlu0 %v3635_v39, %s5729_s25  ;;  %v3154_v17 = vadd.f32 %v10499_v12, %v10498_v3  ;;  %v8550_v39 = vpop.permute.xlu0 %3486  ;;  %v3592_v9 = vadd.f32 %v8424_v52, %v3394_v27  ;;  %v3396_v1 = vadd.f32 %v8307_v46, %v3153_v4  ;;  %v10518_v3 = vld [vmem:[#allocation6_spill] sm:$0xff] }
 0x5c3   : > { %v3593_v24 = vadd.f32 %v8462_v49, %v3395_v11  ;;  %v3155_v49 = vadd.f32 %v10505_v32, %v10504_v31  ;;  %v3399_v46 = vadd.f32 %v8337_v19, %v3156_v56  ;;  %v10515_v11 = vld [vmem:[#allocation23_spill] sm:$0xff]  ;;  %v10526_v31 = vld [vmem:[#allocation93_spill] sm:$0xff] }
 0x5c4   : > { %v3397_v13 = vadd.f32 %v8327_v37, %v3154_v17  ;;  %v3643_v54 = vadd.f32 %v8481_v47, %v3592_v9  ;;  %v3162_v27 = vadd.f32 %v10515_v11, %v10514_v2  ;;  %v10521_v9 = vld [vmem:[#allocation103_spill] sm:$0xff] }
 0x5c5   : > { %v3644_v35 = vadd.f32 %v8481_v47, %v3593_v24 }
 0x5c6   : > { %3741 = vrot.lane.b32.xlu1 %v3638_v50, %s5729_s25  ;;  %3739 = vrot.lane.b32.xlu0 %v3637_v51, %s5729_s25  ;;  %v3595_v52 = vadd.f32 %v8466_v8, %v3397_v13  ;;  %v3594_v50 = vadd.f32 %v8428_v36, %v3396_v1  ;;  %v3491_v37 = vpop.permute.xlu0 %3490  ;;  %v3398_v51 = vadd.f32 %v8313_v57, %v3155_v49  ;;  %v10509_v8 = vld [vmem:[#allocation105_spill] sm:$0xff]  ;;  %v10527_v49 = vld [vmem:[#allocation91_spill] sm:$0xff] }
 0x5c7   : > { %v3157_v0 = vadd.f32 %v10509_v8, %v10508_v25  ;;  %v3597_v36 = vadd.f32 %v8476_v38, %v3399_v46  ;;  %v3401_v57 = vadd.f32 %v8349_v14, %v3158_v21  ;;  %v10513_v38 = vld [vmem:[#allocation59_spill] sm:$0xff]  ;;  %v10522_v13 = vld [vmem:[#allocation61_spill] sm:$0xff] }
 0x5c8   : > { %v3646_v10 = vadd.f32 %v8481_v47, %v3595_v52  ;;  %v3645_v23 = vadd.f32 %v8481_v47, %v3594_v50  ;;  %v3596_v59 = vadd.f32 %v8430_v63, %v3398_v51  ;;  %v3159_v43 = vadd.f32 %v10513_v38, %v10512_v15  ;;  %v10528_v51 = vld [vmem:[#allocation60_spill] sm:$0xff]  ;;  %v10532_v8 = vld [vmem:[#allocation117_spill] sm:$0xff]  ;;  %v10537_v15 = vld [vmem:[#allocation58_spill] sm:$0xff] }
 0x5c9   : > { %v3400_v19 = vadd.f32 %v8321_v16, %v3157_v0  ;;  %v3648_v45 = vadd.f32 %v8481_v47, %v3597_v36  ;;  %v3599_v63 = vadd.f32 %v8493_v20, %v3401_v57  ;;  %v3164_v1 = vadd.f32 %v10522_v13, %v10521_v9  ;;  %v10533_v36 = vld [vmem:[#allocation44_spill] sm:$0xff] }
 0x5ca   : > { %3745 = vrot.lane.b32.xlu1 %v3640_v5, %s5729_s25  ;;  %3743 = vrot.lane.b32.xlu0 %v3639_v34, %s5729_s25  ;;  %v3647_v22 = vadd.f32 %v8481_v47, %v3596_v59  ;;  %v10510_v5 = vld [vmem:[#allocation31_spill] sm:$0xff]  ;;  %v3495_v62 = vpop.permute.xlu0 %3494  ;;  %v3402_v14 = vadd.f32 %v8329_v44, %v3159_v43  ;;  %v10519_v44 = vld [vmem:[#allocation78_spill] sm:$0xff]  ;;  %v10534_v57 = vld [vmem:[#allocation112_spill] sm:$0xff] }
 0x5cb   : > { %v10511_v34 = vld [vmem:[#allocation71_spill] sm:$0xff]  ;;  %v3598_v58 = vadd.f32 %v8434_v40, %v3400_v19  ;;  %v3650_v41 = vadd.f32 %v8481_v47, %v3599_v63  ;;  %v3405_v17 = vadd.f32 %v10519_v44, %v3162_v27  ;;  %v3407_v32 = vadd.f32 %v10526_v31, %v3164_v1  ;;  %v10538_v38 = vld [vmem:[#allocation108_spill] sm:$0xff]  ;;  %v10539_v63 = vld [vmem:[#allocation118_spill] sm:$0xff] }
 0x5cc   : > { %v3160_v61 = vadd.f32 %v10511_v34, %v10510_v5  ;;  %v3600_v12 = vadd.f32 %v10518_v3, %v3402_v14  ;;  %v10535_v5 = vld [vmem:[#allocation65_spill] sm:$0xff]  ;;  %v10536_v34 = vld [vmem:[#allocation84_spill] sm:$0xff]  ;;  %v10546_v44 = vld [vmem:[#allocation119_spill] sm:$0xff] }
 0x5cd   : > { %v3649_v33 = vadd.f32 %v8481_v47, %v3598_v58  ;;  %v3603_v28 = vadd.f32 %v8530_v26, %v3405_v17  ;;  %v10531_v26 = vld [vmem:[#allocation64_spill] sm:$0xff]  ;;  %v3605_v25 = vadd.f32 %v8550_v39, %v3407_v32  ;;  %v3167_v39 = vadd.f32 %v10538_v38, %v10537_v15  ;;  %v10549_v1 = vld [vmem:[#allocation106_spill] sm:$0xff] }
 0x5ce   : > { %3749 = vrot.lane.b32.xlu1 %v3642_v6, %s5729_s25  ;;  %3747 = vrot.lane.b32.xlu0 %v3641_v18, %s5729_s25  ;;  %v3403_v16 = vadd.f32 %v8359_v29, %v3160_v61  ;;  %v10516_v6 = vld [vmem:[#allocation27_spill] sm:$0xff]  ;;  %v10517_v18 = vld [vmem:[#allocation42_spill] sm:$0xff]  ;;  %v3499_v29 = vpop.permute.xlu0 %3498  ;;  %v3651_v24 = vadd.f32 %v8481_v47, %v3600_v12  ;;  %v3165_v21 = vadd.f32 %v10531_v26, %v10530_v7  ;;  %v10540_v14 = vld [vmem:[#allocation92_spill] sm:$0xff] }
 0x5cf   : > { %v3161_v20 = vadd.f32 %v10517_v18, %v10516_v6  ;;  %v3654_v50 = vadd.f32 %v8481_v47, %v3603_v28  ;;  %v3168_v61 = vadd.f32 %v10536_v34, %v10535_v5  ;;  %v10542_v6 = vld [vmem:[#allocation36_spill] sm:$0xff]  ;;  %v10543_v18 = vld [vmem:[#allocation67_spill] sm:$0xff]  ;;  %v10551_v28 = vld [vmem:[#allocation26_spill] sm:$0xff] }
 0x5d0   : > { %v3601_v40 = vadd.f32 %v8512_v55, %v3403_v16  ;;  %v10524_v55 = vld [vmem:[#allocation80_spill] sm:$0xff]  ;;  %v3408_v19 = vadd.f32 %v10534_v57, %v3165_v21  ;;  %v10557_v7 = vld [vmem:[#allocation87_spill] sm:$0xff]  ;;  %v10564_v15 = vld [vmem:[#allocation110_spill] sm:$0xff] }
 0x5d1   : > { %v3404_v48 = vadd.f32 %v10520_v30, %v3161_v20  ;;  %v3170_v20 = vadd.f32 %v10543_v18, %v10542_v6  ;;  %v10547_v30 = vld [vmem:[#allocation95_spill] sm:$0xff]  ;;  %v10553_v31 = vld [vmem:[#allocation120_spill] sm:$0xff] }
 0x5d2   : > { %3753 = vrot.lane.b32.xlu1 %v3644_v35, %s5729_s25  ;;  %3751 = vrot.lane.b32.xlu0 %v3643_v54, %s5729_s25  ;;  %v3652_v4 = vadd.f32 %v8481_v47, %v3601_v40  ;;  %v10523_v35 = vld [vmem:[#allocation39_spill] sm:$0xff]  ;;  %v3503_v53 = vpop.permute.xlu0 %3502  ;;  %v3606_v58 = vadd.f32 %v10539_v63, %v3408_v19  ;;  %v10544_v40 = vld [vmem:[#allocation30_spill] sm:$0xff]  ;;  %v10558_v21 = vld [vmem:[#allocation76_spill] sm:$0xff] }
 0x5d3   : > { %v3163_v54 = vadd.f32 %v10524_v55, %v10523_v35  ;;  %v3602_v56 = vadd.f32 %v10525_v42, %v3404_v48  ;;  %v3413_v48 = vadd.f32 %v10547_v30, %v3170_v20  ;;  %v10550_v35 = vld [vmem:[#allocation109_spill] sm:$0xff]  ;;  %v10561_v57 = vld [vmem:[#allocation43_spill] sm:$0xff] }
 0x5d4   : > { %v3657_v27 = vadd.f32 %v8481_v47, %v3606_v58  ;;  %v3172_v55 = vadd.f32 %v10550_v35, %v10549_v1  ;;  %v10567_v58 = vld [vmem:[#allocation122_spill] sm:$0xff]  ;;  %v10570_v18 = vld [vmem:[#allocation63_spill] sm:$0xff]  ;;  %v10571_v20 = vld [vmem:[#allocation97_spill] sm:$0xff] }
 0x5d5   : > { %v3406_v52 = vadd.f32 %v10527_v49, %v3163_v54  ;;  %v3653_v46 = vadd.f32 %v8481_v47, %v3602_v56  ;;  %v3611_v56 = vadd.f32 %v3499_v29, %v3413_v48  ;;  %v10554_v49 = vld [vmem:[#allocation96_spill] sm:$0xff]  ;;  %v10575_v48 = vld [vmem:[#allocation86_spill] sm:$0xff] }
 0x5d6   : > { %3757 = vrot.lane.b32.xlu1 %v3646_v10, %s5729_s25  ;;  %3755 = vrot.lane.b32.xlu0 %v3645_v23, %s5729_s25  ;;  %v10529_v10 = vld [vmem:[#allocation41_spill] sm:$0xff]  ;;  %v3507_v16 = vpop.permute.xlu0 %3506  ;;  %v10577_v35 = vld [vmem:[#allocation48_spill] sm:$0xff] }
 0x5d7   : > { %v3166_v23 = vadd.f32 %v10529_v10, %v10528_v51  ;;  %v3604_v0 = vadd.f32 %v10532_v8, %v3406_v52  ;;  %v3415_v52 = vadd.f32 %v10554_v49, %v3172_v55  ;;  %v3662_v51 = vadd.f32 %v8481_v47, %v3611_v56  ;;  %v10578_v55 = vld [vmem:[#allocation22_spill] sm:$0xff] }
 0x5d9   : > { %v3409_v59 = vadd.f32 %v10533_v36, %v3166_v23  ;;  %v10556_v23 = vld [vmem:[#allocation75_spill] sm:$0xff]  ;;  %v3613_v8 = vadd.f32 %v3503_v53, %v3415_v52  ;;  %v10566_v53 = vld [vmem:[#allocation38_spill] sm:$0xff] }
 0x5da   : > { %3761 = vrot.lane.b32.xlu1 %v3648_v45, %s5729_s25  ;;  %3759 = vrot.lane.b32.xlu0 %v3647_v22, %s5729_s25  ;;  %v3656_v45 = vadd.f32 %v8481_v47, %v3605_v25  ;;  %v3655_v22 = vadd.f32 %v8481_v47, %v3604_v0  ;;  %v3511_v54 = vpop.permute.xlu0 %3510  ;;  %v3174_v26 = vadd.f32 %v10557_v7, %v10556_v23  ;;  %v10559_v25 = vld [vmem:[#allocation68_spill] sm:$0xff]  ;;  %v10560_v0 = vld [vmem:[#allocation121_spill] sm:$0xff]  ;;  %v10582_v52 = vld [vmem:[#allocation94_spill] sm:$0xff] }
 0x5db   : > { %v3607_v43 = vadd.f32 %v3491_v37, %v3409_v59  ;;  %v10545_v37 = vld [vmem:[#allocation83_spill] sm:$0xff]  ;;  %v3173_v29 = vadd.f32 %v10559_v25, %v10558_v21  ;;  %v3664_v5 = vadd.f32 %v8481_v47, %v3613_v8  ;;  %v10584_v7 = vld [vmem:[#allocation88_spill] sm:$0xff] }
 0x5dc   : > { %v3169_v3 = vadd.f32 %v10545_v37, %v10544_v40  ;;  %v3417_v19 = vadd.f32 %v10561_v57, %v3174_v26  ;;  %v3178_v40 = vadd.f32 %v10571_v20, %v10570_v18  ;;  %v10585_v26 = vld [vmem:[#allocation89_spill] sm:$0xff]  ;;  %v10586_v25 = vld [vmem:[#allocation32_spill] sm:$0xff]  ;;  %v10589_v57 = vld [vmem:[#allocation102_spill] sm:$0xff] }
 0x5dd   : > { %v3658_v11 = vadd.f32 %v8481_v47, %v3607_v43  ;;  %v3182_v21 = vadd.f32 %v10585_v26, %v10584_v7  ;;  %v10598_v20 = vld [vmem:[#allocation19_spill] sm:$0xff]  ;;  %v8788_v7 = vld [vmem:[#allocation2 + $0x6a] sm:$0xff] }
 0x5de   : > { %3765 = vrot.lane.b32.xlu1 %v3650_v41, %s5729_s25  ;;  %3763 = vrot.lane.b32.xlu0 %v3649_v33, %s5729_s25  ;;  %v3411_v41 = vadd.f32 %v10540_v14, %v3168_v61  ;;  %v10541_v33 = vld [vmem:[#allocation40_spill] sm:$0xff]  ;;  %v3515_v59 = vpop.permute.xlu0 %3514  ;;  %v10563_v61 = vld [vmem:[#allocation29_spill] sm:$0xff]  ;;  %v3615_v63 = vadd.f32 %v3507_v16, %v3417_v19  ;;  %v10573_v16 = vld [vmem:[#allocation70_spill] sm:$0xff] }
 0x5df   : > { %v3410_v2 = vadd.f32 %v10541_v33, %v3167_v39  ;;  %v3176_v38 = vadd.f32 %v10564_v15, %v10563_v61  ;;  %v10565_v39 = vld [vmem:[#allocation62_spill] sm:$0xff]  ;;  %v3425_v19 = vadd.f32 %v10589_v57, %v3182_v21  ;;  %v10591_v61 = vld [vmem:[#allocation69_spill] sm:$0xff] }
 0x5e0   : > { %v3609_v12 = vadd.f32 %v3495_v62, %v3411_v41  ;;  %v10552_v62 = vld [vmem:[#allocation34_spill] sm:$0xff]  ;;  %v3175_v43 = vadd.f32 %v10566_v53, %v10565_v39  ;;  %v10568_v41 = vld [vmem:[#allocation101_spill] sm:$0xff] }
 0x5e1   : > { %v3608_v17 = vadd.f32 %v10546_v44, %v3410_v2  ;;  %v3171_v42 = vadd.f32 %v10552_v62, %v10551_v28  ;;  %v3419_v33 = vadd.f32 %v10568_v41, %v3176_v38  ;;  %v10569_v2 = vld [vmem:[#allocation113_spill] sm:$0xff]  ;;  %v3180_v28 = vadd.f32 %v10578_v55, %v10577_v35  ;;  %v10579_v62 = vld [vmem:[#allocation79_spill] sm:$0xff]  ;;  %v10593_v53 = vld [vmem:[#allocation66_spill] sm:$0xff] }
 0x5e2   : > { %3769 = vrot.lane.b32.xlu1 %v3652_v4, %s5729_s25  ;;  %3767 = vrot.lane.b32.xlu0 %v3651_v24, %s5729_s25  ;;  %v10548_v4 = vld [vmem:[#allocation99_spill] sm:$0xff]  ;;  %v3660_v9 = vadd.f32 %v8481_v47, %v3609_v12  ;;  %v3519_v37 = vpop.permute.xlu0 %3518  ;;  %v10592_v15 = vld [vmem:[#allocation37_spill] sm:$0xff] }
 0x5e3   : > { %v3412_v24 = vadd.f32 %v10548_v4, %v3169_v3  ;;  %v3659_v13 = vadd.f32 %v8481_v47, %v3608_v17  ;;  %v10572_v3 = vld [vmem:[#allocation107_spill] sm:$0xff]  ;;  %v3617_v44 = vadd.f32 %v3511_v54, %v3419_v33  ;;  %v3421_v4 = vadd.f32 %v10575_v48, %v3178_v40  ;;  %v10599_v40 = vld [vmem:[#allocation74_spill] sm:$0xff] }
 0x5e4   : > { %v3177_v12 = vadd.f32 %v10573_v16, %v10572_v3  ;;  %v10574_v17 = vld [vmem:[#allocation123_spill] sm:$0xff]  ;;  %v3184_v38 = vadd.f32 %v10592_v15, %v10591_v61  ;;  %v10601_v16 = vld [vmem:[#allocation24_spill] sm:$0xff]  ;;  %v8836_v15 = vld [vmem:[#allocation2 + $0xaa] sm:$0xff] }
 0x5e5   : > { %v3610_v32 = vadd.f32 %v10553_v31, %v3412_v24  ;;  %v10576_v24 = vld [vmem:[#allocation100_spill] sm:$0xff]  ;;  %v3619_v56 = vadd.f32 %v3515_v59, %v3421_v4  ;;  %v10596_v33 = vld [vmem:[#allocation115_spill] sm:$0xff]  ;;  %v10603_v4 = vld [vmem:[#allocation45_spill] sm:$0xff] }
 0x5e6   : > { %3773 = vrot.lane.b32.xlu1 %v3654_v50, %s5729_s25  ;;  %3771 = vrot.lane.b32.xlu0 %v3653_v46, %s5729_s25  ;;  %v10555_v50 = vld [vmem:[#allocation90_spill] sm:$0xff]  ;;  %v10581_v31 = vld [vmem:[#allocation124_spill] sm:$0xff]  ;;  %v3523_v49 = vpop.permute.xlu0 %3522  ;;  %v10600_v3 = vld [vmem:[#allocation47_spill] sm:$0xff] }
 0x5e7   : > { %v3414_v46 = vadd.f32 %v10555_v50, %v3171_v42  ;;  %v3661_v10 = vadd.f32 %v8481_v47, %v3610_v32  ;;  %v10580_v42 = vld [vmem:[#allocation8_spill] sm:$0xff]  ;;  %v3423_v50 = vadd.f32 %v10582_v52, %v3180_v28  ;;  %v8768_v52 = vld [vmem:[#allocation2 + $0x4a] sm:$0xff]  ;;  %v8834_v61 = vld [vmem:[#allocation2 + $0xb2] sm:$0xff] }
 0x5e8   : > { %v3179_v54 = vadd.f32 %v10580_v42, %v10579_v62 }
 0x5e9   : > { %v3612_v36 = vadd.f32 %v10560_v0, %v3414_v46  ;;  %v10583_v46 = vld [vmem:[#allocation82_spill] sm:$0xff]  ;;  %v3621_v0 = vadd.f32 %v3519_v37, %v3423_v50  ;;  %v3186_v37 = vadd.f32 %v10599_v40, %v10598_v20  ;;  %v8774_v50 = vld [vmem:[#allocation2 + $0x62] sm:$0xff]  ;;  %v8882_v20 = vld [vmem:[#allocation2 + $0xf2] sm:$0xff] }
 0x5ea   : > { %3777 = vrot.lane.b32.xlu1 %v3656_v45, %s5729_s25  ;;  %3775 = vrot.lane.b32.xlu0 %v3655_v22, %s5729_s25  ;;  %v10562_v45 = vld [vmem:[#allocation77_spill] sm:$0xff]  ;;  %v3527_v39 = vpop.permute.xlu0 %3526  ;;  %v8884_v40 = vld [vmem:[#allocation2 + $0xea] sm:$0xff] }
 0x5eb   : > { %v3416_v22 = vadd.f32 %v10562_v45, %v3173_v29  ;;  %v3663_v34 = vadd.f32 %v8481_v47, %v3612_v36  ;;  %v10587_v29 = vld [vmem:[#allocation111_spill] sm:$0xff]  ;;  %v10588_v36 = vld [vmem:[#allocation125_spill] sm:$0xff] }
 0x5ec   : > { %v3181_v8 = vadd.f32 %v10587_v29, %v10586_v25  ;;  %v10590_v45 = vld [vmem:[#allocation81_spill] sm:$0xff]  ;;  %v8800_v29 = vld [vmem:[#allocation2 + $0x7a] sm:$0xff] }
 0x5ed   : > { %v3614_v14 = vadd.f32 %v10567_v58, %v3416_v22  ;;  %v3623_v58 = vadd.f32 %v3523_v49, %v3425_v19  ;;  %v8766_v49 = vld [vmem:[#allocation2 + $0x52] sm:$0xff]  ;;  %v8798_v25 = vld [vmem:[#allocation2 + $0x82] sm:$0xff] }
 0x5ee   : > { %3781 = vrot.lane.b32.xlu1 %v3658_v11, %s5729_s25  ;;  %3779 = vrot.lane.b32.xlu0 %v3657_v27, %s5729_s25  ;;  %v3418_v11 = vadd.f32 %v10569_v2, %v3175_v43  ;;  %v3666_v27 = vadd.f32 %v8481_v47, %v3615_v63  ;;  %v3424_v22 = vadd.f32 %v10590_v45, %v3181_v8  ;;  %v10594_v43 = vld [vmem:[#allocation98_spill] sm:$0xff]  ;;  %v3531_v48 = vpop.permute.xlu0 %3530  ;;  %v8822_v45 = vld [vmem:[#allocation2 + $0xa2] sm:$0xff] }
 0x5ef   : > { %v3665_v6 = vadd.f32 %v8481_v47, %v3614_v14  ;;  %v3183_v63 = vadd.f32 %v10594_v43, %v10593_v53  ;;  %v10595_v14 = vld [vmem:[#allocation126_spill] sm:$0xff]  ;;  %v3427_v2 = vadd.f32 %v10596_v33, %v3184_v38  ;;  %v8846_v53 = vld [vmem:[#allocation2 + $0xc2] sm:$0xff]  ;;  %v8848_v43 = vld [vmem:[#allocation2 + $0xba] sm:$0xff] }
 0x5f0   : > { %v3616_v30 = vadd.f32 %v10574_v17, %v3418_v11  ;;  %v3622_v41 = vadd.f32 %v10595_v14, %v3424_v22  ;;  %v10597_v11 = vld [vmem:[#allocation114_spill] sm:$0xff]  ;;  %v10602_v17 = vld [vmem:[#allocation127_spill] sm:$0xff]  ;;  %v8824_v22 = vld [vmem:[#allocation2 + $0x9a] sm:$0xff] }
 0x5f1   : > { %v8858_v14 = vld [vmem:[#allocation2 + $0xd2] sm:$0xff] }
 0x5f2   : > { %3785 = vrot.lane.b32.xlu1 %v3660_v9, %s5729_s25  ;;  %3783 = vrot.lane.b32.xlu0 %v3659_v13, %s5729_s25  ;;  %v3420_v9 = vadd.f32 %v10576_v24, %v3177_v12  ;;  %v3668_v13 = vadd.f32 %v8481_v47, %v3617_v44  ;;  %v3667_v1 = vadd.f32 %v8481_v47, %v3616_v30 }
 0x5f3   : > { %v3673_v18 = vadd.f32 %v8481_v47, %v3622_v41  ;;  %v3185_v12 = vadd.f32 %v10601_v16, %v10600_v3  ;;  %v3625_v44 = vadd.f32 %v3527_v39, %v3427_v2  ;;  %v3429_v24 = vadd.f32 %v10603_v4, %v3186_v37  ;;  %v8860_v41 = vld [vmem:[#allocation2 + $0xca] sm:$0xff]  ;;  %v8894_v16 = vld [vmem:[#allocation2 + $0x102] sm:$0xff] }
 0x5f4   : > { %v3618_v32 = vadd.f32 %v10581_v31, %v3420_v9  ;;  %v10604_v9 = vld [vmem:[#allocation85_spill] sm:$0xff]  ;;  %v8753_v31 = vld [vmem:[#allocation2 + $0x32] sm:$0xff] }
 0x5f5   : > { %v3627_v55 = vadd.f32 %v3531_v48, %v3429_v24  ;;  %v8908_v48 = vld [vmem:[#allocation2 + $0x10a] sm:$0xff] }
 0x5f6   : > { %3789 = vrot.lane.b32.xlu1 %v3662_v51, %s5729_s25  ;;  %3787 = vrot.lane.b32.xlu0 %v3661_v10, %s5729_s25  ;;  %v3422_v51 = vadd.f32 %v10583_v46, %v3179_v54  ;;  %v3670_v10 = vadd.f32 %v8481_v47, %v3619_v56  ;;  %v3669_v23 = vadd.f32 %v8481_v47, %v3618_v32  ;;  %v3969_v54 = vld [vmem:[#allocation2 + $0x22] sm:$0xff]  ;;  %v3968_v56 = vld [vmem:[#allocation2 + $0x1a] sm:$0xff] }
 0x5f7   : > { %v3678_v62 = vadd.f32 %v8481_v47, %v3627_v55  ;;  %v8760_v32 = vld [vmem:[#allocation2 + $0x3a] sm:$0xff]  ;;  %v8930_v55 = vld [vmem:[#allocation2 + $0x132] sm:$0xff] }
 0x5f8   : > { %v3620_v59 = vadd.f32 %v10588_v36, %v3422_v51  ;;  %v8776_v46 = vld [vmem:[#allocation2 + $0x5a] sm:$0xff]  ;;  %v8810_v36 = vld [vmem:[#allocation2 + $0x92] sm:$0xff] }
 0x5fa   : > { %3793 = vrot.lane.b32.xlu1 %v3664_v5, %s5729_s25  ;;  %3791 = vrot.lane.b32.xlu0 %v3663_v34, %s5729_s25  ;;  %v3672_v5 = vadd.f32 %v8481_v47, %v3621_v0  ;;  %v3671_v34 = vadd.f32 %v8481_v47, %v3620_v59  ;;  %v8812_v59 = vld [vmem:[#allocation2 + $0x8a] sm:$0xff] }
 0x5fe   : > { %3797 = vrot.lane.b32.xlu1 %v3666_v27, %s5729_s25  ;;  %3795 = vrot.lane.b32.xlu0 %v3665_v6, %s5729_s25  ;;  %v3426_v27 = vadd.f32 %v10597_v11, %v3183_v63  ;;  %v3674_v6 = vadd.f32 %v8481_v47, %v3623_v58  ;;  %v8870_v11 = vld [vmem:[#allocation2 + $0xe2] sm:$0xff] }
 0x600   : > { %v3624_v30 = vadd.f32 %v10602_v17, %v3426_v27  ;;  %v8872_v27 = vld [vmem:[#allocation2 + $0xda] sm:$0xff] }
 0x602   : > { %3801 = vrot.lane.b32.xlu1 %v3668_v13, %s5729_s25  ;;  %3799 = vrot.lane.b32.xlu0 %v3667_v1, %s5729_s25  ;;  %v3428_v13 = vadd.f32 %v10604_v9, %v3185_v12  ;;  %v3676_v1 = vadd.f32 %v8481_v47, %v3625_v44  ;;  %v3675_v35 = vadd.f32 %v8481_v47, %v3624_v30  ;;  %v8896_v12 = vld [vmem:[#allocation2 + $0xfa] sm:$0xff]  ;;  %v8906_v30 = vld [vmem:[#allocation2 + $0x112] sm:$0xff]  ;;  %v8918_v9 = vld [vmem:[#allocation2 + $0x122] sm:$0xff] }
 0x604   : > { %v3626_v28 = vadd.f32 %v8472_v60, %v3428_v13  ;;  %v3970_v60 = vld [vmem:[#allocation2 + $0x2a] sm:$0xff]  ;;  %v8920_v13 = vld [vmem:[#allocation2 + $0x11a] sm:$0xff] }
 0x606   : > { %3805 = vrot.lane.b32.xlu1 %v3670_v10, %s5729_s25  ;;  %3803 = vrot.lane.b32.xlu0 %v3669_v23, %s5729_s25  ;;  %v3677_v42 = vadd.f32 %v8481_v47, %v3626_v28  ;;  %v8758_v47 = vld [vmem:[#allocation2 + $0x42] sm:$0xff]  ;;  %v8786_v23 = vld [vmem:[#allocation2 + $0x72] sm:$0xff]  ;;  %v8932_v28 = vld [vmem:[#allocation2 + $0x12a] sm:$0xff] }
 0x60a   : > { %3809 = vrot.lane.b32.xlu1 %v3672_v5, %s5729_s25  ;;  %3807 = vrot.lane.b32.xlu0 %v3671_v34, %s5729_s25 }
 0x60e   : > { %3813 = vrot.lane.b32.xlu1 %v3674_v6, %s5729_s25  ;;  %3811 = vrot.lane.b32.xlu0 %v3673_v18, %s5729_s25 }
 0x612   : > { %3817 = vrot.lane.b32.xlu1 %v3676_v1, %s5729_s25  ;;  %3815 = vrot.lane.b32.xlu0 %v3675_v35, %s5729_s25 }
 0x616   : > { %3821 = vrot.lane.b32.xlu1 %v3678_v62, %s5729_s25  ;;  %3819 = vrot.lane.b32.xlu0 %v3677_v42, %s5729_s25 }
 0x61a   : > { %4066 = vrot.lane.b32.xlu1 %v3969_v54, %s5724_s17  ;;  %4064 = vrot.lane.b32.xlu0 %v3968_v56, %s5724_s17  ;;  %v8942_v54 = vld [vmem:[#allocation2 + $0x142] sm:$0xff]  ;;  %v8944_v56 = vld [vmem:[#allocation2 + $0x13a] sm:$0xff] }
 0x61e   : > { %4070 = vrot.lane.b32.xlu1 %v8753_v31, %s5724_s17  ;;  %4068 = vrot.lane.b32.xlu0 %v3970_v60, %s5724_s17 }
 0x622   : > { %4074 = vrot.lane.b32.xlu1 %v8758_v47, %s5724_s17  ;;  %4072 = vrot.lane.b32.xlu0 %v8760_v32, %s5724_s17 }
 0x626   : > { %4078 = vrot.lane.b32.xlu1 %v8766_v49, %s5724_s17  ;;  %4076 = vrot.lane.b32.xlu0 %v8768_v52, %s5724_s17 }
 0x62a   : > { %4082 = vrot.lane.b32.xlu1 %v8774_v50, %s5724_s17  ;;  %4080 = vrot.lane.b32.xlu0 %v8776_v46, %s5724_s17 }
 0x62c   : > { %v3730_v51 = vpop.permute.xlu1 %3729  ;;  %v3728_v10 = vpop.permute.xlu0 %3727 }
 0x62d   : > { %5239 = vst.msk [vmem:[%s6276_s22 + $0x308] sm:$0xff] %vm318_vm2, %v3730_v51  ;;  %5238 = vst.msk [vmem:[%s6276_s22 + $0x300] sm:$0xff] %vm318_vm2, %v3728_v10  ;;  %v8954_v10 = vld [vmem:[#allocation2 + $0x152] sm:$0xff] }
 0x62e   : > { %4086 = vrot.lane.b32.xlu1 %v8786_v23, %s5724_s17  ;;  %4084 = vrot.lane.b32.xlu0 %v8788_v7, %s5724_s17 }
 0x630   : > { %v3734_v26 = vpop.permute.xlu1 %3733  ;;  %v3732_v21 = vpop.permute.xlu0 %3731 }
 0x631   : > { %5241 = vst.msk [vmem:[%s6276_s22 + $0x318] sm:$0xff] %vm318_vm2, %v3734_v26  ;;  %5240 = vst.msk [vmem:[%s6276_s22 + $0x310] sm:$0xff] %vm318_vm2, %v3732_v21  ;;  %v8956_v26 = vld [vmem:[#allocation2 + $0x14a] sm:$0xff] }
 0x632   : > { %4090 = vrot.lane.b32.xlu1 %v8798_v25, %s5724_s17  ;;  %4088 = vrot.lane.b32.xlu0 %v8800_v29, %s5724_s17 }
 0x634   : > { %v3738_v8 = vpop.permute.xlu1 %3737  ;;  %v3736_v0 = vpop.permute.xlu0 %3735 }
 0x635   : > { %5243 = vst.msk [vmem:[%s6276_s22 + $0x328] sm:$0xff] %vm318_vm2, %v3738_v8  ;;  %5242 = vst.msk [vmem:[%s6276_s22 + $0x320] sm:$0xff] %vm318_vm2, %v3736_v0  ;;  %v8966_v0 = vld [vmem:[#allocation2 + $0x162] sm:$0xff] }
 0x636   : > { %4094 = vrot.lane.b32.xlu1 %v8810_v36, %s5724_s17  ;;  %4092 = vrot.lane.b32.xlu0 %v8812_v59, %s5724_s17 }
 0x638   : > { %v3742_v57 = vpop.permute.xlu1 %3741  ;;  %v3740_v19 = vpop.permute.xlu0 %3739 }
 0x639   : > { %5245 = vst.msk [vmem:[%s6276_s22 + $0x338] sm:$0xff] %vm318_vm2, %v3742_v57  ;;  %5244 = vst.msk [vmem:[%s6276_s22 + $0x330] sm:$0xff] %vm318_vm2, %v3740_v19  ;;  %v8968_v57 = vld [vmem:[#allocation2 + $0x15a] sm:$0xff] }
 0x63a   : > { %4098 = vrot.lane.b32.xlu1 %v8822_v45, %s5724_s17  ;;  %4096 = vrot.lane.b32.xlu0 %v8824_v22, %s5724_s17 }
 0x63c   : > { %v3746_v5 = vpop.permute.xlu1 %3745  ;;  %v3744_v34 = vpop.permute.xlu0 %3743 }
 0x63d   : > { %5247 = vst.msk [vmem:[%s6276_s22 + $0x348] sm:$0xff] %vm318_vm2, %v3746_v5  ;;  %5246 = vst.msk [vmem:[%s6276_s22 + $0x340] sm:$0xff] %vm318_vm2, %v3744_v34  ;;  %v8978_v34 = vld [vmem:[#allocation2 + $0x172] sm:$0xff] }
 0x63e   : > { %4102 = vrot.lane.b32.xlu1 %v8834_v61, %s5724_s17  ;;  %4100 = vrot.lane.b32.xlu0 %v8836_v15, %s5724_s17 }
 0x640   : > { %v3750_v38 = vpop.permute.xlu1 %3749  ;;  %v3748_v39 = vpop.permute.xlu0 %3747 }
 0x641   : > { %5249 = vst.msk [vmem:[%s6276_s22 + $0x358] sm:$0xff] %vm318_vm2, %v3750_v38  ;;  %5248 = vst.msk [vmem:[%s6276_s22 + $0x350] sm:$0xff] %vm318_vm2, %v3748_v39  ;;  %v8980_v38 = vld [vmem:[#allocation2 + $0x16a] sm:$0xff] }
 0x642   : > { %4106 = vrot.lane.b32.xlu1 %v8846_v53, %s5724_s17  ;;  %4104 = vrot.lane.b32.xlu0 %v8848_v43, %s5724_s17 }
 0x644   : > { %v3754_v63 = vpop.permute.xlu1 %3753  ;;  %v3752_v58 = vpop.permute.xlu0 %3751 }
 0x645   : > { %5251 = vst.msk [vmem:[%s6276_s22 + $0x368] sm:$0xff] %vm318_vm2, %v3754_v63  ;;  %5250 = vst.msk [vmem:[%s6276_s22 + $0x360] sm:$0xff] %vm318_vm2, %v3752_v58  ;;  %v8990_v58 = vld [vmem:[#allocation2 + $0x182] sm:$0xff] }
 0x646   : > { %4110 = vrot.lane.b32.xlu1 %v8858_v14, %s5724_s17  ;;  %4108 = vrot.lane.b32.xlu0 %v8860_v41, %s5724_s17 }
 0x648   : > { %v3758_v33 = vpop.permute.xlu1 %3757  ;;  %v3756_v2 = vpop.permute.xlu0 %3755 }
 0x649   : > { %5253 = vst.msk [vmem:[%s6276_s22 + $0x378] sm:$0xff] %vm318_vm2, %v3758_v33  ;;  %5252 = vst.msk [vmem:[%s6276_s22 + $0x370] sm:$0xff] %vm318_vm2, %v3756_v2  ;;  %v8992_v33 = vld [vmem:[#allocation2 + $0x17a] sm:$0xff] }
 0x64a   : > { %4114 = vrot.lane.b32.xlu1 %v8870_v11, %s5724_s17  ;;  %4112 = vrot.lane.b32.xlu0 %v8872_v27, %s5724_s17 }
 0x64c   : > { %v3762_v6 = vpop.permute.xlu1 %3761  ;;  %v3760_v18 = vpop.permute.xlu0 %3759 }
 0x64d   : > { %5255 = vst.msk [vmem:[%s6276_s22 + $0x388] sm:$0xff] %vm318_vm2, %v3762_v6  ;;  %5254 = vst.msk [vmem:[%s6276_s22 + $0x380] sm:$0xff] %vm318_vm2, %v3760_v18  ;;  %v9002_v18 = vld [vmem:[#allocation2 + $0x192] sm:$0xff] }
 0x64e   : > { %4118 = vrot.lane.b32.xlu1 %v8882_v20, %s5724_s17  ;;  %4116 = vrot.lane.b32.xlu0 %v8884_v40, %s5724_s17 }
 0x650   : > { %v3766_v37 = vpop.permute.xlu1 %3765  ;;  %v3764_v3 = vpop.permute.xlu0 %3763 }
 0x651   : > { %5257 = vst.msk [vmem:[%s6276_s22 + $0x398] sm:$0xff] %vm318_vm2, %v3766_v37  ;;  %5256 = vst.msk [vmem:[%s6276_s22 + $0x390] sm:$0xff] %vm318_vm2, %v3764_v3  ;;  %v9004_v37 = vld [vmem:[#allocation2 + $0x18a] sm:$0xff] }
 0x652   : > { %4122 = vrot.lane.b32.xlu1 %v8894_v16, %s5724_s17  ;;  %4120 = vrot.lane.b32.xlu0 %v8896_v12, %s5724_s17 }
 0x654   : > { %v3770_v44 = vpop.permute.xlu1 %3769  ;;  %v3768_v17 = vpop.permute.xlu0 %3767 }
 0x655   : > { %5259 = vst.msk [vmem:[%s6276_s22 + $0x3a8] sm:$0xff] %vm318_vm2, %v3770_v44  ;;  %5258 = vst.msk [vmem:[%s6276_s22 + $0x3a0] sm:$0xff] %vm318_vm2, %v3768_v17  ;;  %v9014_v17 = vld [vmem:[#allocation2 + $0x39] sm:$0xff] }
 0x656   : > { %4126 = vrot.lane.b32.xlu1 %v8906_v30, %s5724_s17  ;;  %4124 = vrot.lane.b32.xlu0 %v8908_v48, %s5724_s17 }
 0x658   : > { %v3774_v4 = vpop.permute.xlu1 %3773  ;;  %v3772_v24 = vpop.permute.xlu0 %3771 }
 0x659   : > { %5261 = vst.msk [vmem:[%s6276_s22 + $0x3b8] sm:$0xff] %vm318_vm2, %v3774_v4  ;;  %5260 = vst.msk [vmem:[%s6276_s22 + $0x3b0] sm:$0xff] %vm318_vm2, %v3772_v24  ;;  %v9016_v4 = vld [vmem:[#allocation2 + $0x31] sm:$0xff] }
 0x65a   : > { %4130 = vrot.lane.b32.xlu1 %v8918_v9, %s5724_s17  ;;  %4128 = vrot.lane.b32.xlu0 %v8920_v13, %s5724_s17  ;;  %10605 = vst [vmem:[#allocation16_spill] sm:$0xff] %v9016_v4 }
 0x65c   : > { %v3778_v1 = vpop.permute.xlu1 %3777  ;;  %v3776_v35 = vpop.permute.xlu0 %3775 }
 0x65d   : > { %5263 = vst.msk [vmem:[%s6276_s22 + $0x3c8] sm:$0xff] %vm318_vm2, %v3778_v1  ;;  %5262 = vst.msk [vmem:[%s6276_s22 + $0x3c0] sm:$0xff] %vm318_vm2, %v3776_v35  ;;  %v9026_v35 = vld [vmem:[#allocation2 + $0x49] sm:$0xff] }
 0x65e   : > { %4134 = vrot.lane.b32.xlu1 %v8930_v55, %s5724_s17  ;;  %4132 = vrot.lane.b32.xlu0 %v8932_v28, %s5724_s17 }
 0x660   : > { %v3782_v62 = vpop.permute.xlu1 %3781  ;;  %v3780_v42 = vpop.permute.xlu0 %3779 }
 0x661   : > { %5265 = vst.msk [vmem:[%s6276_s22 + $0x3d8] sm:$0xff] %vm318_vm2, %v3782_v62  ;;  %5264 = vst.msk [vmem:[%s6276_s22 + $0x3d0] sm:$0xff] %vm318_vm2, %v3780_v42  ;;  %v9028_v62 = vld [vmem:[#allocation2 + $0x41] sm:$0xff] }
 0x662   : > { %4138 = vrot.lane.b32.xlu1 %v8942_v54, %s5724_s17  ;;  %4136 = vrot.lane.b32.xlu0 %v8944_v56, %s5724_s17  ;;  %10606 = vst [vmem:[#allocation7_spill] sm:$0xff] %v9028_v62 }
 0x664   : > { %v3786_v60 = vpop.permute.xlu1 %3785  ;;  %v3784_v51 = vpop.permute.xlu0 %3783 }
 0x665   : > { %5267 = vst.msk [vmem:[%s6276_s22 + $0x3e8] sm:$0xff] %vm318_vm2, %v3786_v60  ;;  %5266 = vst.msk [vmem:[%s6276_s22 + $0x3e0] sm:$0xff] %vm318_vm2, %v3784_v51  ;;  %v9038_v51 = vld [vmem:[#allocation2 + $0x59] sm:$0xff] }
 0x666   : > { %4142 = vrot.lane.b32.xlu1 %v8954_v10, %s5724_s17  ;;  %4140 = vrot.lane.b32.xlu0 %v8956_v26, %s5724_s17 }
 0x668   : > { %v3790_v21 = vpop.permute.xlu1 %3789  ;;  %v3788_v8 = vpop.permute.xlu0 %3787 }
 0x669   : > { %5269 = vst.msk [vmem:[%s6276_s22 + $0x3f8] sm:$0xff] %vm318_vm2, %v3790_v21  ;;  %5268 = vst.msk [vmem:[%s6276_s22 + $0x3f0] sm:$0xff] %vm318_vm2, %v3788_v8  ;;  %v9040_v21 = vld [vmem:[#allocation2 + $0x51] sm:$0xff] }
 0x66a   : > { %4146 = vrot.lane.b32.xlu1 %v8966_v0, %s5724_s17  ;;  %4144 = vrot.lane.b32.xlu0 %v8968_v57, %s5724_s17  ;;  %10607 = vst [vmem:[#allocation53_spill] sm:$0xff] %v9040_v21 }
 0x66c   : > { %v3794_v19 = vpop.permute.xlu1 %3793  ;;  %v3792_v5 = vpop.permute.xlu0 %3791 }
 0x66d   : > { %5271 = vst.msk [vmem:[%s6276_s22 + $0x408] sm:$0xff] %vm318_vm2, %v3794_v19  ;;  %5270 = vst.msk [vmem:[%s6276_s22 + $0x400] sm:$0xff] %vm318_vm2, %v3792_v5  ;;  %v9050_v5 = vld [vmem:[#allocation2 + $0x69] sm:$0xff] }
 0x66e   : > { %4150 = vrot.lane.b32.xlu1 %v8978_v34, %s5724_s17  ;;  %4148 = vrot.lane.b32.xlu0 %v8980_v38, %s5724_s17 }
 0x670   : > { %v3798_v39 = vpop.permute.xlu1 %3797  ;;  %v3796_v63 = vpop.permute.xlu0 %3795 }
 0x671   : > { %5273 = vst.msk [vmem:[%s6276_s22 + $0x418] sm:$0xff] %vm318_vm2, %v3798_v39  ;;  %5272 = vst.msk [vmem:[%s6276_s22 + $0x410] sm:$0xff] %vm318_vm2, %v3796_v63  ;;  %v9052_v39 = vld [vmem:[#allocation2 + $0x61] sm:$0xff] }
 0x672   : > { %4154 = vrot.lane.b32.xlu1 %v8990_v58, %s5724_s17  ;;  %4152 = vrot.lane.b32.xlu0 %v8992_v33, %s5724_s17  ;;  %10608 = vst [vmem:[#allocation50_spill] sm:$0xff] %v9052_v39 }
 0x674   : > { %v3802_v2 = vpop.permute.xlu1 %3801  ;;  %v3800_v6 = vpop.permute.xlu0 %3799 }
 0x675   : > { %5275 = vst.msk [vmem:[%s6276_s22 + $0x428] sm:$0xff] %vm318_vm2, %v3802_v2  ;;  %5274 = vst.msk [vmem:[%s6276_s22 + $0x420] sm:$0xff] %vm318_vm2, %v3800_v6  ;;  %v9062_v6 = vld [vmem:[#allocation2 + $0x79] sm:$0xff] }
 0x676   : > { %4158 = vrot.lane.b32.xlu1 %v9002_v18, %s5724_s17  ;;  %4156 = vrot.lane.b32.xlu0 %v9004_v37, %s5724_s17 }
 0x678   : > { %v3806_v3 = vpop.permute.xlu1 %3805  ;;  %v3804_v44 = vpop.permute.xlu0 %3803 }
 0x679   : > { %5277 = vst.msk [vmem:[%s6276_s22 + $0x438] sm:$0xff] %vm318_vm2, %v3806_v3  ;;  %5276 = vst.msk [vmem:[%s6276_s22 + $0x430] sm:$0xff] %vm318_vm2, %v3804_v44  ;;  %v9064_v3 = vld [vmem:[#allocation2 + $0x71] sm:$0xff] }
 0x67a   : > { %4309 = vrot.lane.b32.xlu1 %v9014_v17, %s5723_s15  ;;  %4307 = vrot.lane.b32.xlu0 %v9016_v4, %s5723_s15  ;;  %10609 = vst [vmem:[#allocation56_spill] sm:$0xff] %v9064_v3  ;;  %v9122_v4 = vld [vmem:[#allocation2 + $0xc9] sm:$0xff] }
 0x67b   : > { %10625 = vst [vmem:[#allocation104_spill] sm:$0xff] %v9122_v4 }
 0x67c   : > { %v3810_v24 = vpop.permute.xlu1 %3809  ;;  %v3808_v1 = vpop.permute.xlu0 %3807 }
 0x67d   : > { %5279 = vst.msk [vmem:[%s6276_s22 + $0x448] sm:$0xff] %vm318_vm2, %v3810_v24  ;;  %5278 = vst.msk [vmem:[%s6276_s22 + $0x440] sm:$0xff] %vm318_vm2, %v3808_v1  ;;  %v9074_v1 = vld [vmem:[#allocation2 + $0x89] sm:$0xff] }
 0x67e   : > { %4313 = vrot.lane.b32.xlu1 %v9026_v35, %s5723_s15  ;;  %4311 = vrot.lane.b32.xlu0 %v9028_v62, %s5723_s15  ;;  %10612 = vst [vmem:[#allocation52_spill] sm:$0xff] %v9074_v1 }
 0x680   : > { %v3814_v42 = vpop.permute.xlu1 %3813  ;;  %v3812_v60 = vpop.permute.xlu0 %3811 }
 0x681   : > { %5281 = vst.msk [vmem:[%s6276_s22 + $0x458] sm:$0xff] %vm318_vm2, %v3814_v42  ;;  %5280 = vst.msk [vmem:[%s6276_s22 + $0x450] sm:$0xff] %vm318_vm2, %v3812_v60  ;;  %v9076_v42 = vld [vmem:[#allocation2 + $0x81] sm:$0xff] }
 0x682   : > { %4317 = vrot.lane.b32.xlu1 %v9038_v51, %s5723_s15  ;;  %4315 = vrot.lane.b32.xlu0 %v9040_v21, %s5723_s15  ;;  %10613 = vst [vmem:[#allocation33_spill] sm:$0xff] %v9076_v42 }
 0x684   : > { %v3818_v8 = vpop.permute.xlu1 %3817  ;;  %v3816_v19 = vpop.permute.xlu0 %3815 }
 0x685   : > { %5283 = vst.msk [vmem:[%s6276_s22 + $0x468] sm:$0xff] %vm318_vm2, %v3818_v8  ;;  %5282 = vst.msk [vmem:[%s6276_s22 + $0x460] sm:$0xff] %vm318_vm2, %v3816_v19  ;;  %v9086_v19 = vld [vmem:[#allocation2 + $0x99] sm:$0xff] }
 0x686   : > { %4321 = vrot.lane.b32.xlu1 %v9050_v5, %s5723_s15  ;;  %4319 = vrot.lane.b32.xlu0 %v9052_v39, %s5723_s15  ;;  %10616 = vst [vmem:[#allocation51_spill] sm:$0xff] %v9086_v19  ;;  %v9098_v39 = vld [vmem:[#allocation2 + $0xa9] sm:$0xff] }
 0x687   : > { %10619 = vst [vmem:[#allocation55_spill] sm:$0xff] %v9098_v39 }
 0x688   : > { %v3822_v63 = vpop.permute.xlu1 %3821  ;;  %v3820_v2 = vpop.permute.xlu0 %3819 }
 0x689   : > { %5285 = vst.msk [vmem:[%s6276_s22 + $0x478] sm:$0xff] %vm318_vm2, %v3822_v63  ;;  %5284 = vst.msk [vmem:[%s6276_s22 + $0x470] sm:$0xff] %vm318_vm2, %v3820_v2  ;;  %v9088_v63 = vld [vmem:[#allocation2 + $0x91] sm:$0xff] }
 0x68a   : > { %4325 = vrot.lane.b32.xlu1 %v9062_v6, %s5723_s15  ;;  %4323 = vrot.lane.b32.xlu0 %v9064_v3, %s5723_s15  ;;  %10617 = vst [vmem:[#allocation49_spill] sm:$0xff] %v9088_v63 }
 0x68c   : > { %v9070_v44 = vpop.permute.xlu1 %4066  ;;  %v9072_v24 = vpop.permute.xlu0 %4064 }
 0x68d   : > { %10610 = vst [vmem:[#allocation9_spill] sm:$0xff] %v9070_v44  ;;  %10611 = vst [vmem:[#allocation25_spill] sm:$0xff] %v9072_v24  ;;  %v9134_v44 = vld [vmem:[#allocation2 + $0xd9] sm:$0xff] }
 0x68e   : > { %4329 = vrot.lane.b32.xlu1 %v9074_v1, %s5723_s15  ;;  %4327 = vrot.lane.b32.xlu0 %v9076_v42, %s5723_s15  ;;  %v9100_v42 = vld [vmem:[#allocation2 + $0xa1] sm:$0xff]  ;;  %10628 = vst [vmem:[#allocation21_spill] sm:$0xff] %v9134_v44 }
 0x68f   : > { %10620 = vst [vmem:[#allocation14_spill] sm:$0xff] %v9100_v42  ;;  %v4257_v1 = vld [vmem:[#allocation2 + $0x1a1] sm:$0xff] }
 0x690   : > { %v9082_v60 = vpop.permute.xlu1 %4070  ;;  %v9084_v8 = vpop.permute.xlu0 %4068 }
 0x691   : > { %10614 = vst [vmem:[#allocation10_spill] sm:$0xff] %v9082_v60  ;;  %10615 = vst [vmem:[#allocation35_spill] sm:$0xff] %v9084_v8  ;;  %v9110_v8 = vld [vmem:[#allocation2 + $0xb9] sm:$0xff] }
 0x692   : > { %4333 = vrot.lane.b32.xlu1 %v9086_v19, %s5723_s15  ;;  %4331 = vrot.lane.b32.xlu0 %v9088_v63, %s5723_s15  ;;  %10622 = vst [vmem:[#allocation12_spill] sm:$0xff] %v9110_v8  ;;  %v9112_v63 = vld [vmem:[#allocation2 + $0xb1] sm:$0xff]  ;;  %v9170_v19 = vld [vmem:[#allocation2 + $0x109] sm:$0xff] }
 0x693   : > { %10623 = vst [vmem:[#allocation28_spill] sm:$0xff] %v9112_v63  ;;  %10639 = vst [vmem:[#allocation42_spill] sm:$0xff] %v9170_v19 }
 0x694   : > { %v9094_v2 = vpop.permute.xlu1 %4074  ;;  %v9096_v3 = vpop.permute.xlu0 %4072 }
 0x695   : > { %10618 = vst [vmem:[#allocation11_spill] sm:$0xff] %v9094_v2 }
 0x696   : > { %4337 = vrot.lane.b32.xlu1 %v9098_v39, %s5723_s15  ;;  %4335 = vrot.lane.b32.xlu0 %v9100_v42, %s5723_s15  ;;  %v9124_v42 = vld [vmem:[#allocation2 + $0xc1] sm:$0xff]  ;;  %v9158_v39 = vld [vmem:[#allocation2 + $0xf9] sm:$0xff] }
 0x697   : > { %10626 = vst [vmem:[#allocation13_spill] sm:$0xff] %v9124_v42  ;;  %10635 = vst [vmem:[#allocation59_spill] sm:$0xff] %v9158_v39 }
 0x698   : > { %v9106_v21 = vpop.permute.xlu1 %4078  ;;  %v9108_v62 = vpop.permute.xlu0 %4076 }
 0x699   : > { %10621 = vst [vmem:[#allocation20_spill] sm:$0xff] %v9106_v21 }
 0x69a   : > { %4341 = vrot.lane.b32.xlu1 %v9110_v8, %s5723_s15  ;;  %4339 = vrot.lane.b32.xlu0 %v9112_v63, %s5723_s15  ;;  %v9136_v63 = vld [vmem:[#allocation2 + $0xd1] sm:$0xff]  ;;  %v9146_v8 = vld [vmem:[#allocation2 + $0xe9] sm:$0xff] }
 0x69b   : > { %10629 = vst [vmem:[#allocation72_spill] sm:$0xff] %v9136_v63  ;;  %10631 = vst [vmem:[#allocation105_spill] sm:$0xff] %v9146_v8 }
 0x69c   : > { %v9118_v2 = vpop.permute.xlu1 %4082  ;;  %v9120_v60 = vpop.permute.xlu0 %4080 }
 0x69d   : > { %10624 = vst [vmem:[#allocation54_spill] sm:$0xff] %v9118_v2 }
 0x69e   : > { %4345 = vrot.lane.b32.xlu1 %v9122_v4, %s5723_s15  ;;  %4343 = vrot.lane.b32.xlu0 %v9124_v42, %s5723_s15  ;;  %v9148_v42 = vld [vmem:[#allocation2 + $0xe1] sm:$0xff] }
 0x69f   : > { %10632 = vst [vmem:[#allocation31_spill] sm:$0xff] %v9148_v42 }
 0x6a0   : > { %v9130_v21 = vpop.permute.xlu1 %4086  ;;  %v9132_v24 = vpop.permute.xlu0 %4084 }
 0x6a1   : > { %10627 = vst [vmem:[#allocation17_spill] sm:$0xff] %v9130_v21 }
 0x6a2   : > { %4349 = vrot.lane.b32.xlu1 %v9134_v44, %s5723_s15  ;;  %4347 = vrot.lane.b32.xlu0 %v9136_v63, %s5723_s15  ;;  %v9160_v63 = vld [vmem:[#allocation2 + $0xf1] sm:$0xff] }
 0x6a3   : > { %10636 = vst [vmem:[#allocation46_spill] sm:$0xff] %v9160_v63 }
 0x6a4   : > { %v9142_v2 = vpop.permute.xlu1 %4090  ;;  %v9144_v4 = vpop.permute.xlu0 %4088 }
 0x6a5   : > { %10630 = vst [vmem:[#allocation15_spill] sm:$0xff] %v9142_v2 }
 0x6a6   : > { %4353 = vrot.lane.b32.xlu1 %v9146_v8, %s5723_s15  ;;  %4351 = vrot.lane.b32.xlu0 %v9148_v42, %s5723_s15  ;;  %v9172_v42 = vld [vmem:[#allocation2 + $0x101] sm:$0xff] }
 0x6a7   : > { %10640 = vst [vmem:[#allocation6_spill] sm:$0xff] %v9172_v42 }
 0x6a8   : > { %v9154_v21 = vpop.permute.xlu1 %4094  ;;  %v9156_v44 = vpop.permute.xlu0 %4092 }
 0x6a9   : > { %10633 = vst [vmem:[#allocation71_spill] sm:$0xff] %v9154_v21  ;;  %10634 = vst [vmem:[#allocation18_spill] sm:$0xff] %v9156_v44  ;;  %v9182_v44 = vld [vmem:[#allocation2 + $0x119] sm:$0xff] }
 0x6aa   : > { %4357 = vrot.lane.b32.xlu1 %v9158_v39, %s5723_s15  ;;  %4355 = vrot.lane.b32.xlu0 %v9160_v63, %s5723_s15  ;;  %10643 = vst [vmem:[#allocation103_spill] sm:$0xff] %v9182_v44  ;;  %v9184_v63 = vld [vmem:[#allocation2 + $0x111] sm:$0xff] }
 0x6ab   : > { %10644 = vst [vmem:[#allocation61_spill] sm:$0xff] %v9184_v63 }
 0x6ac   : > { %v9166_v2 = vpop.permute.xlu1 %4098  ;;  %v9168_v8 = vpop.permute.xlu0 %4096 }
 0x6ad   : > { %10637 = vst [vmem:[#allocation23_spill] sm:$0xff] %v9166_v2  ;;  %10638 = vst [vmem:[#allocation27_spill] sm:$0xff] %v9168_v8  ;;  %v9194_v8 = vld [vmem:[#allocation2 + $0x129] sm:$0xff] }
 0x6ae   : > { %4361 = vrot.lane.b32.xlu1 %v9170_v19, %s5723_s15  ;;  %4359 = vrot.lane.b32.xlu0 %v9172_v42, %s5723_s15  ;;  %10647 = vst [vmem:[#allocation116_spill] sm:$0xff] %v9194_v8  ;;  %v9196_v42 = vld [vmem:[#allocation2 + $0x121] sm:$0xff] }
 0x6af   : > { %10648 = vst [vmem:[#allocation93_spill] sm:$0xff] %v9196_v42 }
 0x6b0   : > { %v9178_v21 = vpop.permute.xlu1 %4102  ;;  %v9180_v39 = vpop.permute.xlu0 %4100 }
 0x6b1   : > { %10641 = vst [vmem:[#allocation78_spill] sm:$0xff] %v9178_v21  ;;  %10642 = vst [vmem:[#allocation73_spill] sm:$0xff] %v9180_v39  ;;  %v9206_v39 = vld [vmem:[#allocation2 + $0x139] sm:$0xff] }
 0x6b2   : > { %4365 = vrot.lane.b32.xlu1 %v9182_v44, %s5723_s15  ;;  %4363 = vrot.lane.b32.xlu0 %v9184_v63, %s5723_s15  ;;  %10651 = vst [vmem:[#allocation41_spill] sm:$0xff] %v9206_v39  ;;  %v9208_v63 = vld [vmem:[#allocation2 + $0x131] sm:$0xff] }
 0x6b3   : > { %10652 = vst [vmem:[#allocation57_spill] sm:$0xff] %v9208_v63 }
 0x6b4   : > { %v9190_v2 = vpop.permute.xlu1 %4106  ;;  %v9192_v19 = vpop.permute.xlu0 %4104 }
 0x6b5   : > { %10645 = vst [vmem:[#allocation39_spill] sm:$0xff] %v9190_v2  ;;  %10646 = vst [vmem:[#allocation80_spill] sm:$0xff] %v9192_v19  ;;  %v9218_v19 = vld [vmem:[#allocation2 + $0x149] sm:$0xff] }
 0x6b6   : > { %4369 = vrot.lane.b32.xlu1 %v9194_v8, %s5723_s15  ;;  %4367 = vrot.lane.b32.xlu0 %v9196_v42, %s5723_s15  ;;  %10655 = vst [vmem:[#allocation44_spill] sm:$0xff] %v9218_v19  ;;  %v9220_v42 = vld [vmem:[#allocation2 + $0x141] sm:$0xff] }
 0x6b7   : > { %10656 = vst [vmem:[#allocation112_spill] sm:$0xff] %v9220_v42 }
 0x6b8   : > { %v9202_v21 = vpop.permute.xlu1 %4110  ;;  %v9204_v44 = vpop.permute.xlu0 %4108 }
 0x6b9   : > { %10649 = vst [vmem:[#allocation91_spill] sm:$0xff] %v9202_v21  ;;  %10650 = vst [vmem:[#allocation60_spill] sm:$0xff] %v9204_v44  ;;  %v9230_v44 = vld [vmem:[#allocation2 + $0x159] sm:$0xff] }
 0x6ba   : > { %4373 = vrot.lane.b32.xlu1 %v9206_v39, %s5723_s15  ;;  %4371 = vrot.lane.b32.xlu0 %v9208_v63, %s5723_s15  ;;  %10659 = vst [vmem:[#allocation58_spill] sm:$0xff] %v9230_v44  ;;  %v9232_v63 = vld [vmem:[#allocation2 + $0x151] sm:$0xff] }
 0x6bb   : > { %10660 = vst [vmem:[#allocation108_spill] sm:$0xff] %v9232_v63 }
 0x6bc   : > { %v9214_v2 = vpop.permute.xlu1 %4114  ;;  %v9216_v8 = vpop.permute.xlu0 %4112 }
 0x6bd   : > { %10653 = vst [vmem:[#allocation64_spill] sm:$0xff] %v9214_v2  ;;  %10654 = vst [vmem:[#allocation117_spill] sm:$0xff] %v9216_v8  ;;  %v9242_v8 = vld [vmem:[#allocation2 + $0x169] sm:$0xff] }
 0x6be   : > { %4377 = vrot.lane.b32.xlu1 %v9218_v19, %s5723_s15  ;;  %4375 = vrot.lane.b32.xlu0 %v9220_v42, %s5723_s15  ;;  %10663 = vst [vmem:[#allocation40_spill] sm:$0xff] %v9242_v8  ;;  %v9244_v42 = vld [vmem:[#allocation2 + $0x161] sm:$0xff] }
 0x6bf   : > { %10664 = vst [vmem:[#allocation36_spill] sm:$0xff] %v9244_v42 }
 0x6c0   : > { %v9226_v21 = vpop.permute.xlu1 %4118  ;;  %v9228_v39 = vpop.permute.xlu0 %4116 }
 0x6c1   : > { %10657 = vst [vmem:[#allocation65_spill] sm:$0xff] %v9226_v21  ;;  %10658 = vst [vmem:[#allocation84_spill] sm:$0xff] %v9228_v39  ;;  %v9254_v39 = vld [vmem:[#allocation2 + $0x179] sm:$0xff] }
 0x6c2   : > { %4381 = vrot.lane.b32.xlu1 %v9230_v44, %s5723_s15  ;;  %4379 = vrot.lane.b32.xlu0 %v9232_v63, %s5723_s15  ;;  %10667 = vst [vmem:[#allocation83_spill] sm:$0xff] %v9254_v39  ;;  %v9256_v63 = vld [vmem:[#allocation2 + $0x171] sm:$0xff] }
 0x6c3   : > { %10668 = vst [vmem:[#allocation119_spill] sm:$0xff] %v9256_v63 }
 0x6c4   : > { %v9238_v2 = vpop.permute.xlu1 %4122  ;;  %v9240_v19 = vpop.permute.xlu0 %4120 }
 0x6c5   : > { %10661 = vst [vmem:[#allocation118_spill] sm:$0xff] %v9238_v2  ;;  %10662 = vst [vmem:[#allocation92_spill] sm:$0xff] %v9240_v19  ;;  %v9266_v19 = vld [vmem:[#allocation2 + $0x189] sm:$0xff] }
 0x6c6   : > { %4385 = vrot.lane.b32.xlu1 %v9242_v8, %s5723_s15  ;;  %4383 = vrot.lane.b32.xlu0 %v9244_v42, %s5723_s15  ;;  %10671 = vst [vmem:[#allocation106_spill] sm:$0xff] %v9266_v19  ;;  %v9268_v42 = vld [vmem:[#allocation2 + $0x181] sm:$0xff] }
 0x6c7   : > { %10672 = vst [vmem:[#allocation109_spill] sm:$0xff] %v9268_v42 }
 0x6c8   : > { %v9250_v21 = vpop.permute.xlu1 %4126  ;;  %v9252_v44 = vpop.permute.xlu0 %4124 }
 0x6c9   : > { %10665 = vst [vmem:[#allocation67_spill] sm:$0xff] %v9250_v21  ;;  %10666 = vst [vmem:[#allocation30_spill] sm:$0xff] %v9252_v44  ;;  %v4256_v44 = vld [vmem:[#allocation2 + $0x199] sm:$0xff] }
 0x6ca   : > { %4389 = vrot.lane.b32.xlu1 %v9254_v39, %s5723_s15  ;;  %4387 = vrot.lane.b32.xlu0 %v9256_v63, %s5723_s15  ;;  %v9278_v63 = vld [vmem:[#allocation2 + $0x191] sm:$0xff] }
 0x6cc   : > { %v9262_v2 = vpop.permute.xlu1 %4130  ;;  %v9264_v8 = vpop.permute.xlu0 %4128 }
 0x6cd   : > { %10669 = vst [vmem:[#allocation95_spill] sm:$0xff] %v9262_v2  ;;  %10670 = vst [vmem:[#allocation99_spill] sm:$0xff] %v9264_v8 }
 0x6ce   : > { %4393 = vrot.lane.b32.xlu1 %v9266_v19, %s5723_s15  ;;  %4391 = vrot.lane.b32.xlu0 %v9268_v42, %s5723_s15  ;;  %v4258_v19 = vld [vmem:[#allocation2 + $0x1a9] sm:$0xff] }
 0x6d0   : > { %v9274_v21 = vpop.permute.xlu1 %4134  ;;  %v9276_v39 = vpop.permute.xlu0 %4132 }
 0x6d1   : > { %10673 = vst [vmem:[#allocation26_spill] sm:$0xff] %v9274_v21 }
 0x6d2   : > { %4397 = vrot.lane.b32.xlu1 %v4256_v44, %s5723_s15  ;;  %4395 = vrot.lane.b32.xlu0 %v9278_v63, %s5723_s15 }
 0x6d4   : > { %v9283_v2 = vpop.permute.xlu1 %4138  ;;  %v9285_v8 = vpop.permute.xlu0 %4136 }
 0x6d5   : > { %10674 = vst [vmem:[#allocation34_spill] sm:$0xff] %v9283_v2 }
 0x6d6   : > { %4401 = vrot.lane.b32.xlu1 %v4258_v19, %s5723_s15  ;;  %4399 = vrot.lane.b32.xlu0 %v4257_v1, %s5723_s15 }
 0x6d8   : > { %v9289_v42 = vpop.permute.xlu1 %4142  ;;  %v9291_v21 = vpop.permute.xlu0 %4140 }
 0x6d9   : > { %10675 = vst [vmem:[#allocation120_spill] sm:$0xff] %v9289_v42  ;;  %v5663_v42 = vld [vmem:[#allocation3] ss:$0 sm:$0xff] }
 0x6da   : > { %4507 = vrot.lane.b32.xlu1 %v8760_v32, %s5725_s18  ;;  %4505 = vrot.lane.b32.xlu0 %v8753_v31, %s5725_s18 }
 0x6dc   : > { %v9297_v44 = vpop.permute.xlu1 %4146  ;;  %v9299_v2 = vpop.permute.xlu0 %4144 }
 0x6dd   : > { %10676 = vst [vmem:[#allocation96_spill] sm:$0xff] %v9297_v44  ;;  %v4500_v44 = vld [vmem:[#allocation2 + $0x1a2] sm:$0xff] }
 0x6de   : > { %4511 = vrot.lane.b32.xlu1 %v8768_v52, %s5725_s18  ;;  %4509 = vrot.lane.b32.xlu0 %v8758_v47, %s5725_s18 }
 0x6e0   : > { %v9305_v1 = vpop.permute.xlu1 %4150  ;;  %v9307_v19 = vpop.permute.xlu0 %4148 }
 0x6e1   : > { %10677 = vst [vmem:[#allocation90_spill] sm:$0xff] %v9305_v1  ;;  %v4501_v1 = vld [vmem:[#allocation2 + $0x1aa] sm:$0xff] }
 0x6e2   : > { %4515 = vrot.lane.b32.xlu1 %v8776_v46, %s5725_s18  ;;  %4513 = vrot.lane.b32.xlu0 %v8766_v49, %s5725_s18 }
 0x6e4   : > { %v9313_v31 = vpop.permute.xlu1 %4154  ;;  %v9315_v32 = vpop.permute.xlu0 %4152 }
 0x6e5   : > { %10678 = vst [vmem:[#allocation75_spill] sm:$0xff] %v9313_v31  ;;  %v315_v31 = vld [vmem:[%s5825_s9 + $0x1b8] sm:$0xff] }
 0x6e6   : > { %4519 = vrot.lane.b32.xlu1 %v8788_v7, %s5725_s18  ;;  %4517 = vrot.lane.b32.xlu0 %v8774_v50, %s5725_s18 }
 0x6e7   : > { %5562 = vmatmul.mubr.msk.f32.gmra.mrb[52].mxu1 %vm318_vm2, %v315_v31 }
 0x6e8   : > { %v9321_v47 = vpop.permute.xlu1 %4158  ;;  %v9323_v52 = vpop.permute.xlu0 %4156 }
 0x6ea   : > { %4523 = vrot.lane.b32.xlu1 %v8800_v29, %s5725_s18  ;;  %4521 = vrot.lane.b32.xlu0 %v8786_v23, %s5725_s18 }
 0x6ec   : > { %v9329_v49 = vpop.permute.xlu1 %4309  ;;  %v9331_v46 = vpop.permute.xlu0 %4307 }
 0x6ee   : > { %4527 = vrot.lane.b32.xlu1 %v8812_v59, %s5725_s18  ;;  %4525 = vrot.lane.b32.xlu0 %v8798_v25, %s5725_s18 }
 0x6f0   : > { %v9337_v50 = vpop.permute.xlu1 %4313  ;;  %v9339_v7 = vpop.permute.xlu0 %4311 }
 0x6f2   : > { %4531 = vrot.lane.b32.xlu1 %v8824_v22, %s5725_s18  ;;  %4529 = vrot.lane.b32.xlu0 %v8810_v36, %s5725_s18 }
 0x6f4   : > { %v9345_v23 = vpop.permute.xlu1 %4317  ;;  %v9347_v29 = vpop.permute.xlu0 %4315 }
 0x6f6   : > { %4535 = vrot.lane.b32.xlu1 %v8836_v15, %s5725_s18  ;;  %4533 = vrot.lane.b32.xlu0 %v8822_v45, %s5725_s18 }
 0x6f8   : > { %v9353_v25 = vpop.permute.xlu1 %4321  ;;  %v9355_v59 = vpop.permute.xlu0 %4319 }
 0x6fa   : > { %4539 = vrot.lane.b32.xlu1 %v8848_v43, %s5725_s18  ;;  %4537 = vrot.lane.b32.xlu0 %v8834_v61, %s5725_s18 }
 0x6fc   : > { %v9361_v36 = vpop.permute.xlu1 %4325  ;;  %v9363_v22 = vpop.permute.xlu0 %4323 }
 0x6fe   : > { %4543 = vrot.lane.b32.xlu1 %v8860_v41, %s5725_s18  ;;  %4541 = vrot.lane.b32.xlu0 %v8846_v53, %s5725_s18 }
 0x700   : > { %v9369_v45 = vpop.permute.xlu1 %4329  ;;  %v9371_v15 = vpop.permute.xlu0 %4327 }
 0x702   : > { %4547 = vrot.lane.b32.xlu1 %v8872_v27, %s5725_s18  ;;  %4545 = vrot.lane.b32.xlu0 %v8858_v14, %s5725_s18 }
 0x704   : > { %v9377_v61 = vpop.permute.xlu1 %4333  ;;  %v9379_v43 = vpop.permute.xlu0 %4331 }
 0x706   : > { %4551 = vrot.lane.b32.xlu1 %v8884_v40, %s5725_s18  ;;  %4549 = vrot.lane.b32.xlu0 %v8870_v11, %s5725_s18 }
 0x708   : > { %v9385_v53 = vpop.permute.xlu1 %4337  ;;  %v9387_v41 = vpop.permute.xlu0 %4335 }
 0x70a   : > { %4555 = vrot.lane.b32.xlu1 %v8896_v12, %s5725_s18  ;;  %4553 = vrot.lane.b32.xlu0 %v8882_v20, %s5725_s18 }
 0x70c   : > { %v9393_v14 = vpop.permute.xlu1 %4341  ;;  %v9395_v27 = vpop.permute.xlu0 %4339 }
 0x70e   : > { %4559 = vrot.lane.b32.xlu1 %v8908_v48, %s5725_s18  ;;  %4557 = vrot.lane.b32.xlu0 %v8894_v16, %s5725_s18 }
 0x710   : > { %v9401_v11 = vpop.permute.xlu1 %4345  ;;  %v9403_v40 = vpop.permute.xlu0 %4343 }
 0x712   : > { %4563 = vrot.lane.b32.xlu1 %v8920_v13, %s5725_s18  ;;  %4561 = vrot.lane.b32.xlu0 %v8906_v30, %s5725_s18 }
 0x714   : > { %v9409_v20 = vpop.permute.xlu1 %4349  ;;  %v9411_v12 = vpop.permute.xlu0 %4347 }
 0x715   : > { %10679 = vst [vmem:[#allocation87_spill] sm:$0xff] %v9409_v20 }
 0x716   : > { %4567 = vrot.lane.b32.xlu1 %v8932_v28, %s5725_s18  ;;  %4565 = vrot.lane.b32.xlu0 %v8918_v9, %s5725_s18 }
 0x718   : > { %v9417_v16 = vpop.permute.xlu1 %4353  ;;  %v9419_v48 = vpop.permute.xlu0 %4351 }
 0x719   : > { %10680 = vst [vmem:[#allocation76_spill] sm:$0xff] %v9417_v16 }
 0x71a   : > { %4571 = vrot.lane.b32.xlu1 %v8944_v56, %s5725_s18  ;;  %4569 = vrot.lane.b32.xlu0 %v8930_v55, %s5725_s18 }
 0x71c   : > { %v9425_v30 = vpop.permute.xlu1 %4357  ;;  %v9427_v13 = vpop.permute.xlu0 %4355 }
 0x71d   : > { %10681 = vst [vmem:[#allocation68_spill] sm:$0xff] %v9425_v30  ;;  %v4214_v30 = vadd.f32 %v9108_v62, %v9026_v35 }
 0x71e   : > { %4575 = vrot.lane.b32.xlu1 %v8956_v26, %s5725_s18  ;;  %4573 = vrot.lane.b32.xlu0 %v8942_v54, %s5725_s18 }
 0x720   : > { %v9433_v9 = vpop.permute.xlu1 %4361  ;;  %v9435_v28 = vpop.permute.xlu0 %4359 }
 0x721   : > { %10682 = vst [vmem:[#allocation121_spill] sm:$0xff] %v9433_v9 }
 0x722   : > { %4579 = vrot.lane.b32.xlu1 %v8968_v57, %s5725_s18  ;;  %4577 = vrot.lane.b32.xlu0 %v8954_v10, %s5725_s18  ;;  %v10685_v57 = vmov 0.0   ;;  %v316_v10 = vld [vmem:[%s5825_s9 + $0x1c0] sm:$0xff] }
 0x723   : > { %5564 = vmatprep.mubr.msk.f32.mxu1 %vm5722_vm0, %v10685_v57 }
 0x724   : > { %v9441_v55 = vpop.permute.xlu1 %4365  ;;  %v9443_v56 = vpop.permute.xlu0 %4363  ;;  %5565 = vmatmul.mubr.msk.f32.gmra.mrb[54].mxu1 %vm318_vm2, %v316_v10 }
 0x725   : > { %10683 = vst [vmem:[#allocation43_spill] sm:$0xff] %v9441_v55 }
 0x726   : > { %4583 = vrot.lane.b32.xlu1 %v8980_v38, %s5725_s18  ;;  %4581 = vrot.lane.b32.xlu0 %v8966_v0, %s5725_s18 }
 0x728   : > { %v9451_v54 = vpop.permute.xlu1 %4369  ;;  %v9453_v26 = vpop.permute.xlu0 %4367 }
 0x729   : > { %10684 = vst [vmem:[#allocation77_spill] sm:$0xff] %v9451_v54 }
 0x72a   : > { %4587 = vrot.lane.b32.xlu1 %v8992_v33, %s5725_s18  ;;  %4585 = vrot.lane.b32.xlu0 %v8978_v34, %s5725_s18  ;;  %v4499_v33 = vld [vmem:[#allocation2 + $0x19a] sm:$0xff] }
 0x72c   : > { %v9463_v38 = vpop.permute.xlu1 %4373  ;;  %v9465_v0 = vpop.permute.xlu0 %4371 }
 0x72d   : > { %10686 = vst [vmem:[#allocation29_spill] sm:$0xff] %v9463_v38 }
 0x72e   : > { %4591 = vrot.lane.b32.xlu1 %v9004_v37, %s5725_s18  ;;  %4589 = vrot.lane.b32.xlu0 %v8990_v58, %s5725_s18 }
 0x730   : > { %v9471_v31 = vpop.permute.xlu1 %4377  ;;  %v9473_v57 = vpop.permute.xlu0 %4375 }
 0x731   : > { %10687 = vst [vmem:[#allocation110_spill] sm:$0xff] %v9471_v31 }
 0x732   : > { %4595 = vrot.lane.b32.xlu1 %v4499_v33, %s5725_s18  ;;  %4593 = vrot.lane.b32.xlu0 %v9002_v18, %s5725_s18 }
 0x734   : > { %v9478_v34 = vpop.permute.xlu1 %4381  ;;  %v9480_v10 = vpop.permute.xlu0 %4379 }
 0x735   : > { %10688 = vst [vmem:[#allocation62_spill] sm:$0xff] %v9478_v34 }
 0x736   : > { %4599 = vrot.lane.b32.xlu1 %v4501_v1, %s5725_s18  ;;  %4597 = vrot.lane.b32.xlu0 %v4500_v44, %s5725_s18  ;;  %v4255_v44 = vadd.f32 %v9321_v47, %v9278_v63  ;;  %v4457_v63 = vadd.f32 %v9355_v59, %v4214_v30  ;;  %v10694_v30 = vld [vmem:[#allocation52_spill] sm:$0xff] }
 0x738   : > { %v9484_v58 = vpop.permute.xlu1 %4385  ;;  %v9486_v37 = vpop.permute.xlu0 %4383 }
 0x739   : > { %10689 = vst [vmem:[#allocation38_spill] sm:$0xff] %v9484_v58 }
 0x73a   : > { %4697 = vrot.lane.b32.xlu0 %v5663_v42, %s5730_s26 }
 0x73c   : > { %v9488_v33 = vpop.permute.xlu1 %4389  ;;  %v9490_v18 = vpop.permute.xlu0 %4387 }
 0x73d   : > { %10690 = vst [vmem:[#allocation122_spill] sm:$0xff] %v9488_v33 }
 0x740   : > { %v9492_v34 = vpop.permute.xlu1 %4393  ;;  %v9494_v31 = vpop.permute.xlu0 %4391 }
 0x741   : > { %10691 = vst [vmem:[#allocation101_spill] sm:$0xff] %v9492_v34  ;;  %v4212_v34 = vadd.f32 %v9096_v3, %v9014_v17  ;;  %v4218_v17 = vadd.f32 %v9132_v24, %v9050_v5 }
 0x743   : > { %v4455_v9 = vadd.f32 %v9347_v29, %v4212_v34  ;;  %v4461_v35 = vadd.f32 %v9371_v15, %v4218_v17  ;;  %v4220_v29 = vadd.f32 %v9144_v4, %v9062_v6 }
 0x744   : > { %v9496_v38 = vpop.permute.xlu1 %4397  ;;  %v9498_v1 = vpop.permute.xlu0 %4395 }
 0x745   : > { %10692 = vst [vmem:[#allocation113_spill] sm:$0xff] %v9496_v38 }
 0x748   : > { %v4402_v58 = vpop.permute.xlu1 %4401  ;;  %v9502_v54 = vpop.permute.xlu0 %4399 }
 0x749   : > { %v9504_v55 = vadd.f32 %v4402_v58, %v4255_v44  ;;  %v4216_v58 = vadd.f32 %v9120_v60, %v9038_v51  ;;  %v4463_v51 = vadd.f32 %v9379_v43, %v4220_v29  ;;  %v10701_v29 = vld [vmem:[#allocation80_spill] sm:$0xff] }
 0x74b   : > { %10693 = vst [vmem:[#allocation63_spill] sm:$0xff] %v9504_v55  ;;  %v4459_v55 = vadd.f32 %v9363_v22, %v4216_v58 }
 0x74c   : > { %v9506_v42 = vpop.permute.xlu0 %4505 }
 0x750   : > { %v9508_v33 = vpop.permute.xlu0 %4509 }
 0x754   : > { %v4514_v38 = vpop.permute.xlu0 %4513 }
 0x755   : > { %v9515_v16 = vadd.f32 %v4514_v38, %v4455_v9  ;;  %v10695_v9 = vld [vmem:[#allocation18_spill] sm:$0xff] }
 0x756   : > { %v4222_v22 = vadd.f32 %v10695_v9, %v10694_v30  ;;  %v10702_v9 = vld [vmem:[#allocation104_spill] sm:$0xff] }
 0x758   : > { %v4518_v47 = vpop.permute.xlu0 %4517  ;;  %v4465_v5 = vadd.f32 %v9387_v41, %v4222_v22  ;;  %v10703_v22 = vld [vmem:[#allocation60_spill] sm:$0xff] }
 0x759   : > { %v9520_v44 = vadd.f32 %v4518_v47, %v4457_v63  ;;  %v10698_v63 = vld [vmem:[#allocation55_spill] sm:$0xff]  ;;  %v10699_v47 = vld [vmem:[#allocation73_spill] sm:$0xff] }
 0x75a   : > { %v4226_v43 = vadd.f32 %v10699_v47, %v10698_v63 }
 0x75c   : > { %v4522_v20 = vpop.permute.xlu0 %4521  ;;  %v4469_v17 = vadd.f32 %v9403_v40, %v4226_v43  ;;  %v10707_v43 = vld [vmem:[#allocation84_spill] sm:$0xff] }
 0x75d   : > { %v9525_v3 = vadd.f32 %v4522_v20, %v4459_v55  ;;  %v10696_v20 = vld [vmem:[#allocation51_spill] sm:$0xff] }
 0x75e   : > { %v10697_v55 = vld [vmem:[#allocation27_spill] sm:$0xff] }
 0x75f   : > { %v4224_v15 = vadd.f32 %v10697_v55, %v10696_v20  ;;  %v10704_v55 = vld [vmem:[#allocation21_spill] sm:$0xff] }
 0x760   : > { %v4526_v62 = vpop.permute.xlu0 %4525 }
 0x761   : > { %v9530_v59 = vadd.f32 %v4526_v62, %v4461_v35  ;;  %v4467_v4 = vadd.f32 %v9395_v27, %v4224_v15  ;;  %v10700_v62 = vld [vmem:[#allocation12_spill] sm:$0xff]  ;;  %v4230_v27 = vadd.f32 %v10703_v22, %v10702_v9  ;;  %v10705_v15 = vld [vmem:[#allocation117_spill] sm:$0xff] }
 0x762   : > { %v4228_v41 = vadd.f32 %v10701_v29, %v10700_v62  ;;  %v4232_v40 = vadd.f32 %v10705_v15, %v10704_v55 }
 0x764   : > { %v4530_v60 = vpop.permute.xlu0 %4529  ;;  %v4475_v63 = vadd.f32 %v9427_v13, %v4232_v40  ;;  %v10710_v13 = vld [vmem:[#allocation42_spill] sm:$0xff] }
 0x765   : > { %v9535_v38 = vadd.f32 %v4530_v60, %v4463_v51  ;;  %v4471_v60 = vadd.f32 %v9411_v12, %v4228_v41  ;;  %v10706_v12 = vld [vmem:[#allocation105_spill] sm:$0xff]  ;;  %v10708_v41 = vld [vmem:[#allocation59_spill] sm:$0xff] }
 0x768   : > { %v4534_v24 = vpop.permute.xlu0 %4533 }
 0x769   : > { %v9540_v34 = vadd.f32 %v4534_v24, %v4465_v5  ;;  %v4473_v24 = vadd.f32 %v9419_v48, %v4230_v27 }
 0x76c   : > { %v4538_v6 = vpop.permute.xlu0 %4537 }
 0x76d   : > { %v9545_v58 = vadd.f32 %v4538_v6, %v4467_v4  ;;  %v9562_v6 = vpop.permute.xlu1 %4507 }
 0x770   : > { %v4542_v35 = vpop.permute.xlu0 %4541 }
 0x771   : > { %v9550_v51 = vadd.f32 %v4542_v35, %v4469_v17  ;;  %v4234_v17 = vadd.f32 %v10707_v43, %v10706_v12  ;;  %v9570_v29 = vpop.permute.xlu1 %4511 }
 0x773   : > { %v4477_v62 = vadd.f32 %v9435_v28, %v4234_v17 }
 0x774   : > { %v4546_v30 = vpop.permute.xlu0 %4545 }
 0x775   : > { %v9555_v5 = vadd.f32 %v4546_v30, %v4471_v60  ;;  %v10709_v60 = vld [vmem:[#allocation92_spill] sm:$0xff]  ;;  %v9581_v15 = vpop.permute.xlu1 %4515 }
 0x776   : > { %v4236_v30 = vadd.f32 %v10709_v60, %v10708_v41 }
 0x778   : > { %v4550_v20 = vpop.permute.xlu0 %4549  ;;  %v4479_v22 = vadd.f32 %v9443_v56, %v4236_v30 }
 0x779   : > { %v9560_v4 = vadd.f32 %v4550_v20, %v4473_v24  ;;  %v10711_v24 = vld [vmem:[#allocation30_spill] sm:$0xff] }
 0x77a   : > { %v4238_v20 = vadd.f32 %v10711_v24, %v10710_v13 }
 0x77c   : > { %v4554_v47 = vpop.permute.xlu0 %4553  ;;  %v4481_v28 = vadd.f32 %v9453_v26, %v4238_v20  ;;  %v10715_v26 = vld [vmem:[#allocation41_spill] sm:$0xff] }
 0x77d   : > { %v9567_v35 = vadd.f32 %v4554_v47, %v4475_v63  ;;  %v10712_v63 = vld [vmem:[#allocation103_spill] sm:$0xff] }
 0x77e   : > { %v10713_v47 = vld [vmem:[#allocation99_spill] sm:$0xff] }
 0x77f   : > { %v4240_v12 = vadd.f32 %v10713_v47, %v10712_v63 }
 0x780   : > { %v4558_v48 = vpop.permute.xlu0 %4557 }
 0x781   : > { %v9574_v9 = vadd.f32 %v4558_v48, %v4477_v62  ;;  %v4483_v17 = vadd.f32 %v9465_v0, %v4240_v12  ;;  %v9589_v62 = vpop.permute.xlu1 %4519  ;;  %v10714_v48 = vld [vmem:[#allocation116_spill] sm:$0xff]  ;;  %v10717_v12 = vld [vmem:[#allocation58_spill] sm:$0xff] }
 0x782   : > { %v4242_v41 = vadd.f32 %v9276_v39, %v10714_v48 }
 0x784   : > { %v4562_v27 = vpop.permute.xlu0 %4561  ;;  %v4485_v30 = vadd.f32 %v9473_v57, %v4242_v41 }
 0x785   : > { %v9579_v55 = vadd.f32 %v4562_v27, %v4479_v22  ;;  %v4244_v27 = vadd.f32 %v9285_v8, %v10715_v26  ;;  %v9600_v24 = vpop.permute.xlu1 %4523  ;;  %v4248_v8 = vadd.f32 %v9299_v2, %v10717_v12  ;;  %v10719_v26 = vld [vmem:[#allocation83_spill] sm:$0xff]  ;;  %v10721_v12 = vld [vmem:[#allocation9_spill] sm:$0xff] }
 0x787   : > { %v4487_v0 = vadd.f32 %v9480_v10, %v4244_v27  ;;  %v10718_v10 = vld [vmem:[#allocation40_spill] sm:$0xff]  ;;  %v4252_v27 = vadd.f32 %v9315_v32, %v10719_v26  ;;  %v10724_v26 = vld [vmem:[#allocation10_spill] sm:$0xff] }
 0x788   : > { %v4566_v40 = vpop.permute.xlu0 %4565  ;;  %v4250_v41 = vadd.f32 %v9307_v19, %v10718_v10 }
 0x789   : > { %v9586_v43 = vadd.f32 %v4566_v40, %v4481_v28  ;;  %v10716_v28 = vld [vmem:[#allocation44_spill] sm:$0xff]  ;;  %v9608_v47 = vpop.permute.xlu1 %4527  ;;  %v4495_v2 = vadd.f32 %v9498_v1, %v4252_v27 }
 0x78a   : > { %v4246_v40 = vadd.f32 %v9291_v21, %v10716_v28  ;;  %v10720_v28 = vld [vmem:[#allocation106_spill] sm:$0xff] }
 0x78b   : > { %v4254_v19 = vadd.f32 %v9323_v52, %v10720_v28  ;;  %v10723_v52 = vld [vmem:[#allocation16_spill] sm:$0xff] }
 0x78c   : > { %v4570_v56 = vpop.permute.xlu0 %4569  ;;  %v4489_v39 = vadd.f32 %v9486_v37, %v4246_v40  ;;  %v4493_v37 = vadd.f32 %v9494_v31, %v4250_v41  ;;  %v4211_v27 = vadd.f32 %v10724_v26, %v10723_v52  ;;  %v10730_v26 = vld [vmem:[#allocation50_spill] sm:$0xff] }
 0x78d   : > { %v9593_v60 = vadd.f32 %v4570_v56, %v4483_v17  ;;  %v4491_v56 = vadd.f32 %v9490_v18, %v4248_v8  ;;  %v9619_v21 = vpop.permute.xlu1 %4531  ;;  %v10722_v8 = vld [vmem:[#allocation25_spill] sm:$0xff]  ;;  %v4497_v32 = vadd.f32 %v9502_v54, %v4254_v19 }
 0x790   : > { %v4574_v22 = vpop.permute.xlu0 %4573 }
 0x791   : > { %v9598_v13 = vadd.f32 %v4574_v22, %v4485_v30 }
 0x794   : > { %v4578_v20 = vpop.permute.xlu0 %4577 }
 0x795   : > { %v9605_v63 = vadd.f32 %v4578_v20, %v4487_v0  ;;  %v9627_v20 = vpop.permute.xlu1 %4535 }
 0x798   : > { %v4582_v57 = vpop.permute.xlu0 %4581 }
 0x799   : > { %v9612_v17 = vadd.f32 %v4582_v57, %v4489_v39  ;;  %v3921_v39 = vld [vmem:[#allocation2 + $0x21] sm:$0xff]  ;;  %v3920_v57 = vld [vmem:[#allocation2 + $0x19] sm:$0xff] }
 0x79a   : > { %v4209_v31 = vadd.f32 %v10721_v12, %v3921_v39  ;;  %v10726_v12 = vld [vmem:[#allocation7_spill] sm:$0xff] }
 0x79c   : > { %v4586_v48 = vpop.permute.xlu0 %4585  ;;  %v4452_v10 = vadd.f32 %v9329_v49, %v4209_v31  ;;  %v4454_v49 = vadd.f32 %v9337_v50, %v4211_v27  ;;  %v10727_v31 = vld [vmem:[#allocation11_spill] sm:$0xff]  ;;  %v10731_v27 = vld [vmem:[#allocation54_spill] sm:$0xff] }
 0x79d   : > { %v9617_v30 = vadd.f32 %v4586_v48, %v4491_v56  ;;  %v4208_v56 = vadd.f32 %v10722_v8, %v3920_v57  ;;  %v4213_v8 = vadd.f32 %v10727_v31, %v10726_v12  ;;  %v10734_v12 = vld [vmem:[#allocation33_spill] sm:$0xff]  ;;  %v10735_v31 = vld [vmem:[#allocation15_spill] sm:$0xff] }
 0x79e   : > { %v4650_v28 = vadd.f32 %v9562_v6, %v4452_v10  ;;  %v10729_v10 = vld [vmem:[#allocation20_spill] sm:$0xff] }
 0x79f   : > { %v4451_v1 = vadd.f32 %v9331_v46, %v4208_v56  ;;  %v4652_v56 = vadd.f32 %v9570_v29, %v4454_v49  ;;  %v4456_v50 = vadd.f32 %v9345_v23, %v4213_v8  ;;  %v10733_v49 = vld [vmem:[#allocation17_spill] sm:$0xff] }
 0x7a0   : > { %v4590_v22 = vpop.permute.xlu0 %4589 }
 0x7a1   : > { %v9624_v0 = vadd.f32 %v4590_v22, %v4493_v37  ;;  %v3922_v37 = vld [vmem:[#allocation2 + $0x29] sm:$0xff]  ;;  %v9640_v22 = vpop.permute.xlu1 %4539  ;;  %v4649_v39 = vadd.f32 %v9506_v42, %v4451_v1 }
 0x7a4   : > { %v4594_v18 = vpop.permute.xlu0 %4593 }
 0x7a5   : > { %v9631_v40 = vadd.f32 %v4594_v18, %v4495_v2  ;;  %v10725_v2 = vld [vmem:[#allocation35_spill] sm:$0xff]  ;;  %v4544_v42 = vpop.permute.xlu1 %4543 }
 0x7a6   : > { %v4210_v18 = vadd.f32 %v10725_v2, %v3922_v37  ;;  %v4654_v37 = vadd.f32 %v9581_v15, %v4456_v50  ;;  %v4217_v2 = vadd.f32 %v10731_v27, %v10730_v26  ;;  %v10736_v50 = vld [vmem:[#allocation49_spill] sm:$0xff]  ;;  %v10741_v26 = vld [vmem:[#allocation78_spill] sm:$0xff] }
 0x7a8   : > { %v4598_v48 = vpop.permute.xlu0 %4597  ;;  %v4453_v46 = vadd.f32 %v9339_v7, %v4210_v18  ;;  %v4460_v15 = vadd.f32 %v9361_v36, %v4217_v2 }
 0x7a9   : > { %v9638_v41 = vadd.f32 %v4598_v48, %v4497_v32  ;;  %v10728_v48 = vld [vmem:[#allocation53_spill] sm:$0xff]  ;;  %v4548_v52 = vpop.permute.xlu1 %4547 }
 0x7aa   : > { %v4651_v32 = vadd.f32 %v9508_v33, %v4453_v46  ;;  %v4215_v1 = vadd.f32 %v10729_v10, %v10728_v48  ;;  %v4658_v46 = vadd.f32 %v9600_v24, %v4460_v15  ;;  %v10738_v10 = vld [vmem:[#allocation14_spill] sm:$0xff]  ;;  %v10742_v15 = vld [vmem:[#allocation13_spill] sm:$0xff] }
 0x7ac   : > { %v9647_v54 = vpop.permute.xlu0 %4697  ;;  %v4458_v33 = vadd.f32 %v9353_v25, %v4215_v1  ;;  %v10739_v1 = vld [vmem:[#allocation23_spill] sm:$0xff] }
 0x7ad   : > { %v4701_v19 = vadd.f32 %v9647_v54, %v4650_v28  ;;  %v4700_v57 = vadd.f32 %v9647_v54, %v4649_v39  ;;  %v4703_v7 = vadd.f32 %v9647_v54, %v4652_v56  ;;  %v4702_v6 = vadd.f32 %v9647_v54, %v4651_v32  ;;  %v10732_v39 = vld [vmem:[#allocation56_spill] sm:$0xff] }
 0x7ae   : > { %v4705_v29 = vadd.f32 %v9647_v54, %v4654_v37  ;;  %v4704_v23 = vadd.f32 %v9647_v54, %v9515_v16  ;;  %v4656_v18 = vadd.f32 %v9589_v62, %v4458_v33  ;;  %v4706_v25 = vadd.f32 %v9647_v54, %v9520_v44  ;;  %v4552_v62 = vpop.permute.xlu1 %4551 }
 0x7af   : > { %4798 = vrot.lane.b32.xlu0 %v4701_v19, %s5731_s27  ;;  %4796 = vrot.lane.b32.xlu1 %v4700_v57, %s5731_s27  ;;  %v4219_v16 = vadd.f32 %v10733_v49, %v10732_v39  ;;  %v4709_v57 = vadd.f32 %v9647_v54, %v4658_v46  ;;  %v4708_v36 = vadd.f32 %v9647_v54, %v9525_v3  ;;  %v10746_v46 = vld [vmem:[#allocation91_spill] sm:$0xff] }
 0x7b0   : > { %v4707_v28 = vadd.f32 %v9647_v54, %v4656_v18  ;;  %v4221_v44 = vadd.f32 %v10735_v31, %v10734_v12  ;;  %v4720_v31 = vadd.f32 %v9647_v54, %v9555_v5 }
 0x7b1   : > { %v4462_v19 = vadd.f32 %v9369_v45, %v4219_v16  ;;  %v4710_v45 = vadd.f32 %v9647_v54, %v9530_v59  ;;  %v4225_v59 = vadd.f32 %v10739_v1, %v10738_v10  ;;  %v10745_v16 = vld [vmem:[#allocation72_spill] sm:$0xff]  ;;  %v4724_v10 = vadd.f32 %v9647_v54, %v9567_v35  ;;  %v10754_v1 = vld [vmem:[#allocation6_spill] sm:$0xff] }
 0x7b2   : > { %v4464_v24 = vadd.f32 %v9377_v61, %v4221_v44  ;;  %v4556_v32 = vpop.permute.xlu1 %4555  ;;  %v4712_v61 = vadd.f32 %v9647_v54, %v9535_v38  ;;  %v10748_v44 = vld [vmem:[#allocation31_spill] sm:$0xff] }
 0x7b3   : > { %4802 = vrot.lane.b32.xlu0 %v4703_v7, %s5731_s27  ;;  %4800 = vrot.lane.b32.xlu1 %v4702_v6, %s5731_s27  ;;  %v4660_v8 = vadd.f32 %v9608_v47, %v4462_v19  ;;  %v10737_v7 = vld [vmem:[#allocation71_spill] sm:$0xff]  ;;  %v4468_v33 = vadd.f32 %v9393_v14, %v4225_v59  ;;  %v4716_v14 = vadd.f32 %v9647_v54, %v9545_v58  ;;  %v10755_v59 = vld [vmem:[#allocation118_spill] sm:$0xff] }
 0x7b4   : > { %v4223_v3 = vadd.f32 %v10737_v7, %v10736_v50  ;;  %v4662_v6 = vadd.f32 %v9619_v21, %v4464_v24  ;;  %v4231_v19 = vadd.f32 %v10746_v46, %v10745_v16  ;;  %v4722_v50 = vadd.f32 %v9647_v54, %v9560_v4  ;;  %v10764_v16 = vld [vmem:[#allocation26_spill] sm:$0xff] }
 0x7b5   : > { %v4711_v56 = vadd.f32 %v9647_v54, %v4660_v8  ;;  %v4666_v27 = vadd.f32 %v9640_v22, %v4468_v33  ;;  %v10744_v22 = vld [vmem:[#allocation87_spill] sm:$0xff]  ;;  %v10749_v8 = vld [vmem:[#allocation64_spill] sm:$0xff] }
 0x7b6   : > { %v4466_v47 = vadd.f32 %v9385_v53, %v4223_v3  ;;  %v4713_v48 = vadd.f32 %v9647_v54, %v4662_v6  ;;  %v4560_v21 = vpop.permute.xlu1 %4559  ;;  %v4714_v53 = vadd.f32 %v9647_v54, %v9540_v34  ;;  %v4233_v24 = vadd.f32 %v10749_v8, %v10748_v44  ;;  %v10751_v3 = vld [vmem:[#allocation46_spill] sm:$0xff]  ;;  %v10752_v6 = vld [vmem:[#allocation65_spill] sm:$0xff]  ;;  %v10756_v33 = vld [vmem:[#allocation43_spill] sm:$0xff] }
 0x7b7   : > { %4806 = vrot.lane.b32.xlu0 %v4705_v29, %s5731_s27  ;;  %4804 = vrot.lane.b32.xlu1 %v4704_v23, %s5731_s27  ;;  %v10740_v23 = vld [vmem:[#allocation28_spill] sm:$0xff]  ;;  %v4717_v2 = vadd.f32 %v9647_v54, %v4666_v27  ;;  %v10768_v8 = vld [vmem:[#allocation62_spill] sm:$0xff] }
 0x7b8   : > { %v4664_v37 = vadd.f32 %v9627_v20, %v4466_v47  ;;  %v4227_v38 = vadd.f32 %v10741_v26, %v10740_v23  ;;  %v4235_v47 = vadd.f32 %v10752_v6, %v10751_v3  ;;  %v4726_v23 = vadd.f32 %v9647_v54, %v9574_v9  ;;  %v10757_v26 = vld [vmem:[#allocation61_spill] sm:$0xff]  ;;  %v10771_v3 = vld [vmem:[#allocation38_spill] sm:$0xff] }
 0x7ba   : > { %v4715_v29 = vadd.f32 %v9647_v54, %v4664_v37  ;;  %v4470_v20 = vadd.f32 %v9401_v11, %v4227_v38  ;;  %v4564_v18 = vpop.permute.xlu1 %4563  ;;  %v4718_v11 = vadd.f32 %v9647_v54, %v9550_v51  ;;  %v4237_v37 = vadd.f32 %v10755_v59, %v10754_v1  ;;  %v10758_v38 = vld [vmem:[#allocation67_spill] sm:$0xff]  ;;  %v10774_v1 = vld [vmem:[#allocation122_spill] sm:$0xff] }
 0x7bb   : > { %4810 = vrot.lane.b32.xlu0 %v4707_v28, %s5731_s27  ;;  %4808 = vrot.lane.b32.xlu1 %v4706_v25, %s5731_s27  ;;  %v10743_v28 = vld [vmem:[#allocation39_spill] sm:$0xff]  ;;  %v4239_v27 = vadd.f32 %v10758_v38, %v10757_v26  ;;  %v10777_v26 = vld [vmem:[#allocation101_spill] sm:$0xff] }
 0x7bc   : > { %v4229_v34 = vadd.f32 %v10743_v28, %v10742_v15  ;;  %v4668_v25 = vadd.f32 %v4544_v42, %v4470_v20  ;;  %v10760_v28 = vld [vmem:[#allocation93_spill] sm:$0xff] }
 0x7be   : > { %v4472_v39 = vadd.f32 %v10744_v22, %v4229_v34  ;;  %v4719_v49 = vadd.f32 %v9647_v54, %v4668_v25  ;;  %v4568_v42 = vpop.permute.xlu1 %4567  ;;  %v10761_v34 = vld [vmem:[#allocation95_spill] sm:$0xff] }
 0x7bf   : > { %4814 = vrot.lane.b32.xlu0 %v4709_v57, %s5731_s27  ;;  %4812 = vrot.lane.b32.xlu1 %v4708_v36, %s5731_s27  ;;  %v10747_v57 = vld [vmem:[#allocation76_spill] sm:$0xff]  ;;  %v4241_v25 = vadd.f32 %v10761_v34, %v10760_v28  ;;  %v10780_v34 = vld [vmem:[#allocation113_spill] sm:$0xff] }
 0x7c0   : > { %v4670_v58 = vadd.f32 %v4548_v52, %v4472_v39  ;;  %v4474_v36 = vadd.f32 %v10747_v57, %v4231_v19  ;;  %v10750_v52 = vld [vmem:[#allocation68_spill] sm:$0xff] }
 0x7c2   : > { %v4721_v12 = vadd.f32 %v9647_v54, %v4670_v58  ;;  %v4672_v51 = vadd.f32 %v4552_v62, %v4474_v36  ;;  %v4572_v7 = vpop.permute.xlu1 %4571  ;;  %v10753_v62 = vld [vmem:[#allocation121_spill] sm:$0xff]  ;;  %v10765_v58 = vld [vmem:[#allocation110_spill] sm:$0xff]  ;;  %v4732_v36 = vadd.f32 %v9647_v54, %v9593_v60 }
 0x7c3   : > { %4818 = vrot.lane.b32.xlu0 %v4711_v56, %s5731_s27  ;;  %4816 = vrot.lane.b32.xlu1 %v4710_v45, %s5731_s27  ;;  %v4476_v56 = vadd.f32 %v10750_v52, %v4233_v24  ;;  %v4734_v52 = vadd.f32 %v9647_v54, %v9598_v13 }
 0x7c4   : > { %v4723_v45 = vadd.f32 %v9647_v54, %v4672_v51 }
 0x7c5   : > { %v4674_v5 = vadd.f32 %v4556_v32, %v4476_v56 }
 0x7c6   : > { %v4576_v32 = vpop.permute.xlu1 %4575 }
 0x7c7   : > { %4822 = vrot.lane.b32.xlu0 %v4713_v48, %s5731_s27  ;;  %4820 = vrot.lane.b32.xlu1 %v4712_v61, %s5731_s27  ;;  %v4478_v48 = vadd.f32 %v10753_v62, %v4235_v47  ;;  %v4725_v61 = vadd.f32 %v9647_v54, %v4674_v5  ;;  %v4736_v5 = vadd.f32 %v9647_v54, %v9605_v63  ;;  %v10772_v62 = vld [vmem:[#allocation36_spill] sm:$0xff] }
 0x7c9   : > { %v4676_v4 = vadd.f32 %v4560_v21, %v4478_v48  ;;  %v10759_v21 = vld [vmem:[#allocation77_spill] sm:$0xff]  ;;  %v10773_v48 = vld [vmem:[#allocation96_spill] sm:$0xff] }
 0x7ca   : > { %v4482_v20 = vadd.f32 %v10759_v21, %v4239_v27  ;;  %v4580_v15 = vpop.permute.xlu1 %4579 }
 0x7cb   : > { %4826 = vrot.lane.b32.xlu0 %v4715_v29, %s5731_s27  ;;  %4824 = vrot.lane.b32.xlu1 %v4714_v53, %s5731_s27  ;;  %v4480_v29 = vadd.f32 %v10756_v33, %v4237_v37  ;;  %v4727_v53 = vadd.f32 %v9647_v54, %v4676_v4  ;;  %v4738_v4 = vadd.f32 %v9647_v54, %v9612_v17  ;;  %v10775_v33 = vld [vmem:[#allocation119_spill] sm:$0xff]  ;;  %v10778_v17 = vld [vmem:[#allocation109_spill] sm:$0xff] }
 0x7cc   : > { %v4680_v9 = vadd.f32 %v4568_v42, %v4482_v20 }
 0x7cd   : > { %v4678_v35 = vadd.f32 %v4564_v18, %v4480_v29  ;;  %v10762_v18 = vld [vmem:[#allocation29_spill] sm:$0xff]  ;;  %v10776_v29 = vld [vmem:[#allocation90_spill] sm:$0xff] }
 0x7ce   : > { %v4484_v22 = vadd.f32 %v10762_v18, %v4241_v25  ;;  %v4731_v39 = vadd.f32 %v9647_v54, %v4680_v9  ;;  %v4584_v19 = vpop.permute.xlu1 %4583  ;;  %v4251_v63 = vadd.f32 %v10776_v29, %v10775_v33  ;;  %v4742_v18 = vadd.f32 %v9647_v54, %v9624_v0 }
 0x7cf   : > { %4830 = vrot.lane.b32.xlu0 %v4717_v2, %s5731_s27  ;;  %4828 = vrot.lane.b32.xlu1 %v4716_v14, %s5731_s27  ;;  %v4729_v2 = vadd.f32 %v9647_v54, %v4678_v35  ;;  %v4728_v14 = vadd.f32 %v9647_v54, %v9579_v55  ;;  %v4740_v35 = vadd.f32 %v9647_v54, %v9617_v30 }
 0x7d0   : > { %v4682_v55 = vadd.f32 %v4572_v7, %v4484_v22  ;;  %v4494_v38 = vadd.f32 %v10777_v26, %v4251_v63 }
 0x7d2   : > { %v4733_v57 = vadd.f32 %v9647_v54, %v4682_v55  ;;  %v4588_v56 = vpop.permute.xlu1 %4587 }
 0x7d3   : > { %4834 = vrot.lane.b32.xlu0 %v4719_v49, %s5731_s27  ;;  %4832 = vrot.lane.b32.xlu1 %v4718_v11, %s5731_s27  ;;  %v4730_v49 = vadd.f32 %v9647_v54, %v9586_v43  ;;  %v10763_v11 = vld [vmem:[#allocation57_spill] sm:$0xff] }
 0x7d4   : > { %v4243_v46 = vadd.f32 %v10764_v16, %v10763_v11  ;;  %v10781_v11 = vld [vmem:[#allocation63_spill] sm:$0xff] }
 0x7d6   : > { %v4486_v42 = vadd.f32 %v10765_v58, %v4243_v46  ;;  %v4746_v46 = vadd.f32 %v9647_v54, %v9638_v41 }
 0x7d7   : > { %4838 = vrot.lane.b32.xlu0 %v4721_v12, %s5731_s27  ;;  %4836 = vrot.lane.b32.xlu1 %v4720_v31, %s5731_s27  ;;  %v10766_v12 = vld [vmem:[#allocation112_spill] sm:$0xff]  ;;  %v10767_v31 = vld [vmem:[#allocation34_spill] sm:$0xff] }
 0x7d8   : > { %v4245_v44 = vadd.f32 %v10767_v31, %v10766_v12  ;;  %v4684_v43 = vadd.f32 %v4576_v32, %v4486_v42  ;;  %v835_v32 = vpop.f32.mrb[52].mxu1 }
 0x7da   : > { %v4488_v24 = vadd.f32 %v10768_v8, %v4245_v44  ;;  %v4735_v51 = vadd.f32 %v9647_v54, %v4684_v43 }
 0x7db   : > { %4842 = vrot.lane.b32.xlu0 %v4723_v45, %s5731_s27  ;;  %4840 = vrot.lane.b32.xlu1 %v4722_v50, %s5731_s27  ;;  %v10769_v45 = vld [vmem:[#allocation108_spill] sm:$0xff] }
 0x7dc   : > { %v10770_v50 = vld [vmem:[#allocation120_spill] sm:$0xff]  ;;  %v4686_v60 = vadd.f32 %v4580_v15, %v4488_v24 }
 0x7dd   : > { %v4247_v7 = vadd.f32 %v10770_v50, %v10769_v45 }
 0x7de   : > { %v4737_v47 = vadd.f32 %v9647_v54, %v4686_v60 }
 0x7df   : > { %4846 = vrot.lane.b32.xlu0 %v4725_v61, %s5731_s27  ;;  %4844 = vrot.lane.b32.xlu1 %v4724_v10, %s5731_s27  ;;  %v4490_v6 = vadd.f32 %v10771_v3, %v4247_v7  ;;  %v4249_v61 = vadd.f32 %v10773_v48, %v10772_v62  ;;  %v4592_v10 = vpop.permute.xlu1 %4591 }
 0x7e0   : > { %v4692_v15 = vadd.f32 %v4592_v10, %v4494_v38 }
 0x7e1   : > { %v4688_v13 = vadd.f32 %v4584_v19, %v4490_v6  ;;  %v4492_v59 = vadd.f32 %v10774_v1, %v4249_v61 }
 0x7e2   : > { %v4743_v9 = vadd.f32 %v9647_v54, %v4692_v15 }
 0x7e3   : > { %4850 = vrot.lane.b32.xlu0 %v4727_v53, %s5731_s27  ;;  %4848 = vrot.lane.b32.xlu1 %v4726_v23, %s5731_s27  ;;  %v4739_v37 = vadd.f32 %v9647_v54, %v4688_v13  ;;  %v4690_v53 = vadd.f32 %v4588_v56, %v4492_v59  ;;  %v5563_v23 = vpop.f32.mrb[53].mxu1  ;;  %v4596_v21 = vpop.permute.xlu1 %4595 }
 0x7e5   : > { %v4741_v27 = vadd.f32 %v9647_v54, %v4690_v53 }
 0x7e7   : > { %4854 = vrot.lane.b32.xlu0 %v4729_v2, %s5731_s27  ;;  %4852 = vrot.lane.b32.xlu1 %v4728_v14, %s5731_s27  ;;  %v10779_v2 = vld [vmem:[#allocation75_spill] sm:$0xff]  ;;  %v4600_v22 = vpop.permute.xlu1 %4599 }
 0x7e8   : > { %v4253_v14 = vadd.f32 %v10779_v2, %v10778_v17  ;;  %v4696_v16 = vadd.f32 %v4600_v22, %v10781_v11 }
 0x7ea   : > { %v4496_v25 = vadd.f32 %v10780_v34, %v4253_v14  ;;  %v4747_v0 = vadd.f32 %v9647_v54, %v4696_v16 }
 0x7eb   : > { %4858 = vrot.lane.b32.xlu0 %v4731_v39, %s5731_s27  ;;  %4856 = vrot.lane.b32.xlu1 %v4730_v49, %s5731_s27  ;;  %v4744_v49 = vadd.f32 %v9647_v54, %v9631_v40 }
 0x7ec   : > { %v4694_v30 = vadd.f32 %v4596_v21, %v4496_v25 }
 0x7ee   : > { %v4745_v39 = vadd.f32 %v9647_v54, %v4694_v30 }
 0x7ef   : > { %4862 = vrot.lane.b32.xlu0 %v4733_v57, %s5731_s27  ;;  %4860 = vrot.lane.b32.xlu1 %v4732_v36, %s5731_s27 }
 0x7f3   : > { %4866 = vrot.lane.b32.xlu0 %v4735_v51, %s5731_s27  ;;  %4864 = vrot.lane.b32.xlu1 %v4734_v52, %s5731_s27 }
 0x7f7   : > { %4870 = vrot.lane.b32.xlu0 %v4737_v47, %s5731_s27  ;;  %4868 = vrot.lane.b32.xlu1 %v4736_v5, %s5731_s27  ;;  %v840_v20 = vpop.f32.mrb[54].mxu1 }
 0x7f8   : > { %v5566_v28 = vpop.f32.mrb[55].mxu1 }
 0x7fb   : > { %4874 = vrot.lane.b32.xlu0 %v4739_v37, %s5731_s27  ;;  %4872 = vrot.lane.b32.xlu1 %v4738_v4, %s5731_s27 }
 0x7ff   : > { %4878 = vrot.lane.b32.xlu0 %v4741_v27, %s5731_s27  ;;  %4876 = vrot.lane.b32.xlu1 %v4740_v35, %s5731_s27 }
 0x803   : > { %4882 = vrot.lane.b32.xlu0 %v4743_v9, %s5731_s27  ;;  %4880 = vrot.lane.b32.xlu1 %v4742_v18, %s5731_s27 }
 0x807   : > { %4886 = vrot.lane.b32.xlu0 %v4745_v39, %s5731_s27  ;;  %4884 = vrot.lane.b32.xlu1 %v4744_v49, %s5731_s27 }
 0x80b   : > { %4890 = vrot.lane.b32.xlu0 %v4747_v0, %s5731_s27  ;;  %4888 = vrot.lane.b32.xlu1 %v4746_v46, %s5731_s27 }
 0x821   : > { %v4799_v40 = vpop.permute.xlu0 %4798  ;;  %v4797_v55 = vpop.permute.xlu1 %4796 }
 0x822   : > { %5287 = vst.msk [vmem:[%s6276_s22 + $0x488] sm:$0xff] %vm318_vm2, %v4799_v40  ;;  %5286 = vst.msk [vmem:[%s6276_s22 + $0x480] sm:$0xff] %vm318_vm2, %v4797_v55 }
 0x825   : > { %v4803_v19 = vpop.permute.xlu0 %4802  ;;  %v4801_v58 = vpop.permute.xlu1 %4800 }
 0x826   : > { %5289 = vst.msk [vmem:[%s6276_s22 + $0x498] sm:$0xff] %vm318_vm2, %v4803_v19  ;;  %5288 = vst.msk [vmem:[%s6276_s22 + $0x490] sm:$0xff] %vm318_vm2, %v4801_v58 }
 0x829   : > { %v4807_v41 = vpop.permute.xlu0 %4806  ;;  %v4805_v54 = vpop.permute.xlu1 %4804 }
 0x82a   : > { %5291 = vst.msk [vmem:[%s6276_s22 + $0x4a8] sm:$0xff] %vm318_vm2, %v4807_v41  ;;  %5290 = vst.msk [vmem:[%s6276_s22 + $0x4a0] sm:$0xff] %vm318_vm2, %v4805_v54 }
 0x82d   : > { %v4811_v42 = vpop.permute.xlu0 %4810  ;;  %v4809_v57 = vpop.permute.xlu1 %4808 }
 0x82e   : > { %5293 = vst.msk [vmem:[%s6276_s22 + $0x4b8] sm:$0xff] %vm318_vm2, %v4811_v42  ;;  %5292 = vst.msk [vmem:[%s6276_s22 + $0x4b0] sm:$0xff] %vm318_vm2, %v4809_v57 }
 0x831   : > { %v4815_v36 = vpop.permute.xlu0 %4814  ;;  %v4813_v12 = vpop.permute.xlu1 %4812 }
 0x832   : > { %5295 = vst.msk [vmem:[%s6276_s22 + $0x4c8] sm:$0xff] %vm318_vm2, %v4815_v36  ;;  %5294 = vst.msk [vmem:[%s6276_s22 + $0x4c0] sm:$0xff] %vm318_vm2, %v4813_v12 }
 0x835   : > { %v4819_v31 = vpop.permute.xlu0 %4818  ;;  %v4817_v44 = vpop.permute.xlu1 %4816 }
 0x836   : > { %5297 = vst.msk [vmem:[%s6276_s22 + $0x4d8] sm:$0xff] %vm318_vm2, %v4819_v31  ;;  %5296 = vst.msk [vmem:[%s6276_s22 + $0x4d0] sm:$0xff] %vm318_vm2, %v4817_v44 }
 0x839   : > { %v4823_v43 = vpop.permute.xlu0 %4822  ;;  %v4821_v8 = vpop.permute.xlu1 %4820 }
 0x83a   : > { %5299 = vst.msk [vmem:[%s6276_s22 + $0x4e8] sm:$0xff] %vm318_vm2, %v4823_v43  ;;  %5298 = vst.msk [vmem:[%s6276_s22 + $0x4e0] sm:$0xff] %vm318_vm2, %v4821_v8 }
 0x83d   : > { %v4827_v24 = vpop.permute.xlu0 %4826  ;;  %v4825_v51 = vpop.permute.xlu1 %4824 }
 0x83e   : > { %5301 = vst.msk [vmem:[%s6276_s22 + $0x4f8] sm:$0xff] %vm318_vm2, %v4827_v24  ;;  %5300 = vst.msk [vmem:[%s6276_s22 + $0x4f0] sm:$0xff] %vm318_vm2, %v4825_v51 }
 0x841   : > { %v4831_v52 = vpop.permute.xlu0 %4830  ;;  %v4829_v56 = vpop.permute.xlu1 %4828 }
 0x842   : > { %5303 = vst.msk [vmem:[%s6276_s22 + $0x508] sm:$0xff] %vm318_vm2, %v4831_v52  ;;  %5302 = vst.msk [vmem:[%s6276_s22 + $0x500] sm:$0xff] %vm318_vm2, %v4829_v56 }
 0x845   : > { %v4835_v45 = vpop.permute.xlu0 %4834  ;;  %v4833_v50 = vpop.permute.xlu1 %4832 }
 0x846   : > { %5305 = vst.msk [vmem:[%s6276_s22 + $0x518] sm:$0xff] %vm318_vm2, %v4835_v45  ;;  %5304 = vst.msk [vmem:[%s6276_s22 + $0x510] sm:$0xff] %vm318_vm2, %v4833_v50 }
 0x849   : > { %v4839_v7 = vpop.permute.xlu0 %4838  ;;  %v4837_v60 = vpop.permute.xlu1 %4836 }
 0x84a   : > { %5307 = vst.msk [vmem:[%s6276_s22 + $0x528] sm:$0xff] %vm318_vm2, %v4839_v7  ;;  %5306 = vst.msk [vmem:[%s6276_s22 + $0x520] sm:$0xff] %vm318_vm2, %v4837_v60 }
 0x84d   : > { %v4843_v3 = vpop.permute.xlu0 %4842  ;;  %v4841_v6 = vpop.permute.xlu1 %4840 }
 0x84e   : > { %5309 = vst.msk [vmem:[%s6276_s22 + $0x538] sm:$0xff] %vm318_vm2, %v4843_v3  ;;  %5308 = vst.msk [vmem:[%s6276_s22 + $0x530] sm:$0xff] %vm318_vm2, %v4841_v6 }
 0x851   : > { %v4847_v47 = vpop.permute.xlu0 %4846  ;;  %v4845_v5 = vpop.permute.xlu1 %4844 }
 0x852   : > { %5311 = vst.msk [vmem:[%s6276_s22 + $0x548] sm:$0xff] %vm318_vm2, %v4847_v47  ;;  %5310 = vst.msk [vmem:[%s6276_s22 + $0x540] sm:$0xff] %vm318_vm2, %v4845_v5 }
 0x855   : > { %v4851_v62 = vpop.permute.xlu0 %4850  ;;  %v4849_v48 = vpop.permute.xlu1 %4848 }
 0x856   : > { %5313 = vst.msk [vmem:[%s6276_s22 + $0x558] sm:$0xff] %vm318_vm2, %v4851_v62  ;;  %5312 = vst.msk [vmem:[%s6276_s22 + $0x550] sm:$0xff] %vm318_vm2, %v4849_v48 }
 0x859   : > { %v4855_v61 = vpop.permute.xlu0 %4854  ;;  %v4853_v13 = vpop.permute.xlu1 %4852 }
 0x85a   : > { %5315 = vst.msk [vmem:[%s6276_s22 + $0x568] sm:$0xff] %vm318_vm2, %v4855_v61  ;;  %5314 = vst.msk [vmem:[%s6276_s22 + $0x560] sm:$0xff] %vm318_vm2, %v4853_v13 }
 0x85d   : > { %v4859_v10 = vpop.permute.xlu0 %4858  ;;  %v4857_v1 = vpop.permute.xlu1 %4856 }
 0x85e   : > { %5317 = vst.msk [vmem:[%s6276_s22 + $0x578] sm:$0xff] %vm318_vm2, %v4859_v10  ;;  %5316 = vst.msk [vmem:[%s6276_s22 + $0x570] sm:$0xff] %vm318_vm2, %v4857_v1 }
 0x861   : > { %v4863_v59 = vpop.permute.xlu0 %4862  ;;  %v4861_v37 = vpop.permute.xlu1 %4860 }
 0x862   : > { %5319 = vst.msk [vmem:[%s6276_s22 + $0x588] sm:$0xff] %vm318_vm2, %v4863_v59  ;;  %5318 = vst.msk [vmem:[%s6276_s22 + $0x580] sm:$0xff] %vm318_vm2, %v4861_v37 }
 0x865   : > { %v4867_v4 = vpop.permute.xlu0 %4866  ;;  %v4865_v32 = vpop.permute.xlu1 %4864 }
 0x866   : > { %5321 = vst.msk [vmem:[%s6276_s22 + $0x598] sm:$0xff] %vm318_vm2, %v4867_v4  ;;  %5320 = vst.msk [vmem:[%s6276_s22 + $0x590] sm:$0xff] %vm318_vm2, %v4865_v32 }
 0x869   : > { %v4871_v33 = vpop.permute.xlu0 %4870  ;;  %v4869_v29 = vpop.permute.xlu1 %4868 }
 0x86a   : > { %5323 = vst.msk [vmem:[%s6276_s22 + $0x5a8] sm:$0xff] %vm318_vm2, %v4871_v33  ;;  %5322 = vst.msk [vmem:[%s6276_s22 + $0x5a0] sm:$0xff] %vm318_vm2, %v4869_v29 }
 0x86d   : > { %v4875_v63 = vpop.permute.xlu0 %4874  ;;  %v4873_v53 = vpop.permute.xlu1 %4872 }
 0x86e   : > { %5325 = vst.msk [vmem:[%s6276_s22 + $0x5b8] sm:$0xff] %vm318_vm2, %v4875_v63  ;;  %5324 = vst.msk [vmem:[%s6276_s22 + $0x5b0] sm:$0xff] %vm318_vm2, %v4873_v53 }
 0x871   : > { %v4879_v23 = vpop.permute.xlu0 %4878  ;;  %v4877_v26 = vpop.permute.xlu1 %4876 }
 0x872   : > { %5327 = vst.msk [vmem:[%s6276_s22 + $0x5c8] sm:$0xff] %vm318_vm2, %v4879_v23  ;;  %5326 = vst.msk [vmem:[%s6276_s22 + $0x5c0] sm:$0xff] %vm318_vm2, %v4877_v26 }
 0x875   : > { %v4883_v38 = vpop.permute.xlu0 %4882  ;;  %v4881_v27 = vpop.permute.xlu1 %4880 }
 0x876   : > { %5329 = vst.msk [vmem:[%s6276_s22 + $0x5d8] sm:$0xff] %vm318_vm2, %v4883_v38  ;;  %5328 = vst.msk [vmem:[%s6276_s22 + $0x5d0] sm:$0xff] %vm318_vm2, %v4881_v27 }
 0x879   : > { %v4887_v35 = vpop.permute.xlu0 %4886  ;;  %v4885_v21 = vpop.permute.xlu1 %4884 }
 0x87a   : > { %5331 = vst.msk [vmem:[%s6276_s22 + $0x5e8] sm:$0xff] %vm318_vm2, %v4887_v35  ;;  %5330 = vst.msk [vmem:[%s6276_s22 + $0x5e0] sm:$0xff] %vm318_vm2, %v4885_v21 }
 0x87d   : > { %v4891_v20 = vpop.permute.xlu0 %4890  ;;  %v4889_v17 = vpop.permute.xlu1 %4888 }
 0x87e   : > { %5333 = vst.msk [vmem:[%s6276_s22 + $0x5f8] sm:$0xff] %vm318_vm2, %v4891_v20  ;;  %5332 = vst.msk [vmem:[%s6276_s22 + $0x5f0] sm:$0xff] %vm318_vm2, %v4889_v17 }
 0x87f PF: > { %s14_s14 = sadd.s32 1, %s5718_s14   ;;  %s10782_s12 = smov %s5714_s13 }
 0x880   : > { %p11_p3 = scmp.ge.s32.totalorder %s14_s14, 4   ;;  %s10783_s13 = smov %s10785_s16 }
 0x882   :  { %13 = sbr.rel (!%p11_p3) target bundleno = 2 (0x2), region = 74 }
 0x889   :  { %5025 = vsyncpa [#allocation4], 1 }
 0x88a   :  { %5027 = vsyncpa [#allocation4 + $0x1], 1 }

</bundles_post_ra>
